<compile_context>
chip_gen: v5e
topology: v5e:2x2
jax: 0.10.0
libtpu: 0.0.40
codegen_flags: <defaults>
</compile_context>

<pallas_src>
import functools
import math

import jax
import jax.numpy as jnp
from jax.experimental import pallas as pl
from jax.experimental.pallas import tpu as pltpu

# ---------------- model constants (mirrors the PyTorch __init__) -------------
V_TH = 1.0                      # ParametricLIFNode default v_threshold
V_RESET = 0.0                   # v_reset
INIT_TAU = 2.0                  # init_tau -> w = -log(tau-1) = 0, sigmoid(w) = 0.5
PLIF_DECAY = 1.0 / INIT_TAU     # = 0.5
BN_EPS = 1e-3
BN_SCALE = 1.0 / math.sqrt(1.0 + BN_EPS)   # eval BN: running_mean=0, var=1, gamma=1, beta=0
CONV_SP = [(2, 1), (2, 1), (2, 1), (2, 0), (1, 1)]   # (stride, padding) per conv block


def _round_up(x, m):
    return ((x + m - 1) // m) * m


def _cdiv(a, b):
    return (a + b - 1) // b


def _pick_tm(m):
    """Row-tile size: big tiles to amortize per-step overhead; >=2 blocks when the
    layer is large enough so the 'parallel' axis can shard across TensorCores."""
    if m <= 128:
        return m                                # one block; block dim == full array dim
    if m <= 1024:
        return _round_up((m + 1) // 2, 8)       # two parallel blocks
    return 512


# ------------------------------ fused Pallas kernel ----------------------------
def _gemm_plif_kernel(a_ref, w_ref, o_ref, v_ref, *, n_out, decay, v_th):
    # a_ref: (1, tm, Kp)  bf16 input rows (im2col patches / features) for time step t
    # w_ref: (Kp, Np)     bf16 weight, BN folded, zero padded to MXU-friendly shape
    # o_ref: (1, tm, n_out)    spike output for time step t
    # v_ref: (tm, n_out)  f32  membrane potential; persists across the T grid axis
    t = pl.program_id(1)

    @pl.when(t == 0)
    def _():
        v_ref[...] = jnp.zeros_like(v_ref)      # reset_net(): v starts at v_reset = 0

    y = jnp.dot(a_ref[0], w_ref[...], preferred_element_type=jnp.float32)[:, :n_out]

    # ParametricLIF, decay_input=True, init_tau=2 -> sigmoid(w) = 0.5, hard reset to 0:
    #   v <- v + (x - v) * sigmoid(w) ; s = heaviside(v - v_th) ; v <- (1 - s) * v
    v = v_ref[...] + (y - v_ref[...]) * decay
    spk = (v >= v_th).astype(jnp.float32)
    o_ref[0] = spk.astype(o_ref.dtype)
    v_ref[...] = v * (1.0 - spk)


def fused_matmul_plif(a, w, *, out_dtype=jnp.bfloat16, decay=PLIF_DECAY, v_th=V_TH):
    """Fused (a @ w) + multi-step PLIF.

    a: [T, M, Ka]  (Ka may already contain zero-padded K columns)
    w: [K, Cout]   with K <= Ka (BN scale already folded in)
    returns binary spikes [T, M, Cout] in out_dtype.
    """
    T, M, Ka = a.shape
    K, Cout = w.shape
    assert K <= Ka
    Kp = _round_up(Ka, 128)
    Np = _round_up(Cout, 128)
    if Kp != Ka:                                # tiny classifier-style case only
        a = jnp.pad(a, ((0, 0), (0, 0), (0, Kp - Ka)))
    w_p = jnp.pad(w, ((0, Kp - K), (0, Np - Cout))).astype(jnp.bfloat16)

    tm = _pick_tm(M)
    grid = (_cdiv(M, tm), T)                    # ragged last row-block is masked by Pallas

    kernel = functools.partial(_gemm_plif_kernel, n_out=Cout, decay=decay, v_th=v_th)
    return pl.pallas_call(
        kernel,
        out_shape=jax.ShapeDtypeStruct((T, M, Cout), out_dtype),
        grid=grid,
        in_specs=[
            pl.BlockSpec((1, tm, Kp), lambda j, t: (t, j, 0)),
            pl.BlockSpec((Kp, Np), lambda j, t: (0, 0)),
        ],
        out_specs=pl.BlockSpec((1, tm, Cout), lambda j, t: (t, j, 0)),
        scratch_shapes=[pltpu.VMEM((tm, Cout), jnp.float32)],   # membrane potential
        compiler_params=pltpu.CompilerParams(
            dimension_semantics=("parallel", "arbitrary")),
    )(a.astype(jnp.bfloat16), w_p)


# ------------------------------ model glue --------------------------------
def _im2col(x, k, stride, pad, k_extra=0):
    """x: [B, H, W, C] -> patches [B, OH, OW, k*k*C + k_extra] in (kh, kw, cin) order,
    with `k_extra` zero columns appended inside the same concatenate (no extra pad pass)."""
    B, H, W, C = x.shape
    x = jnp.pad(x, ((0, 0), (pad, pad), (pad, pad), (0, 0)))
    Hp, Wp = H + 2 * pad, W + 2 * pad
    OH = (Hp - k) // stride + 1
    OW = (Wp - k) // stride + 1
    cols = []
    for dy in range(k):
        for dx in range(k):
            cols.append(x[:, dy:dy + stride * OH:stride, dx:dx + stride * OW:stride, :])
    if k_extra:
        cols.append(jnp.zeros((B, OH, OW, k_extra), x.dtype))
    patches = jnp.concatenate(cols, axis=-1)
    return patches, OH, OW


def conv_bn_plif_block(x, w, stride, pad, T, N, out_dtype=jnp.bfloat16):
    """Conv2d(bias=False) + BatchNorm2d(eval) + PLIF + Dropout(eval=identity), fused."""
    TN, H, W_, Cin = x.shape
    Cout, _, k, _ = w.shape
    K = k * k * Cin
    Kp = _round_up(K, 128)
    patches, OH, OW = _im2col(x, k, stride, pad, k_extra=Kp - K)    # [T*N, OH, OW, Kp]
    a = patches.reshape(T, N * OH * OW, Kp)
    # PyTorch conv weight [Cout, Cin, KH, KW] -> (KH, KW, Cin, Cout) to match im2col
    # order; eval-mode BN folds to a single scale on the weight.
    w_mat = jnp.transpose(w, (2, 3, 1, 0)).reshape(K, Cout) * BN_SCALE
    s = fused_matmul_plif(a, w_mat, out_dtype=out_dtype)            # [T, N*OH*OW, Cout]
    return s.reshape(TN, OH, OW, Cout)


def init_params(key, inp_features=2, channels=8, feat_neur=512, classes=12):
    c = channels
    conv_cfg = [(inp_features, c), (c, 2 * c), (2 * c, 4 * c), (4 * c, 8 * c), (8 * c, 8 * c)]
    keys = jax.random.split(key, len(conv_cfg) + 2)
    params = {"conv": []}
    for i, (cin, cout) in enumerate(conv_cfg):
        std = math.sqrt(2.0 / (cout * 3 * 3))   # kaiming_normal_, mode='fan_out', relu
        params["conv"].append(std * jax.random.normal(keys[i], (cout, cin, 3, 3), jnp.float32))
    d_in = 6 * 6 * 8 * c
    params["fc"] = jax.random.normal(keys[-2], (feat_neur, d_in), jnp.float32) / math.sqrt(d_in)
    params["cls"] = jax.random.normal(keys[-1], (classes, feat_neur), jnp.float32) / math.sqrt(feat_neur)
    return params


@jax.jit
def all_conv_plif_snn_forward(spike, params):
    """spike: [N, C, H, W, T] -> (out_spikes [T, N, classes], features [N, feat_neur])."""
    N, C, H, W, T = spike.shape
    # permute(4, 0, 1, 2, 3) + NCHW->NHWC per (t, n) step; bf16 is exact for 0/1 spikes.
    x = jnp.transpose(spike, (4, 0, 2, 3, 1)).reshape(T * N, H, W, C).astype(jnp.bfloat16)

    for w, (stride, pad) in zip(params["conv"], CONV_SP):
        x = conv_bn_plif_block(x, w, stride, pad, T, N)

    TN, OH, OW, Cf = x.shape
    # layer.Flatten on [T, N, C, H, W] flattens in (C, H, W) order.
    feat_in = (x.reshape(T, N, OH, OW, Cf)
                .transpose(0, 1, 4, 2, 3)
                .reshape(T, N, Cf * OH * OW))

    # Linear(bias=False) + PLIF (fused).
    feat_spk = fused_matmul_plif(feat_in, params["fc"].T, out_dtype=jnp.float32)   # [T, N, F]

    # pretrain=False branch: features = spike.mean(0) of the feature-extractor output.
    features = jnp.mean(feat_spk, axis=0)                                          # [N, F]

    # classifier: Linear(bias=False) + PLIF (fused).
    out_spk = fused_matmul_plif(feat_spk, params["cls"].T, out_dtype=jnp.float32)  # [T, N, classes]
    return out_spk, features


if __name__ == "__main__":
    key = jax.random.PRNGKey(0)
    k_in, k_par = jax.random.split(key)

    # Small config: channels=4, feat_neur=64, classes=12.  Spatial 100x100 is required
    # because the module hard-codes Linear(6*6*8*channels, ...), i.e. the conv stack
    # must end at 6x6 (100 -> 50 -> 25 -> 13 -> 6 -> 6).
    N, C, H, W, T = 2, 2, 100, 100, 4
    spike = (jax.random.uniform(k_in, (N, C, H, W, T)) < 0.3).astype(jnp.float32)

    params = init_params(k_par, inp_features=C, channels=4, feat_neur=64, classes=12)

    out_spk, features = all_conv_plif_snn_forward(spike, params)
    jax.block_until_ready((out_spk, features))

    assert out_spk.shape == (T, N, 12), out_spk.shape
    assert features.shape == (N, 64), features.shape
    assert bool(jnp.all((out_spk == 0.0) | (out_spk == 1.0)))
    print("KERNEL_OK")
</pallas_src>

<mosaic_0001>
module attributes {stable_mosaic.version = 11 : i64} {
  func.func @_gemm_plif_kernel(%arg0: i32, %arg1: i32, %arg2: memref<1x512x128xbf16, #tpu.memory_space<vmem>>, %arg3: memref<128x128xbf16, #tpu.memory_space<vmem>>, %arg4: memref<1x512x4xbf16, #tpu.memory_space<vmem>>, %arg5: memref<512x4xf32, #tpu.memory_space<vmem>>) attributes {dimension_semantics = [#tpu.dimension_semantics<parallel>, #tpu.dimension_semantics<arbitrary>], iteration_bounds = array<i64: 10, 4>, scalar_prefetch = 0 : i64, scratch_operands = 1 : i64, tpu.core_type = #tpu.core_type<tc>, window_params = [{transform_indices = @transform_0, window_bounds = array<i64: 1, 512, 128>}, {pipeline_mode = #tpu.pipeline_mode<synchronous>, transform_indices = @transform_1, window_bounds = array<i64: 128, 128>}, {transform_indices = @transform_2, window_bounds = array<i64: 1, 512, 4>}]} {
    %c0_i32 = arith.constant 0 : i32
    %0 = arith.cmpi eq, %arg1, %c0_i32 : i32
    %1 = arith.extui %0 : i1 to i32
    %c0_i32_0 = arith.constant 0 : i32
    %2 = arith.cmpi ne, %1, %c0_i32_0 : i32
    scf.if %2 {
      %cst_17 = arith.constant 0.000000e+00 : f32
      %26 = vector.broadcast %cst_17 : f32 to vector<512x4xf32>
      %c0_18 = arith.constant 0 : index
      %c0_19 = arith.constant 0 : index
      %27 = vector.load %arg5[%c0_18, %c0_19] : memref<512x4xf32, #tpu.memory_space<vmem>>, vector<512x4xf32>
      tpu.vector_store %arg5[%c0_18, %c0_19], %26 {strides = array<i32>} : memref<512x4xf32, #tpu.memory_space<vmem>>, vector<512x4xf32>,
    } else {
    }
    %c0 = arith.constant 0 : index
    %c0_1 = arith.constant 0 : index
    %c0_2 = arith.constant 0 : index
    %3 = vector.load %arg2[%c0, %c0_1, %c0_2] : memref<1x512x128xbf16, #tpu.memory_space<vmem>>, vector<1x512x128xbf16>
    %4 = vector.shape_cast %3 : vector<1x512x128xbf16> to vector<512x128xbf16>
    %c0_3 = arith.constant 0 : index
    %c0_4 = arith.constant 0 : index
    %5 = vector.load %arg3[%c0_3, %c0_4] : memref<128x128xbf16, #tpu.memory_space<vmem>>, vector<128x128xbf16>
    %cst = arith.constant dense<0.000000e+00> : vector<512x128xf32>
    %6 = tpu.matmul %4, %5, %cst {dimension_numbers = #tpu.dot_dimension_numbers<[1], [0], [0], [1], [0, 0, 1, 1], [], []>} : vector<512x128xbf16>, vector<128x128xbf16>, vector<512x128xf32> -> vector<512x128xf32>
    %7 = vector.extract_strided_slice %6 {offsets = [0, 0], sizes = [512, 4], strides = [1, 1]} : vector<512x128xf32> to vector<512x4xf32>
    %c0_5 = arith.constant 0 : index
    %c0_6 = arith.constant 0 : index
    %8 = vector.load %arg5[%c0_5, %c0_6] : memref<512x4xf32, #tpu.memory_space<vmem>>, vector<512x4xf32>
    %c0_7 = arith.constant 0 : index
    %c0_8 = arith.constant 0 : index
    %9 = vector.load %arg5[%c0_7, %c0_8] : memref<512x4xf32, #tpu.memory_space<vmem>>, vector<512x4xf32>
    %10 = arith.subf %7, %9 : vector<512x4xf32>
    %cst_9 = arith.constant 5.000000e-01 : f32
    %11 = vector.broadcast %cst_9 : f32 to vector<512x4xf32>
    %12 = arith.mulf %10, %11 : vector<512x4xf32>
    %13 = arith.addf %8, %12 : vector<512x4xf32>
    %cst_10 = arith.constant 1.000000e+00 : f32
    %14 = vector.broadcast %cst_10 : f32 to vector<512x4xf32>
    %15 = arith.cmpf oge, %13, %14 : vector<512x4xf32>
    %16 = arith.extui %15 : vector<512x4xi1> to vector<512x4xi32>
    %17 = arith.sitofp %16 : vector<512x4xi32> to vector<512x4xf32>
    %18 = arith.truncf %17 : vector<512x4xf32> to vector<512x4xbf16>
    %c0_11 = arith.constant 0 : index
    %c0_12 = arith.constant 0 : index
    %c0_13 = arith.constant 0 : index
    %19 = vector.load %arg4[%c0_11, %c0_12, %c0_13] : memref<1x512x4xbf16, #tpu.memory_space<vmem>>, vector<1x512x4xbf16>
    %20 = vector.shape_cast %19 : vector<1x512x4xbf16> to vector<512x4xbf16>
    %21 = vector.shape_cast %18 : vector<512x4xbf16> to vector<1x512x4xbf16>
    tpu.vector_store %arg4[%c0_11, %c0_12, %c0_13], %21 {strides = array<i32>} : memref<1x512x4xbf16, #tpu.memory_space<vmem>>, vector<1x512x4xbf16>,
    %cst_14 = arith.constant 1.000000e+00 : f32
    %22 = vector.broadcast %cst_14 : f32 to vector<512x4xf32>
    %23 = arith.subf %22, %17 : vector<512x4xf32>
    %24 = arith.mulf %13, %23 : vector<512x4xf32>
    %c0_15 = arith.constant 0 : index
    %c0_16 = arith.constant 0 : index
    %25 = vector.load %arg5[%c0_15, %c0_16] : memref<512x4xf32, #tpu.memory_space<vmem>>, vector<512x4xf32>
    tpu.vector_store %arg5[%c0_15, %c0_16], %24 {strides = array<i32>} : memref<512x4xf32, #tpu.memory_space<vmem>>, vector<512x4xf32>,
    return
  }
  func.func @transform_0(%arg0: i32, %arg1: i32) -> (i32, i32, i32) {
    %c0_i32 = arith.constant 0 : i32
    %c0_i32_0 = arith.constant 0 : i32
    return %arg1, %arg0, %c0_i32 : i32, i32, i32
  }
  func.func @transform_1(%arg0: i32, %arg1: i32) -> (i32, i32) {
    %c0_i32 = arith.constant 0 : i32
    %c0_i32_0 = arith.constant 0 : i32
    %c0_i32_1 = arith.constant 0 : i32
    return %c0_i32, %c0_i32_0 : i32, i32
  }
  func.func @transform_2(%arg0: i32, %arg1: i32) -> (i32, i32, i32) {
    %c0_i32 = arith.constant 0 : i32
    %c0_i32_0 = arith.constant 0 : i32
    return %arg1, %arg0, %c0_i32 : i32, i32, i32
  }
}

module attributes {stable_mosaic.version = 11 : i64} {
  func.func @_gemm_plif_kernel(%arg0: i32, %arg1: i32, %arg2: memref<1x512x128xbf16, #tpu.memory_space<vmem>>, %arg3: memref<128x128xbf16, #tpu.memory_space<vmem>>, %arg4: memref<1x512x8xbf16, #tpu.memory_space<vmem>>, %arg5: memref<512x8xf32, #tpu.memory_space<vmem>>) attributes {dimension_semantics = [#tpu.dimension_semantics<parallel>, #tpu.dimension_semantics<arbitrary>], iteration_bounds = array<i64: 3, 4>, scalar_prefetch = 0 : i64, scratch_operands = 1 : i64, tpu.core_type = #tpu.core_type<tc>, window_params = [{transform_indices = @transform_0, window_bounds = array<i64: 1, 512, 128>}, {pipeline_mode = #tpu.pipeline_mode<synchronous>, transform_indices = @transform_1, window_bounds = array<i64: 128, 128>}, {transform_indices = @transform_2, window_bounds = array<i64: 1, 512, 8>}]} {
    %c0_i32 = arith.constant 0 : i32
    %0 = arith.cmpi eq, %arg1, %c0_i32 : i32
    %1 = arith.extui %0 : i1 to i32
    %c0_i32_0 = arith.constant 0 : i32
    %2 = arith.cmpi ne, %1, %c0_i32_0 : i32
    scf.if %2 {
      %cst_17 = arith.constant 0.000000e+00 : f32
      %26 = vector.broadcast %cst_17 : f32 to vector<512x8xf32>
      %c0_18 = arith.constant 0 : index
      %c0_19 = arith.constant 0 : index
      %27 = vector.load %arg5[%c0_18, %c0_19] : memref<512x8xf32, #tpu.memory_space<vmem>>, vector<512x8xf32>
      tpu.vector_store %arg5[%c0_18, %c0_19], %26 {strides = array<i32>} : memref<512x8xf32, #tpu.memory_space<vmem>>, vector<512x8xf32>,
    } else {
    }
    %c0 = arith.constant 0 : index
    %c0_1 = arith.constant 0 : index
    %c0_2 = arith.constant 0 : index
    %3 = vector.load %arg2[%c0, %c0_1, %c0_2] : memref<1x512x128xbf16, #tpu.memory_space<vmem>>, vector<1x512x128xbf16>
    %4 = vector.shape_cast %3 : vector<1x512x128xbf16> to vector<512x128xbf16>
    %c0_3 = arith.constant 0 : index
    %c0_4 = arith.constant 0 : index
    %5 = vector.load %arg3[%c0_3, %c0_4] : memref<128x128xbf16, #tpu.memory_space<vmem>>, vector<128x128xbf16>
    %cst = arith.constant dense<0.000000e+00> : vector<512x128xf32>
    %6 = tpu.matmul %4, %5, %cst {dimension_numbers = #tpu.dot_dimension_numbers<[1], [0], [0], [1], [0, 0, 1, 1], [], []>} : vector<512x128xbf16>, vector<128x128xbf16>, vector<512x128xf32> -> vector<512x128xf32>
    %7 = vector.extract_strided_slice %6 {offsets = [0, 0], sizes = [512, 8], strides = [1, 1]} : vector<512x128xf32> to vector<512x8xf32>
    %c0_5 = arith.constant 0 : index
    %c0_6 = arith.constant 0 : index
    %8 = vector.load %arg5[%c0_5, %c0_6] : memref<512x8xf32, #tpu.memory_space<vmem>>, vector<512x8xf32>
    %c0_7 = arith.constant 0 : index
    %c0_8 = arith.constant 0 : index
    %9 = vector.load %arg5[%c0_7, %c0_8] : memref<512x8xf32, #tpu.memory_space<vmem>>, vector<512x8xf32>
    %10 = arith.subf %7, %9 : vector<512x8xf32>
    %cst_9 = arith.constant 5.000000e-01 : f32
    %11 = vector.broadcast %cst_9 : f32 to vector<512x8xf32>
    %12 = arith.mulf %10, %11 : vector<512x8xf32>
    %13 = arith.addf %8, %12 : vector<512x8xf32>
    %cst_10 = arith.constant 1.000000e+00 : f32
    %14 = vector.broadcast %cst_10 : f32 to vector<512x8xf32>
    %15 = arith.cmpf oge, %13, %14 : vector<512x8xf32>
    %16 = arith.extui %15 : vector<512x8xi1> to vector<512x8xi32>
    %17 = arith.sitofp %16 : vector<512x8xi32> to vector<512x8xf32>
    %18 = arith.truncf %17 : vector<512x8xf32> to vector<512x8xbf16>
    %c0_11 = arith.constant 0 : index
    %c0_12 = arith.constant 0 : index
    %c0_13 = arith.constant 0 : index
    %19 = vector.load %arg4[%c0_11, %c0_12, %c0_13] : memref<1x512x8xbf16, #tpu.memory_space<vmem>>, vector<1x512x8xbf16>
    %20 = vector.shape_cast %19 : vector<1x512x8xbf16> to vector<512x8xbf16>
    %21 = vector.shape_cast %18 : vector<512x8xbf16> to vector<1x512x8xbf16>
    tpu.vector_store %arg4[%c0_11, %c0_12, %c0_13], %21 {strides = array<i32>} : memref<1x512x8xbf16, #tpu.memory_space<vmem>>, vector<1x512x8xbf16>,
    %cst_14 = arith.constant 1.000000e+00 : f32
    %22 = vector.broadcast %cst_14 : f32 to vector<512x8xf32>
    %23 = arith.subf %22, %17 : vector<512x8xf32>
    %24 = arith.mulf %13, %23 : vector<512x8xf32>
    %c0_15 = arith.constant 0 : index
    %c0_16 = arith.constant 0 : index
    %25 = vector.load %arg5[%c0_15, %c0_16] : memref<512x8xf32, #tpu.memory_space<vmem>>, vector<512x8xf32>
    tpu.vector_store %arg5[%c0_15, %c0_16], %24 {strides = array<i32>} : memref<512x8xf32, #tpu.memory_space<vmem>>, vector<512x8xf32>,
    return
  }
  func.func @transform_0(%arg0: i32, %arg1: i32) -> (i32, i32, i32) {
    %c0_i32 = arith.constant 0 : i32
    %c0_i32_0 = arith.constant 0 : i32
    return %arg1, %arg0, %c0_i32 : i32, i32, i32
  }
  func.func @transform_1(%arg0: i32, %arg1: i32) -> (i32, i32) {
    %c0_i32 = arith.constant 0 : i32
    %c0_i32_0 = arith.constant 0 : i32
    %c0_i32_1 = arith.constant 0 : i32
    return %c0_i32, %c0_i32_0 : i32, i32
  }
  func.func @transform_2(%arg0: i32, %arg1: i32) -> (i32, i32, i32) {
    %c0_i32 = arith.constant 0 : i32
    %c0_i32_0 = arith.constant 0 : i32
    return %arg1, %arg0, %c0_i32 : i32, i32, i32
  }
}

module attributes {stable_mosaic.version = 11 : i64} {
  func.func @_gemm_plif_kernel(%arg0: i32, %arg1: i32, %arg2: memref<1x176x128xbf16, #tpu.memory_space<vmem>>, %arg3: memref<128x128xbf16, #tpu.memory_space<vmem>>, %arg4: memref<1x176x16xbf16, #tpu.memory_space<vmem>>, %arg5: memref<176x16xf32, #tpu.memory_space<vmem>>) attributes {dimension_semantics = [#tpu.dimension_semantics<parallel>, #tpu.dimension_semantics<arbitrary>], iteration_bounds = array<i64: 2, 4>, scalar_prefetch = 0 : i64, scratch_operands = 1 : i64, tpu.core_type = #tpu.core_type<tc>, window_params = [{transform_indices = @transform_0, window_bounds = array<i64: 1, 176, 128>}, {pipeline_mode = #tpu.pipeline_mode<synchronous>, transform_indices = @transform_1, window_bounds = array<i64: 128, 128>}, {transform_indices = @transform_2, window_bounds = array<i64: 1, 176, 16>}]} {
    %c0_i32 = arith.constant 0 : i32
    %0 = arith.cmpi eq, %arg1, %c0_i32 : i32
    %1 = arith.extui %0 : i1 to i32
    %c0_i32_0 = arith.constant 0 : i32
    %2 = arith.cmpi ne, %1, %c0_i32_0 : i32
    scf.if %2 {
      %cst_17 = arith.constant 0.000000e+00 : f32
      %26 = vector.broadcast %cst_17 : f32 to vector<176x16xf32>
      %c0_18 = arith.constant 0 : index
      %c0_19 = arith.constant 0 : index
      %27 = vector.load %arg5[%c0_18, %c0_19] : memref<176x16xf32, #tpu.memory_space<vmem>>, vector<176x16xf32>
      tpu.vector_store %arg5[%c0_18, %c0_19], %26 {strides = array<i32>} : memref<176x16xf32, #tpu.memory_space<vmem>>, vector<176x16xf32>,
    } else {
    }
    %c0 = arith.constant 0 : index
    %c0_1 = arith.constant 0 : index
    %c0_2 = arith.constant 0 : index
    %3 = vector.load %arg2[%c0, %c0_1, %c0_2] : memref<1x176x128xbf16, #tpu.memory_space<vmem>>, vector<1x176x128xbf16>
    %4 = vector.shape_cast %3 : vector<1x176x128xbf16> to vector<176x128xbf16>
    %c0_3 = arith.constant 0 : index
    %c0_4 = arith.constant 0 : index
    %5 = vector.load %arg3[%c0_3, %c0_4] : memref<128x128xbf16, #tpu.memory_space<vmem>>, vector<128x128xbf16>
    %cst = arith.constant dense<0.000000e+00> : vector<176x128xf32>
    %6 = tpu.matmul %4, %5, %cst {dimension_numbers = #tpu.dot_dimension_numbers<[1], [0], [0], [1], [0, 0, 1, 1], [], []>} : vector<176x128xbf16>, vector<128x128xbf16>, vector<176x128xf32> -> vector<176x128xf32>
    %7 = vector.extract_strided_slice %6 {offsets = [0, 0], sizes = [176, 16], strides = [1, 1]} : vector<176x128xf32> to vector<176x16xf32>
    %c0_5 = arith.constant 0 : index
    %c0_6 = arith.constant 0 : index
    %8 = vector.load %arg5[%c0_5, %c0_6] : memref<176x16xf32, #tpu.memory_space<vmem>>, vector<176x16xf32>
    %c0_7 = arith.constant 0 : index
    %c0_8 = arith.constant 0 : index
    %9 = vector.load %arg5[%c0_7, %c0_8] : memref<176x16xf32, #tpu.memory_space<vmem>>, vector<176x16xf32>
    %10 = arith.subf %7, %9 : vector<176x16xf32>
    %cst_9 = arith.constant 5.000000e-01 : f32
    %11 = vector.broadcast %cst_9 : f32 to vector<176x16xf32>
    %12 = arith.mulf %10, %11 : vector<176x16xf32>
    %13 = arith.addf %8, %12 : vector<176x16xf32>
    %cst_10 = arith.constant 1.000000e+00 : f32
    %14 = vector.broadcast %cst_10 : f32 to vector<176x16xf32>
    %15 = arith.cmpf oge, %13, %14 : vector<176x16xf32>
    %16 = arith.extui %15 : vector<176x16xi1> to vector<176x16xi32>
    %17 = arith.sitofp %16 : vector<176x16xi32> to vector<176x16xf32>
    %18 = arith.truncf %17 : vector<176x16xf32> to vector<176x16xbf16>
    %c0_11 = arith.constant 0 : index
    %c0_12 = arith.constant 0 : index
    %c0_13 = arith.constant 0 : index
    %19 = vector.load %arg4[%c0_11, %c0_12, %c0_13] : memref<1x176x16xbf16, #tpu.memory_space<vmem>>, vector<1x176x16xbf16>
    %20 = vector.shape_cast %19 : vector<1x176x16xbf16> to vector<176x16xbf16>
    %21 = vector.shape_cast %18 : vector<176x16xbf16> to vector<1x176x16xbf16>
    tpu.vector_store %arg4[%c0_11, %c0_12, %c0_13], %21 {strides = array<i32>} : memref<1x176x16xbf16, #tpu.memory_space<vmem>>, vector<1x176x16xbf16>,
    %cst_14 = arith.constant 1.000000e+00 : f32
    %22 = vector.broadcast %cst_14 : f32 to vector<176x16xf32>
    %23 = arith.subf %22, %17 : vector<176x16xf32>
    %24 = arith.mulf %13, %23 : vector<176x16xf32>
    %c0_15 = arith.constant 0 : index
    %c0_16 = arith.constant 0 : index
    %25 = vector.load %arg5[%c0_15, %c0_16] : memref<176x16xf32, #tpu.memory_space<vmem>>, vector<176x16xf32>
    tpu.vector_store %arg5[%c0_15, %c0_16], %24 {strides = array<i32>} : memref<176x16xf32, #tpu.memory_space<vmem>>, vector<176x16xf32>,
    return
  }
  func.func @transform_0(%arg0: i32, %arg1: i32) -> (i32, i32, i32) {
    %c0_i32 = arith.constant 0 : i32
    %c0_i32_0 = arith.constant 0 : i32
    return %arg1, %arg0, %c0_i32 : i32, i32, i32
  }
  func.func @transform_1(%arg0: i32, %arg1: i32) -> (i32, i32) {
    %c0_i32 = arith.constant 0 : i32
    %c0_i32_0 = arith.constant 0 : i32
    %c0_i32_1 = arith.constant 0 : i32
    return %c0_i32, %c0_i32_0 : i32, i32
  }
  func.func @transform_2(%arg0: i32, %arg1: i32) -> (i32, i32, i32) {
    %c0_i32 = arith.constant 0 : i32
    %c0_i32_0 = arith.constant 0 : i32
    return %arg1, %arg0, %c0_i32 : i32, i32, i32
  }
}

module attributes {stable_mosaic.version = 11 : i64} {
  func.func @_gemm_plif_kernel(%arg0: i32, %arg1: i32, %arg2: memref<1x72x256xbf16, #tpu.memory_space<vmem>>, %arg3: memref<256x128xbf16, #tpu.memory_space<vmem>>, %arg4: memref<1x72x32xbf16, #tpu.memory_space<vmem>>, %arg5: memref<72x32xf32, #tpu.memory_space<vmem>>) attributes {dimension_semantics = [#tpu.dimension_semantics<parallel>, #tpu.dimension_semantics<arbitrary>], iteration_bounds = array<i64: 1, 4>, scalar_prefetch = 0 : i64, scratch_operands = 1 : i64, tpu.core_type = #tpu.core_type<tc>, window_params = [{transform_indices = @transform_0, window_bounds = array<i64: 1, 72, 256>}, {pipeline_mode = #tpu.pipeline_mode<synchronous>, transform_indices = @transform_1, window_bounds = array<i64: 256, 128>}, {transform_indices = @transform_2, window_bounds = array<i64: 1, 72, 32>}]} {
    %c0_i32 = arith.constant 0 : i32
    %0 = arith.cmpi eq, %arg1, %c0_i32 : i32
    %1 = arith.extui %0 : i1 to i32
    %c0_i32_0 = arith.constant 0 : i32
    %2 = arith.cmpi ne, %1, %c0_i32_0 : i32
    scf.if %2 {
      %cst_17 = arith.constant 0.000000e+00 : f32
      %26 = vector.broadcast %cst_17 : f32 to vector<72x32xf32>
      %c0_18 = arith.constant 0 : index
      %c0_19 = arith.constant 0 : index
      %27 = vector.load %arg5[%c0_18, %c0_19] : memref<72x32xf32, #tpu.memory_space<vmem>>, vector<72x32xf32>
      tpu.vector_store %arg5[%c0_18, %c0_19], %26 {strides = array<i32>} : memref<72x32xf32, #tpu.memory_space<vmem>>, vector<72x32xf32>,
    } else {
    }
    %c0 = arith.constant 0 : index
    %c0_1 = arith.constant 0 : index
    %c0_2 = arith.constant 0 : index
    %3 = vector.load %arg2[%c0, %c0_1, %c0_2] : memref<1x72x256xbf16, #tpu.memory_space<vmem>>, vector<1x72x256xbf16>
    %4 = vector.shape_cast %3 : vector<1x72x256xbf16> to vector<72x256xbf16>
    %c0_3 = arith.constant 0 : index
    %c0_4 = arith.constant 0 : index
    %5 = vector.load %arg3[%c0_3, %c0_4] : memref<256x128xbf16, #tpu.memory_space<vmem>>, vector<256x128xbf16>
    %cst = arith.constant dense<0.000000e+00> : vector<72x128xf32>
    %6 = tpu.matmul %4, %5, %cst {dimension_numbers = #tpu.dot_dimension_numbers<[1], [0], [0], [1], [0, 0, 1, 1], [], []>} : vector<72x256xbf16>, vector<256x128xbf16>, vector<72x128xf32> -> vector<72x128xf32>
    %7 = vector.extract_strided_slice %6 {offsets = [0, 0], sizes = [72, 32], strides = [1, 1]} : vector<72x128xf32> to vector<72x32xf32>
    %c0_5 = arith.constant 0 : index
    %c0_6 = arith.constant 0 : index
    %8 = vector.load %arg5[%c0_5, %c0_6] : memref<72x32xf32, #tpu.memory_space<vmem>>, vector<72x32xf32>
    %c0_7 = arith.constant 0 : index
    %c0_8 = arith.constant 0 : index
    %9 = vector.load %arg5[%c0_7, %c0_8] : memref<72x32xf32, #tpu.memory_space<vmem>>, vector<72x32xf32>
    %10 = arith.subf %7, %9 : vector<72x32xf32>
    %cst_9 = arith.constant 5.000000e-01 : f32
    %11 = vector.broadcast %cst_9 : f32 to vector<72x32xf32>
    %12 = arith.mulf %10, %11 : vector<72x32xf32>
    %13 = arith.addf %8, %12 : vector<72x32xf32>
    %cst_10 = arith.constant 1.000000e+00 : f32
    %14 = vector.broadcast %cst_10 : f32 to vector<72x32xf32>
    %15 = arith.cmpf oge, %13, %14 : vector<72x32xf32>
    %16 = arith.extui %15 : vector<72x32xi1> to vector<72x32xi32>
    %17 = arith.sitofp %16 : vector<72x32xi32> to vector<72x32xf32>
    %18 = arith.truncf %17 : vector<72x32xf32> to vector<72x32xbf16>
    %c0_11 = arith.constant 0 : index
    %c0_12 = arith.constant 0 : index
    %c0_13 = arith.constant 0 : index
    %19 = vector.load %arg4[%c0_11, %c0_12, %c0_13] : memref<1x72x32xbf16, #tpu.memory_space<vmem>>, vector<1x72x32xbf16>
    %20 = vector.shape_cast %19 : vector<1x72x32xbf16> to vector<72x32xbf16>
    %21 = vector.shape_cast %18 : vector<72x32xbf16> to vector<1x72x32xbf16>
    tpu.vector_store %arg4[%c0_11, %c0_12, %c0_13], %21 {strides = array<i32>} : memref<1x72x32xbf16, #tpu.memory_space<vmem>>, vector<1x72x32xbf16>,
    %cst_14 = arith.constant 1.000000e+00 : f32
    %22 = vector.broadcast %cst_14 : f32 to vector<72x32xf32>
    %23 = arith.subf %22, %17 : vector<72x32xf32>
    %24 = arith.mulf %13, %23 : vector<72x32xf32>
    %c0_15 = arith.constant 0 : index
    %c0_16 = arith.constant 0 : index
    %25 = vector.load %arg5[%c0_15, %c0_16] : memref<72x32xf32, #tpu.memory_space<vmem>>, vector<72x32xf32>
    tpu.vector_store %arg5[%c0_15, %c0_16], %24 {strides = array<i32>} : memref<72x32xf32, #tpu.memory_space<vmem>>, vector<72x32xf32>,
    return
  }
  func.func @transform_0(%arg0: i32, %arg1: i32) -> (i32, i32, i32) {
    %c0_i32 = arith.constant 0 : i32
    %c0_i32_0 = arith.constant 0 : i32
    return %arg1, %arg0, %c0_i32 : i32, i32, i32
  }
  func.func @transform_1(%arg0: i32, %arg1: i32) -> (i32, i32) {
    %c0_i32 = arith.constant 0 : i32
    %c0_i32_0 = arith.constant 0 : i32
    %c0_i32_1 = arith.constant 0 : i32
    return %c0_i32, %c0_i32_0 : i32, i32
  }
  func.func @transform_2(%arg0: i32, %arg1: i32) -> (i32, i32, i32) {
    %c0_i32 = arith.constant 0 : i32
    %c0_i32_0 = arith.constant 0 : i32
    return %arg1, %arg0, %c0_i32 : i32, i32, i32
  }
}

module attributes {stable_mosaic.version = 11 : i64} {
  func.func @_gemm_plif_kernel(%arg0: i32, %arg1: i32, %arg2: memref<1x72x384xbf16, #tpu.memory_space<vmem>>, %arg3: memref<384x128xbf16, #tpu.memory_space<vmem>>, %arg4: memref<1x72x32xbf16, #tpu.memory_space<vmem>>, %arg5: memref<72x32xf32, #tpu.memory_space<vmem>>) attributes {dimension_semantics = [#tpu.dimension_semantics<parallel>, #tpu.dimension_semantics<arbitrary>], iteration_bounds = array<i64: 1, 4>, scalar_prefetch = 0 : i64, scratch_operands = 1 : i64, tpu.core_type = #tpu.core_type<tc>, window_params = [{transform_indices = @transform_0, window_bounds = array<i64: 1, 72, 384>}, {pipeline_mode = #tpu.pipeline_mode<synchronous>, transform_indices = @transform_1, window_bounds = array<i64: 384, 128>}, {transform_indices = @transform_2, window_bounds = array<i64: 1, 72, 32>}]} {
    %c0_i32 = arith.constant 0 : i32
    %0 = arith.cmpi eq, %arg1, %c0_i32 : i32
    %1 = arith.extui %0 : i1 to i32
    %c0_i32_0 = arith.constant 0 : i32
    %2 = arith.cmpi ne, %1, %c0_i32_0 : i32
    scf.if %2 {
      %cst_17 = arith.constant 0.000000e+00 : f32
      %26 = vector.broadcast %cst_17 : f32 to vector<72x32xf32>
      %c0_18 = arith.constant 0 : index
      %c0_19 = arith.constant 0 : index
      %27 = vector.load %arg5[%c0_18, %c0_19] : memref<72x32xf32, #tpu.memory_space<vmem>>, vector<72x32xf32>
      tpu.vector_store %arg5[%c0_18, %c0_19], %26 {strides = array<i32>} : memref<72x32xf32, #tpu.memory_space<vmem>>, vector<72x32xf32>,
    } else {
    }
    %c0 = arith.constant 0 : index
    %c0_1 = arith.constant 0 : index
    %c0_2 = arith.constant 0 : index
    %3 = vector.load %arg2[%c0, %c0_1, %c0_2] : memref<1x72x384xbf16, #tpu.memory_space<vmem>>, vector<1x72x384xbf16>
    %4 = vector.shape_cast %3 : vector<1x72x384xbf16> to vector<72x384xbf16>
    %c0_3 = arith.constant 0 : index
    %c0_4 = arith.constant 0 : index
    %5 = vector.load %arg3[%c0_3, %c0_4] : memref<384x128xbf16, #tpu.memory_space<vmem>>, vector<384x128xbf16>
    %cst = arith.constant dense<0.000000e+00> : vector<72x128xf32>
    %6 = tpu.matmul %4, %5, %cst {dimension_numbers = #tpu.dot_dimension_numbers<[1], [0], [0], [1], [0, 0, 1, 1], [], []>} : vector<72x384xbf16>, vector<384x128xbf16>, vector<72x128xf32> -> vector<72x128xf32>
    %7 = vector.extract_strided_slice %6 {offsets = [0, 0], sizes = [72, 32], strides = [1, 1]} : vector<72x128xf32> to vector<72x32xf32>
    %c0_5 = arith.constant 0 : index
    %c0_6 = arith.constant 0 : index
    %8 = vector.load %arg5[%c0_5, %c0_6] : memref<72x32xf32, #tpu.memory_space<vmem>>, vector<72x32xf32>
    %c0_7 = arith.constant 0 : index
    %c0_8 = arith.constant 0 : index
    %9 = vector.load %arg5[%c0_7, %c0_8] : memref<72x32xf32, #tpu.memory_space<vmem>>, vector<72x32xf32>
    %10 = arith.subf %7, %9 : vector<72x32xf32>
    %cst_9 = arith.constant 5.000000e-01 : f32
    %11 = vector.broadcast %cst_9 : f32 to vector<72x32xf32>
    %12 = arith.mulf %10, %11 : vector<72x32xf32>
    %13 = arith.addf %8, %12 : vector<72x32xf32>
    %cst_10 = arith.constant 1.000000e+00 : f32
    %14 = vector.broadcast %cst_10 : f32 to vector<72x32xf32>
    %15 = arith.cmpf oge, %13, %14 : vector<72x32xf32>
    %16 = arith.extui %15 : vector<72x32xi1> to vector<72x32xi32>
    %17 = arith.sitofp %16 : vector<72x32xi32> to vector<72x32xf32>
    %18 = arith.truncf %17 : vector<72x32xf32> to vector<72x32xbf16>
    %c0_11 = arith.constant 0 : index
    %c0_12 = arith.constant 0 : index
    %c0_13 = arith.constant 0 : index
    %19 = vector.load %arg4[%c0_11, %c0_12, %c0_13] : memref<1x72x32xbf16, #tpu.memory_space<vmem>>, vector<1x72x32xbf16>
    %20 = vector.shape_cast %19 : vector<1x72x32xbf16> to vector<72x32xbf16>
    %21 = vector.shape_cast %18 : vector<72x32xbf16> to vector<1x72x32xbf16>
    tpu.vector_store %arg4[%c0_11, %c0_12, %c0_13], %21 {strides = array<i32>} : memref<1x72x32xbf16, #tpu.memory_space<vmem>>, vector<1x72x32xbf16>,
    %cst_14 = arith.constant 1.000000e+00 : f32
    %22 = vector.broadcast %cst_14 : f32 to vector<72x32xf32>
    %23 = arith.subf %22, %17 : vector<72x32xf32>
    %24 = arith.mulf %13, %23 : vector<72x32xf32>
    %c0_15 = arith.constant 0 : index
    %c0_16 = arith.constant 0 : index
    %25 = vector.load %arg5[%c0_15, %c0_16] : memref<72x32xf32, #tpu.memory_space<vmem>>, vector<72x32xf32>
    tpu.vector_store %arg5[%c0_15, %c0_16], %24 {strides = array<i32>} : memref<72x32xf32, #tpu.memory_space<vmem>>, vector<72x32xf32>,
    return
  }
  func.func @transform_0(%arg0: i32, %arg1: i32) -> (i32, i32, i32) {
    %c0_i32 = arith.constant 0 : i32
    %c0_i32_0 = arith.constant 0 : i32
    return %arg1, %arg0, %c0_i32 : i32, i32, i32
  }
  func.func @transform_1(%arg0: i32, %arg1: i32) -> (i32, i32) {
    %c0_i32 = arith.constant 0 : i32
    %c0_i32_0 = arith.constant 0 : i32
    %c0_i32_1 = arith.constant 0 : i32
    return %c0_i32, %c0_i32_0 : i32, i32
  }
  func.func @transform_2(%arg0: i32, %arg1: i32) -> (i32, i32, i32) {
    %c0_i32 = arith.constant 0 : i32
    %c0_i32_0 = arith.constant 0 : i32
    return %arg1, %arg0, %c0_i32 : i32, i32, i32
  }
}

module attributes {stable_mosaic.version = 11 : i64} {
  func.func @_gemm_plif_kernel(%arg0: i32, %arg1: i32, %arg2: memref<1x2x1152xbf16, #tpu.memory_space<vmem>>, %arg3: memref<1152x128xbf16, #tpu.memory_space<vmem>>, %arg4: memref<1x2x64xf32, #tpu.memory_space<vmem>>, %arg5: memref<2x64xf32, #tpu.memory_space<vmem>>) attributes {dimension_semantics = [#tpu.dimension_semantics<parallel>, #tpu.dimension_semantics<arbitrary>], iteration_bounds = array<i64: 1, 4>, scalar_prefetch = 0 : i64, scratch_operands = 1 : i64, tpu.core_type = #tpu.core_type<tc>, window_params = [{transform_indices = @transform_0, window_bounds = array<i64: 1, 2, 1152>}, {pipeline_mode = #tpu.pipeline_mode<synchronous>, transform_indices = @transform_1, window_bounds = array<i64: 1152, 128>}, {transform_indices = @transform_2, window_bounds = array<i64: 1, 2, 64>}]} {
    %c0_i32 = arith.constant 0 : i32
    %0 = arith.cmpi eq, %arg1, %c0_i32 : i32
    %1 = arith.extui %0 : i1 to i32
    %c0_i32_0 = arith.constant 0 : i32
    %2 = arith.cmpi ne, %1, %c0_i32_0 : i32
    scf.if %2 {
      %cst_17 = arith.constant 0.000000e+00 : f32
      %25 = vector.broadcast %cst_17 : f32 to vector<2x64xf32>
      %c0_18 = arith.constant 0 : index
      %c0_19 = arith.constant 0 : index
      %26 = vector.load %arg5[%c0_18, %c0_19] : memref<2x64xf32, #tpu.memory_space<vmem>>, vector<2x64xf32>
      tpu.vector_store %arg5[%c0_18, %c0_19], %25 {strides = array<i32>} : memref<2x64xf32, #tpu.memory_space<vmem>>, vector<2x64xf32>,
    } else {
    }
    %c0 = arith.constant 0 : index
    %c0_1 = arith.constant 0 : index
    %c0_2 = arith.constant 0 : index
    %3 = vector.load %arg2[%c0, %c0_1, %c0_2] : memref<1x2x1152xbf16, #tpu.memory_space<vmem>>, vector<1x2x1152xbf16>
    %4 = vector.shape_cast %3 : vector<1x2x1152xbf16> to vector<2x1152xbf16>
    %c0_3 = arith.constant 0 : index
    %c0_4 = arith.constant 0 : index
    %5 = vector.load %arg3[%c0_3, %c0_4] : memref<1152x128xbf16, #tpu.memory_space<vmem>>, vector<1152x128xbf16>
    %cst = arith.constant dense<0.000000e+00> : vector<2x128xf32>
    %6 = tpu.matmul %4, %5, %cst {dimension_numbers = #tpu.dot_dimension_numbers<[1], [0], [0], [1], [0, 0, 1, 1], [], []>} : vector<2x1152xbf16>, vector<1152x128xbf16>, vector<2x128xf32> -> vector<2x128xf32>
    %7 = vector.extract_strided_slice %6 {offsets = [0, 0], sizes = [2, 64], strides = [1, 1]} : vector<2x128xf32> to vector<2x64xf32>
    %c0_5 = arith.constant 0 : index
    %c0_6 = arith.constant 0 : index
    %8 = vector.load %arg5[%c0_5, %c0_6] : memref<2x64xf32, #tpu.memory_space<vmem>>, vector<2x64xf32>
    %c0_7 = arith.constant 0 : index
    %c0_8 = arith.constant 0 : index
    %9 = vector.load %arg5[%c0_7, %c0_8] : memref<2x64xf32, #tpu.memory_space<vmem>>, vector<2x64xf32>
    %10 = arith.subf %7, %9 : vector<2x64xf32>
    %cst_9 = arith.constant 5.000000e-01 : f32
    %11 = vector.broadcast %cst_9 : f32 to vector<2x64xf32>
    %12 = arith.mulf %10, %11 : vector<2x64xf32>
    %13 = arith.addf %8, %12 : vector<2x64xf32>
    %cst_10 = arith.constant 1.000000e+00 : f32
    %14 = vector.broadcast %cst_10 : f32 to vector<2x64xf32>
    %15 = arith.cmpf oge, %13, %14 : vector<2x64xf32>
    %16 = arith.extui %15 : vector<2x64xi1> to vector<2x64xi32>
    %17 = arith.sitofp %16 : vector<2x64xi32> to vector<2x64xf32>
    %c0_11 = arith.constant 0 : index
    %c0_12 = arith.constant 0 : index
    %c0_13 = arith.constant 0 : index
    %18 = vector.load %arg4[%c0_11, %c0_12, %c0_13] : memref<1x2x64xf32, #tpu.memory_space<vmem>>, vector<1x2x64xf32>
    %19 = vector.shape_cast %18 : vector<1x2x64xf32> to vector<2x64xf32>
    %20 = vector.shape_cast %17 : vector<2x64xf32> to vector<1x2x64xf32>
    tpu.vector_store %arg4[%c0_11, %c0_12, %c0_13], %20 {strides = array<i32>} : memref<1x2x64xf32, #tpu.memory_space<vmem>>, vector<1x2x64xf32>,
    %cst_14 = arith.constant 1.000000e+00 : f32
    %21 = vector.broadcast %cst_14 : f32 to vector<2x64xf32>
    %22 = arith.subf %21, %17 : vector<2x64xf32>
    %23 = arith.mulf %13, %22 : vector<2x64xf32>
    %c0_15 = arith.constant 0 : index
    %c0_16 = arith.constant 0 : index
    %24 = vector.load %arg5[%c0_15, %c0_16] : memref<2x64xf32, #tpu.memory_space<vmem>>, vector<2x64xf32>
    tpu.vector_store %arg5[%c0_15, %c0_16], %23 {strides = array<i32>} : memref<2x64xf32, #tpu.memory_space<vmem>>, vector<2x64xf32>,
    return
  }
  func.func @transform_0(%arg0: i32, %arg1: i32) -> (i32, i32, i32) {
    %c0_i32 = arith.constant 0 : i32
    %c0_i32_0 = arith.constant 0 : i32
    return %arg1, %arg0, %c0_i32 : i32, i32, i32
  }
  func.func @transform_1(%arg0: i32, %arg1: i32) -> (i32, i32) {
    %c0_i32 = arith.constant 0 : i32
    %c0_i32_0 = arith.constant 0 : i32
    %c0_i32_1 = arith.constant 0 : i32
    return %c0_i32, %c0_i32_0 : i32, i32
  }
  func.func @transform_2(%arg0: i32, %arg1: i32) -> (i32, i32, i32) {
    %c0_i32 = arith.constant 0 : i32
    %c0_i32_0 = arith.constant 0 : i32
    return %arg1, %arg0, %c0_i32 : i32, i32, i32
  }
}

module attributes {stable_mosaic.version = 11 : i64} {
  func.func @_gemm_plif_kernel(%arg0: i32, %arg1: i32, %arg2: memref<1x2x128xbf16, #tpu.memory_space<vmem>>, %arg3: memref<128x128xbf16, #tpu.memory_space<vmem>>, %arg4: memref<1x2x12xf32, #tpu.memory_space<vmem>>, %arg5: memref<2x12xf32, #tpu.memory_space<vmem>>) attributes {dimension_semantics = [#tpu.dimension_semantics<parallel>, #tpu.dimension_semantics<arbitrary>], iteration_bounds = array<i64: 1, 4>, scalar_prefetch = 0 : i64, scratch_operands = 1 : i64, tpu.core_type = #tpu.core_type<tc>, window_params = [{transform_indices = @transform_0, window_bounds = array<i64: 1, 2, 128>}, {pipeline_mode = #tpu.pipeline_mode<synchronous>, transform_indices = @transform_1, window_bounds = array<i64: 128, 128>}, {transform_indices = @transform_2, window_bounds = array<i64: 1, 2, 12>}]} {
    %c0_i32 = arith.constant 0 : i32
    %0 = arith.cmpi eq, %arg1, %c0_i32 : i32
    %1 = arith.extui %0 : i1 to i32
    %c0_i32_0 = arith.constant 0 : i32
    %2 = arith.cmpi ne, %1, %c0_i32_0 : i32
    scf.if %2 {
      %cst_17 = arith.constant 0.000000e+00 : f32
      %25 = vector.broadcast %cst_17 : f32 to vector<2x12xf32>
      %c0_18 = arith.constant 0 : index
      %c0_19 = arith.constant 0 : index
      %26 = vector.load %arg5[%c0_18, %c0_19] : memref<2x12xf32, #tpu.memory_space<vmem>>, vector<2x12xf32>
      tpu.vector_store %arg5[%c0_18, %c0_19], %25 {strides = array<i32>} : memref<2x12xf32, #tpu.memory_space<vmem>>, vector<2x12xf32>,
    } else {
    }
    %c0 = arith.constant 0 : index
    %c0_1 = arith.constant 0 : index
    %c0_2 = arith.constant 0 : index
    %3 = vector.load %arg2[%c0, %c0_1, %c0_2] : memref<1x2x128xbf16, #tpu.memory_space<vmem>>, vector<1x2x128xbf16>
    %4 = vector.shape_cast %3 : vector<1x2x128xbf16> to vector<2x128xbf16>
    %c0_3 = arith.constant 0 : index
    %c0_4 = arith.constant 0 : index
    %5 = vector.load %arg3[%c0_3, %c0_4] : memref<128x128xbf16, #tpu.memory_space<vmem>>, vector<128x128xbf16>
    %cst = arith.constant dense<0.000000e+00> : vector<2x128xf32>
    %6 = tpu.matmul %4, %5, %cst {dimension_numbers = #tpu.dot_dimension_numbers<[1], [0], [0], [1], [0, 0, 1, 1], [], []>} : vector<2x128xbf16>, vector<128x128xbf16>, vector<2x128xf32> -> vector<2x128xf32>
    %7 = vector.extract_strided_slice %6 {offsets = [0, 0], sizes = [2, 12], strides = [1, 1]} : vector<2x128xf32> to vector<2x12xf32>
    %c0_5 = arith.constant 0 : index
    %c0_6 = arith.constant 0 : index
    %8 = vector.load %arg5[%c0_5, %c0_6] : memref<2x12xf32, #tpu.memory_space<vmem>>, vector<2x12xf32>
    %c0_7 = arith.constant 0 : index
    %c0_8 = arith.constant 0 : index
    %9 = vector.load %arg5[%c0_7, %c0_8] : memref<2x12xf32, #tpu.memory_space<vmem>>, vector<2x12xf32>
    %10 = arith.subf %7, %9 : vector<2x12xf32>
    %cst_9 = arith.constant 5.000000e-01 : f32
    %11 = vector.broadcast %cst_9 : f32 to vector<2x12xf32>
    %12 = arith.mulf %10, %11 : vector<2x12xf32>
    %13 = arith.addf %8, %12 : vector<2x12xf32>
    %cst_10 = arith.constant 1.000000e+00 : f32
    %14 = vector.broadcast %cst_10 : f32 to vector<2x12xf32>
    %15 = arith.cmpf oge, %13, %14 : vector<2x12xf32>
    %16 = arith.extui %15 : vector<2x12xi1> to vector<2x12xi32>
    %17 = arith.sitofp %16 : vector<2x12xi32> to vector<2x12xf32>
    %c0_11 = arith.constant 0 : index
    %c0_12 = arith.constant 0 : index
    %c0_13 = arith.constant 0 : index
    %18 = vector.load %arg4[%c0_11, %c0_12, %c0_13] : memref<1x2x12xf32, #tpu.memory_space<vmem>>, vector<1x2x12xf32>
    %19 = vector.shape_cast %18 : vector<1x2x12xf32> to vector<2x12xf32>
    %20 = vector.shape_cast %17 : vector<2x12xf32> to vector<1x2x12xf32>
    tpu.vector_store %arg4[%c0_11, %c0_12, %c0_13], %20 {strides = array<i32>} : memref<1x2x12xf32, #tpu.memory_space<vmem>>, vector<1x2x12xf32>,
    %cst_14 = arith.constant 1.000000e+00 : f32
    %21 = vector.broadcast %cst_14 : f32 to vector<2x12xf32>
    %22 = arith.subf %21, %17 : vector<2x12xf32>
    %23 = arith.mulf %13, %22 : vector<2x12xf32>
    %c0_15 = arith.constant 0 : index
    %c0_16 = arith.constant 0 : index
    %24 = vector.load %arg5[%c0_15, %c0_16] : memref<2x12xf32, #tpu.memory_space<vmem>>, vector<2x12xf32>
    tpu.vector_store %arg5[%c0_15, %c0_16], %23 {strides = array<i32>} : memref<2x12xf32, #tpu.memory_space<vmem>>, vector<2x12xf32>,
    return
  }
  func.func @transform_0(%arg0: i32, %arg1: i32) -> (i32, i32, i32) {
    %c0_i32 = arith.constant 0 : i32
    %c0_i32_0 = arith.constant 0 : i32
    return %arg1, %arg0, %c0_i32 : i32, i32, i32
  }
  func.func @transform_1(%arg0: i32, %arg1: i32) -> (i32, i32) {
    %c0_i32 = arith.constant 0 : i32
    %c0_i32_0 = arith.constant 0 : i32
    %c0_i32_1 = arith.constant 0 : i32
    return %c0_i32, %c0_i32_0 : i32, i32
  }
  func.func @transform_2(%arg0: i32, %arg1: i32) -> (i32, i32, i32) {
    %c0_i32 = arith.constant 0 : i32
    %c0_i32_0 = arith.constant 0 : i32
    return %arg1, %arg0, %c0_i32 : i32, i32, i32
  }
}

</mosaic_0001>

<bundles_post_ra>
// kernel: all_conv_plif_snn_forward.7
= control target key start
LH: loop header
LB: loop body
LE: loop exit
PB: predicated region body
PF: predicated region fallthrough
CT: control target
= control target key end

     0   :  { %s2460_s9 = smov 0   ;;  %s2462_s10 = smov 0   ;;  %s3182_s0 = inlined_call_operand.vmem [shape: bf16[4,5000,128], index: 0, kind: input, shape index: {}]   ;;  %s3183_s1 = inlined_call_operand.vmem [shape: bf16[128,128], index: 1, kind: input, shape index: {}]   ;;  %s3184_s2 = inlined_call_operand.vmem [shape: bf16[4,5000,4], index: 2, kind: output, shape index: {}]  }
   0x1   :  { %s2464_s11 = smov 0   ;;  %s2466_s12 = smov 0  }
   0x2   :  { %s2468_s13 = smov 0   ;;  %s2470_s14 = smov 0  }
   0x3   :  { %s2472_s15 = smov 0  }
   0x4 LB: > { %s21_s16 = sadd.s32 1, %s2401_s13  ;;  %s24_s17 = sadd.s32 1, %s2405_s14  ;;  %s2409_s15 = sphi %s2472_s15, %s12_s15   ;;  %s2405_s14 = sphi %s2470_s14, %s3196_s14   ;;  %s2401_s13 = sphi %s2468_s13, %s3195_s13   ;;  %s2397_s12 = sphi %s2466_s12, %s3194_s12   ;;  %s2393_s11 = sphi %s2464_s11, %s3193_s11   ;;  %s2389_s10 = sphi %s2462_s10, %s3192_s10   ;;  %s2385_s9 = sphi %s2460_s9, %s3191_s9  }
   0x5   : > { %p22_p0 = scmp.ge.s32.totalorder %s21_s16, 4  ;;  %s1883_s18 = sadd.s32 4294967295, %s2409_s15  }
   0x6   : > { %p92_p1 = scmp.ne.s32.totalorder %s2389_s10, %s2385_s9  ;;  %p93_p2 = scmp.eq.s32.totalorder %s1883_s18, 39 }
   0x7   : > { %s3198_s16 = smov (%p22_p0, %s21_s16), 0  ;;  %s3200_s17 = smov (!%p22_p0, %s24_s17), %s2405_s14 }
   0x8   : > { %s77_s19 = ssub.s32 %s2401_s13, %s3198_s16  ;;  %p26_p3 = scmp.ge.s32.totalorder %s3200_s17, 10 }
   0x9   : > { %p1887_p4 = scmp.ge.s32.totalorder %s2409_s15, 1  ;;  %p2504_p5 = por %p93_p2, %p92_p1 }
   0xa   : > { %p141_p6 = scmp.lt.s32.totalorder %s2409_s15, 41  ;;  %s3202_s17 = smov (%p26_p3, %s3200_s17), 0 }
   0xb   : > { %s78_s21 = ssub.s32 %s2405_s14, %s3202_s17  ;;  %s82_s23 = sadd.s32 1, %s2389_s10 }
   0xc   : > { %p142_p7 = pnand %p1887_p4, %p141_p6  ;;  %s79_s22 = sor.u32 %s78_s21, %s77_s19 }
   0xd   : > { %p80_p8 = scmp.eq.s32.totalorder %s79_s22, 0  ;;  %s167_s25 = sand.u32 (!%p142_p7), 1, %s2385_s9  }
   0xe   : > { %145 = sbr.rel (%p142_p7) target bundleno = 459 (0x1cb), region = 28  ;;  %s2518_s26 = sshll.u32 (!%p142_p7), %s2397_s12, 6 }
   0xf   : > { %s2515_s24 = scalar_select %p80_p8, %s2389_s10, %s82_s23  }
  0x10   : > { %s1888_s27 = sshll.u32 (!%p142_p7), %s167_s25, 8  ;;  %p175_p9 = scmp.lt.s32.totalorder (!%p142_p7), %s2393_s11, 3 }
  0x11   : > { %p177_p10 = scmp.lt.s32.totalorder (!%p142_p7), %s2518_s26, 624  ;;  %s2529_s8 = scalar_lea.vmem (!%p142_p7), [#allocation3], %s1888_s27  }
  0x12   : > { %p1891_p11 = scmp.ne.s32.totalorder (!%p142_p7), %s2393_s11, 0 }
  0x13   : > { %s176_s28 = scalar_select %p175_p9, %s2393_s11, 3 }
  0x14   : > { %s178_s29 = scalar_select %p177_p10, %s2518_s26, 624 }
  0x15   : > { %s2199_s30 = smul.u32 625, %s176_s28 }
  0x16   : > { %196 = sbr.rel (%p1891_p11) target bundleno = 92 (0x5c), region = 32 }
  0x17   : > { %s180_s3 = sadd.s32 %s2199_s30, %s178_s29 }
  0x18   : > { %s1890_s4 = sshll.u32 %s180_s3, 2 }
  0x19   : > { %s2527_s7 = scalar_lea.vmem %s3182_s0, %s1890_s4 }
  0x1b   : > { %vm197_vm0 = vcmask 31744   ;;  %v2443_v0 = vmov 0.0  }
  0x1c   : > { %198 = vst.msk [vmem:[#allocation2] sm:$0xff] %vm197_vm0, %v2443_v0 }
  0x1d   : > { %199 = vst.msk [vmem:[#allocation2 + $0x8] sm:$0xff] %vm197_vm0, %v2443_v0 }
  0x1e   : > { %200 = vst.msk [vmem:[#allocation2 + $0x10] sm:$0xff] %vm197_vm0, %v2443_v0 }
  0x1f   : > { %201 = vst.msk [vmem:[#allocation2 + $0x18] sm:$0xff] %vm197_vm0, %v2443_v0 }
  0x20   : > { %202 = vst.msk [vmem:[#allocation2 + $0x20] sm:$0xff] %vm197_vm0, %v2443_v0 }
  0x21   : > { %203 = vst.msk [vmem:[#allocation2 + $0x28] sm:$0xff] %vm197_vm0, %v2443_v0 }
  0x22   : > { %204 = vst.msk [vmem:[#allocation2 + $0x30] sm:$0xff] %vm197_vm0, %v2443_v0 }
  0x23   : > { %205 = vst.msk [vmem:[#allocation2 + $0x38] sm:$0xff] %vm197_vm0, %v2443_v0 }
  0x24   : > { %206 = vst.msk [vmem:[#allocation2 + $0x40] sm:$0xff] %vm197_vm0, %v2443_v0 }
  0x25   : > { %207 = vst.msk [vmem:[#allocation2 + $0x48] sm:$0xff] %vm197_vm0, %v2443_v0 }
  0x26   : > { %208 = vst.msk [vmem:[#allocation2 + $0x50] sm:$0xff] %vm197_vm0, %v2443_v0 }
  0x27   : > { %209 = vst.msk [vmem:[#allocation2 + $0x58] sm:$0xff] %vm197_vm0, %v2443_v0 }
  0x28   : > { %210 = vst.msk [vmem:[#allocation2 + $0x60] sm:$0xff] %vm197_vm0, %v2443_v0 }
  0x29   : > { %211 = vst.msk [vmem:[#allocation2 + $0x68] sm:$0xff] %vm197_vm0, %v2443_v0 }
  0x2a   : > { %212 = vst.msk [vmem:[#allocation2 + $0x70] sm:$0xff] %vm197_vm0, %v2443_v0 }
  0x2b   : > { %213 = vst.msk [vmem:[#allocation2 + $0x78] sm:$0xff] %vm197_vm0, %v2443_v0 }
  0x2c   : > { %214 = vst.msk [vmem:[#allocation2 + $0x80] sm:$0xff] %vm197_vm0, %v2443_v0 }
  0x2d   : > { %215 = vst.msk [vmem:[#allocation2 + $0x88] sm:$0xff] %vm197_vm0, %v2443_v0 }
  0x2e   : > { %216 = vst.msk [vmem:[#allocation2 + $0x90] sm:$0xff] %vm197_vm0, %v2443_v0 }
  0x2f   : > { %217 = vst.msk [vmem:[#allocation2 + $0x98] sm:$0xff] %vm197_vm0, %v2443_v0 }
  0x30   : > { %218 = vst.msk [vmem:[#allocation2 + $0xa0] sm:$0xff] %vm197_vm0, %v2443_v0 }
  0x31   : > { %219 = vst.msk [vmem:[#allocation2 + $0xa8] sm:$0xff] %vm197_vm0, %v2443_v0 }
  0x32   : > { %220 = vst.msk [vmem:[#allocation2 + $0xb0] sm:$0xff] %vm197_vm0, %v2443_v0 }
  0x33   : > { %221 = vst.msk [vmem:[#allocation2 + $0xb8] sm:$0xff] %vm197_vm0, %v2443_v0 }
  0x34   : > { %222 = vst.msk [vmem:[#allocation2 + $0xc0] sm:$0xff] %vm197_vm0, %v2443_v0 }
  0x35   : > { %223 = vst.msk [vmem:[#allocation2 + $0xc8] sm:$0xff] %vm197_vm0, %v2443_v0 }
  0x36   : > { %224 = vst.msk [vmem:[#allocation2 + $0xd0] sm:$0xff] %vm197_vm0, %v2443_v0 }
  0x37   : > { %225 = vst.msk [vmem:[#allocation2 + $0xd8] sm:$0xff] %vm197_vm0, %v2443_v0 }
  0x38   : > { %226 = vst.msk [vmem:[#allocation2 + $0xe0] sm:$0xff] %vm197_vm0, %v2443_v0 }
  0x39   : > { %227 = vst.msk [vmem:[#allocation2 + $0xe8] sm:$0xff] %vm197_vm0, %v2443_v0 }
  0x3a   : > { %228 = vst.msk [vmem:[#allocation2 + $0xf0] sm:$0xff] %vm197_vm0, %v2443_v0 }
  0x3b   : > { %229 = vst.msk [vmem:[#allocation2 + $0xf8] sm:$0xff] %vm197_vm0, %v2443_v0 }
  0x3c   : > { %230 = vst.msk [vmem:[#allocation2 + $0x100] sm:$0xff] %vm197_vm0, %v2443_v0 }
  0x3d   : > { %231 = vst.msk [vmem:[#allocation2 + $0x108] sm:$0xff] %vm197_vm0, %v2443_v0 }
  0x3e   : > { %232 = vst.msk [vmem:[#allocation2 + $0x110] sm:$0xff] %vm197_vm0, %v2443_v0 }
  0x3f   : > { %233 = vst.msk [vmem:[#allocation2 + $0x118] sm:$0xff] %vm197_vm0, %v2443_v0 }
  0x40   : > { %234 = vst.msk [vmem:[#allocation2 + $0x120] sm:$0xff] %vm197_vm0, %v2443_v0 }
  0x41   : > { %235 = vst.msk [vmem:[#allocation2 + $0x128] sm:$0xff] %vm197_vm0, %v2443_v0 }
  0x42   : > { %236 = vst.msk [vmem:[#allocation2 + $0x130] sm:$0xff] %vm197_vm0, %v2443_v0 }
  0x43   : > { %237 = vst.msk [vmem:[#allocation2 + $0x138] sm:$0xff] %vm197_vm0, %v2443_v0 }
  0x44   : > { %238 = vst.msk [vmem:[#allocation2 + $0x140] sm:$0xff] %vm197_vm0, %v2443_v0 }
  0x45   : > { %239 = vst.msk [vmem:[#allocation2 + $0x148] sm:$0xff] %vm197_vm0, %v2443_v0 }
  0x46   : > { %240 = vst.msk [vmem:[#allocation2 + $0x150] sm:$0xff] %vm197_vm0, %v2443_v0 }
  0x47   : > { %241 = vst.msk [vmem:[#allocation2 + $0x158] sm:$0xff] %vm197_vm0, %v2443_v0 }
  0x48   : > { %242 = vst.msk [vmem:[#allocation2 + $0x160] sm:$0xff] %vm197_vm0, %v2443_v0 }
  0x49   : > { %243 = vst.msk [vmem:[#allocation2 + $0x168] sm:$0xff] %vm197_vm0, %v2443_v0 }
  0x4a   : > { %244 = vst.msk [vmem:[#allocation2 + $0x170] sm:$0xff] %vm197_vm0, %v2443_v0 }
  0x4b   : > { %245 = vst.msk [vmem:[#allocation2 + $0x178] sm:$0xff] %vm197_vm0, %v2443_v0 }
  0x4c   : > { %246 = vst.msk [vmem:[#allocation2 + $0x180] sm:$0xff] %vm197_vm0, %v2443_v0 }
  0x4d   : > { %247 = vst.msk [vmem:[#allocation2 + $0x188] sm:$0xff] %vm197_vm0, %v2443_v0 }
  0x4e   : > { %248 = vst.msk [vmem:[#allocation2 + $0x190] sm:$0xff] %vm197_vm0, %v2443_v0 }
  0x4f   : > { %249 = vst.msk [vmem:[#allocation2 + $0x198] sm:$0xff] %vm197_vm0, %v2443_v0 }
  0x50   : > { %250 = vst.msk [vmem:[#allocation2 + $0x1a0] sm:$0xff] %vm197_vm0, %v2443_v0 }
  0x51   : > { %251 = vst.msk [vmem:[#allocation2 + $0x1a8] sm:$0xff] %vm197_vm0, %v2443_v0 }
  0x52   : > { %252 = vst.msk [vmem:[#allocation2 + $0x1b0] sm:$0xff] %vm197_vm0, %v2443_v0 }
  0x53   : > { %253 = vst.msk [vmem:[#allocation2 + $0x1b8] sm:$0xff] %vm197_vm0, %v2443_v0 }
  0x54   : > { %254 = vst.msk [vmem:[#allocation2 + $0x1c0] sm:$0xff] %vm197_vm0, %v2443_v0 }
  0x55   : > { %255 = vst.msk [vmem:[#allocation2 + $0x1c8] sm:$0xff] %vm197_vm0, %v2443_v0 }
  0x56   : > { %256 = vst.msk [vmem:[#allocation2 + $0x1d0] sm:$0xff] %vm197_vm0, %v2443_v0 }
  0x57   : > { %257 = vst.msk [vmem:[#allocation2 + $0x1d8] sm:$0xff] %vm197_vm0, %v2443_v0 }
  0x58   : > { %258 = vst.msk [vmem:[#allocation2 + $0x1e0] sm:$0xff] %vm197_vm0, %v2443_v0 }
  0x59   : > { %259 = vst.msk [vmem:[#allocation2 + $0x1e8] sm:$0xff] %vm197_vm0, %v2443_v0 }
  0x5a   : > { %260 = vst.msk [vmem:[#allocation2 + $0x1f0] sm:$0xff] %vm197_vm0, %v2443_v0 }
  0x5b   : > { %261 = vst.msk [vmem:[#allocation2 + $0x1f8] sm:$0xff] %vm197_vm0, %v2443_v0 }
  0x5c PF: > { %v2172_v1 = vld [vmem:[%s3183_s1 + $0x38] sm:$0xff]  ;;  %v2171_v2 = vld [vmem:[%s3183_s1 + $0x30] sm:$0xff]  ;;  %v2170_v3 = vld [vmem:[%s3183_s1 + $0x28] sm:$0xff]  ;;  %vm1263_vm2 = vcmask 27648   ;;  %vm1456_vm3 = vcmask 31744   ;;  %v2444_v57 = vmov 0.0  }
  0x5d   : > { %582 = vmatpush.bf16.msra.mxu0 %v2172_v1  ;;  %2175 = vmatpush.bf16.msra.mxu1 %v2172_v1  ;;  %v2169_v4 = vld [vmem:[%s3183_s1 + $0x20] sm:$0xff]  ;;  %v2168_v5 = vld [vmem:[%s3183_s1 + $0x18] sm:$0xff]  ;;  %v2167_v6 = vld [vmem:[%s3183_s1 + $0x10] sm:$0xff]  ;;  %s2200_s9 = smul.u32 (%p2504_p5), 625, %s2393_s11 }
  0x5e   : > { %2176 = vmatpush.bf16.msra.mxu2 %v2172_v1  ;;  %2177 = vmatpush.bf16.msra.mxu3 %v2172_v1  ;;  %v2166_v7 = vld [vmem:[%s3183_s1 + $0x8] sm:$0xff]  ;;  %v2165_v8 = vld [vmem:[%s3183_s1] sm:$0xff]  ;;  %v2135_v17 = vld [vmem:[%s2527_s7 + $0x10] sm:$0xff] }
  0x5f   : > { %v2133_v9 = vld [vmem:[%s2527_s7] sm:$0xff]  ;;  %v2134_v13 = vld [vmem:[%s2527_s7 + $0x8] sm:$0xff]  ;;  %v2143_v18 = vld [vmem:[%s2527_s7 + $0x50] sm:$0xff]  ;;  %s1535_s12 = sadd.s32 (%p2504_p5), %s2200_s9, %s2518_s26 }
  0x60   : > { %v2141_v10 = vld [vmem:[%s2527_s7 + $0x40] sm:$0xff]  ;;  %v2142_v14 = vld [vmem:[%s2527_s7 + $0x48] sm:$0xff]  ;;  %v2151_v19 = vld [vmem:[%s2527_s7 + $0x90] sm:$0xff]  ;;  %s2120_s18 = sshll.u32 (%p2504_p5), %s1535_s12, 2 }
  0x61   : > { %583 = vmatpush.bf16.msra.mxu0 %v2171_v2  ;;  %2178 = vmatpush.bf16.msra.mxu1 %v2171_v2  ;;  %v2149_v11 = vld [vmem:[%s2527_s7 + $0x80] sm:$0xff]  ;;  %v2150_v15 = vld [vmem:[%s2527_s7 + $0x88] sm:$0xff]  ;;  %v2159_v20 = vld [vmem:[%s2527_s7 + $0xd0] sm:$0xff]  ;;  %s3039_s23 = scalar_lea.vmem (%p2504_p5), %s3184_s2, %s2120_s18  }
  0x62   : > { %2179 = vmatpush.bf16.msra.mxu2 %v2171_v2  ;;  %2180 = vmatpush.bf16.msra.mxu3 %v2171_v2  ;;  %v2157_v12 = vld [vmem:[%s2527_s7 + $0xc0] sm:$0xff]  ;;  %v2158_v16 = vld [vmem:[%s2527_s7 + $0xc8] sm:$0xff]  ;;  %v2136_v21 = vld [vmem:[%s2527_s7 + $0x18] sm:$0xff] }
  0x63   : > { %v2144_v22 = vld [vmem:[%s2527_s7 + $0x58] sm:$0xff]  ;;  %v2137_v25 = vld [vmem:[%s2527_s7 + $0x20] sm:$0xff]  ;;  %v2138_v29 = vld [vmem:[%s2527_s7 + $0x28] sm:$0xff] }
  0x64   : > { %v2152_v23 = vld [vmem:[%s2527_s7 + $0x98] sm:$0xff]  ;;  %v2145_v26 = vld [vmem:[%s2527_s7 + $0x60] sm:$0xff]  ;;  %v2146_v30 = vld [vmem:[%s2527_s7 + $0x68] sm:$0xff] }
  0x65   : > { %584 = vmatpush.bf16.msra.mxu0 %v2170_v3  ;;  %2181 = vmatpush.bf16.msra.mxu1 %v2170_v3  ;;  %v2160_v24 = vld [vmem:[%s2527_s7 + $0xd8] sm:$0xff]  ;;  %v2153_v27 = vld [vmem:[%s2527_s7 + $0xa0] sm:$0xff]  ;;  %v2154_v31 = vld [vmem:[%s2527_s7 + $0xa8] sm:$0xff] }
  0x66   : > { %2182 = vmatpush.bf16.msra.mxu2 %v2170_v3  ;;  %2183 = vmatpush.bf16.msra.mxu3 %v2170_v3  ;;  %v2161_v28 = vld [vmem:[%s2527_s7 + $0xe0] sm:$0xff]  ;;  %v2162_v32 = vld [vmem:[%s2527_s7 + $0xe8] sm:$0xff]  ;;  %v2139_v33 = vld [vmem:[%s2527_s7 + $0x30] sm:$0xff] }
  0x67   : > { %v2147_v34 = vld [vmem:[%s2527_s7 + $0x70] sm:$0xff]  ;;  %v2140_v37 = vld [vmem:[%s2527_s7 + $0x38] sm:$0xff]  ;;  %v751_v41 = vld [vmem:[#allocation2] sm:$0xff] }
  0x68   : > { %v2155_v35 = vld [vmem:[%s2527_s7 + $0xb0] sm:$0xff]  ;;  %v2148_v38 = vld [vmem:[%s2527_s7 + $0x78] sm:$0xff]  ;;  %v767_v42 = vld [vmem:[#allocation2 + $0x80] sm:$0xff] }
  0x69   : > { %585 = vmatpush.bf16.msra.mxu0 %v2169_v4  ;;  %2184 = vmatpush.bf16.msra.mxu1 %v2169_v4  ;;  %v2163_v36 = vld [vmem:[%s2527_s7 + $0xf0] sm:$0xff]  ;;  %v2156_v39 = vld [vmem:[%s2527_s7 + $0xb8] sm:$0xff]  ;;  %v783_v51 = vld [vmem:[#allocation2 + $0x100] sm:$0xff] }
  0x6a   : > { %2185 = vmatpush.bf16.msra.mxu2 %v2169_v4  ;;  %2186 = vmatpush.bf16.msra.mxu3 %v2169_v4  ;;  %v2164_v40 = vld [vmem:[%s2527_s7 + $0xf8] sm:$0xff]  ;;  %v799_v52 = vld [vmem:[#allocation2 + $0x180] sm:$0xff]  ;;  %v752_v55 = vld [vmem:[#allocation2 + $0x8] sm:$0xff]  ;;  %s1529_s7 = ssub.s32 (%p2504_p5), 625, %s2518_s26 }
  0x6b   : > { %v768_v56 = vld [vmem:[#allocation2 + $0x88] sm:$0xff]  ;;  %p1530_p12 = scmp.lt.s32.totalorder (%p2504_p5), %s1529_s7, 64 }
  0x6d   : > { %586 = vmatpush.bf16.msra.mxu0 %v2168_v5  ;;  %2187 = vmatpush.bf16.msra.mxu1 %v2168_v5 }
  0x6e   : > { %2188 = vmatpush.bf16.msra.mxu2 %v2168_v5  ;;  %2189 = vmatpush.bf16.msra.mxu3 %v2168_v5 }
  0x71   : > { %587 = vmatpush.bf16.msra.mxu0 %v2167_v6  ;;  %2190 = vmatpush.bf16.msra.mxu1 %v2167_v6 }
  0x72   : > { %2191 = vmatpush.bf16.msra.mxu2 %v2167_v6  ;;  %2192 = vmatpush.bf16.msra.mxu3 %v2167_v6 }
  0x75   : > { %588 = vmatpush.bf16.msra.mxu0 %v2166_v7  ;;  %2193 = vmatpush.bf16.msra.mxu1 %v2166_v7 }
  0x76   : > { %2194 = vmatpush.bf16.msra.mxu2 %v2166_v7  ;;  %2195 = vmatpush.bf16.msra.mxu3 %v2166_v7 }
  0x79   : > { %589 = vmatpush.bf16.msra.mxu0 %v2165_v8  ;;  %2196 = vmatpush.bf16.msra.mxu1 %v2165_v8 }
  0x7a   : > { %2197 = vmatpush.bf16.msra.mxu2 %v2165_v8  ;;  %2198 = vmatpush.bf16.msra.mxu3 %v2165_v8 }
  0x7c   : > { %590 = vmatmul.bf16.vlgmr.msra.gmra.mxu0 %v2133_v9  ;;  %630 = vmatmul.bf16.vlgmr.msra.gmra.mxu1 %v2141_v10 }
  0x7d   : > { %670 = vmatmul.bf16.vlgmr.msra.gmra.mxu2 %v2149_v11  ;;  %710 = vmatmul.bf16.vlgmr.msra.gmra.mxu3 %v2157_v12 }
  0x8c   : > { %595 = vmatmul.bf16.gmra.mxu0 %v2134_v13  ;;  %635 = vmatmul.bf16.gmra.mxu1 %v2142_v14 }
  0x8d   : > { %675 = vmatmul.bf16.gmra.mxu2 %v2150_v15  ;;  %715 = vmatmul.bf16.gmra.mxu3 %v2158_v16  ;;  %v784_v16 = vld [vmem:[#allocation2 + $0x108] sm:$0xff] }
  0x9c   : > { %600 = vmatmul.bf16.gmra.mxu0 %v2135_v17  ;;  %640 = vmatmul.bf16.gmra.mxu1 %v2143_v18  ;;  %v800_v17 = vld [vmem:[#allocation2 + $0x188] sm:$0xff] }
  0x9d   : > { %680 = vmatmul.bf16.gmra.mxu2 %v2151_v19  ;;  %720 = vmatmul.bf16.gmra.mxu3 %v2159_v20 }
  0xac   : > { %605 = vmatmul.bf16.gmra.mxu0 %v2136_v21  ;;  %645 = vmatmul.bf16.gmra.mxu1 %v2144_v22 }
  0xad   : > { %685 = vmatmul.bf16.gmra.mxu2 %v2152_v23  ;;  %725 = vmatmul.bf16.gmra.mxu3 %v2160_v24 }
  0xbc   : > { %610 = vmatmul.bf16.gmra.mxu0 %v2137_v25  ;;  %650 = vmatmul.bf16.gmra.mxu1 %v2145_v26 }
  0xbd   : > { %690 = vmatmul.bf16.gmra.mxu2 %v2153_v27  ;;  %730 = vmatmul.bf16.gmra.mxu3 %v2161_v28 }
  0xcc   : > { %615 = vmatmul.bf16.gmra.mxu0 %v2138_v29  ;;  %655 = vmatmul.bf16.gmra.mxu1 %v2146_v30  ;;  %v753_v30 = vld [vmem:[#allocation2 + $0x10] sm:$0xff] }
  0xcd   : > { %695 = vmatmul.bf16.gmra.mxu2 %v2154_v31  ;;  %735 = vmatmul.bf16.gmra.mxu3 %v2162_v32  ;;  %v769_v31 = vld [vmem:[#allocation2 + $0x90] sm:$0xff] }
  0xdc   : > { %620 = vmatmul.bf16.gmra.mxu0 %v2139_v33  ;;  %660 = vmatmul.bf16.gmra.mxu1 %v2147_v34 }
  0xdd   : > { %700 = vmatmul.bf16.gmra.mxu2 %v2155_v35  ;;  %740 = vmatmul.bf16.gmra.mxu3 %v2163_v36 }
  0xec   : > { %625 = vmatmul.bf16.gmra.mxu0 %v2140_v37  ;;  %665 = vmatmul.bf16.gmra.mxu1 %v2148_v38 }
  0xed   : > { %705 = vmatmul.bf16.gmra.mxu2 %v2156_v39  ;;  %745 = vmatmul.bf16.gmra.mxu3 %v2164_v40 }
  0xf9   : > { %v591_v43 = vpop.f32.mrf.mxu0  ;;  %v631_v44 = vpop.f32.mrf.mxu1 }
  0xfa   : > { %v815_v45 = vsub.f32 %v591_v43, %v751_v41  ;;  %v831_v46 = vsub.f32 %v631_v44, %v767_v42 }
  0xfc   : > { %v879_v47 = vmul.f32 0.5, %v815_v45  ;;  %v895_v48 = vmul.f32 0.5, %v831_v46 }
  0xfe   : > { %v943_v49 = vadd.f32 %v879_v47, %v751_v41  ;;  %v959_v50 = vadd.f32 %v895_v48, %v767_v42 }
 0x100   : > { %vm1007_vm1 = vcmp.ge.f32.partialorder %v943_v49, 1.0  ;;  %vm1023_vm4 = vcmp.ge.f32.partialorder %v959_v50, 1.0  ;;  %v671_v53 = vpop.f32.mrf.mxu2  ;;  %v711_v54 = vpop.f32.mrf.mxu3 }
 0x101   : > { %v2052_v58 = vsel %vm1007_vm1, 1.0, %v2444_v57  ;;  %v2068_v59 = vsel %vm1023_vm4, 1.0, %v2444_v57  ;;  %v847_v60 = vsub.f32 %v671_v53, %v783_v51  ;;  %v863_v61 = vsub.f32 %v711_v54, %v799_v52  ;;  %v593_v62 = vpop.f32.mrf.mxu0  ;;  %v633_v63 = vpop.f32.mrf.mxu1 }
 0x102   : > { %v1199_v0 = vpack.c.bf16 %v2052_v58, %v2052_v58  ;;  %v1328_v1 = vsub.f32 1.0, %v2052_v58  ;;  %v1215_v2 = vpack.c.bf16 %v2068_v59, %v2068_v59  ;;  %v1344_v3 = vsub.f32 1.0, %v2068_v59 }
 0x103   : > { %v911_v4 = vmul.f32 0.5, %v847_v60  ;;  %v927_v5 = vmul.f32 0.5, %v863_v61  ;;  %v816_v6 = vsub.f32 %v593_v62, %v752_v55  ;;  %v832_v7 = vsub.f32 %v633_v63, %v768_v56 }
 0x104   : > { %1264 = vst.msk [vmem:[%s2529_s8] sm:$0xf] %vm1263_vm2, %v1199_v0  ;;  %v1392_v8 = vmul.f32 %v1328_v1, %v943_v49  ;;  %v1408_v9 = vmul.f32 %v1344_v3, %v959_v50  ;;  %v785_v50 = vld [vmem:[#allocation2 + $0x110] sm:$0xff] }
 0x105   : > { %1280 = vst.msk [vmem:[%s2529_s8 + $0x40] sm:$0xf] %vm1263_vm2, %v1215_v2  ;;  %v975_v10 = vadd.f32 %v911_v4, %v783_v51  ;;  %v991_v11 = vadd.f32 %v927_v5, %v799_v52  ;;  %v880_v12 = vmul.f32 0.5, %v816_v6  ;;  %v896_v13 = vmul.f32 0.5, %v832_v7  ;;  %v801_v51 = vld [vmem:[#allocation2 + $0x190] sm:$0xff]  ;;  %v754_v5 = vld [vmem:[#allocation2 + $0x18] sm:$0xff] }
 0x106   : > { %1457 = vst.msk [vmem:[#allocation2] sm:$0xff] %vm1456_vm3, %v1392_v8  ;;  %v770_v6 = vld [vmem:[#allocation2 + $0x98] sm:$0xff] }
 0x107   : > { %1473 = vst.msk [vmem:[#allocation2 + $0x80] sm:$0xff] %vm1456_vm3, %v1408_v9  ;;  %vm1039_vm5 = vcmp.ge.f32.partialorder %v975_v10, 1.0  ;;  %vm1055_vm6 = vcmp.ge.f32.partialorder %v991_v11, 1.0  ;;  %v944_v14 = vadd.f32 %v880_v12, %v752_v55  ;;  %v960_v15 = vadd.f32 %v896_v13, %v768_v56 }
 0x108   : > { %v2084_v18 = vsel %vm1039_vm5, 1.0, %v2444_v57  ;;  %v2100_v19 = vsel %vm1055_vm6, 1.0, %v2444_v57  ;;  %v673_v20 = vpop.f32.mrf.mxu2  ;;  %v713_v21 = vpop.f32.mrf.mxu3 }
 0x109   : > { %v1231_v22 = vpack.c.bf16 %v2084_v18, %v2084_v18  ;;  %v1360_v23 = vsub.f32 1.0, %v2084_v18  ;;  %v1247_v24 = vpack.c.bf16 %v2100_v19, %v2100_v19  ;;  %v1376_v25 = vsub.f32 1.0, %v2100_v19  ;;  %v596_v26 = vpop.f32.mrf.mxu0  ;;  %v636_v27 = vpop.f32.mrf.mxu1  ;;  %v786_v19 = vld [vmem:[#allocation2 + $0x118] sm:$0xff] }
 0x10a   : > { %vm1008_vm7 = vcmp.ge.f32.partialorder %v944_v14, 1.0  ;;  %vm1024_vm8 = vcmp.ge.f32.partialorder %v960_v15, 1.0  ;;  %v848_v28 = vsub.f32 %v673_v20, %v784_v16  ;;  %v864_v29 = vsub.f32 %v713_v21, %v800_v17  ;;  %v802_v20 = vld [vmem:[#allocation2 + $0x198] sm:$0xff] }
 0x10b   : > { %1296 = vst.msk [vmem:[%s2529_s8 + $0x80] sm:$0xf] %vm1263_vm2, %v1231_v22  ;;  %v1424_v32 = vmul.f32 %v1360_v23, %v975_v10  ;;  %v1440_v33 = vmul.f32 %v1376_v25, %v991_v11  ;;  %v2053_v34 = vsel %vm1008_vm7, 1.0, %v2444_v57  ;;  %v2069_v35 = vsel %vm1024_vm8, 1.0, %v2444_v57 }
 0x10c   : > { %1312 = vst.msk [vmem:[%s2529_s8 + $0xc0] sm:$0xf] %vm1263_vm2, %v1247_v24  ;;  %v1200_v36 = vpack.c.bf16 %v2053_v34, %v2053_v34  ;;  %v1329_v37 = vsub.f32 1.0, %v2053_v34  ;;  %v1216_v38 = vpack.c.bf16 %v2069_v35, %v2069_v35  ;;  %v1345_v39 = vsub.f32 1.0, %v2069_v35  ;;  %v771_v34 = vld [vmem:[#allocation2 + $0xa0] sm:$0xff] }
 0x10d   : > { %1489 = vst.msk [vmem:[#allocation2 + $0x100] sm:$0xff] %vm1456_vm3, %v1424_v32  ;;  %v912_v40 = vmul.f32 0.5, %v848_v28  ;;  %v928_v41 = vmul.f32 0.5, %v864_v29  ;;  %v817_v42 = vsub.f32 %v596_v26, %v753_v30  ;;  %v833_v43 = vsub.f32 %v636_v27, %v769_v31 }
 0x10e   : > { %1505 = vst.msk [vmem:[#allocation2 + $0x180] sm:$0xff] %vm1456_vm3, %v1440_v33  ;;  %v1393_v44 = vmul.f32 %v1329_v37, %v944_v14  ;;  %v1409_v45 = vmul.f32 %v1345_v39, %v960_v15  ;;  %v755_v33 = vld [vmem:[#allocation2 + $0x20] sm:$0xff] }
 0x10f   : > { %1265 = vst.msk [vmem:[%s2529_s8 + $0x4] sm:$0xf] %vm1263_vm2, %v1200_v36  ;;  %v976_v46 = vadd.f32 %v912_v40, %v784_v16  ;;  %v992_v47 = vadd.f32 %v928_v41, %v800_v17  ;;  %v881_v48 = vmul.f32 0.5, %v817_v42  ;;  %v897_v49 = vmul.f32 0.5, %v833_v43 }
 0x110   : > { %1458 = vst.msk [vmem:[#allocation2 + $0x8] sm:$0xff] %vm1456_vm3, %v1393_v44  ;;  %v676_v52 = vpop.f32.mrf.mxu2  ;;  %v716_v53 = vpop.f32.mrf.mxu3 }
 0x111   : > { %1281 = vst.msk [vmem:[%s2529_s8 + $0x44] sm:$0xf] %vm1263_vm2, %v1216_v38  ;;  %vm1040_vm9 = vcmp.ge.f32.partialorder %v976_v46, 1.0  ;;  %vm1056_vm10 = vcmp.ge.f32.partialorder %v992_v47, 1.0  ;;  %v945_v54 = vadd.f32 %v881_v48, %v753_v30  ;;  %v961_v55 = vadd.f32 %v897_v49, %v769_v31  ;;  %v598_v56 = vpop.f32.mrf.mxu0  ;;  %v638_v58 = vpop.f32.mrf.mxu1 }
 0x112   : > { %1474 = vst.msk [vmem:[#allocation2 + $0x88] sm:$0xff] %vm1456_vm3, %v1409_v45  ;;  %v2085_v59 = vsel %vm1040_vm9, 1.0, %v2444_v57  ;;  %v2101_v60 = vsel %vm1056_vm10, 1.0, %v2444_v57  ;;  %v849_v61 = vsub.f32 %v676_v52, %v785_v50  ;;  %v865_v62 = vsub.f32 %v716_v53, %v801_v51 }
 0x113   : > { %v1232_v63 = vpack.c.bf16 %v2085_v59, %v2085_v59  ;;  %v1361_v0 = vsub.f32 1.0, %v2085_v59  ;;  %v1248_v1 = vpack.c.bf16 %v2101_v60, %v2101_v60  ;;  %v1377_v2 = vsub.f32 1.0, %v2101_v60 }
 0x114   : > { %vm1009_vm11 = vcmp.ge.f32.partialorder %v945_v54, 1.0  ;;  %vm1025_vm12 = vcmp.ge.f32.partialorder %v961_v55, 1.0  ;;  %v913_v3 = vmul.f32 0.5, %v849_v61  ;;  %v929_v4 = vmul.f32 0.5, %v865_v62  ;;  %v787_v62 = vld [vmem:[#allocation2 + $0x120] sm:$0xff] }
 0x115   : > { %1297 = vst.msk [vmem:[%s2529_s8 + $0x84] sm:$0xf] %vm1263_vm2, %v1232_v63  ;;  %v1425_v7 = vmul.f32 %v1361_v0, %v976_v46  ;;  %v1441_v8 = vmul.f32 %v1377_v2, %v992_v47  ;;  %v2054_v9 = vsel %vm1009_vm11, 1.0, %v2444_v57  ;;  %v2070_v10 = vsel %vm1025_vm12, 1.0, %v2444_v57  ;;  %v803_v63 = vld [vmem:[#allocation2 + $0x1a0] sm:$0xff] }
 0x116   : > { %1313 = vst.msk [vmem:[%s2529_s8 + $0xc4] sm:$0xf] %vm1263_vm2, %v1248_v1  ;;  %v1201_v11 = vpack.c.bf16 %v2054_v9, %v2054_v9  ;;  %v1330_v12 = vsub.f32 1.0, %v2054_v9  ;;  %v1217_v13 = vpack.c.bf16 %v2070_v10, %v2070_v10  ;;  %v1346_v14 = vsub.f32 1.0, %v2070_v10 }
 0x117   : > { %1490 = vst.msk [vmem:[#allocation2 + $0x108] sm:$0xff] %vm1456_vm3, %v1425_v7  ;;  %v977_v15 = vadd.f32 %v913_v3, %v785_v50  ;;  %v993_v16 = vadd.f32 %v929_v4, %v801_v51  ;;  %v818_v17 = vsub.f32 %v598_v56, %v754_v5  ;;  %v834_v18 = vsub.f32 %v638_v58, %v770_v6 }
 0x118   : > { %1506 = vst.msk [vmem:[#allocation2 + $0x188] sm:$0xff] %vm1456_vm3, %v1441_v8  ;;  %v1394_v21 = vmul.f32 %v1330_v12, %v945_v54  ;;  %v1410_v22 = vmul.f32 %v1346_v14, %v961_v55  ;;  %v678_v23 = vpop.f32.mrf.mxu2  ;;  %v718_v24 = vpop.f32.mrf.mxu3  ;;  %v756_v12 = vld [vmem:[#allocation2 + $0x28] sm:$0xff] }
 0x119   : > { %1266 = vst.msk [vmem:[%s2529_s8 + $0x8] sm:$0xf] %vm1263_vm2, %v1201_v11  ;;  %vm1041_vm13 = vcmp.ge.f32.partialorder %v977_v15, 1.0  ;;  %vm1057_vm14 = vcmp.ge.f32.partialorder %v993_v16, 1.0  ;;  %v882_v25 = vmul.f32 0.5, %v818_v17  ;;  %v898_v26 = vmul.f32 0.5, %v834_v18  ;;  %v601_v27 = vpop.f32.mrf.mxu0  ;;  %v641_v28 = vpop.f32.mrf.mxu1 }
 0x11a   : > { %1459 = vst.msk [vmem:[#allocation2 + $0x10] sm:$0xff] %vm1456_vm3, %v1394_v21  ;;  %v2086_v29 = vsel %vm1041_vm13, 1.0, %v2444_v57  ;;  %v2102_v30 = vsel %vm1057_vm14, 1.0, %v2444_v57  ;;  %v850_v31 = vsub.f32 %v678_v23, %v786_v19  ;;  %v866_v32 = vsub.f32 %v718_v24, %v802_v20  ;;  %v788_v21 = vld [vmem:[#allocation2 + $0x128] sm:$0xff] }
 0x11b   : > { %1282 = vst.msk [vmem:[%s2529_s8 + $0x48] sm:$0xf] %vm1263_vm2, %v1217_v13  ;;  %v1233_v35 = vpack.c.bf16 %v2086_v29, %v2086_v29  ;;  %v1362_v36 = vsub.f32 1.0, %v2086_v29  ;;  %v1249_v37 = vpack.c.bf16 %v2102_v30, %v2102_v30  ;;  %v1378_v38 = vsub.f32 1.0, %v2102_v30  ;;  %v772_v13 = vld [vmem:[#allocation2 + $0xa8] sm:$0xff] }
 0x11c   : > { %1475 = vst.msk [vmem:[#allocation2 + $0x90] sm:$0xff] %vm1456_vm3, %v1410_v22  ;;  %v946_v39 = vadd.f32 %v882_v25, %v754_v5  ;;  %v962_v40 = vadd.f32 %v898_v26, %v770_v6  ;;  %v914_v41 = vmul.f32 0.5, %v850_v31  ;;  %v930_v42 = vmul.f32 0.5, %v866_v32  ;;  %v804_v26 = vld [vmem:[#allocation2 + $0x1a8] sm:$0xff] }
 0x11d   : > { %1298 = vst.msk [vmem:[%s2529_s8 + $0x88] sm:$0xf] %vm1263_vm2, %v1233_v35  ;;  %v1426_v43 = vmul.f32 %v1362_v36, %v977_v15  ;;  %v1442_v44 = vmul.f32 %v1378_v38, %v993_v16  ;;  %v819_v45 = vsub.f32 %v601_v27, %v755_v33  ;;  %v835_v46 = vsub.f32 %v641_v28, %v771_v34  ;;  %v2779_v27 = vld [vmem:[#allocation2 + $0x30] sm:$0xff] }
 0x11e   : > { %1314 = vst.msk [vmem:[%s2529_s8 + $0xc8] sm:$0xf] %vm1263_vm2, %v1249_v37  ;;  %vm1010_vm15 = vcmp.ge.f32.partialorder %v946_v39, 1.0  ;;  %vm1026_vm0 = vcmp.ge.f32.partialorder %v962_v40, 1.0  ;;  %v978_v47 = vadd.f32 %v914_v41, %v786_v19  ;;  %v994_v48 = vadd.f32 %v930_v42, %v802_v20  ;;  %v2781_v28 = vld [vmem:[#allocation2 + $0xb0] sm:$0xff] }
 0x11f   : > { %1491 = vst.msk [vmem:[#allocation2 + $0x110] sm:$0xff] %vm1456_vm3, %v1426_v43  ;;  %v2055_v49 = vsel %vm1010_vm15, 1.0, %v2444_v57  ;;  %v2071_v50 = vsel %vm1026_vm0, 1.0, %v2444_v57  ;;  %v883_v51 = vmul.f32 0.5, %v819_v45  ;;  %v899_v52 = vmul.f32 0.5, %v835_v46 }
 0x120   : > { %1507 = vst.msk [vmem:[#allocation2 + $0x190] sm:$0xff] %vm1456_vm3, %v1442_v44  ;;  %v1202_v53 = vpack.c.bf16 %v2055_v49, %v2055_v49  ;;  %v1331_v54 = vsub.f32 1.0, %v2055_v49  ;;  %v1218_v55 = vpack.c.bf16 %v2071_v50, %v2071_v50  ;;  %v1347_v56 = vsub.f32 1.0, %v2071_v50  ;;  %v681_v58 = vpop.f32.mrf.mxu2  ;;  %v721_v59 = vpop.f32.mrf.mxu3 }
 0x121   : > { %vm1042_vm1 = vcmp.ge.f32.partialorder %v978_v47, 1.0  ;;  %vm1058_vm4 = vcmp.ge.f32.partialorder %v994_v48, 1.0  ;;  %v947_v60 = vadd.f32 %v883_v51, %v755_v33  ;;  %v963_v61 = vadd.f32 %v899_v52, %v771_v34  ;;  %v603_v0 = vpop.f32.mrf.mxu0  ;;  %v643_v1 = vpop.f32.mrf.mxu1 }
 0x122   : > { %1267 = vst.msk [vmem:[%s2529_s8 + $0xc] sm:$0xf] %vm1263_vm2, %v1202_v53  ;;  %v1395_v2 = vmul.f32 %v1331_v54, %v946_v39  ;;  %v1411_v3 = vmul.f32 %v1347_v56, %v962_v40  ;;  %v2087_v4 = vsel %vm1042_vm1, 1.0, %v2444_v57  ;;  %v2103_v5 = vsel %vm1058_vm4, 1.0, %v2444_v57 }
 0x123   : > { %1283 = vst.msk [vmem:[%s2529_s8 + $0x4c] sm:$0xf] %vm1263_vm2, %v1218_v55  ;;  %v1234_v6 = vpack.c.bf16 %v2087_v4, %v2087_v4  ;;  %v1363_v7 = vsub.f32 1.0, %v2087_v4  ;;  %v1250_v8 = vpack.c.bf16 %v2103_v5, %v2103_v5  ;;  %v1379_v9 = vsub.f32 1.0, %v2103_v5 }
 0x124   : > { %1460 = vst.msk [vmem:[#allocation2 + $0x18] sm:$0xff] %vm1456_vm3, %v1395_v2  ;;  %vm1011_vm5 = vcmp.ge.f32.partialorder %v947_v60, 1.0  ;;  %vm1027_vm6 = vcmp.ge.f32.partialorder %v963_v61, 1.0  ;;  %v851_v10 = vsub.f32 %v681_v58, %v787_v62  ;;  %v867_v11 = vsub.f32 %v721_v59, %v803_v63  ;;  %v789_v2 = vld [vmem:[#allocation2 + $0x130] sm:$0xff] }
 0x125   : > { %1476 = vst.msk [vmem:[#allocation2 + $0x98] sm:$0xff] %vm1456_vm3, %v1411_v3  ;;  %v1427_v14 = vmul.f32 %v1363_v7, %v978_v47  ;;  %v1443_v15 = vmul.f32 %v1379_v9, %v994_v48  ;;  %v2056_v16 = vsel %vm1011_vm5, 1.0, %v2444_v57  ;;  %v2072_v17 = vsel %vm1027_vm6, 1.0, %v2444_v57 }
 0x126   : > { %1299 = vst.msk [vmem:[%s2529_s8 + $0x8c] sm:$0xf] %vm1263_vm2, %v1234_v6  ;;  %v1203_v18 = vpack.c.bf16 %v2056_v16, %v2056_v16  ;;  %v1332_v19 = vsub.f32 1.0, %v2056_v16  ;;  %v1348_v20 = vsub.f32 1.0, %v2072_v17  ;;  %v915_v22 = vmul.f32 0.5, %v851_v10  ;;  %v805_v6 = vld [vmem:[#allocation2 + $0x1b0] sm:$0xff] }
 0x127   : > { %1492 = vst.msk [vmem:[#allocation2 + $0x118] sm:$0xff] %vm1456_vm3, %v1427_v14  ;;  %v931_v23 = vmul.f32 0.5, %v867_v11  ;;  %v820_v24 = vsub.f32 %v603_v0, %v756_v12  ;;  %v836_v25 = vsub.f32 %v643_v1, %v772_v13  ;;  %v1219_v30 = vpack.c.bf16 %v2072_v17, %v2072_v17  ;;  %v774_v14 = vld [vmem:[#allocation2 + $0xb8] sm:$0xff] }
 0x128   : > { %1315 = vst.msk [vmem:[%s2529_s8 + $0xcc] sm:$0xf] %vm1263_vm2, %v1250_v8  ;;  %v1396_v29 = vmul.f32 %v1332_v19, %v947_v60  ;;  %v1412_v31 = vmul.f32 %v1348_v20, %v963_v61  ;;  %v683_v32 = vpop.f32.mrf.mxu2  ;;  %v723_v33 = vpop.f32.mrf.mxu3  ;;  %v979_v34 = vadd.f32 %v915_v22, %v787_v62 }
 0x129   : > { %1508 = vst.msk [vmem:[#allocation2 + $0x198] sm:$0xff] %vm1456_vm3, %v1443_v15  ;;  %v995_v35 = vadd.f32 %v931_v23, %v803_v63  ;;  %v884_v36 = vmul.f32 0.5, %v820_v24  ;;  %v900_v37 = vmul.f32 0.5, %v836_v25  ;;  %v606_v38 = vpop.f32.mrf.mxu0  ;;  %v646_v39 = vpop.f32.mrf.mxu1  ;;  %v852_v40 = vsub.f32 %v683_v32, %v788_v21 }
 0x12a   : > { %1268 = vst.msk [vmem:[%s2529_s8 + $0x10] sm:$0xf] %vm1263_vm2, %v1203_v18  ;;  %v868_v41 = vsub.f32 %v723_v33, %v804_v26  ;;  %v821_v42 = vsub.f32 %v606_v38, %v2779_v27  ;;  %v837_v43 = vsub.f32 %v646_v39, %v2781_v28  ;;  %vm1043_vm7 = vcmp.ge.f32.partialorder %v979_v34, 1.0 }
 0x12b   : > { %1461 = vst.msk [vmem:[#allocation2 + $0x20] sm:$0xff] %vm1456_vm3, %v1396_v29  ;;  %vm1059_vm8 = vcmp.ge.f32.partialorder %v995_v35, 1.0  ;;  %v948_v44 = vadd.f32 %v884_v36, %v756_v12  ;;  %v964_v45 = vadd.f32 %v900_v37, %v772_v13  ;;  %v2088_v46 = vsel %vm1043_vm7, 1.0, %v2444_v57  ;;  %v758_v13 = vld [vmem:[#allocation2 + $0x38] sm:$0xff] }
 0x12c   : > { %1284 = vst.msk [vmem:[%s2529_s8 + $0x50] sm:$0xf] %vm1263_vm2, %v1219_v30  ;;  %v2104_v47 = vsel %vm1059_vm8, 1.0, %v2444_v57  ;;  %v916_v48 = vmul.f32 0.5, %v852_v40  ;;  %v932_v49 = vmul.f32 0.5, %v868_v41  ;;  %v1235_v50 = vpack.c.bf16 %v2088_v46, %v2088_v46  ;;  %v2813_v29 = vld [vmem:[#allocation2 + $0x138] sm:$0xff] }
 0x12d   : > { %1477 = vst.msk [vmem:[#allocation2 + $0xa0] sm:$0xff] %vm1456_vm3, %v1412_v31  ;;  %v1364_v51 = vsub.f32 1.0, %v2088_v46  ;;  %v1251_v52 = vpack.c.bf16 %v2104_v47, %v2104_v47  ;;  %v1380_v53 = vsub.f32 1.0, %v2104_v47  ;;  %vm1012_vm9 = vcmp.ge.f32.partialorder %v948_v44, 1.0  ;;  %v2816_v31 = vld [vmem:[#allocation2 + $0x1b8] sm:$0xff] }
 0x12e   : > { %vm1028_vm10 = vcmp.ge.f32.partialorder %v964_v45, 1.0  ;;  %v980_v54 = vadd.f32 %v916_v48, %v788_v21  ;;  %v996_v55 = vadd.f32 %v932_v49, %v804_v26  ;;  %1300 = vst.msk [vmem:[%s2529_s8 + $0x90] sm:$0xf] %vm1263_vm2, %v1235_v50  ;;  %v2057_v59 = vsel %vm1012_vm9, 1.0, %v2444_v57 }
 0x12f   : > { %v1428_v56 = vmul.f32 %v1364_v51, %v979_v34  ;;  %v1444_v58 = vmul.f32 %v1380_v53, %v995_v35  ;;  %v2073_v60 = vsel %vm1028_vm10, 1.0, %v2444_v57  ;;  %1316 = vst.msk [vmem:[%s2529_s8 + $0xd0] sm:$0xf] %vm1263_vm2, %v1251_v52  ;;  %v1204_v61 = vpack.c.bf16 %v2057_v59, %v2057_v59 }
 0x130   : > { %v1333_v62 = vsub.f32 1.0, %v2057_v59  ;;  %v1220_v63 = vpack.c.bf16 %v2073_v60, %v2073_v60  ;;  %v1349_v0 = vsub.f32 1.0, %v2073_v60  ;;  %v686_v1 = vpop.f32.mrf.mxu2  ;;  %v726_v3 = vpop.f32.mrf.mxu3  ;;  %vm1044_vm11 = vcmp.ge.f32.partialorder %v980_v54, 1.0  ;;  %v759_v60 = vld [vmem:[#allocation2 + $0x40] sm:$0xff] }
 0x131   : > { %1493 = vst.msk [vmem:[#allocation2 + $0x120] sm:$0xff] %vm1456_vm3, %v1428_v56  ;;  %vm1060_vm12 = vcmp.ge.f32.partialorder %v996_v55, 1.0  ;;  %v885_v4 = vmul.f32 0.5, %v821_v42  ;;  %v901_v5 = vmul.f32 0.5, %v837_v43  ;;  %v608_v7 = vpop.f32.mrf.mxu0  ;;  %v648_v8 = vpop.f32.mrf.mxu1  ;;  %v2089_v11 = vsel %vm1044_vm11, 1.0, %v2444_v57 }
 0x132   : > { %1509 = vst.msk [vmem:[#allocation2 + $0x1a0] sm:$0xff] %vm1456_vm3, %v1444_v58  ;;  %v1397_v9 = vmul.f32 %v1333_v62, %v948_v44  ;;  %v1413_v10 = vmul.f32 %v1349_v0, %v964_v45  ;;  %v2105_v12 = vsel %vm1060_vm12, 1.0, %v2444_v57  ;;  %v1236_v15 = vpack.c.bf16 %v2089_v11, %v2089_v11 }
 0x133   : > { %1269 = vst.msk [vmem:[%s2529_s8 + $0x14] sm:$0xf] %vm1263_vm2, %v1204_v61  ;;  %v1365_v16 = vsub.f32 1.0, %v2089_v11  ;;  %v1252_v17 = vpack.c.bf16 %v2105_v12, %v2105_v12  ;;  %v1381_v18 = vsub.f32 1.0, %v2105_v12  ;;  %v949_v19 = vadd.f32 %v885_v4, %v2779_v27  ;;  %v775_v61 = vld [vmem:[#allocation2 + $0xc0] sm:$0xff] }
 0x134   : > { %1462 = vst.msk [vmem:[#allocation2 + $0x28] sm:$0xff] %vm1456_vm3, %v1397_v9  ;;  %v965_v20 = vadd.f32 %v901_v5, %v2781_v28  ;;  %v853_v21 = vsub.f32 %v686_v1, %v789_v2  ;;  %v869_v22 = vsub.f32 %v726_v3, %v805_v6  ;;  %v822_v25 = vsub.f32 %v608_v7, %v758_v13  ;;  %v807_v3 = vld [vmem:[#allocation2 + $0x1c0] sm:$0xff]  ;;  %v2842_v9 = vld [vmem:[#allocation2 + $0xc8] sm:$0xff] }
 0x135   : > { %1285 = vst.msk [vmem:[%s2529_s8 + $0x54] sm:$0xf] %vm1263_vm2, %v1220_v63  ;;  %v1429_v23 = vmul.f32 %v1365_v16, %v980_v54  ;;  %v1445_v24 = vmul.f32 %v1381_v18, %v996_v55  ;;  %v838_v26 = vsub.f32 %v648_v8, %v774_v14  ;;  %vm1013_vm13 = vcmp.ge.f32.partialorder %v949_v19, 1.0  ;;  %v2840_v8 = vld [vmem:[#allocation2 + $0x48] sm:$0xff] }
 0x136   : > { %1478 = vst.msk [vmem:[#allocation2 + $0xa8] sm:$0xff] %vm1456_vm3, %v1413_v10  ;;  %vm1029_vm14 = vcmp.ge.f32.partialorder %v965_v20, 1.0  ;;  %v917_v30 = vmul.f32 0.5, %v853_v21  ;;  %v933_v27 = vmul.f32 0.5, %v869_v22  ;;  %v2058_v28 = vsel %vm1013_vm13, 1.0, %v2444_v57 }
 0x137   : > { %1301 = vst.msk [vmem:[%s2529_s8 + $0x94] sm:$0xf] %vm1263_vm2, %v1236_v15  ;;  %v2074_v32 = vsel %vm1029_vm14, 1.0, %v2444_v57  ;;  %v886_v33 = vmul.f32 0.5, %v822_v25  ;;  %v902_v34 = vmul.f32 0.5, %v838_v26  ;;  %v1205_v35 = vpack.c.bf16 %v2058_v28, %v2058_v28 }
 0x138   : > { %1494 = vst.msk [vmem:[#allocation2 + $0x128] sm:$0xff] %vm1456_vm3, %v1429_v23  ;;  %v1334_v36 = vsub.f32 1.0, %v2058_v28  ;;  %v1221_v37 = vpack.c.bf16 %v2074_v32, %v2074_v32  ;;  %v1350_v38 = vsub.f32 1.0, %v2074_v32  ;;  %v688_v39 = vpop.f32.mrf.mxu2  ;;  %v728_v40 = vpop.f32.mrf.mxu3  ;;  %v981_v41 = vadd.f32 %v917_v30, %v789_v2  ;;  %v791_v2 = vld [vmem:[#allocation2 + $0x140] sm:$0xff] }
 0x139   : > { %1317 = vst.msk [vmem:[%s2529_s8 + $0xd4] sm:$0xf] %vm1263_vm2, %v1252_v17  ;;  %v997_v42 = vadd.f32 %v933_v27, %v805_v6  ;;  %v950_v43 = vadd.f32 %v886_v33, %v758_v13  ;;  %v966_v44 = vadd.f32 %v902_v34, %v774_v14  ;;  %v611_v45 = vpop.f32.mrf.mxu0  ;;  %v651_v46 = vpop.f32.mrf.mxu1  ;;  %v854_v49 = vsub.f32 %v688_v39, %v2813_v29 }
 0x13a   : > { %1510 = vst.msk [vmem:[#allocation2 + $0x1a8] sm:$0xff] %vm1456_vm3, %v1445_v24  ;;  %v1398_v47 = vmul.f32 %v1334_v36, %v949_v19  ;;  %v1414_v48 = vmul.f32 %v1350_v38, %v965_v20  ;;  %v870_v50 = vsub.f32 %v728_v40, %v2816_v31  ;;  %vm1045_vm15 = vcmp.ge.f32.partialorder %v981_v41, 1.0 }
 0x13b   : > { %1270 = vst.msk [vmem:[%s2529_s8 + $0x18] sm:$0xf] %vm1263_vm2, %v1205_v35  ;;  %vm1061_vm0 = vcmp.ge.f32.partialorder %v997_v42, 1.0  ;;  %vm1014_vm1 = vcmp.ge.f32.partialorder %v950_v43, 1.0  ;;  %vm1030_vm4 = vcmp.ge.f32.partialorder %v966_v44, 1.0  ;;  %v2090_v51 = vsel %vm1045_vm15, 1.0, %v2444_v57 }
 0x13c   : > { %1463 = vst.msk [vmem:[#allocation2 + $0x30] sm:$0xff] %vm1456_vm3, %v1398_v47  ;;  %v2106_v52 = vsel %vm1061_vm0, 1.0, %v2444_v57  ;;  %v2059_v53 = vsel %vm1014_vm1, 1.0, %v2444_v57  ;;  %v2075_v54 = vsel %vm1030_vm4, 1.0, %v2444_v57  ;;  %v1237_v55 = vpack.c.bf16 %v2090_v51, %v2090_v51  ;;  %v792_v47 = vld [vmem:[#allocation2 + $0x148] sm:$0xff] }
 0x13d   : > { %1286 = vst.msk [vmem:[%s2529_s8 + $0x58] sm:$0xf] %vm1263_vm2, %v1221_v37  ;;  %v1366_v56 = vsub.f32 1.0, %v2090_v51  ;;  %v1253_v58 = vpack.c.bf16 %v2106_v52, %v2106_v52  ;;  %v1382_v59 = vsub.f32 1.0, %v2106_v52  ;;  %v1206_v62 = vpack.c.bf16 %v2059_v53, %v2059_v53  ;;  %v808_v51 = vld [vmem:[#allocation2 + $0x1c8] sm:$0xff] }
 0x13e   : > { %1479 = vst.msk [vmem:[#allocation2 + $0xb0] sm:$0xff] %vm1456_vm3, %v1414_v48  ;;  %v1335_v63 = vsub.f32 1.0, %v2059_v53  ;;  %v1222_v0 = vpack.c.bf16 %v2075_v54, %v2075_v54  ;;  %v1351_v1 = vsub.f32 1.0, %v2075_v54  ;;  %v918_v6 = vmul.f32 0.5, %v854_v49 }
 0x13f   : > { %1302 = vst.msk [vmem:[%s2529_s8 + $0x98] sm:$0xf] %vm1263_vm2, %v1237_v55  ;;  %v1430_v4 = vmul.f32 %v1366_v56, %v981_v41  ;;  %v1446_v5 = vmul.f32 %v1382_v59, %v997_v42  ;;  %v934_v7 = vmul.f32 0.5, %v870_v50  ;;  %v823_v12 = vsub.f32 %v611_v45, %v759_v60  ;;  %v761_v59 = vld [vmem:[#allocation2 + $0x50] sm:$0xff] }
 0x140   : > { %1318 = vst.msk [vmem:[%s2529_s8 + $0xd8] sm:$0xf] %vm1263_vm2, %v1253_v58  ;;  %v1399_v10 = vmul.f32 %v1335_v63, %v950_v43  ;;  %v1415_v11 = vmul.f32 %v1351_v1, %v966_v44  ;;  %v839_v13 = vsub.f32 %v651_v46, %v775_v61  ;;  %v691_v14 = vpop.f32.mrf.mxu2  ;;  %v731_v15 = vpop.f32.mrf.mxu3  ;;  %v982_v16 = vadd.f32 %v918_v6, %v2813_v29 }
 0x141   : > { %1495 = vst.msk [vmem:[#allocation2 + $0x130] sm:$0xff] %vm1456_vm3, %v1430_v4  ;;  %v998_v17 = vadd.f32 %v934_v7, %v2816_v31  ;;  %v855_v18 = vsub.f32 %v691_v14, %v791_v2  ;;  %v871_v19 = vsub.f32 %v731_v15, %v807_v3  ;;  %v613_v20 = vpop.f32.mrf.mxu0  ;;  %v653_v21 = vpop.f32.mrf.mxu1  ;;  %v887_v22 = vmul.f32 0.5, %v823_v12 }
 0x142   : > { %1511 = vst.msk [vmem:[#allocation2 + $0x1b0] sm:$0xff] %vm1456_vm3, %v1446_v5  ;;  %v903_v23 = vmul.f32 0.5, %v839_v13  ;;  %v824_v24 = vsub.f32 %v613_v20, %v2840_v8  ;;  %v840_v25 = vsub.f32 %v653_v21, %v2842_v9  ;;  %vm1046_vm5 = vcmp.ge.f32.partialorder %v982_v16, 1.0  ;;  %v2880_v13 = vld [vmem:[#allocation2 + $0x1d0] sm:$0xff] }
 0x143   : > { %1271 = vst.msk [vmem:[%s2529_s8 + $0x1c] sm:$0xf] %vm1263_vm2, %v1206_v62  ;;  %vm1062_vm6 = vcmp.ge.f32.partialorder %v998_v17, 1.0  ;;  %v919_v26 = vmul.f32 0.5, %v855_v18  ;;  %v935_v29 = vmul.f32 0.5, %v871_v19  ;;  %v2091_v30 = vsel %vm1046_vm5, 1.0, %v2444_v57 }
 0x144   : > { %1464 = vst.msk [vmem:[#allocation2 + $0x38] sm:$0xff] %vm1456_vm3, %v1399_v10  ;;  %v2107_v27 = vsel %vm1062_vm6, 1.0, %v2444_v57  ;;  %v951_v31 = vadd.f32 %v887_v22, %v759_v60  ;;  %v967_v28 = vadd.f32 %v903_v23, %v775_v61  ;;  %v1238_v32 = vpack.c.bf16 %v2091_v30, %v2091_v30  ;;  %v777_v60 = vld [vmem:[#allocation2 + $0xd0] sm:$0xff] }
 0x145   : > { %1287 = vst.msk [vmem:[%s2529_s8 + $0x5c] sm:$0xf] %vm1263_vm2, %v1222_v0  ;;  %v1367_v33 = vsub.f32 1.0, %v2091_v30  ;;  %v1254_v34 = vpack.c.bf16 %v2107_v27, %v2107_v27  ;;  %v1383_v35 = vsub.f32 1.0, %v2107_v27  ;;  %v983_v36 = vadd.f32 %v919_v26, %v791_v2 }
 0x146   : > { %1480 = vst.msk [vmem:[#allocation2 + $0xb8] sm:$0xff] %vm1456_vm3, %v1415_v11  ;;  %vm1015_vm7 = vcmp.ge.f32.partialorder %v951_v31, 1.0  ;;  %vm1031_vm8 = vcmp.ge.f32.partialorder %v967_v28, 1.0  ;;  %v999_v37 = vadd.f32 %v935_v29, %v807_v3  ;;  %v888_v49 = vmul.f32 0.5, %v824_v24  ;;  %v2877_v11 = vld [vmem:[#allocation2 + $0x150] sm:$0xff] }
 0x147   : > { %1303 = vst.msk [vmem:[%s2529_s8 + $0x9c] sm:$0xf] %vm1263_vm2, %v1238_v32  ;;  %v1431_v38 = vmul.f32 %v1367_v33, %v982_v16  ;;  %v1447_v39 = vmul.f32 %v1383_v35, %v998_v17  ;;  %v2060_v40 = vsel %vm1015_vm7, 1.0, %v2444_v57  ;;  %v2076_v41 = vsel %vm1031_vm8, 1.0, %v2444_v57 }
 0x148   : > { %1319 = vst.msk [vmem:[%s2529_s8 + $0xdc] sm:$0xf] %vm1263_vm2, %v1254_v34  ;;  %v1207_v42 = vpack.c.bf16 %v2060_v40, %v2060_v40  ;;  %v1336_v43 = vsub.f32 1.0, %v2060_v40  ;;  %v1223_v44 = vpack.c.bf16 %v2076_v41, %v2076_v41  ;;  %v1352_v45 = vsub.f32 1.0, %v2076_v41  ;;  %v693_v46 = vpop.f32.mrf.mxu2  ;;  %v733_v48 = vpop.f32.mrf.mxu3  ;;  %v762_v41 = vld [vmem:[#allocation2 + $0x58] sm:$0xff] }
 0x149   : > { %1496 = vst.msk [vmem:[#allocation2 + $0x138] sm:$0xff] %vm1456_vm3, %v1431_v38  ;;  %vm1047_vm9 = vcmp.ge.f32.partialorder %v983_v36, 1.0  ;;  %vm1063_vm10 = vcmp.ge.f32.partialorder %v999_v37, 1.0  ;;  %v904_v50 = vmul.f32 0.5, %v840_v25  ;;  %v616_v52 = vpop.f32.mrf.mxu0  ;;  %v656_v53 = vpop.f32.mrf.mxu1  ;;  %v952_v1 = vadd.f32 %v888_v49, %v2840_v8 }
 0x14a   : > { %1512 = vst.msk [vmem:[#allocation2 + $0x1b8] sm:$0xff] %vm1456_vm3, %v1447_v39  ;;  %v1400_v54 = vmul.f32 %v1336_v43, %v951_v31  ;;  %v1416_v55 = vmul.f32 %v1352_v45, %v967_v28  ;;  %v2092_v56 = vsel %vm1047_vm9, 1.0, %v2444_v57  ;;  %v2108_v58 = vsel %vm1063_vm10, 1.0, %v2444_v57 }
 0x14b   : > { %1272 = vst.msk [vmem:[%s2529_s8 + $0x20] sm:$0xf] %vm1263_vm2, %v1207_v42  ;;  %v1239_v61 = vpack.c.bf16 %v2092_v56, %v2092_v56  ;;  %v1368_v62 = vsub.f32 1.0, %v2092_v56  ;;  %v1255_v63 = vpack.c.bf16 %v2108_v58, %v2108_v58  ;;  %v1384_v0 = vsub.f32 1.0, %v2108_v58  ;;  %v778_v42 = vld [vmem:[#allocation2 + $0xd8] sm:$0xff] }
 0x14c   : > { %1465 = vst.msk [vmem:[#allocation2 + $0x40] sm:$0xff] %vm1456_vm3, %v1400_v54  ;;  %v968_v2 = vadd.f32 %v904_v50, %v2842_v9  ;;  %v856_v3 = vsub.f32 %v693_v46, %v792_v47  ;;  %v872_v4 = vsub.f32 %v733_v48, %v808_v51  ;;  %v825_v7 = vsub.f32 %v616_v52, %v761_v59  ;;  %v810_v48 = vld [vmem:[#allocation2 + $0x1d8] sm:$0xff]  ;;  %v2906_v54 = vld [vmem:[#allocation2 + $0xe0] sm:$0xff] }
 0x14d   : > { %1288 = vst.msk [vmem:[%s2529_s8 + $0x60] sm:$0xf] %vm1263_vm2, %v1223_v44  ;;  %v1432_v5 = vmul.f32 %v1368_v62, %v983_v36  ;;  %v1448_v6 = vmul.f32 %v1384_v0, %v999_v37  ;;  %v841_v10 = vsub.f32 %v656_v53, %v777_v60  ;;  %vm1016_vm11 = vcmp.ge.f32.partialorder %v952_v1, 1.0  ;;  %v2904_v53 = vld [vmem:[#allocation2 + $0x60] sm:$0xff] }
 0x14e   : > { %1481 = vst.msk [vmem:[#allocation2 + $0xc0] sm:$0xff] %vm1456_vm3, %v1416_v55  ;;  %vm1032_vm12 = vcmp.ge.f32.partialorder %v968_v2, 1.0  ;;  %v920_v12 = vmul.f32 0.5, %v856_v3  ;;  %v936_v8 = vmul.f32 0.5, %v872_v4  ;;  %v2061_v9 = vsel %vm1016_vm11, 1.0, %v2444_v57 }
 0x14f   : > { %1304 = vst.msk [vmem:[%s2529_s8 + $0xa0] sm:$0xf] %vm1263_vm2, %v1239_v61  ;;  %v2077_v14 = vsel %vm1032_vm12, 1.0, %v2444_v57  ;;  %v889_v15 = vmul.f32 0.5, %v825_v7  ;;  %v905_v16 = vmul.f32 0.5, %v841_v10  ;;  %v1208_v17 = vpack.c.bf16 %v2061_v9, %v2061_v9 }
 0x150   : > { %1497 = vst.msk [vmem:[#allocation2 + $0x140] sm:$0xff] %vm1456_vm3, %v1432_v5  ;;  %v1337_v18 = vsub.f32 1.0, %v2061_v9  ;;  %v1224_v19 = vpack.c.bf16 %v2077_v14, %v2077_v14  ;;  %v1353_v20 = vsub.f32 1.0, %v2077_v14  ;;  %v696_v21 = vpop.f32.mrf.mxu2  ;;  %v736_v22 = vpop.f32.mrf.mxu3  ;;  %v984_v23 = vadd.f32 %v920_v12, %v792_v47  ;;  %v794_v47 = vld [vmem:[#allocation2 + $0x158] sm:$0xff] }
 0x151   : > { %1320 = vst.msk [vmem:[%s2529_s8 + $0xe0] sm:$0xf] %vm1263_vm2, %v1255_v63  ;;  %v1000_v24 = vadd.f32 %v936_v8, %v808_v51  ;;  %v953_v25 = vadd.f32 %v889_v15, %v761_v59  ;;  %v969_v26 = vadd.f32 %v905_v16, %v777_v60  ;;  %v618_v29 = vpop.f32.mrf.mxu0  ;;  %v658_v30 = vpop.f32.mrf.mxu1  ;;  %v857_v28 = vsub.f32 %v696_v21, %v2877_v11 }
 0x152   : > { %1513 = vst.msk [vmem:[#allocation2 + $0x1c0] sm:$0xff] %vm1456_vm3, %v1448_v6  ;;  %v1401_v27 = vmul.f32 %v1337_v18, %v952_v1  ;;  %v1417_v31 = vmul.f32 %v1353_v20, %v968_v2  ;;  %v873_v32 = vsub.f32 %v736_v22, %v2880_v13  ;;  %vm1048_vm13 = vcmp.ge.f32.partialorder %v984_v23, 1.0 }
 0x153   : > { %1273 = vst.msk [vmem:[%s2529_s8 + $0x24] sm:$0xf] %vm1263_vm2, %v1208_v17  ;;  %vm1064_vm14 = vcmp.ge.f32.partialorder %v1000_v24, 1.0  ;;  %vm1017_vm15 = vcmp.ge.f32.partialorder %v953_v25, 1.0  ;;  %vm1033_vm0 = vcmp.ge.f32.partialorder %v969_v26, 1.0  ;;  %v2093_v33 = vsel %vm1048_vm13, 1.0, %v2444_v57 }
 0x154   : > { %1466 = vst.msk [vmem:[#allocation2 + $0x48] sm:$0xff] %vm1456_vm3, %v1401_v27  ;;  %v2109_v34 = vsel %vm1064_vm14, 1.0, %v2444_v57  ;;  %v2062_v35 = vsel %vm1017_vm15, 1.0, %v2444_v57  ;;  %v2078_v36 = vsel %vm1033_vm0, 1.0, %v2444_v57  ;;  %v1240_v37 = vpack.c.bf16 %v2093_v33, %v2093_v33  ;;  %v795_v27 = vld [vmem:[#allocation2 + $0x160] sm:$0xff] }
 0x155   : > { %1289 = vst.msk [vmem:[%s2529_s8 + $0x64] sm:$0xf] %vm1263_vm2, %v1224_v19  ;;  %v1369_v38 = vsub.f32 1.0, %v2093_v33  ;;  %v1256_v39 = vpack.c.bf16 %v2109_v34, %v2109_v34  ;;  %v1385_v40 = vsub.f32 1.0, %v2109_v34  ;;  %v1209_v43 = vpack.c.bf16 %v2062_v35, %v2062_v35  ;;  %v811_v33 = vld [vmem:[#allocation2 + $0x1e0] sm:$0xff] }
 0x156   : > { %1482 = vst.msk [vmem:[#allocation2 + $0xc8] sm:$0xff] %vm1456_vm3, %v1417_v31  ;;  %v1338_v44 = vsub.f32 1.0, %v2062_v35  ;;  %v1225_v45 = vpack.c.bf16 %v2078_v36, %v2078_v36  ;;  %v1354_v46 = vsub.f32 1.0, %v2078_v36  ;;  %v921_v51 = vmul.f32 0.5, %v857_v28 }
 0x157   : > { %1305 = vst.msk [vmem:[%s2529_s8 + $0xa4] sm:$0xf] %vm1263_vm2, %v1240_v37  ;;  %v1433_v49 = vmul.f32 %v1369_v38, %v984_v23  ;;  %v1449_v50 = vmul.f32 %v1385_v40, %v1000_v24  ;;  %v937_v52 = vmul.f32 0.5, %v873_v32  ;;  %v826_v58 = vsub.f32 %v618_v29, %v762_v41  ;;  %v764_v40 = vld [vmem:[#allocation2 + $0x68] sm:$0xff] }
 0x158   : > { %1321 = vst.msk [vmem:[%s2529_s8 + $0xe4] sm:$0xf] %vm1263_vm2, %v1256_v39  ;;  %v1402_v55 = vmul.f32 %v1338_v44, %v953_v25  ;;  %v1418_v56 = vmul.f32 %v1354_v46, %v969_v26  ;;  %v842_v59 = vsub.f32 %v658_v30, %v778_v42  ;;  %v698_v60 = vpop.f32.mrf.mxu2  ;;  %v738_v61 = vpop.f32.mrf.mxu3  ;;  %v985_v62 = vadd.f32 %v921_v51, %v2877_v11 }
 0x159   : > { %1498 = vst.msk [vmem:[#allocation2 + $0x148] sm:$0xff] %vm1456_vm3, %v1433_v49  ;;  %v1001_v63 = vadd.f32 %v937_v52, %v2880_v13  ;;  %v858_v0 = vsub.f32 %v698_v60, %v794_v47  ;;  %v874_v1 = vsub.f32 %v738_v61, %v810_v48  ;;  %v621_v2 = vpop.f32.mrf.mxu0  ;;  %v661_v3 = vpop.f32.mrf.mxu1  ;;  %v890_v4 = vmul.f32 0.5, %v826_v58 }
 0x15a   : > { %1514 = vst.msk [vmem:[#allocation2 + $0x1c8] sm:$0xff] %vm1456_vm3, %v1449_v50  ;;  %v906_v5 = vmul.f32 0.5, %v842_v59  ;;  %v827_v6 = vsub.f32 %v621_v2, %v2904_v53  ;;  %v843_v7 = vsub.f32 %v661_v3, %v2906_v54  ;;  %vm1049_vm1 = vcmp.ge.f32.partialorder %v985_v62, 1.0  ;;  %v2944_v59 = vld [vmem:[#allocation2 + $0x1e8] sm:$0xff] }
 0x15b   : > { %1274 = vst.msk [vmem:[%s2529_s8 + $0x28] sm:$0xf] %vm1263_vm2, %v1209_v43  ;;  %vm1065_vm4 = vcmp.ge.f32.partialorder %v1001_v63, 1.0  ;;  %v922_v10 = vmul.f32 0.5, %v858_v0  ;;  %v938_v11 = vmul.f32 0.5, %v874_v1  ;;  %v2094_v12 = vsel %vm1049_vm1, 1.0, %v2444_v57 }
 0x15c   : > { %1467 = vst.msk [vmem:[#allocation2 + $0x50] sm:$0xff] %vm1456_vm3, %v1402_v55  ;;  %v2110_v8 = vsel %vm1065_vm4, 1.0, %v2444_v57  ;;  %v954_v13 = vadd.f32 %v890_v4, %v762_v41  ;;  %v970_v9 = vadd.f32 %v906_v5, %v778_v42  ;;  %v1241_v14 = vpack.c.bf16 %v2094_v12, %v2094_v12  ;;  %v780_v41 = vld [vmem:[#allocation2 + $0xe8] sm:$0xff] }
 0x15d   : > { %1290 = vst.msk [vmem:[%s2529_s8 + $0x68] sm:$0xf] %vm1263_vm2, %v1225_v45  ;;  %v1370_v15 = vsub.f32 1.0, %v2094_v12  ;;  %v1257_v16 = vpack.c.bf16 %v2110_v8, %v2110_v8  ;;  %v1386_v17 = vsub.f32 1.0, %v2110_v8  ;;  %v986_v18 = vadd.f32 %v922_v10, %v794_v47 }
 0x15e   : > { %1483 = vst.msk [vmem:[#allocation2 + $0xd0] sm:$0xff] %vm1456_vm3, %v1418_v56  ;;  %vm1018_vm5 = vcmp.ge.f32.partialorder %v954_v13, 1.0  ;;  %vm1034_vm6 = vcmp.ge.f32.partialorder %v970_v9, 1.0  ;;  %v1002_v19 = vadd.f32 %v938_v11, %v810_v48  ;;  %v891_v28 = vmul.f32 0.5, %v827_v6  ;;  %v2941_v56 = vld [vmem:[#allocation2 + $0x168] sm:$0xff] }
 0x15f   : > { %1306 = vst.msk [vmem:[%s2529_s8 + $0xa8] sm:$0xf] %vm1263_vm2, %v1241_v14  ;;  %v1434_v20 = vmul.f32 %v1370_v15, %v985_v62  ;;  %v1450_v21 = vmul.f32 %v1386_v17, %v1001_v63  ;;  %v2063_v22 = vsel %vm1018_vm5, 1.0, %v2444_v57  ;;  %v2079_v23 = vsel %vm1034_vm6, 1.0, %v2444_v57 }
 0x160   : > { %1322 = vst.msk [vmem:[%s2529_s8 + $0xe8] sm:$0xf] %vm1263_vm2, %v1257_v16  ;;  %v1210_v24 = vpack.c.bf16 %v2063_v22, %v2063_v22  ;;  %v1339_v25 = vsub.f32 1.0, %v2063_v22  ;;  %v1226_v26 = vpack.c.bf16 %v2079_v23, %v2079_v23  ;;  %v1355_v29 = vsub.f32 1.0, %v2079_v23  ;;  %v701_v30 = vpop.f32.mrf.mxu2  ;;  %v741_v31 = vpop.f32.mrf.mxu3  ;;  %v765_v23 = vld [vmem:[#allocation2 + $0x70] sm:$0xff] }
 0x161   : > { %1499 = vst.msk [vmem:[#allocation2 + $0x150] sm:$0xff] %vm1456_vm3, %v1434_v20  ;;  %vm1050_vm7 = vcmp.ge.f32.partialorder %v986_v18, 1.0  ;;  %vm1066_vm8 = vcmp.ge.f32.partialorder %v1002_v19, 1.0  ;;  %v907_v32 = vmul.f32 0.5, %v843_v7  ;;  %v623_v34 = vpop.f32.mrf.mxu0  ;;  %v663_v35 = vpop.f32.mrf.mxu1  ;;  %v955_v46 = vadd.f32 %v891_v28, %v2904_v53 }
 0x162   : > { %1515 = vst.msk [vmem:[#allocation2 + $0x1d0] sm:$0xff] %vm1456_vm3, %v1450_v21  ;;  %v1403_v36 = vmul.f32 %v1339_v25, %v954_v13  ;;  %v1419_v37 = vmul.f32 %v1355_v29, %v970_v9  ;;  %v2095_v38 = vsel %vm1050_vm7, 1.0, %v2444_v57  ;;  %v2111_v39 = vsel %vm1066_vm8, 1.0, %v2444_v57 }
 0x163   : > { %1275 = vst.msk [vmem:[%s2529_s8 + $0x2c] sm:$0xf] %vm1263_vm2, %v1210_v24  ;;  %v1242_v42 = vpack.c.bf16 %v2095_v38, %v2095_v38  ;;  %v1371_v43 = vsub.f32 1.0, %v2095_v38  ;;  %v1258_v44 = vpack.c.bf16 %v2111_v39, %v2111_v39  ;;  %v1387_v45 = vsub.f32 1.0, %v2111_v39  ;;  %v781_v24 = vld [vmem:[#allocation2 + $0xf0] sm:$0xff] }
 0x164   : > { %1468 = vst.msk [vmem:[#allocation2 + $0x58] sm:$0xff] %vm1456_vm3, %v1403_v36  ;;  %v971_v47 = vadd.f32 %v907_v32, %v2906_v54  ;;  %v859_v48 = vsub.f32 %v701_v30, %v795_v27  ;;  %v875_v49 = vsub.f32 %v741_v31, %v811_v33  ;;  %v828_v52 = vsub.f32 %v623_v34, %v764_v40  ;;  %v813_v31 = vld [vmem:[#allocation2 + $0x1f0] sm:$0xff]  ;;  %v2970_v36 = vld [vmem:[#allocation2 + $0xf8] sm:$0xff] }
 0x165   : > { %1291 = vst.msk [vmem:[%s2529_s8 + $0x6c] sm:$0xf] %vm1263_vm2, %v1226_v26  ;;  %v1435_v50 = vmul.f32 %v1371_v43, %v986_v18  ;;  %v1451_v51 = vmul.f32 %v1387_v45, %v1002_v19  ;;  %v844_v55 = vsub.f32 %v663_v35, %v780_v41  ;;  %vm1019_vm9 = vcmp.ge.f32.partialorder %v955_v46, 1.0  ;;  %v2968_v35 = vld [vmem:[#allocation2 + $0x78] sm:$0xff] }
 0x166   : > { %1484 = vst.msk [vmem:[#allocation2 + $0xd8] sm:$0xff] %vm1456_vm3, %v1419_v37  ;;  %vm1035_vm10 = vcmp.ge.f32.partialorder %v971_v47, 1.0  ;;  %v923_v58 = vmul.f32 0.5, %v859_v48  ;;  %v939_v53 = vmul.f32 0.5, %v875_v49  ;;  %v2064_v54 = vsel %vm1019_vm9, 1.0, %v2444_v57 }
 0x167   : > { %1307 = vst.msk [vmem:[%s2529_s8 + $0xac] sm:$0xf] %vm1263_vm2, %v1242_v42  ;;  %v2080_v60 = vsel %vm1035_vm10, 1.0, %v2444_v57  ;;  %v892_v61 = vmul.f32 0.5, %v828_v52  ;;  %v908_v62 = vmul.f32 0.5, %v844_v55  ;;  %v1211_v63 = vpack.c.bf16 %v2064_v54, %v2064_v54 }
 0x168   : > { %1500 = vst.msk [vmem:[#allocation2 + $0x158] sm:$0xff] %vm1456_vm3, %v1435_v50  ;;  %v1340_v0 = vsub.f32 1.0, %v2064_v54  ;;  %v1227_v1 = vpack.c.bf16 %v2080_v60, %v2080_v60  ;;  %v1356_v2 = vsub.f32 1.0, %v2080_v60  ;;  %v703_v3 = vpop.f32.mrf.mxu2  ;;  %v743_v4 = vpop.f32.mrf.mxu3  ;;  %v987_v5 = vadd.f32 %v923_v58, %v795_v27  ;;  %v797_v27 = vld [vmem:[#allocation2 + $0x170] sm:$0xff] }
 0x169   : > { %1323 = vst.msk [vmem:[%s2529_s8 + $0xec] sm:$0xf] %vm1263_vm2, %v1258_v44  ;;  %v1003_v6 = vadd.f32 %v939_v53, %v811_v33  ;;  %v956_v7 = vadd.f32 %v892_v61, %v764_v40  ;;  %v972_v10 = vadd.f32 %v908_v62, %v780_v41  ;;  %v626_v11 = vpop.f32.mrf.mxu0  ;;  %v666_v12 = vpop.f32.mrf.mxu1  ;;  %v860_v9 = vsub.f32 %v703_v3, %v2941_v56 }
 0x16a   : > { %1516 = vst.msk [vmem:[#allocation2 + $0x1d8] sm:$0xff] %vm1456_vm3, %v1451_v51  ;;  %v1404_v8 = vmul.f32 %v1340_v0, %v955_v46  ;;  %v1420_v13 = vmul.f32 %v1356_v2, %v971_v47  ;;  %v876_v14 = vsub.f32 %v743_v4, %v2944_v59  ;;  %vm1051_vm11 = vcmp.ge.f32.partialorder %v987_v5, 1.0 }
 0x16b   : > { %1276 = vst.msk [vmem:[%s2529_s8 + $0x30] sm:$0xf] %vm1263_vm2, %v1211_v63  ;;  %vm1067_vm12 = vcmp.ge.f32.partialorder %v1003_v6, 1.0  ;;  %vm1020_vm13 = vcmp.ge.f32.partialorder %v956_v7, 1.0  ;;  %vm1036_vm14 = vcmp.ge.f32.partialorder %v972_v10, 1.0  ;;  %v2096_v15 = vsel %vm1051_vm11, 1.0, %v2444_v57 }
 0x16c   : > { %1469 = vst.msk [vmem:[#allocation2 + $0x60] sm:$0xff] %vm1456_vm3, %v1404_v8  ;;  %v2112_v16 = vsel %vm1067_vm12, 1.0, %v2444_v57  ;;  %v2065_v17 = vsel %vm1020_vm13, 1.0, %v2444_v57  ;;  %v2081_v18 = vsel %vm1036_vm14, 1.0, %v2444_v57  ;;  %v1243_v19 = vpack.c.bf16 %v2096_v15, %v2096_v15 }
 0x16d   : > { %1292 = vst.msk [vmem:[%s2529_s8 + $0x70] sm:$0xf] %vm1263_vm2, %v1227_v1  ;;  %v1372_v20 = vsub.f32 1.0, %v2096_v15  ;;  %v1259_v21 = vpack.c.bf16 %v2112_v16, %v2112_v16  ;;  %v1388_v22 = vsub.f32 1.0, %v2112_v16  ;;  %v1212_v25 = vpack.c.bf16 %v2065_v17, %v2065_v17  ;;  %v814_v15 = vld [vmem:[#allocation2 + $0x1f8] sm:$0xff] }
 0x16e   : > { %1485 = vst.msk [vmem:[#allocation2 + $0xe0] sm:$0xff] %vm1456_vm3, %v1420_v13  ;;  %v1341_v26 = vsub.f32 1.0, %v2065_v17  ;;  %v1228_v29 = vpack.c.bf16 %v2081_v18, %v2081_v18  ;;  %v1357_v30 = vsub.f32 1.0, %v2081_v18  ;;  %v924_v33 = vmul.f32 0.5, %v860_v9 }
 0x16f   : > { %1308 = vst.msk [vmem:[%s2529_s8 + $0xb0] sm:$0xf] %vm1263_vm2, %v1243_v19  ;;  %v1436_v28 = vmul.f32 %v1372_v20, %v987_v5  ;;  %v1452_v32 = vmul.f32 %v1388_v22, %v1003_v6  ;;  %v940_v34 = vmul.f32 0.5, %v876_v14  ;;  %v829_v39 = vsub.f32 %v626_v11, %v765_v23 }
 0x170   : > { %1324 = vst.msk [vmem:[%s2529_s8 + $0xf0] sm:$0xf] %vm1263_vm2, %v1259_v21  ;;  %v1405_v37 = vmul.f32 %v1341_v26, %v956_v7  ;;  %v1421_v38 = vmul.f32 %v1357_v30, %v972_v10  ;;  %v845_v40 = vsub.f32 %v666_v12, %v781_v24  ;;  %v706_v41 = vpop.f32.mrf.mxu2  ;;  %v746_v42 = vpop.f32.mrf.mxu3  ;;  %v988_v43 = vadd.f32 %v924_v33, %v2941_v56  ;;  %v798_v12 = vld [vmem:[#allocation2 + $0x178] sm:$0xff] }
 0x171   : > { %1501 = vst.msk [vmem:[#allocation2 + $0x160] sm:$0xff] %vm1456_vm3, %v1436_v28  ;;  %v1004_v44 = vadd.f32 %v940_v34, %v2944_v59  ;;  %v861_v45 = vsub.f32 %v706_v41, %v797_v27  ;;  %v877_v46 = vsub.f32 %v746_v42, %v813_v31  ;;  %v628_v47 = vpop.f32.mrf.mxu0  ;;  %v668_v48 = vpop.f32.mrf.mxu1  ;;  %v893_v49 = vmul.f32 0.5, %v829_v39 }
 0x172   : > { %1517 = vst.msk [vmem:[#allocation2 + $0x1e0] sm:$0xff] %vm1456_vm3, %v1452_v32  ;;  %v909_v50 = vmul.f32 0.5, %v845_v40  ;;  %v830_v51 = vsub.f32 %v628_v47, %v2968_v35  ;;  %v846_v52 = vsub.f32 %v668_v48, %v2970_v36  ;;  %vm1052_vm15 = vcmp.ge.f32.partialorder %v988_v43, 1.0 }
 0x173   : > { %1277 = vst.msk [vmem:[%s2529_s8 + $0x34] sm:$0xf] %vm1263_vm2, %v1212_v25  ;;  %vm1068_vm0 = vcmp.ge.f32.partialorder %v1004_v44, 1.0  ;;  %v925_v55 = vmul.f32 0.5, %v861_v45  ;;  %v941_v56 = vmul.f32 0.5, %v877_v46  ;;  %v2097_v58 = vsel %vm1052_vm15, 1.0, %v2444_v57 }
 0x174   : > { %1470 = vst.msk [vmem:[#allocation2 + $0x68] sm:$0xff] %vm1456_vm3, %v1405_v37  ;;  %v2113_v53 = vsel %vm1068_vm0, 1.0, %v2444_v57  ;;  %v957_v59 = vadd.f32 %v893_v49, %v765_v23  ;;  %v973_v54 = vadd.f32 %v909_v50, %v781_v24  ;;  %v1244_v60 = vpack.c.bf16 %v2097_v58, %v2097_v58 }
 0x175   : > { %1293 = vst.msk [vmem:[%s2529_s8 + $0x74] sm:$0xf] %vm1263_vm2, %v1228_v29  ;;  %v1373_v61 = vsub.f32 1.0, %v2097_v58  ;;  %v1260_v62 = vpack.c.bf16 %v2113_v53, %v2113_v53  ;;  %v1389_v63 = vsub.f32 1.0, %v2113_v53  ;;  %v989_v0 = vadd.f32 %v925_v55, %v797_v27 }
 0x176   : > { %1486 = vst.msk [vmem:[#allocation2 + $0xe8] sm:$0xff] %vm1456_vm3, %v1421_v38  ;;  %vm1021_vm1 = vcmp.ge.f32.partialorder %v957_v59, 1.0  ;;  %vm1037_vm4 = vcmp.ge.f32.partialorder %v973_v54, 1.0  ;;  %v1005_v1 = vadd.f32 %v941_v56, %v813_v31  ;;  %v894_v8 = vmul.f32 0.5, %v830_v51 }
 0x177   : > { %1309 = vst.msk [vmem:[%s2529_s8 + $0xb4] sm:$0xf] %vm1263_vm2, %v1244_v60  ;;  %v1437_v2 = vmul.f32 %v1373_v61, %v988_v43  ;;  %v1453_v3 = vmul.f32 %v1389_v63, %v1004_v44  ;;  %v2066_v4 = vsel %vm1021_vm1, 1.0, %v2444_v57  ;;  %v2082_v5 = vsel %vm1037_vm4, 1.0, %v2444_v57 }
 0x178   : > { %1325 = vst.msk [vmem:[%s2529_s8 + $0xf4] sm:$0xf] %vm1263_vm2, %v1260_v62  ;;  %v1213_v6 = vpack.c.bf16 %v2066_v4, %v2066_v4  ;;  %v1342_v7 = vsub.f32 1.0, %v2066_v4  ;;  %v1229_v10 = vpack.c.bf16 %v2082_v5, %v2082_v5  ;;  %v1358_v11 = vsub.f32 1.0, %v2082_v5  ;;  %v708_v9 = vpop.f32.mrf.mxu2  ;;  %v748_v14 = vpop.f32.mrf.mxu3 }
 0x179   : > { %1502 = vst.msk [vmem:[#allocation2 + $0x168] sm:$0xff] %vm1456_vm3, %v1437_v2  ;;  %vm1053_vm5 = vcmp.ge.f32.partialorder %v989_v0, 1.0  ;;  %vm1069_vm6 = vcmp.ge.f32.partialorder %v1005_v1, 1.0  ;;  %v910_v13 = vmul.f32 0.5, %v846_v52  ;;  %v958_v23 = vadd.f32 %v894_v8, %v2968_v35 }
 0x17a   : > { %1518 = vst.msk [vmem:[#allocation2 + $0x1e8] sm:$0xff] %vm1456_vm3, %v1453_v3  ;;  %v1406_v16 = vmul.f32 %v1342_v7, %v957_v59  ;;  %v1422_v17 = vmul.f32 %v1358_v11, %v973_v54  ;;  %v2098_v18 = vsel %vm1053_vm5, 1.0, %v2444_v57  ;;  %v2114_v19 = vsel %vm1069_vm6, 1.0, %v2444_v57 }
 0x17b   : > { %1278 = vst.msk [vmem:[%s2529_s8 + $0x38] sm:$0xf] %vm1263_vm2, %v1213_v6  ;;  %v1245_v20 = vpack.c.bf16 %v2098_v18, %v2098_v18  ;;  %v1374_v21 = vsub.f32 1.0, %v2098_v18  ;;  %v1390_v22 = vsub.f32 1.0, %v2114_v19  ;;  %v974_v24 = vadd.f32 %v910_v13, %v2970_v36 }
 0x17c   : > { %1471 = vst.msk [vmem:[#allocation2 + $0x70] sm:$0xff] %vm1456_vm3, %v1406_v16  ;;  %v862_v25 = vsub.f32 %v708_v9, %v798_v12  ;;  %v878_v26 = vsub.f32 %v748_v14, %v814_v15  ;;  %v1261_v30 = vpack.c.bf16 %v2114_v19, %v2114_v19  ;;  %vm1022_vm7 = vcmp.ge.f32.partialorder %v958_v23, 1.0 }
 0x17d   : > { %1294 = vst.msk [vmem:[%s2529_s8 + $0x78] sm:$0xf] %vm1263_vm2, %v1229_v10  ;;  %v1438_v29 = vmul.f32 %v1374_v21, %v989_v0  ;;  %v1454_v27 = vmul.f32 %v1390_v22, %v1005_v1  ;;  %vm1038_vm8 = vcmp.ge.f32.partialorder %v974_v24, 1.0  ;;  %v2067_v32 = vsel %vm1022_vm7, 1.0, %v2444_v57 }
 0x17e   : > { %1487 = vst.msk [vmem:[#allocation2 + $0xf0] sm:$0xff] %vm1456_vm3, %v1422_v17  ;;  %v926_v31 = vmul.f32 0.5, %v862_v25  ;;  %v942_v28 = vmul.f32 0.5, %v878_v26  ;;  %v2083_v33 = vsel %vm1038_vm8, 1.0, %v2444_v57  ;;  %v1214_v34 = vpack.c.bf16 %v2067_v32, %v2067_v32 }
 0x17f   : > { %1310 = vst.msk [vmem:[%s2529_s8 + $0xb8] sm:$0xf] %vm1263_vm2, %v1245_v20  ;;  %v1343_v35 = vsub.f32 1.0, %v2067_v32  ;;  %v1359_v36 = vsub.f32 1.0, %v2083_v33  ;;  %v1230_v37 = vpack.c.bf16 %v2083_v33, %v2083_v33 }
 0x180   : > { %1503 = vst.msk [vmem:[#allocation2 + $0x170] sm:$0xff] %vm1456_vm3, %v1438_v29  ;;  %v990_v38 = vadd.f32 %v926_v31, %v798_v12  ;;  %v1006_v39 = vadd.f32 %v942_v28, %v814_v15 }
 0x181   : > { %1326 = vst.msk [vmem:[%s2529_s8 + $0xf8] sm:$0xf] %vm1263_vm2, %v1261_v30  ;;  %v1407_v40 = vmul.f32 %v1343_v35, %v958_v23  ;;  %v1423_v41 = vmul.f32 %v1359_v36, %v974_v24 }
 0x182   : > { %1519 = vst.msk [vmem:[#allocation2 + $0x1f0] sm:$0xff] %vm1456_vm3, %v1454_v27  ;;  %vm1054_vm9 = vcmp.ge.f32.partialorder %v990_v38, 1.0  ;;  %vm1070_vm10 = vcmp.ge.f32.partialorder %v1006_v39, 1.0 }
 0x183   : > { %1279 = vst.msk [vmem:[%s2529_s8 + $0x3c] sm:$0xf] %vm1263_vm2, %v1214_v34  ;;  %v2099_v42 = vsel %vm1054_vm9, 1.0, %v2444_v57  ;;  %v2115_v43 = vsel %vm1070_vm10, 1.0, %v2444_v57 }
 0x184   : > { %1472 = vst.msk [vmem:[#allocation2 + $0x78] sm:$0xff] %vm1456_vm3, %v1407_v40  ;;  %v1246_v44 = vpack.c.bf16 %v2099_v42, %v2099_v42  ;;  %v1375_v45 = vsub.f32 1.0, %v2099_v42  ;;  %v1262_v46 = vpack.c.bf16 %v2115_v43, %v2115_v43  ;;  %v1391_v47 = vsub.f32 1.0, %v2115_v43 }
 0x185   : > { %1295 = vst.msk [vmem:[%s2529_s8 + $0x7c] sm:$0xf] %vm1263_vm2, %v1230_v37 }
 0x186   : > { %1488 = vst.msk [vmem:[#allocation2 + $0xf8] sm:$0xff] %vm1456_vm3, %v1423_v41  ;;  %v1439_v48 = vmul.f32 %v1375_v45, %v990_v38  ;;  %v1455_v49 = vmul.f32 %v1391_v47, %v1006_v39  ;;  %1527 = sbr.rel (!%p2504_p5) target bundleno = 459 (0x1cb), region = 36 }
 0x187   : > { %1311 = vst.msk [vmem:[%s2529_s8 + $0xbc] sm:$0xf] %vm1263_vm2, %v1246_v44 }
 0x188   : > { %1327 = vst.msk [vmem:[%s2529_s8 + $0xfc] sm:$0xf] %vm1263_vm2, %v1262_v46 }
 0x189   : > { %1504 = vst.msk [vmem:[#allocation2 + $0x178] sm:$0xff] %vm1456_vm3, %v1439_v48 }
 0x18a   : > { %1520 = vst.msk [vmem:[#allocation2 + $0x1f8] sm:$0xff] %vm1456_vm3, %v1455_v49 }
 0x18b   : > { %s3204_s7 = smov (!%p1530_p12, %s1529_s7), 64 }
 0x18c   : > { %s2118_s19 = sshll.u32 %s3204_s7, 2 }
 0x18d   : > { %p2121_p13 = scmp.eq.s32.totalorder %s2118_s19, 0 }
 0x18e   : > { %s3042_s20 = sshrl.u32 (!%p2121_p13), %s3204_s7, 5 }
 0x18f   : > { %1540 = sbr.rel (%p2121_p13) target bundleno = 459 (0x1cb), region = 40  ;;  %p2122_p0 = scmp.le.s32.totalorder (!%p2121_p13), %s3042_s20, 0 }
 0x194   : > { %1828 = sbr.rel (%p2122_p0) target bundleno = 442 (0x1ba), region = 112  ;;  %s3186_s11 = smov (!%p2122_p0), %s3039_s23 }
 0x195   : > { %s3187_s26 = smov (!%p2122_p0), %s2529_s8  ;;  %s3051_s25 = smov (!%p2122_p0), 0  }
 0x196   : > { %s3053_s27 = smov (!%p2122_p0), 0  }
 0x199 LB: >> { %v1557_v57 = vld [vmem:[%s2417_s26] sm:$0xf]  ;;  %v1559_v50 = vld [vmem:[%s2417_s26 + $0x4] sm:$0xf]  ;;  %v1561_v51 = vld [vmem:[%s2417_s26 + $0x8] sm:$0xf]  ;;  %s2425_s27 = sphi %s3053_s27, %s1551_s27   ;;  %s2421_s25 = sphi %s3051_s25, %s3190_s25   ;;  %s2417_s26 = sphi %s3187_s26, %s3189_s26   ;;  %s2413_s11 = sphi %s3186_s11, %s3188_s11  }
 0x19a   : >> { %1558 = vst [vmem:[%s2413_s11] sm:$0xf] %v1557_v57  ;;  %v1563_v52 = vld [vmem:[%s2417_s26 + $0xc] sm:$0xf]  ;;  %v1565_v55 = vld [vmem:[%s2417_s26 + $0x10] sm:$0xf]  ;;  %s1621_s28 = sadd.s32 1, %s2421_s25 }
 0x19b   : >> { %1560 = vst [vmem:[%s2413_s11 + $0x4] sm:$0xf] %v1559_v50  ;;  %v1567_v56 = vld [vmem:[%s2417_s26 + $0x14] sm:$0xf]  ;;  %v1569_v58 = vld [vmem:[%s2417_s26 + $0x18] sm:$0xf]  ;;  %p1622_p1 = scmp.ge.s32.totalorder %s1621_s28, %s3042_s20 }
 0x19c   : >> { %1562 = vst [vmem:[%s2413_s11 + $0x8] sm:$0xf] %v1561_v51  ;;  %v1571_v53 = vld [vmem:[%s2417_s26 + $0x1c] sm:$0xf]  ;;  %v1573_v59 = vld [vmem:[%s2417_s26 + $0x20] sm:$0xf] }
 0x19d   : >> { %1564 = vst [vmem:[%s2413_s11 + $0xc] sm:$0xf] %v1563_v52  ;;  %v1575_v54 = vld [vmem:[%s2417_s26 + $0x24] sm:$0xf]  ;;  %v1577_v60 = vld [vmem:[%s2417_s26 + $0x28] sm:$0xf] }
 0x19e   : >> { %1566 = vst [vmem:[%s2413_s11 + $0x10] sm:$0xf] %v1565_v55  ;;  %v1579_v61 = vld [vmem:[%s2417_s26 + $0x2c] sm:$0xf]  ;;  %v1581_v62 = vld [vmem:[%s2417_s26 + $0x30] sm:$0xf] }
 0x19f   : >> { %1568 = vst [vmem:[%s2413_s11 + $0x14] sm:$0xf] %v1567_v56  ;;  %v1583_v63 = vld [vmem:[%s2417_s26 + $0x34] sm:$0xf]  ;;  %v1585_v0 = vld [vmem:[%s2417_s26 + $0x38] sm:$0xf] }
 0x1a0   : >> { %1570 = vst [vmem:[%s2413_s11 + $0x18] sm:$0xf] %v1569_v58  ;;  %v1587_v1 = vld [vmem:[%s2417_s26 + $0x3c] sm:$0xf]  ;;  %v1589_v2 = vld [vmem:[%s2417_s26 + $0x40] sm:$0xf] }
 0x1a1   : >> { %1572 = vst [vmem:[%s2413_s11 + $0x1c] sm:$0xf] %v1571_v53  ;;  %v1591_v3 = vld [vmem:[%s2417_s26 + $0x44] sm:$0xf]  ;;  %s3206_s28 = smov (%p1622_p1, %s1621_s28), 0  ;;  %s1551_s27 = sadd.s32 1, %s2425_s27  }
 0x1a2   : >> { %1574 = vst [vmem:[%s2413_s11 + $0x20] sm:$0xf] %v1573_v59  ;;  %v1593_v4 = vld [vmem:[%s2417_s26 + $0x48] sm:$0xf]  ;;  %v1595_v5 = vld [vmem:[%s2417_s26 + $0x4c] sm:$0xf]  ;;  %p1550_p2 = scmp.ge.s32.totalorder %s1551_s27, %s3042_s20  ;;  %s3190_s25 = smov %s3206_s28 }
 0x1a3   : >> { %1576 = vst [vmem:[%s2413_s11 + $0x24] sm:$0xf] %v1575_v54  ;;  %s2123_s29 = sshll.u32 %s3206_s28, 7  ;;  %v1597_v6 = vld [vmem:[%s2417_s26 + $0x50] sm:$0xf] }
 0x1a4   : >> { %1578 = vst [vmem:[%s2413_s11 + $0x28] sm:$0xf] %v1577_v60  ;;  %s3112_s30 = scalar_lea.vmem %s2529_s8, %s2123_s29 [#allocation3]   ;;  %s1627_s3 = scalar_lea.vmem %s3039_s23, %s2123_s29   ;;  %v1599_v7 = vld [vmem:[%s2417_s26 + $0x54] sm:$0xf]  ;;  %v1601_v10 = vld [vmem:[%s2417_s26 + $0x58] sm:$0xf] }
 0x1a5   : >> { %1580 = vst [vmem:[%s2413_s11 + $0x2c] sm:$0xf] %v1579_v61  ;;  %v1603_v11 = vld [vmem:[%s2417_s26 + $0x5c] sm:$0xf]  ;;  %v1605_v12 = vld [vmem:[%s2417_s26 + $0x60] sm:$0xf] }
 0x1a6   : >> { %1582 = vst [vmem:[%s2413_s11 + $0x30] sm:$0xf] %v1581_v62  ;;  %v1607_v8 = vld [vmem:[%s2417_s26 + $0x64] sm:$0xf]  ;;  %v1609_v13 = vld [vmem:[%s2417_s26 + $0x68] sm:$0xf] }
 0x1a7   : >> { %1584 = vst [vmem:[%s2413_s11 + $0x34] sm:$0xf] %v1583_v63  ;;  %v1611_v9 = vld [vmem:[%s2417_s26 + $0x6c] sm:$0xf]  ;;  %v1613_v14 = vld [vmem:[%s2417_s26 + $0x70] sm:$0xf] }
 0x1a8   : >> { %1586 = vst [vmem:[%s2413_s11 + $0x38] sm:$0xf] %v1585_v0  ;;  %v1615_v15 = vld [vmem:[%s2417_s26 + $0x74] sm:$0xf]  ;;  %v1617_v16 = vld [vmem:[%s2417_s26 + $0x78] sm:$0xf] }
 0x1a9   : >> { %1588 = vst [vmem:[%s2413_s11 + $0x3c] sm:$0xf] %v1587_v1  ;;  %v1619_v17 = vld [vmem:[%s2417_s26 + $0x7c] sm:$0xf]  ;;  %s3189_s26 = smov %s3112_s30 }
 0x1aa   : >> { %1590 = vst [vmem:[%s2413_s11 + $0x40] sm:$0xf] %v1589_v2 }
 0x1ab   : >> { %1592 = vst [vmem:[%s2413_s11 + $0x44] sm:$0xf] %v1591_v3 }
 0x1ac   : >> { %1594 = vst [vmem:[%s2413_s11 + $0x48] sm:$0xf] %v1593_v4 }
 0x1ad   : >> { %1596 = vst [vmem:[%s2413_s11 + $0x4c] sm:$0xf] %v1595_v5 }
 0x1ae   : >> { %1598 = vst [vmem:[%s2413_s11 + $0x50] sm:$0xf] %v1597_v6 }
 0x1af   : >> { %1600 = vst [vmem:[%s2413_s11 + $0x54] sm:$0xf] %v1599_v7 }
 0x1b0   : >> { %1602 = vst [vmem:[%s2413_s11 + $0x58] sm:$0xf] %v1601_v10 }
 0x1b1   : >> { %1604 = vst [vmem:[%s2413_s11 + $0x5c] sm:$0xf] %v1603_v11 }
 0x1b2   : >> { %1606 = vst [vmem:[%s2413_s11 + $0x60] sm:$0xf] %v1605_v12 }
 0x1b3   : >> { %1608 = vst [vmem:[%s2413_s11 + $0x64] sm:$0xf] %v1607_v8 }
 0x1b4   : >> { %1610 = vst [vmem:[%s2413_s11 + $0x68] sm:$0xf] %v1609_v13 }
 0x1b5   : >> { %1612 = vst [vmem:[%s2413_s11 + $0x6c] sm:$0xf] %v1611_v9  ;;  %1553 = sbr.rel (!%p1550_p2) target bundleno = 409 (0x199), region = 118 }
 0x1b6   : >> { %1614 = vst [vmem:[%s2413_s11 + $0x70] sm:$0xf] %v1613_v14 }
 0x1b7   : >> { %1616 = vst [vmem:[%s2413_s11 + $0x74] sm:$0xf] %v1615_v15 }
 0x1b8   : >> { %1618 = vst [vmem:[%s2413_s11 + $0x78] sm:$0xf] %v1617_v16 }
 0x1b9   : >> { %1620 = vst [vmem:[%s2413_s11 + $0x7c] sm:$0xf] %v1619_v17  ;;  %s3188_s11 = smov %s1627_s3 }
 0x1ba PF: > { %s3153_s4 = sand.u32 31, %s3204_s7   ;;  %s2173_s5 = sshll.u32 %s3042_s20, 7 }
 0x1bb   : > { %s1632_s6 = scalar_lea.vmem %s2529_s8, %s2173_s5 [#allocation3]   ;;  %s1634_s9 = scalar_lea.vmem %s3039_s23, %s2173_s5  }
 0x1bc   : > { %p2128_p3 = scmp.le.s32.totalorder %s3153_s4, 0 }
 0x1bd   : > { %s2427_s12 = smov (!%p2128_p3), %s1634_s9   ;;  %s2431_s18 = smov (!%p2128_p3), %s1632_s6  }
 0x1be   : > { %1842 = sbr.rel (%p2128_p3) target bundleno = 459 (0x1cb), region = 123  ;;  %s2435_s19 = smov (!%p2128_p3), 0  }
 0x1bf   : > { %s2439_s21 = smov (!%p2128_p3), 0  }
 0x1c3 LB: >> { %v1644_v18 = vld [vmem:[%s2433_s18] sm:$0xf]  ;;  %s1646_s7 = sadd.s32 1, %s2437_s19  ;;  %s1638_s21 = sadd.s32 1, %s2441_s21   ;;  %s2441_s21 = sphi %s2439_s21, %s1638_s21   ;;  %s2437_s19 = sphi %s2435_s19, %s2436_s19   ;;  %s2433_s18 = sphi %s2431_s18, %s1651_s18   ;;  %s2429_s12 = sphi %s2427_s12, %s1652_s12  }
 0x1c4   : >> { %1645 = vst [vmem:[%s2429_s12] sm:$0xf] %v1644_v18  ;;  %p1647_p4 = scmp.ge.s32.totalorder %s1646_s7, %s3153_s4  ;;  %p1637_p5 = scmp.ge.s32.totalorder %s1638_s21, %s3153_s4 }
 0x1c6   : >> { %s3208_s7 = smov (%p1647_p4, %s1646_s7), 0  ;;  %1640 = sbr.rel (!%p1637_p5) target bundleno = 451 (0x1c3), region = 129 }
 0x1c7   : >> { %s2129_s8 = sshll.u32 %s3208_s7, 2  ;;  %s2436_s19 = smov %s3208_s7  }
 0x1c8   : >> { %s1651_s18 = scalar_lea.vmem %s1632_s6, %s2129_s8 [#allocation3]   ;;  %s1652_s12 = scalar_lea.vmem %s1634_s9, %s2129_s8  }
 0x1cb PF: > { %s12_s15 = sadd.s32 1, %s2409_s15   ;;  %s3191_s9 = smov %s2389_s10 }
 0x1cc   : > { %p9_p6 = scmp.ge.s32.totalorder %s12_s15, 42   ;;  %s3192_s10 = smov %s2515_s24 }
 0x1cd   : > { %s3193_s11 = smov %s2401_s13  ;;  %s3194_s12 = smov %s2405_s14 }
 0x1ce   : > { %s3195_s13 = smov %s3198_s16  ;;  %s3196_s14 = smov %s3202_s17 }
 0x1cf   :  { %11 = sbr.rel (!%p9_p6) target bundleno = 4 (0x4), region = 140 }

// kernel: all_conv_plif_snn_forward.8
= control target key start
LH: loop header
LB: loop body
LE: loop exit
PB: predicated region body
PF: predicated region fallthrough
CT: control target
= control target key end

     0   :  { %s2460_s9 = smov 0   ;;  %s2462_s10 = smov 0   ;;  %s3182_s0 = inlined_call_operand.vmem [shape: bf16[4,1250,128], index: 0, kind: input, shape index: {}]   ;;  %s3183_s1 = inlined_call_operand.vmem [shape: bf16[128,128], index: 1, kind: input, shape index: {}]   ;;  %s3184_s2 = inlined_call_operand.vmem [shape: bf16[4,1250,8], index: 2, kind: output, shape index: {}]  }
   0x1   :  { %s2464_s11 = smov 0   ;;  %s2466_s12 = smov 0  }
   0x2   :  { %s2468_s13 = smov 0   ;;  %s2470_s14 = smov 0  }
   0x3   :  { %s2472_s15 = smov 0  }
   0x4 LB: > { %s21_s16 = sadd.s32 1, %s2401_s13  ;;  %s24_s17 = sadd.s32 1, %s2405_s14  ;;  %s2409_s15 = sphi %s2472_s15, %s12_s15   ;;  %s2405_s14 = sphi %s2470_s14, %s3196_s14   ;;  %s2401_s13 = sphi %s2468_s13, %s3195_s13   ;;  %s2397_s12 = sphi %s2466_s12, %s3194_s12   ;;  %s2393_s11 = sphi %s2464_s11, %s3193_s11   ;;  %s2389_s10 = sphi %s2462_s10, %s3192_s10   ;;  %s2385_s9 = sphi %s2460_s9, %s3191_s9  }
   0x5   : > { %p22_p0 = scmp.ge.s32.totalorder %s21_s16, 4  ;;  %s1883_s18 = sadd.s32 4294967295, %s2409_s15  }
   0x6   : > { %p92_p1 = scmp.ne.s32.totalorder %s2389_s10, %s2385_s9  ;;  %p93_p2 = scmp.eq.s32.totalorder %s1883_s18, 11 }
   0x7   : > { %s3198_s16 = smov (%p22_p0, %s21_s16), 0  ;;  %s3200_s17 = smov (!%p22_p0, %s24_s17), %s2405_s14 }
   0x8   : > { %s77_s19 = ssub.s32 %s2401_s13, %s3198_s16  ;;  %p26_p3 = scmp.ge.s32.totalorder %s3200_s17, 3 }
   0x9   : > { %p1887_p4 = scmp.ge.s32.totalorder %s2409_s15, 1  ;;  %p2504_p5 = por %p93_p2, %p92_p1 }
   0xa   : > { %p141_p6 = scmp.lt.s32.totalorder %s2409_s15, 13  ;;  %s3202_s17 = smov (%p26_p3, %s3200_s17), 0 }
   0xb   : > { %s78_s21 = ssub.s32 %s2405_s14, %s3202_s17  ;;  %s82_s23 = sadd.s32 1, %s2389_s10 }
   0xc   : > { %p142_p7 = pnand %p1887_p4, %p141_p6  ;;  %s79_s22 = sor.u32 %s78_s21, %s77_s19 }
   0xd   : > { %p80_p8 = scmp.eq.s32.totalorder %s79_s22, 0  ;;  %s167_s25 = sand.u32 (!%p142_p7), 1, %s2385_s9  }
   0xe   : > { %145 = sbr.rel (%p142_p7) target bundleno = 459 (0x1cb), region = 28  ;;  %s2518_s26 = sshll.u32 (!%p142_p7), %s2397_s12, 6 }
   0xf   : > { %s2515_s24 = scalar_select %p80_p8, %s2389_s10, %s82_s23  }
  0x10   : > { %s1888_s27 = sshll.u32 (!%p142_p7), %s167_s25, 8  ;;  %p175_p9 = scmp.lt.s32.totalorder (!%p142_p7), %s2393_s11, 3 }
  0x11   : > { %p177_p10 = scmp.lt.s32.totalorder (!%p142_p7), %s2518_s26, 156  ;;  %s2529_s8 = scalar_lea.vmem (!%p142_p7), [#allocation3], %s1888_s27  }
  0x12   : > { %p1891_p11 = scmp.ne.s32.totalorder (!%p142_p7), %s2393_s11, 0 }
  0x13   : > { %s176_s28 = scalar_select %p175_p9, %s2393_s11, 3 }
  0x14   : > { %s178_s29 = scalar_select %p177_p10, %s2518_s26, 156 }
  0x15   : > { %s2199_s30 = smul.u32 157, %s176_s28 }
  0x16   : > { %196 = sbr.rel (%p1891_p11) target bundleno = 92 (0x5c), region = 32 }
  0x17   : > { %s180_s3 = sadd.s32 %s2199_s30, %s178_s29 }
  0x18   : > { %s1890_s4 = sshll.u32 %s180_s3, 2 }
  0x19   : > { %s2527_s7 = scalar_lea.vmem %s3182_s0, %s1890_s4 }
  0x1b   : > { %vm197_vm0 = vcmask 64512   ;;  %v2443_v0 = vmov 0.0  }
  0x1c   : > { %198 = vst.msk [vmem:[#allocation2] sm:$0xff] %vm197_vm0, %v2443_v0 }
  0x1d   : > { %199 = vst.msk [vmem:[#allocation2 + $0x8] sm:$0xff] %vm197_vm0, %v2443_v0 }
  0x1e   : > { %200 = vst.msk [vmem:[#allocation2 + $0x10] sm:$0xff] %vm197_vm0, %v2443_v0 }
  0x1f   : > { %201 = vst.msk [vmem:[#allocation2 + $0x18] sm:$0xff] %vm197_vm0, %v2443_v0 }
  0x20   : > { %202 = vst.msk [vmem:[#allocation2 + $0x20] sm:$0xff] %vm197_vm0, %v2443_v0 }
  0x21   : > { %203 = vst.msk [vmem:[#allocation2 + $0x28] sm:$0xff] %vm197_vm0, %v2443_v0 }
  0x22   : > { %204 = vst.msk [vmem:[#allocation2 + $0x30] sm:$0xff] %vm197_vm0, %v2443_v0 }
  0x23   : > { %205 = vst.msk [vmem:[#allocation2 + $0x38] sm:$0xff] %vm197_vm0, %v2443_v0 }
  0x24   : > { %206 = vst.msk [vmem:[#allocation2 + $0x40] sm:$0xff] %vm197_vm0, %v2443_v0 }
  0x25   : > { %207 = vst.msk [vmem:[#allocation2 + $0x48] sm:$0xff] %vm197_vm0, %v2443_v0 }
  0x26   : > { %208 = vst.msk [vmem:[#allocation2 + $0x50] sm:$0xff] %vm197_vm0, %v2443_v0 }
  0x27   : > { %209 = vst.msk [vmem:[#allocation2 + $0x58] sm:$0xff] %vm197_vm0, %v2443_v0 }
  0x28   : > { %210 = vst.msk [vmem:[#allocation2 + $0x60] sm:$0xff] %vm197_vm0, %v2443_v0 }
  0x29   : > { %211 = vst.msk [vmem:[#allocation2 + $0x68] sm:$0xff] %vm197_vm0, %v2443_v0 }
  0x2a   : > { %212 = vst.msk [vmem:[#allocation2 + $0x70] sm:$0xff] %vm197_vm0, %v2443_v0 }
  0x2b   : > { %213 = vst.msk [vmem:[#allocation2 + $0x78] sm:$0xff] %vm197_vm0, %v2443_v0 }
  0x2c   : > { %214 = vst.msk [vmem:[#allocation2 + $0x80] sm:$0xff] %vm197_vm0, %v2443_v0 }
  0x2d   : > { %215 = vst.msk [vmem:[#allocation2 + $0x88] sm:$0xff] %vm197_vm0, %v2443_v0 }
  0x2e   : > { %216 = vst.msk [vmem:[#allocation2 + $0x90] sm:$0xff] %vm197_vm0, %v2443_v0 }
  0x2f   : > { %217 = vst.msk [vmem:[#allocation2 + $0x98] sm:$0xff] %vm197_vm0, %v2443_v0 }
  0x30   : > { %218 = vst.msk [vmem:[#allocation2 + $0xa0] sm:$0xff] %vm197_vm0, %v2443_v0 }
  0x31   : > { %219 = vst.msk [vmem:[#allocation2 + $0xa8] sm:$0xff] %vm197_vm0, %v2443_v0 }
  0x32   : > { %220 = vst.msk [vmem:[#allocation2 + $0xb0] sm:$0xff] %vm197_vm0, %v2443_v0 }
  0x33   : > { %221 = vst.msk [vmem:[#allocation2 + $0xb8] sm:$0xff] %vm197_vm0, %v2443_v0 }
  0x34   : > { %222 = vst.msk [vmem:[#allocation2 + $0xc0] sm:$0xff] %vm197_vm0, %v2443_v0 }
  0x35   : > { %223 = vst.msk [vmem:[#allocation2 + $0xc8] sm:$0xff] %vm197_vm0, %v2443_v0 }
  0x36   : > { %224 = vst.msk [vmem:[#allocation2 + $0xd0] sm:$0xff] %vm197_vm0, %v2443_v0 }
  0x37   : > { %225 = vst.msk [vmem:[#allocation2 + $0xd8] sm:$0xff] %vm197_vm0, %v2443_v0 }
  0x38   : > { %226 = vst.msk [vmem:[#allocation2 + $0xe0] sm:$0xff] %vm197_vm0, %v2443_v0 }
  0x39   : > { %227 = vst.msk [vmem:[#allocation2 + $0xe8] sm:$0xff] %vm197_vm0, %v2443_v0 }
  0x3a   : > { %228 = vst.msk [vmem:[#allocation2 + $0xf0] sm:$0xff] %vm197_vm0, %v2443_v0 }
  0x3b   : > { %229 = vst.msk [vmem:[#allocation2 + $0xf8] sm:$0xff] %vm197_vm0, %v2443_v0 }
  0x3c   : > { %230 = vst.msk [vmem:[#allocation2 + $0x100] sm:$0xff] %vm197_vm0, %v2443_v0 }
  0x3d   : > { %231 = vst.msk [vmem:[#allocation2 + $0x108] sm:$0xff] %vm197_vm0, %v2443_v0 }
  0x3e   : > { %232 = vst.msk [vmem:[#allocation2 + $0x110] sm:$0xff] %vm197_vm0, %v2443_v0 }
  0x3f   : > { %233 = vst.msk [vmem:[#allocation2 + $0x118] sm:$0xff] %vm197_vm0, %v2443_v0 }
  0x40   : > { %234 = vst.msk [vmem:[#allocation2 + $0x120] sm:$0xff] %vm197_vm0, %v2443_v0 }
  0x41   : > { %235 = vst.msk [vmem:[#allocation2 + $0x128] sm:$0xff] %vm197_vm0, %v2443_v0 }
  0x42   : > { %236 = vst.msk [vmem:[#allocation2 + $0x130] sm:$0xff] %vm197_vm0, %v2443_v0 }
  0x43   : > { %237 = vst.msk [vmem:[#allocation2 + $0x138] sm:$0xff] %vm197_vm0, %v2443_v0 }
  0x44   : > { %238 = vst.msk [vmem:[#allocation2 + $0x140] sm:$0xff] %vm197_vm0, %v2443_v0 }
  0x45   : > { %239 = vst.msk [vmem:[#allocation2 + $0x148] sm:$0xff] %vm197_vm0, %v2443_v0 }
  0x46   : > { %240 = vst.msk [vmem:[#allocation2 + $0x150] sm:$0xff] %vm197_vm0, %v2443_v0 }
  0x47   : > { %241 = vst.msk [vmem:[#allocation2 + $0x158] sm:$0xff] %vm197_vm0, %v2443_v0 }
  0x48   : > { %242 = vst.msk [vmem:[#allocation2 + $0x160] sm:$0xff] %vm197_vm0, %v2443_v0 }
  0x49   : > { %243 = vst.msk [vmem:[#allocation2 + $0x168] sm:$0xff] %vm197_vm0, %v2443_v0 }
  0x4a   : > { %244 = vst.msk [vmem:[#allocation2 + $0x170] sm:$0xff] %vm197_vm0, %v2443_v0 }
  0x4b   : > { %245 = vst.msk [vmem:[#allocation2 + $0x178] sm:$0xff] %vm197_vm0, %v2443_v0 }
  0x4c   : > { %246 = vst.msk [vmem:[#allocation2 + $0x180] sm:$0xff] %vm197_vm0, %v2443_v0 }
  0x4d   : > { %247 = vst.msk [vmem:[#allocation2 + $0x188] sm:$0xff] %vm197_vm0, %v2443_v0 }
  0x4e   : > { %248 = vst.msk [vmem:[#allocation2 + $0x190] sm:$0xff] %vm197_vm0, %v2443_v0 }
  0x4f   : > { %249 = vst.msk [vmem:[#allocation2 + $0x198] sm:$0xff] %vm197_vm0, %v2443_v0 }
  0x50   : > { %250 = vst.msk [vmem:[#allocation2 + $0x1a0] sm:$0xff] %vm197_vm0, %v2443_v0 }
  0x51   : > { %251 = vst.msk [vmem:[#allocation2 + $0x1a8] sm:$0xff] %vm197_vm0, %v2443_v0 }
  0x52   : > { %252 = vst.msk [vmem:[#allocation2 + $0x1b0] sm:$0xff] %vm197_vm0, %v2443_v0 }
  0x53   : > { %253 = vst.msk [vmem:[#allocation2 + $0x1b8] sm:$0xff] %vm197_vm0, %v2443_v0 }
  0x54   : > { %254 = vst.msk [vmem:[#allocation2 + $0x1c0] sm:$0xff] %vm197_vm0, %v2443_v0 }
  0x55   : > { %255 = vst.msk [vmem:[#allocation2 + $0x1c8] sm:$0xff] %vm197_vm0, %v2443_v0 }
  0x56   : > { %256 = vst.msk [vmem:[#allocation2 + $0x1d0] sm:$0xff] %vm197_vm0, %v2443_v0 }
  0x57   : > { %257 = vst.msk [vmem:[#allocation2 + $0x1d8] sm:$0xff] %vm197_vm0, %v2443_v0 }
  0x58   : > { %258 = vst.msk [vmem:[#allocation2 + $0x1e0] sm:$0xff] %vm197_vm0, %v2443_v0 }
  0x59   : > { %259 = vst.msk [vmem:[#allocation2 + $0x1e8] sm:$0xff] %vm197_vm0, %v2443_v0 }
  0x5a   : > { %260 = vst.msk [vmem:[#allocation2 + $0x1f0] sm:$0xff] %vm197_vm0, %v2443_v0 }
  0x5b   : > { %261 = vst.msk [vmem:[#allocation2 + $0x1f8] sm:$0xff] %vm197_vm0, %v2443_v0 }
  0x5c PF: > { %v2172_v1 = vld [vmem:[%s3183_s1 + $0x38] sm:$0xff]  ;;  %v2171_v2 = vld [vmem:[%s3183_s1 + $0x30] sm:$0xff]  ;;  %v2170_v3 = vld [vmem:[%s3183_s1 + $0x28] sm:$0xff]  ;;  %vm1263_vm2 = vcmask 60416   ;;  %vm1456_vm3 = vcmask 64512   ;;  %v2444_v57 = vmov 0.0  }
  0x5d   : > { %582 = vmatpush.bf16.msra.mxu0 %v2172_v1  ;;  %2175 = vmatpush.bf16.msra.mxu1 %v2172_v1  ;;  %v2169_v4 = vld [vmem:[%s3183_s1 + $0x20] sm:$0xff]  ;;  %v2168_v5 = vld [vmem:[%s3183_s1 + $0x18] sm:$0xff]  ;;  %v2167_v6 = vld [vmem:[%s3183_s1 + $0x10] sm:$0xff]  ;;  %s2200_s9 = smul.u32 (%p2504_p5), 157, %s2393_s11 }
  0x5e   : > { %2176 = vmatpush.bf16.msra.mxu2 %v2172_v1  ;;  %2177 = vmatpush.bf16.msra.mxu3 %v2172_v1  ;;  %v2166_v7 = vld [vmem:[%s3183_s1 + $0x8] sm:$0xff]  ;;  %v2165_v8 = vld [vmem:[%s3183_s1] sm:$0xff]  ;;  %v2135_v17 = vld [vmem:[%s2527_s7 + $0x10] sm:$0xff] }
  0x5f   : > { %v2133_v9 = vld [vmem:[%s2527_s7] sm:$0xff]  ;;  %v2134_v13 = vld [vmem:[%s2527_s7 + $0x8] sm:$0xff]  ;;  %v2143_v18 = vld [vmem:[%s2527_s7 + $0x50] sm:$0xff]  ;;  %s1535_s12 = sadd.s32 (%p2504_p5), %s2200_s9, %s2518_s26 }
  0x60   : > { %v2141_v10 = vld [vmem:[%s2527_s7 + $0x40] sm:$0xff]  ;;  %v2142_v14 = vld [vmem:[%s2527_s7 + $0x48] sm:$0xff]  ;;  %v2151_v19 = vld [vmem:[%s2527_s7 + $0x90] sm:$0xff]  ;;  %s2120_s18 = sshll.u32 (%p2504_p5), %s1535_s12, 2 }
  0x61   : > { %583 = vmatpush.bf16.msra.mxu0 %v2171_v2  ;;  %2178 = vmatpush.bf16.msra.mxu1 %v2171_v2  ;;  %v2149_v11 = vld [vmem:[%s2527_s7 + $0x80] sm:$0xff]  ;;  %v2150_v15 = vld [vmem:[%s2527_s7 + $0x88] sm:$0xff]  ;;  %v2159_v20 = vld [vmem:[%s2527_s7 + $0xd0] sm:$0xff]  ;;  %s3039_s23 = scalar_lea.vmem (%p2504_p5), %s3184_s2, %s2120_s18  }
  0x62   : > { %2179 = vmatpush.bf16.msra.mxu2 %v2171_v2  ;;  %2180 = vmatpush.bf16.msra.mxu3 %v2171_v2  ;;  %v2157_v12 = vld [vmem:[%s2527_s7 + $0xc0] sm:$0xff]  ;;  %v2158_v16 = vld [vmem:[%s2527_s7 + $0xc8] sm:$0xff]  ;;  %v2136_v21 = vld [vmem:[%s2527_s7 + $0x18] sm:$0xff] }
  0x63   : > { %v2144_v22 = vld [vmem:[%s2527_s7 + $0x58] sm:$0xff]  ;;  %v2137_v25 = vld [vmem:[%s2527_s7 + $0x20] sm:$0xff]  ;;  %v2138_v29 = vld [vmem:[%s2527_s7 + $0x28] sm:$0xff] }
  0x64   : > { %v2152_v23 = vld [vmem:[%s2527_s7 + $0x98] sm:$0xff]  ;;  %v2145_v26 = vld [vmem:[%s2527_s7 + $0x60] sm:$0xff]  ;;  %v2146_v30 = vld [vmem:[%s2527_s7 + $0x68] sm:$0xff] }
  0x65   : > { %584 = vmatpush.bf16.msra.mxu0 %v2170_v3  ;;  %2181 = vmatpush.bf16.msra.mxu1 %v2170_v3  ;;  %v2160_v24 = vld [vmem:[%s2527_s7 + $0xd8] sm:$0xff]  ;;  %v2153_v27 = vld [vmem:[%s2527_s7 + $0xa0] sm:$0xff]  ;;  %v2154_v31 = vld [vmem:[%s2527_s7 + $0xa8] sm:$0xff] }
  0x66   : > { %2182 = vmatpush.bf16.msra.mxu2 %v2170_v3  ;;  %2183 = vmatpush.bf16.msra.mxu3 %v2170_v3  ;;  %v2161_v28 = vld [vmem:[%s2527_s7 + $0xe0] sm:$0xff]  ;;  %v2162_v32 = vld [vmem:[%s2527_s7 + $0xe8] sm:$0xff]  ;;  %v2139_v33 = vld [vmem:[%s2527_s7 + $0x30] sm:$0xff] }
  0x67   : > { %v2147_v34 = vld [vmem:[%s2527_s7 + $0x70] sm:$0xff]  ;;  %v2140_v37 = vld [vmem:[%s2527_s7 + $0x38] sm:$0xff]  ;;  %v751_v41 = vld [vmem:[#allocation2] sm:$0xff] }
  0x68   : > { %v2155_v35 = vld [vmem:[%s2527_s7 + $0xb0] sm:$0xff]  ;;  %v2148_v38 = vld [vmem:[%s2527_s7 + $0x78] sm:$0xff]  ;;  %v767_v42 = vld [vmem:[#allocation2 + $0x80] sm:$0xff] }
  0x69   : > { %585 = vmatpush.bf16.msra.mxu0 %v2169_v4  ;;  %2184 = vmatpush.bf16.msra.mxu1 %v2169_v4  ;;  %v2163_v36 = vld [vmem:[%s2527_s7 + $0xf0] sm:$0xff]  ;;  %v2156_v39 = vld [vmem:[%s2527_s7 + $0xb8] sm:$0xff]  ;;  %v783_v51 = vld [vmem:[#allocation2 + $0x100] sm:$0xff] }
  0x6a   : > { %2185 = vmatpush.bf16.msra.mxu2 %v2169_v4  ;;  %2186 = vmatpush.bf16.msra.mxu3 %v2169_v4  ;;  %v2164_v40 = vld [vmem:[%s2527_s7 + $0xf8] sm:$0xff]  ;;  %v799_v52 = vld [vmem:[#allocation2 + $0x180] sm:$0xff]  ;;  %v752_v55 = vld [vmem:[#allocation2 + $0x8] sm:$0xff]  ;;  %s1529_s7 = ssub.s32 (%p2504_p5), 157, %s2518_s26 }
  0x6b   : > { %v768_v56 = vld [vmem:[#allocation2 + $0x88] sm:$0xff]  ;;  %p1530_p12 = scmp.lt.s32.totalorder (%p2504_p5), %s1529_s7, 64 }
  0x6d   : > { %586 = vmatpush.bf16.msra.mxu0 %v2168_v5  ;;  %2187 = vmatpush.bf16.msra.mxu1 %v2168_v5 }
  0x6e   : > { %2188 = vmatpush.bf16.msra.mxu2 %v2168_v5  ;;  %2189 = vmatpush.bf16.msra.mxu3 %v2168_v5 }
  0x71   : > { %587 = vmatpush.bf16.msra.mxu0 %v2167_v6  ;;  %2190 = vmatpush.bf16.msra.mxu1 %v2167_v6 }
  0x72   : > { %2191 = vmatpush.bf16.msra.mxu2 %v2167_v6  ;;  %2192 = vmatpush.bf16.msra.mxu3 %v2167_v6 }
  0x75   : > { %588 = vmatpush.bf16.msra.mxu0 %v2166_v7  ;;  %2193 = vmatpush.bf16.msra.mxu1 %v2166_v7 }
  0x76   : > { %2194 = vmatpush.bf16.msra.mxu2 %v2166_v7  ;;  %2195 = vmatpush.bf16.msra.mxu3 %v2166_v7 }
  0x79   : > { %589 = vmatpush.bf16.msra.mxu0 %v2165_v8  ;;  %2196 = vmatpush.bf16.msra.mxu1 %v2165_v8 }
  0x7a   : > { %2197 = vmatpush.bf16.msra.mxu2 %v2165_v8  ;;  %2198 = vmatpush.bf16.msra.mxu3 %v2165_v8 }
  0x7c   : > { %590 = vmatmul.bf16.vlgmr.msra.gmra.mxu0 %v2133_v9  ;;  %630 = vmatmul.bf16.vlgmr.msra.gmra.mxu1 %v2141_v10 }
  0x7d   : > { %670 = vmatmul.bf16.vlgmr.msra.gmra.mxu2 %v2149_v11  ;;  %710 = vmatmul.bf16.vlgmr.msra.gmra.mxu3 %v2157_v12 }
  0x8c   : > { %595 = vmatmul.bf16.gmra.mxu0 %v2134_v13  ;;  %635 = vmatmul.bf16.gmra.mxu1 %v2142_v14 }
  0x8d   : > { %675 = vmatmul.bf16.gmra.mxu2 %v2150_v15  ;;  %715 = vmatmul.bf16.gmra.mxu3 %v2158_v16  ;;  %v784_v16 = vld [vmem:[#allocation2 + $0x108] sm:$0xff] }
  0x9c   : > { %600 = vmatmul.bf16.gmra.mxu0 %v2135_v17  ;;  %640 = vmatmul.bf16.gmra.mxu1 %v2143_v18  ;;  %v800_v17 = vld [vmem:[#allocation2 + $0x188] sm:$0xff] }
  0x9d   : > { %680 = vmatmul.bf16.gmra.mxu2 %v2151_v19  ;;  %720 = vmatmul.bf16.gmra.mxu3 %v2159_v20 }
  0xac   : > { %605 = vmatmul.bf16.gmra.mxu0 %v2136_v21  ;;  %645 = vmatmul.bf16.gmra.mxu1 %v2144_v22 }
  0xad   : > { %685 = vmatmul.bf16.gmra.mxu2 %v2152_v23  ;;  %725 = vmatmul.bf16.gmra.mxu3 %v2160_v24 }
  0xbc   : > { %610 = vmatmul.bf16.gmra.mxu0 %v2137_v25  ;;  %650 = vmatmul.bf16.gmra.mxu1 %v2145_v26 }
  0xbd   : > { %690 = vmatmul.bf16.gmra.mxu2 %v2153_v27  ;;  %730 = vmatmul.bf16.gmra.mxu3 %v2161_v28 }
  0xcc   : > { %615 = vmatmul.bf16.gmra.mxu0 %v2138_v29  ;;  %655 = vmatmul.bf16.gmra.mxu1 %v2146_v30  ;;  %v753_v30 = vld [vmem:[#allocation2 + $0x10] sm:$0xff] }
  0xcd   : > { %695 = vmatmul.bf16.gmra.mxu2 %v2154_v31  ;;  %735 = vmatmul.bf16.gmra.mxu3 %v2162_v32  ;;  %v769_v31 = vld [vmem:[#allocation2 + $0x90] sm:$0xff] }
  0xdc   : > { %620 = vmatmul.bf16.gmra.mxu0 %v2139_v33  ;;  %660 = vmatmul.bf16.gmra.mxu1 %v2147_v34 }
  0xdd   : > { %700 = vmatmul.bf16.gmra.mxu2 %v2155_v35  ;;  %740 = vmatmul.bf16.gmra.mxu3 %v2163_v36 }
  0xec   : > { %625 = vmatmul.bf16.gmra.mxu0 %v2140_v37  ;;  %665 = vmatmul.bf16.gmra.mxu1 %v2148_v38 }
  0xed   : > { %705 = vmatmul.bf16.gmra.mxu2 %v2156_v39  ;;  %745 = vmatmul.bf16.gmra.mxu3 %v2164_v40 }
  0xf9   : > { %v591_v43 = vpop.f32.mrf.mxu0  ;;  %v631_v44 = vpop.f32.mrf.mxu1 }
  0xfa   : > { %v815_v45 = vsub.f32 %v591_v43, %v751_v41  ;;  %v831_v46 = vsub.f32 %v631_v44, %v767_v42 }
  0xfc   : > { %v879_v47 = vmul.f32 0.5, %v815_v45  ;;  %v895_v48 = vmul.f32 0.5, %v831_v46 }
  0xfe   : > { %v943_v49 = vadd.f32 %v879_v47, %v751_v41  ;;  %v959_v50 = vadd.f32 %v895_v48, %v767_v42 }
 0x100   : > { %vm1007_vm1 = vcmp.ge.f32.partialorder %v943_v49, 1.0  ;;  %vm1023_vm4 = vcmp.ge.f32.partialorder %v959_v50, 1.0  ;;  %v671_v53 = vpop.f32.mrf.mxu2  ;;  %v711_v54 = vpop.f32.mrf.mxu3 }
 0x101   : > { %v2052_v58 = vsel %vm1007_vm1, 1.0, %v2444_v57  ;;  %v2068_v59 = vsel %vm1023_vm4, 1.0, %v2444_v57  ;;  %v847_v60 = vsub.f32 %v671_v53, %v783_v51  ;;  %v863_v61 = vsub.f32 %v711_v54, %v799_v52  ;;  %v593_v62 = vpop.f32.mrf.mxu0  ;;  %v633_v63 = vpop.f32.mrf.mxu1 }
 0x102   : > { %v1199_v0 = vpack.c.bf16 %v2052_v58, %v2052_v58  ;;  %v1328_v1 = vsub.f32 1.0, %v2052_v58  ;;  %v1215_v2 = vpack.c.bf16 %v2068_v59, %v2068_v59  ;;  %v1344_v3 = vsub.f32 1.0, %v2068_v59 }
 0x103   : > { %v911_v4 = vmul.f32 0.5, %v847_v60  ;;  %v927_v5 = vmul.f32 0.5, %v863_v61  ;;  %v816_v6 = vsub.f32 %v593_v62, %v752_v55  ;;  %v832_v7 = vsub.f32 %v633_v63, %v768_v56 }
 0x104   : > { %1264 = vst.msk [vmem:[%s2529_s8] sm:$0xf] %vm1263_vm2, %v1199_v0  ;;  %v1392_v8 = vmul.f32 %v1328_v1, %v943_v49  ;;  %v1408_v9 = vmul.f32 %v1344_v3, %v959_v50  ;;  %v785_v50 = vld [vmem:[#allocation2 + $0x110] sm:$0xff] }
 0x105   : > { %1280 = vst.msk [vmem:[%s2529_s8 + $0x40] sm:$0xf] %vm1263_vm2, %v1215_v2  ;;  %v975_v10 = vadd.f32 %v911_v4, %v783_v51  ;;  %v991_v11 = vadd.f32 %v927_v5, %v799_v52  ;;  %v880_v12 = vmul.f32 0.5, %v816_v6  ;;  %v896_v13 = vmul.f32 0.5, %v832_v7  ;;  %v801_v51 = vld [vmem:[#allocation2 + $0x190] sm:$0xff]  ;;  %v754_v5 = vld [vmem:[#allocation2 + $0x18] sm:$0xff] }
 0x106   : > { %1457 = vst.msk [vmem:[#allocation2] sm:$0xff] %vm1456_vm3, %v1392_v8  ;;  %v770_v6 = vld [vmem:[#allocation2 + $0x98] sm:$0xff] }
 0x107   : > { %1473 = vst.msk [vmem:[#allocation2 + $0x80] sm:$0xff] %vm1456_vm3, %v1408_v9  ;;  %vm1039_vm5 = vcmp.ge.f32.partialorder %v975_v10, 1.0  ;;  %vm1055_vm6 = vcmp.ge.f32.partialorder %v991_v11, 1.0  ;;  %v944_v14 = vadd.f32 %v880_v12, %v752_v55  ;;  %v960_v15 = vadd.f32 %v896_v13, %v768_v56 }
 0x108   : > { %v2084_v18 = vsel %vm1039_vm5, 1.0, %v2444_v57  ;;  %v2100_v19 = vsel %vm1055_vm6, 1.0, %v2444_v57  ;;  %v673_v20 = vpop.f32.mrf.mxu2  ;;  %v713_v21 = vpop.f32.mrf.mxu3 }
 0x109   : > { %v1231_v22 = vpack.c.bf16 %v2084_v18, %v2084_v18  ;;  %v1360_v23 = vsub.f32 1.0, %v2084_v18  ;;  %v1247_v24 = vpack.c.bf16 %v2100_v19, %v2100_v19  ;;  %v1376_v25 = vsub.f32 1.0, %v2100_v19  ;;  %v596_v26 = vpop.f32.mrf.mxu0  ;;  %v636_v27 = vpop.f32.mrf.mxu1  ;;  %v786_v19 = vld [vmem:[#allocation2 + $0x118] sm:$0xff] }
 0x10a   : > { %vm1008_vm7 = vcmp.ge.f32.partialorder %v944_v14, 1.0  ;;  %vm1024_vm8 = vcmp.ge.f32.partialorder %v960_v15, 1.0  ;;  %v848_v28 = vsub.f32 %v673_v20, %v784_v16  ;;  %v864_v29 = vsub.f32 %v713_v21, %v800_v17  ;;  %v802_v20 = vld [vmem:[#allocation2 + $0x198] sm:$0xff] }
 0x10b   : > { %1296 = vst.msk [vmem:[%s2529_s8 + $0x80] sm:$0xf] %vm1263_vm2, %v1231_v22  ;;  %v1424_v32 = vmul.f32 %v1360_v23, %v975_v10  ;;  %v1440_v33 = vmul.f32 %v1376_v25, %v991_v11  ;;  %v2053_v34 = vsel %vm1008_vm7, 1.0, %v2444_v57  ;;  %v2069_v35 = vsel %vm1024_vm8, 1.0, %v2444_v57 }
 0x10c   : > { %1312 = vst.msk [vmem:[%s2529_s8 + $0xc0] sm:$0xf] %vm1263_vm2, %v1247_v24  ;;  %v1200_v36 = vpack.c.bf16 %v2053_v34, %v2053_v34  ;;  %v1329_v37 = vsub.f32 1.0, %v2053_v34  ;;  %v1216_v38 = vpack.c.bf16 %v2069_v35, %v2069_v35  ;;  %v1345_v39 = vsub.f32 1.0, %v2069_v35  ;;  %v771_v34 = vld [vmem:[#allocation2 + $0xa0] sm:$0xff] }
 0x10d   : > { %1489 = vst.msk [vmem:[#allocation2 + $0x100] sm:$0xff] %vm1456_vm3, %v1424_v32  ;;  %v912_v40 = vmul.f32 0.5, %v848_v28  ;;  %v928_v41 = vmul.f32 0.5, %v864_v29  ;;  %v817_v42 = vsub.f32 %v596_v26, %v753_v30  ;;  %v833_v43 = vsub.f32 %v636_v27, %v769_v31 }
 0x10e   : > { %1505 = vst.msk [vmem:[#allocation2 + $0x180] sm:$0xff] %vm1456_vm3, %v1440_v33  ;;  %v1393_v44 = vmul.f32 %v1329_v37, %v944_v14  ;;  %v1409_v45 = vmul.f32 %v1345_v39, %v960_v15  ;;  %v755_v33 = vld [vmem:[#allocation2 + $0x20] sm:$0xff] }
 0x10f   : > { %1265 = vst.msk [vmem:[%s2529_s8 + $0x4] sm:$0xf] %vm1263_vm2, %v1200_v36  ;;  %v976_v46 = vadd.f32 %v912_v40, %v784_v16  ;;  %v992_v47 = vadd.f32 %v928_v41, %v800_v17  ;;  %v881_v48 = vmul.f32 0.5, %v817_v42  ;;  %v897_v49 = vmul.f32 0.5, %v833_v43 }
 0x110   : > { %1458 = vst.msk [vmem:[#allocation2 + $0x8] sm:$0xff] %vm1456_vm3, %v1393_v44  ;;  %v676_v52 = vpop.f32.mrf.mxu2  ;;  %v716_v53 = vpop.f32.mrf.mxu3 }
 0x111   : > { %1281 = vst.msk [vmem:[%s2529_s8 + $0x44] sm:$0xf] %vm1263_vm2, %v1216_v38  ;;  %vm1040_vm9 = vcmp.ge.f32.partialorder %v976_v46, 1.0  ;;  %vm1056_vm10 = vcmp.ge.f32.partialorder %v992_v47, 1.0  ;;  %v945_v54 = vadd.f32 %v881_v48, %v753_v30  ;;  %v961_v55 = vadd.f32 %v897_v49, %v769_v31  ;;  %v598_v56 = vpop.f32.mrf.mxu0  ;;  %v638_v58 = vpop.f32.mrf.mxu1 }
 0x112   : > { %1474 = vst.msk [vmem:[#allocation2 + $0x88] sm:$0xff] %vm1456_vm3, %v1409_v45  ;;  %v2085_v59 = vsel %vm1040_vm9, 1.0, %v2444_v57  ;;  %v2101_v60 = vsel %vm1056_vm10, 1.0, %v2444_v57  ;;  %v849_v61 = vsub.f32 %v676_v52, %v785_v50  ;;  %v865_v62 = vsub.f32 %v716_v53, %v801_v51 }
 0x113   : > { %v1232_v63 = vpack.c.bf16 %v2085_v59, %v2085_v59  ;;  %v1361_v0 = vsub.f32 1.0, %v2085_v59  ;;  %v1248_v1 = vpack.c.bf16 %v2101_v60, %v2101_v60  ;;  %v1377_v2 = vsub.f32 1.0, %v2101_v60 }
 0x114   : > { %vm1009_vm11 = vcmp.ge.f32.partialorder %v945_v54, 1.0  ;;  %vm1025_vm12 = vcmp.ge.f32.partialorder %v961_v55, 1.0  ;;  %v913_v3 = vmul.f32 0.5, %v849_v61  ;;  %v929_v4 = vmul.f32 0.5, %v865_v62  ;;  %v787_v62 = vld [vmem:[#allocation2 + $0x120] sm:$0xff] }
 0x115   : > { %1297 = vst.msk [vmem:[%s2529_s8 + $0x84] sm:$0xf] %vm1263_vm2, %v1232_v63  ;;  %v1425_v7 = vmul.f32 %v1361_v0, %v976_v46  ;;  %v1441_v8 = vmul.f32 %v1377_v2, %v992_v47  ;;  %v2054_v9 = vsel %vm1009_vm11, 1.0, %v2444_v57  ;;  %v2070_v10 = vsel %vm1025_vm12, 1.0, %v2444_v57  ;;  %v803_v63 = vld [vmem:[#allocation2 + $0x1a0] sm:$0xff] }
 0x116   : > { %1313 = vst.msk [vmem:[%s2529_s8 + $0xc4] sm:$0xf] %vm1263_vm2, %v1248_v1  ;;  %v1201_v11 = vpack.c.bf16 %v2054_v9, %v2054_v9  ;;  %v1330_v12 = vsub.f32 1.0, %v2054_v9  ;;  %v1217_v13 = vpack.c.bf16 %v2070_v10, %v2070_v10  ;;  %v1346_v14 = vsub.f32 1.0, %v2070_v10 }
 0x117   : > { %1490 = vst.msk [vmem:[#allocation2 + $0x108] sm:$0xff] %vm1456_vm3, %v1425_v7  ;;  %v977_v15 = vadd.f32 %v913_v3, %v785_v50  ;;  %v993_v16 = vadd.f32 %v929_v4, %v801_v51  ;;  %v818_v17 = vsub.f32 %v598_v56, %v754_v5  ;;  %v834_v18 = vsub.f32 %v638_v58, %v770_v6 }
 0x118   : > { %1506 = vst.msk [vmem:[#allocation2 + $0x188] sm:$0xff] %vm1456_vm3, %v1441_v8  ;;  %v1394_v21 = vmul.f32 %v1330_v12, %v945_v54  ;;  %v1410_v22 = vmul.f32 %v1346_v14, %v961_v55  ;;  %v678_v23 = vpop.f32.mrf.mxu2  ;;  %v718_v24 = vpop.f32.mrf.mxu3  ;;  %v756_v12 = vld [vmem:[#allocation2 + $0x28] sm:$0xff] }
 0x119   : > { %1266 = vst.msk [vmem:[%s2529_s8 + $0x8] sm:$0xf] %vm1263_vm2, %v1201_v11  ;;  %vm1041_vm13 = vcmp.ge.f32.partialorder %v977_v15, 1.0  ;;  %vm1057_vm14 = vcmp.ge.f32.partialorder %v993_v16, 1.0  ;;  %v882_v25 = vmul.f32 0.5, %v818_v17  ;;  %v898_v26 = vmul.f32 0.5, %v834_v18  ;;  %v601_v27 = vpop.f32.mrf.mxu0  ;;  %v641_v28 = vpop.f32.mrf.mxu1 }
 0x11a   : > { %1459 = vst.msk [vmem:[#allocation2 + $0x10] sm:$0xff] %vm1456_vm3, %v1394_v21  ;;  %v2086_v29 = vsel %vm1041_vm13, 1.0, %v2444_v57  ;;  %v2102_v30 = vsel %vm1057_vm14, 1.0, %v2444_v57  ;;  %v850_v31 = vsub.f32 %v678_v23, %v786_v19  ;;  %v866_v32 = vsub.f32 %v718_v24, %v802_v20  ;;  %v788_v21 = vld [vmem:[#allocation2 + $0x128] sm:$0xff] }
 0x11b   : > { %1282 = vst.msk [vmem:[%s2529_s8 + $0x48] sm:$0xf] %vm1263_vm2, %v1217_v13  ;;  %v1233_v35 = vpack.c.bf16 %v2086_v29, %v2086_v29  ;;  %v1362_v36 = vsub.f32 1.0, %v2086_v29  ;;  %v1249_v37 = vpack.c.bf16 %v2102_v30, %v2102_v30  ;;  %v1378_v38 = vsub.f32 1.0, %v2102_v30  ;;  %v772_v13 = vld [vmem:[#allocation2 + $0xa8] sm:$0xff] }
 0x11c   : > { %1475 = vst.msk [vmem:[#allocation2 + $0x90] sm:$0xff] %vm1456_vm3, %v1410_v22  ;;  %v946_v39 = vadd.f32 %v882_v25, %v754_v5  ;;  %v962_v40 = vadd.f32 %v898_v26, %v770_v6  ;;  %v914_v41 = vmul.f32 0.5, %v850_v31  ;;  %v930_v42 = vmul.f32 0.5, %v866_v32  ;;  %v804_v26 = vld [vmem:[#allocation2 + $0x1a8] sm:$0xff] }
 0x11d   : > { %1298 = vst.msk [vmem:[%s2529_s8 + $0x88] sm:$0xf] %vm1263_vm2, %v1233_v35  ;;  %v1426_v43 = vmul.f32 %v1362_v36, %v977_v15  ;;  %v1442_v44 = vmul.f32 %v1378_v38, %v993_v16  ;;  %v819_v45 = vsub.f32 %v601_v27, %v755_v33  ;;  %v835_v46 = vsub.f32 %v641_v28, %v771_v34  ;;  %v2779_v27 = vld [vmem:[#allocation2 + $0x30] sm:$0xff] }
 0x11e   : > { %1314 = vst.msk [vmem:[%s2529_s8 + $0xc8] sm:$0xf] %vm1263_vm2, %v1249_v37  ;;  %vm1010_vm15 = vcmp.ge.f32.partialorder %v946_v39, 1.0  ;;  %vm1026_vm0 = vcmp.ge.f32.partialorder %v962_v40, 1.0  ;;  %v978_v47 = vadd.f32 %v914_v41, %v786_v19  ;;  %v994_v48 = vadd.f32 %v930_v42, %v802_v20  ;;  %v2781_v28 = vld [vmem:[#allocation2 + $0xb0] sm:$0xff] }
 0x11f   : > { %1491 = vst.msk [vmem:[#allocation2 + $0x110] sm:$0xff] %vm1456_vm3, %v1426_v43  ;;  %v2055_v49 = vsel %vm1010_vm15, 1.0, %v2444_v57  ;;  %v2071_v50 = vsel %vm1026_vm0, 1.0, %v2444_v57  ;;  %v883_v51 = vmul.f32 0.5, %v819_v45  ;;  %v899_v52 = vmul.f32 0.5, %v835_v46 }
 0x120   : > { %1507 = vst.msk [vmem:[#allocation2 + $0x190] sm:$0xff] %vm1456_vm3, %v1442_v44  ;;  %v1202_v53 = vpack.c.bf16 %v2055_v49, %v2055_v49  ;;  %v1331_v54 = vsub.f32 1.0, %v2055_v49  ;;  %v1218_v55 = vpack.c.bf16 %v2071_v50, %v2071_v50  ;;  %v1347_v56 = vsub.f32 1.0, %v2071_v50  ;;  %v681_v58 = vpop.f32.mrf.mxu2  ;;  %v721_v59 = vpop.f32.mrf.mxu3 }
 0x121   : > { %vm1042_vm1 = vcmp.ge.f32.partialorder %v978_v47, 1.0  ;;  %vm1058_vm4 = vcmp.ge.f32.partialorder %v994_v48, 1.0  ;;  %v947_v60 = vadd.f32 %v883_v51, %v755_v33  ;;  %v963_v61 = vadd.f32 %v899_v52, %v771_v34  ;;  %v603_v0 = vpop.f32.mrf.mxu0  ;;  %v643_v1 = vpop.f32.mrf.mxu1 }
 0x122   : > { %1267 = vst.msk [vmem:[%s2529_s8 + $0xc] sm:$0xf] %vm1263_vm2, %v1202_v53  ;;  %v1395_v2 = vmul.f32 %v1331_v54, %v946_v39  ;;  %v1411_v3 = vmul.f32 %v1347_v56, %v962_v40  ;;  %v2087_v4 = vsel %vm1042_vm1, 1.0, %v2444_v57  ;;  %v2103_v5 = vsel %vm1058_vm4, 1.0, %v2444_v57 }
 0x123   : > { %1283 = vst.msk [vmem:[%s2529_s8 + $0x4c] sm:$0xf] %vm1263_vm2, %v1218_v55  ;;  %v1234_v6 = vpack.c.bf16 %v2087_v4, %v2087_v4  ;;  %v1363_v7 = vsub.f32 1.0, %v2087_v4  ;;  %v1250_v8 = vpack.c.bf16 %v2103_v5, %v2103_v5  ;;  %v1379_v9 = vsub.f32 1.0, %v2103_v5 }
 0x124   : > { %1460 = vst.msk [vmem:[#allocation2 + $0x18] sm:$0xff] %vm1456_vm3, %v1395_v2  ;;  %vm1011_vm5 = vcmp.ge.f32.partialorder %v947_v60, 1.0  ;;  %vm1027_vm6 = vcmp.ge.f32.partialorder %v963_v61, 1.0  ;;  %v851_v10 = vsub.f32 %v681_v58, %v787_v62  ;;  %v867_v11 = vsub.f32 %v721_v59, %v803_v63  ;;  %v789_v2 = vld [vmem:[#allocation2 + $0x130] sm:$0xff] }
 0x125   : > { %1476 = vst.msk [vmem:[#allocation2 + $0x98] sm:$0xff] %vm1456_vm3, %v1411_v3  ;;  %v1427_v14 = vmul.f32 %v1363_v7, %v978_v47  ;;  %v1443_v15 = vmul.f32 %v1379_v9, %v994_v48  ;;  %v2056_v16 = vsel %vm1011_vm5, 1.0, %v2444_v57  ;;  %v2072_v17 = vsel %vm1027_vm6, 1.0, %v2444_v57 }
 0x126   : > { %1299 = vst.msk [vmem:[%s2529_s8 + $0x8c] sm:$0xf] %vm1263_vm2, %v1234_v6  ;;  %v1203_v18 = vpack.c.bf16 %v2056_v16, %v2056_v16  ;;  %v1332_v19 = vsub.f32 1.0, %v2056_v16  ;;  %v1348_v20 = vsub.f32 1.0, %v2072_v17  ;;  %v915_v22 = vmul.f32 0.5, %v851_v10  ;;  %v805_v6 = vld [vmem:[#allocation2 + $0x1b0] sm:$0xff] }
 0x127   : > { %1492 = vst.msk [vmem:[#allocation2 + $0x118] sm:$0xff] %vm1456_vm3, %v1427_v14  ;;  %v931_v23 = vmul.f32 0.5, %v867_v11  ;;  %v820_v24 = vsub.f32 %v603_v0, %v756_v12  ;;  %v836_v25 = vsub.f32 %v643_v1, %v772_v13  ;;  %v1219_v30 = vpack.c.bf16 %v2072_v17, %v2072_v17  ;;  %v774_v14 = vld [vmem:[#allocation2 + $0xb8] sm:$0xff] }
 0x128   : > { %1315 = vst.msk [vmem:[%s2529_s8 + $0xcc] sm:$0xf] %vm1263_vm2, %v1250_v8  ;;  %v1396_v29 = vmul.f32 %v1332_v19, %v947_v60  ;;  %v1412_v31 = vmul.f32 %v1348_v20, %v963_v61  ;;  %v683_v32 = vpop.f32.mrf.mxu2  ;;  %v723_v33 = vpop.f32.mrf.mxu3  ;;  %v979_v34 = vadd.f32 %v915_v22, %v787_v62 }
 0x129   : > { %1508 = vst.msk [vmem:[#allocation2 + $0x198] sm:$0xff] %vm1456_vm3, %v1443_v15  ;;  %v995_v35 = vadd.f32 %v931_v23, %v803_v63  ;;  %v884_v36 = vmul.f32 0.5, %v820_v24  ;;  %v900_v37 = vmul.f32 0.5, %v836_v25  ;;  %v606_v38 = vpop.f32.mrf.mxu0  ;;  %v646_v39 = vpop.f32.mrf.mxu1  ;;  %v852_v40 = vsub.f32 %v683_v32, %v788_v21 }
 0x12a   : > { %1268 = vst.msk [vmem:[%s2529_s8 + $0x10] sm:$0xf] %vm1263_vm2, %v1203_v18  ;;  %v868_v41 = vsub.f32 %v723_v33, %v804_v26  ;;  %v821_v42 = vsub.f32 %v606_v38, %v2779_v27  ;;  %v837_v43 = vsub.f32 %v646_v39, %v2781_v28  ;;  %vm1043_vm7 = vcmp.ge.f32.partialorder %v979_v34, 1.0 }
 0x12b   : > { %1461 = vst.msk [vmem:[#allocation2 + $0x20] sm:$0xff] %vm1456_vm3, %v1396_v29  ;;  %vm1059_vm8 = vcmp.ge.f32.partialorder %v995_v35, 1.0  ;;  %v948_v44 = vadd.f32 %v884_v36, %v756_v12  ;;  %v964_v45 = vadd.f32 %v900_v37, %v772_v13  ;;  %v2088_v46 = vsel %vm1043_vm7, 1.0, %v2444_v57  ;;  %v758_v13 = vld [vmem:[#allocation2 + $0x38] sm:$0xff] }
 0x12c   : > { %1284 = vst.msk [vmem:[%s2529_s8 + $0x50] sm:$0xf] %vm1263_vm2, %v1219_v30  ;;  %v2104_v47 = vsel %vm1059_vm8, 1.0, %v2444_v57  ;;  %v916_v48 = vmul.f32 0.5, %v852_v40  ;;  %v932_v49 = vmul.f32 0.5, %v868_v41  ;;  %v1235_v50 = vpack.c.bf16 %v2088_v46, %v2088_v46  ;;  %v2813_v29 = vld [vmem:[#allocation2 + $0x138] sm:$0xff] }
 0x12d   : > { %1477 = vst.msk [vmem:[#allocation2 + $0xa0] sm:$0xff] %vm1456_vm3, %v1412_v31  ;;  %v1364_v51 = vsub.f32 1.0, %v2088_v46  ;;  %v1251_v52 = vpack.c.bf16 %v2104_v47, %v2104_v47  ;;  %v1380_v53 = vsub.f32 1.0, %v2104_v47  ;;  %vm1012_vm9 = vcmp.ge.f32.partialorder %v948_v44, 1.0  ;;  %v2816_v31 = vld [vmem:[#allocation2 + $0x1b8] sm:$0xff] }
 0x12e   : > { %vm1028_vm10 = vcmp.ge.f32.partialorder %v964_v45, 1.0  ;;  %v980_v54 = vadd.f32 %v916_v48, %v788_v21  ;;  %v996_v55 = vadd.f32 %v932_v49, %v804_v26  ;;  %1300 = vst.msk [vmem:[%s2529_s8 + $0x90] sm:$0xf] %vm1263_vm2, %v1235_v50  ;;  %v2057_v59 = vsel %vm1012_vm9, 1.0, %v2444_v57 }
 0x12f   : > { %v1428_v56 = vmul.f32 %v1364_v51, %v979_v34  ;;  %v1444_v58 = vmul.f32 %v1380_v53, %v995_v35  ;;  %v2073_v60 = vsel %vm1028_vm10, 1.0, %v2444_v57  ;;  %1316 = vst.msk [vmem:[%s2529_s8 + $0xd0] sm:$0xf] %vm1263_vm2, %v1251_v52  ;;  %v1204_v61 = vpack.c.bf16 %v2057_v59, %v2057_v59 }
 0x130   : > { %v1333_v62 = vsub.f32 1.0, %v2057_v59  ;;  %v1220_v63 = vpack.c.bf16 %v2073_v60, %v2073_v60  ;;  %v1349_v0 = vsub.f32 1.0, %v2073_v60  ;;  %v686_v1 = vpop.f32.mrf.mxu2  ;;  %v726_v3 = vpop.f32.mrf.mxu3  ;;  %vm1044_vm11 = vcmp.ge.f32.partialorder %v980_v54, 1.0  ;;  %v759_v60 = vld [vmem:[#allocation2 + $0x40] sm:$0xff] }
 0x131   : > { %1493 = vst.msk [vmem:[#allocation2 + $0x120] sm:$0xff] %vm1456_vm3, %v1428_v56  ;;  %vm1060_vm12 = vcmp.ge.f32.partialorder %v996_v55, 1.0  ;;  %v885_v4 = vmul.f32 0.5, %v821_v42  ;;  %v901_v5 = vmul.f32 0.5, %v837_v43  ;;  %v608_v7 = vpop.f32.mrf.mxu0  ;;  %v648_v8 = vpop.f32.mrf.mxu1  ;;  %v2089_v11 = vsel %vm1044_vm11, 1.0, %v2444_v57 }
 0x132   : > { %1509 = vst.msk [vmem:[#allocation2 + $0x1a0] sm:$0xff] %vm1456_vm3, %v1444_v58  ;;  %v1397_v9 = vmul.f32 %v1333_v62, %v948_v44  ;;  %v1413_v10 = vmul.f32 %v1349_v0, %v964_v45  ;;  %v2105_v12 = vsel %vm1060_vm12, 1.0, %v2444_v57  ;;  %v1236_v15 = vpack.c.bf16 %v2089_v11, %v2089_v11 }
 0x133   : > { %1269 = vst.msk [vmem:[%s2529_s8 + $0x14] sm:$0xf] %vm1263_vm2, %v1204_v61  ;;  %v1365_v16 = vsub.f32 1.0, %v2089_v11  ;;  %v1252_v17 = vpack.c.bf16 %v2105_v12, %v2105_v12  ;;  %v1381_v18 = vsub.f32 1.0, %v2105_v12  ;;  %v949_v19 = vadd.f32 %v885_v4, %v2779_v27  ;;  %v775_v61 = vld [vmem:[#allocation2 + $0xc0] sm:$0xff] }
 0x134   : > { %1462 = vst.msk [vmem:[#allocation2 + $0x28] sm:$0xff] %vm1456_vm3, %v1397_v9  ;;  %v965_v20 = vadd.f32 %v901_v5, %v2781_v28  ;;  %v853_v21 = vsub.f32 %v686_v1, %v789_v2  ;;  %v869_v22 = vsub.f32 %v726_v3, %v805_v6  ;;  %v822_v25 = vsub.f32 %v608_v7, %v758_v13  ;;  %v807_v3 = vld [vmem:[#allocation2 + $0x1c0] sm:$0xff]  ;;  %v2842_v9 = vld [vmem:[#allocation2 + $0xc8] sm:$0xff] }
 0x135   : > { %1285 = vst.msk [vmem:[%s2529_s8 + $0x54] sm:$0xf] %vm1263_vm2, %v1220_v63  ;;  %v1429_v23 = vmul.f32 %v1365_v16, %v980_v54  ;;  %v1445_v24 = vmul.f32 %v1381_v18, %v996_v55  ;;  %v838_v26 = vsub.f32 %v648_v8, %v774_v14  ;;  %vm1013_vm13 = vcmp.ge.f32.partialorder %v949_v19, 1.0  ;;  %v2840_v8 = vld [vmem:[#allocation2 + $0x48] sm:$0xff] }
 0x136   : > { %1478 = vst.msk [vmem:[#allocation2 + $0xa8] sm:$0xff] %vm1456_vm3, %v1413_v10  ;;  %vm1029_vm14 = vcmp.ge.f32.partialorder %v965_v20, 1.0  ;;  %v917_v30 = vmul.f32 0.5, %v853_v21  ;;  %v933_v27 = vmul.f32 0.5, %v869_v22  ;;  %v2058_v28 = vsel %vm1013_vm13, 1.0, %v2444_v57 }
 0x137   : > { %1301 = vst.msk [vmem:[%s2529_s8 + $0x94] sm:$0xf] %vm1263_vm2, %v1236_v15  ;;  %v2074_v32 = vsel %vm1029_vm14, 1.0, %v2444_v57  ;;  %v886_v33 = vmul.f32 0.5, %v822_v25  ;;  %v902_v34 = vmul.f32 0.5, %v838_v26  ;;  %v1205_v35 = vpack.c.bf16 %v2058_v28, %v2058_v28 }
 0x138   : > { %1494 = vst.msk [vmem:[#allocation2 + $0x128] sm:$0xff] %vm1456_vm3, %v1429_v23  ;;  %v1334_v36 = vsub.f32 1.0, %v2058_v28  ;;  %v1221_v37 = vpack.c.bf16 %v2074_v32, %v2074_v32  ;;  %v1350_v38 = vsub.f32 1.0, %v2074_v32  ;;  %v688_v39 = vpop.f32.mrf.mxu2  ;;  %v728_v40 = vpop.f32.mrf.mxu3  ;;  %v981_v41 = vadd.f32 %v917_v30, %v789_v2  ;;  %v791_v2 = vld [vmem:[#allocation2 + $0x140] sm:$0xff] }
 0x139   : > { %1317 = vst.msk [vmem:[%s2529_s8 + $0xd4] sm:$0xf] %vm1263_vm2, %v1252_v17  ;;  %v997_v42 = vadd.f32 %v933_v27, %v805_v6  ;;  %v950_v43 = vadd.f32 %v886_v33, %v758_v13  ;;  %v966_v44 = vadd.f32 %v902_v34, %v774_v14  ;;  %v611_v45 = vpop.f32.mrf.mxu0  ;;  %v651_v46 = vpop.f32.mrf.mxu1  ;;  %v854_v49 = vsub.f32 %v688_v39, %v2813_v29 }
 0x13a   : > { %1510 = vst.msk [vmem:[#allocation2 + $0x1a8] sm:$0xff] %vm1456_vm3, %v1445_v24  ;;  %v1398_v47 = vmul.f32 %v1334_v36, %v949_v19  ;;  %v1414_v48 = vmul.f32 %v1350_v38, %v965_v20  ;;  %v870_v50 = vsub.f32 %v728_v40, %v2816_v31  ;;  %vm1045_vm15 = vcmp.ge.f32.partialorder %v981_v41, 1.0 }
 0x13b   : > { %1270 = vst.msk [vmem:[%s2529_s8 + $0x18] sm:$0xf] %vm1263_vm2, %v1205_v35  ;;  %vm1061_vm0 = vcmp.ge.f32.partialorder %v997_v42, 1.0  ;;  %vm1014_vm1 = vcmp.ge.f32.partialorder %v950_v43, 1.0  ;;  %vm1030_vm4 = vcmp.ge.f32.partialorder %v966_v44, 1.0  ;;  %v2090_v51 = vsel %vm1045_vm15, 1.0, %v2444_v57 }
 0x13c   : > { %1463 = vst.msk [vmem:[#allocation2 + $0x30] sm:$0xff] %vm1456_vm3, %v1398_v47  ;;  %v2106_v52 = vsel %vm1061_vm0, 1.0, %v2444_v57  ;;  %v2059_v53 = vsel %vm1014_vm1, 1.0, %v2444_v57  ;;  %v2075_v54 = vsel %vm1030_vm4, 1.0, %v2444_v57  ;;  %v1237_v55 = vpack.c.bf16 %v2090_v51, %v2090_v51  ;;  %v792_v47 = vld [vmem:[#allocation2 + $0x148] sm:$0xff] }
 0x13d   : > { %1286 = vst.msk [vmem:[%s2529_s8 + $0x58] sm:$0xf] %vm1263_vm2, %v1221_v37  ;;  %v1366_v56 = vsub.f32 1.0, %v2090_v51  ;;  %v1253_v58 = vpack.c.bf16 %v2106_v52, %v2106_v52  ;;  %v1382_v59 = vsub.f32 1.0, %v2106_v52  ;;  %v1206_v62 = vpack.c.bf16 %v2059_v53, %v2059_v53  ;;  %v808_v51 = vld [vmem:[#allocation2 + $0x1c8] sm:$0xff] }
 0x13e   : > { %1479 = vst.msk [vmem:[#allocation2 + $0xb0] sm:$0xff] %vm1456_vm3, %v1414_v48  ;;  %v1335_v63 = vsub.f32 1.0, %v2059_v53  ;;  %v1222_v0 = vpack.c.bf16 %v2075_v54, %v2075_v54  ;;  %v1351_v1 = vsub.f32 1.0, %v2075_v54  ;;  %v918_v6 = vmul.f32 0.5, %v854_v49 }
 0x13f   : > { %1302 = vst.msk [vmem:[%s2529_s8 + $0x98] sm:$0xf] %vm1263_vm2, %v1237_v55  ;;  %v1430_v4 = vmul.f32 %v1366_v56, %v981_v41  ;;  %v1446_v5 = vmul.f32 %v1382_v59, %v997_v42  ;;  %v934_v7 = vmul.f32 0.5, %v870_v50  ;;  %v823_v12 = vsub.f32 %v611_v45, %v759_v60  ;;  %v761_v59 = vld [vmem:[#allocation2 + $0x50] sm:$0xff] }
 0x140   : > { %1318 = vst.msk [vmem:[%s2529_s8 + $0xd8] sm:$0xf] %vm1263_vm2, %v1253_v58  ;;  %v1399_v10 = vmul.f32 %v1335_v63, %v950_v43  ;;  %v1415_v11 = vmul.f32 %v1351_v1, %v966_v44  ;;  %v839_v13 = vsub.f32 %v651_v46, %v775_v61  ;;  %v691_v14 = vpop.f32.mrf.mxu2  ;;  %v731_v15 = vpop.f32.mrf.mxu3  ;;  %v982_v16 = vadd.f32 %v918_v6, %v2813_v29 }
 0x141   : > { %1495 = vst.msk [vmem:[#allocation2 + $0x130] sm:$0xff] %vm1456_vm3, %v1430_v4  ;;  %v998_v17 = vadd.f32 %v934_v7, %v2816_v31  ;;  %v855_v18 = vsub.f32 %v691_v14, %v791_v2  ;;  %v871_v19 = vsub.f32 %v731_v15, %v807_v3  ;;  %v613_v20 = vpop.f32.mrf.mxu0  ;;  %v653_v21 = vpop.f32.mrf.mxu1  ;;  %v887_v22 = vmul.f32 0.5, %v823_v12 }
 0x142   : > { %1511 = vst.msk [vmem:[#allocation2 + $0x1b0] sm:$0xff] %vm1456_vm3, %v1446_v5  ;;  %v903_v23 = vmul.f32 0.5, %v839_v13  ;;  %v824_v24 = vsub.f32 %v613_v20, %v2840_v8  ;;  %v840_v25 = vsub.f32 %v653_v21, %v2842_v9  ;;  %vm1046_vm5 = vcmp.ge.f32.partialorder %v982_v16, 1.0  ;;  %v2880_v13 = vld [vmem:[#allocation2 + $0x1d0] sm:$0xff] }
 0x143   : > { %1271 = vst.msk [vmem:[%s2529_s8 + $0x1c] sm:$0xf] %vm1263_vm2, %v1206_v62  ;;  %vm1062_vm6 = vcmp.ge.f32.partialorder %v998_v17, 1.0  ;;  %v919_v26 = vmul.f32 0.5, %v855_v18  ;;  %v935_v29 = vmul.f32 0.5, %v871_v19  ;;  %v2091_v30 = vsel %vm1046_vm5, 1.0, %v2444_v57 }
 0x144   : > { %1464 = vst.msk [vmem:[#allocation2 + $0x38] sm:$0xff] %vm1456_vm3, %v1399_v10  ;;  %v2107_v27 = vsel %vm1062_vm6, 1.0, %v2444_v57  ;;  %v951_v31 = vadd.f32 %v887_v22, %v759_v60  ;;  %v967_v28 = vadd.f32 %v903_v23, %v775_v61  ;;  %v1238_v32 = vpack.c.bf16 %v2091_v30, %v2091_v30  ;;  %v777_v60 = vld [vmem:[#allocation2 + $0xd0] sm:$0xff] }
 0x145   : > { %1287 = vst.msk [vmem:[%s2529_s8 + $0x5c] sm:$0xf] %vm1263_vm2, %v1222_v0  ;;  %v1367_v33 = vsub.f32 1.0, %v2091_v30  ;;  %v1254_v34 = vpack.c.bf16 %v2107_v27, %v2107_v27  ;;  %v1383_v35 = vsub.f32 1.0, %v2107_v27  ;;  %v983_v36 = vadd.f32 %v919_v26, %v791_v2 }
 0x146   : > { %1480 = vst.msk [vmem:[#allocation2 + $0xb8] sm:$0xff] %vm1456_vm3, %v1415_v11  ;;  %vm1015_vm7 = vcmp.ge.f32.partialorder %v951_v31, 1.0  ;;  %vm1031_vm8 = vcmp.ge.f32.partialorder %v967_v28, 1.0  ;;  %v999_v37 = vadd.f32 %v935_v29, %v807_v3  ;;  %v888_v49 = vmul.f32 0.5, %v824_v24  ;;  %v2877_v11 = vld [vmem:[#allocation2 + $0x150] sm:$0xff] }
 0x147   : > { %1303 = vst.msk [vmem:[%s2529_s8 + $0x9c] sm:$0xf] %vm1263_vm2, %v1238_v32  ;;  %v1431_v38 = vmul.f32 %v1367_v33, %v982_v16  ;;  %v1447_v39 = vmul.f32 %v1383_v35, %v998_v17  ;;  %v2060_v40 = vsel %vm1015_vm7, 1.0, %v2444_v57  ;;  %v2076_v41 = vsel %vm1031_vm8, 1.0, %v2444_v57 }
 0x148   : > { %1319 = vst.msk [vmem:[%s2529_s8 + $0xdc] sm:$0xf] %vm1263_vm2, %v1254_v34  ;;  %v1207_v42 = vpack.c.bf16 %v2060_v40, %v2060_v40  ;;  %v1336_v43 = vsub.f32 1.0, %v2060_v40  ;;  %v1223_v44 = vpack.c.bf16 %v2076_v41, %v2076_v41  ;;  %v1352_v45 = vsub.f32 1.0, %v2076_v41  ;;  %v693_v46 = vpop.f32.mrf.mxu2  ;;  %v733_v48 = vpop.f32.mrf.mxu3  ;;  %v762_v41 = vld [vmem:[#allocation2 + $0x58] sm:$0xff] }
 0x149   : > { %1496 = vst.msk [vmem:[#allocation2 + $0x138] sm:$0xff] %vm1456_vm3, %v1431_v38  ;;  %vm1047_vm9 = vcmp.ge.f32.partialorder %v983_v36, 1.0  ;;  %vm1063_vm10 = vcmp.ge.f32.partialorder %v999_v37, 1.0  ;;  %v904_v50 = vmul.f32 0.5, %v840_v25  ;;  %v616_v52 = vpop.f32.mrf.mxu0  ;;  %v656_v53 = vpop.f32.mrf.mxu1  ;;  %v952_v1 = vadd.f32 %v888_v49, %v2840_v8 }
 0x14a   : > { %1512 = vst.msk [vmem:[#allocation2 + $0x1b8] sm:$0xff] %vm1456_vm3, %v1447_v39  ;;  %v1400_v54 = vmul.f32 %v1336_v43, %v951_v31  ;;  %v1416_v55 = vmul.f32 %v1352_v45, %v967_v28  ;;  %v2092_v56 = vsel %vm1047_vm9, 1.0, %v2444_v57  ;;  %v2108_v58 = vsel %vm1063_vm10, 1.0, %v2444_v57 }
 0x14b   : > { %1272 = vst.msk [vmem:[%s2529_s8 + $0x20] sm:$0xf] %vm1263_vm2, %v1207_v42  ;;  %v1239_v61 = vpack.c.bf16 %v2092_v56, %v2092_v56  ;;  %v1368_v62 = vsub.f32 1.0, %v2092_v56  ;;  %v1255_v63 = vpack.c.bf16 %v2108_v58, %v2108_v58  ;;  %v1384_v0 = vsub.f32 1.0, %v2108_v58  ;;  %v778_v42 = vld [vmem:[#allocation2 + $0xd8] sm:$0xff] }
 0x14c   : > { %1465 = vst.msk [vmem:[#allocation2 + $0x40] sm:$0xff] %vm1456_vm3, %v1400_v54  ;;  %v968_v2 = vadd.f32 %v904_v50, %v2842_v9  ;;  %v856_v3 = vsub.f32 %v693_v46, %v792_v47  ;;  %v872_v4 = vsub.f32 %v733_v48, %v808_v51  ;;  %v825_v7 = vsub.f32 %v616_v52, %v761_v59  ;;  %v810_v48 = vld [vmem:[#allocation2 + $0x1d8] sm:$0xff]  ;;  %v2906_v54 = vld [vmem:[#allocation2 + $0xe0] sm:$0xff] }
 0x14d   : > { %1288 = vst.msk [vmem:[%s2529_s8 + $0x60] sm:$0xf] %vm1263_vm2, %v1223_v44  ;;  %v1432_v5 = vmul.f32 %v1368_v62, %v983_v36  ;;  %v1448_v6 = vmul.f32 %v1384_v0, %v999_v37  ;;  %v841_v10 = vsub.f32 %v656_v53, %v777_v60  ;;  %vm1016_vm11 = vcmp.ge.f32.partialorder %v952_v1, 1.0  ;;  %v2904_v53 = vld [vmem:[#allocation2 + $0x60] sm:$0xff] }
 0x14e   : > { %1481 = vst.msk [vmem:[#allocation2 + $0xc0] sm:$0xff] %vm1456_vm3, %v1416_v55  ;;  %vm1032_vm12 = vcmp.ge.f32.partialorder %v968_v2, 1.0  ;;  %v920_v12 = vmul.f32 0.5, %v856_v3  ;;  %v936_v8 = vmul.f32 0.5, %v872_v4  ;;  %v2061_v9 = vsel %vm1016_vm11, 1.0, %v2444_v57 }
 0x14f   : > { %1304 = vst.msk [vmem:[%s2529_s8 + $0xa0] sm:$0xf] %vm1263_vm2, %v1239_v61  ;;  %v2077_v14 = vsel %vm1032_vm12, 1.0, %v2444_v57  ;;  %v889_v15 = vmul.f32 0.5, %v825_v7  ;;  %v905_v16 = vmul.f32 0.5, %v841_v10  ;;  %v1208_v17 = vpack.c.bf16 %v2061_v9, %v2061_v9 }
 0x150   : > { %1497 = vst.msk [vmem:[#allocation2 + $0x140] sm:$0xff] %vm1456_vm3, %v1432_v5  ;;  %v1337_v18 = vsub.f32 1.0, %v2061_v9  ;;  %v1224_v19 = vpack.c.bf16 %v2077_v14, %v2077_v14  ;;  %v1353_v20 = vsub.f32 1.0, %v2077_v14  ;;  %v696_v21 = vpop.f32.mrf.mxu2  ;;  %v736_v22 = vpop.f32.mrf.mxu3  ;;  %v984_v23 = vadd.f32 %v920_v12, %v792_v47  ;;  %v794_v47 = vld [vmem:[#allocation2 + $0x158] sm:$0xff] }
 0x151   : > { %1320 = vst.msk [vmem:[%s2529_s8 + $0xe0] sm:$0xf] %vm1263_vm2, %v1255_v63  ;;  %v1000_v24 = vadd.f32 %v936_v8, %v808_v51  ;;  %v953_v25 = vadd.f32 %v889_v15, %v761_v59  ;;  %v969_v26 = vadd.f32 %v905_v16, %v777_v60  ;;  %v618_v29 = vpop.f32.mrf.mxu0  ;;  %v658_v30 = vpop.f32.mrf.mxu1  ;;  %v857_v28 = vsub.f32 %v696_v21, %v2877_v11 }
 0x152   : > { %1513 = vst.msk [vmem:[#allocation2 + $0x1c0] sm:$0xff] %vm1456_vm3, %v1448_v6  ;;  %v1401_v27 = vmul.f32 %v1337_v18, %v952_v1  ;;  %v1417_v31 = vmul.f32 %v1353_v20, %v968_v2  ;;  %v873_v32 = vsub.f32 %v736_v22, %v2880_v13  ;;  %vm1048_vm13 = vcmp.ge.f32.partialorder %v984_v23, 1.0 }
 0x153   : > { %1273 = vst.msk [vmem:[%s2529_s8 + $0x24] sm:$0xf] %vm1263_vm2, %v1208_v17  ;;  %vm1064_vm14 = vcmp.ge.f32.partialorder %v1000_v24, 1.0  ;;  %vm1017_vm15 = vcmp.ge.f32.partialorder %v953_v25, 1.0  ;;  %vm1033_vm0 = vcmp.ge.f32.partialorder %v969_v26, 1.0  ;;  %v2093_v33 = vsel %vm1048_vm13, 1.0, %v2444_v57 }
 0x154   : > { %1466 = vst.msk [vmem:[#allocation2 + $0x48] sm:$0xff] %vm1456_vm3, %v1401_v27  ;;  %v2109_v34 = vsel %vm1064_vm14, 1.0, %v2444_v57  ;;  %v2062_v35 = vsel %vm1017_vm15, 1.0, %v2444_v57  ;;  %v2078_v36 = vsel %vm1033_vm0, 1.0, %v2444_v57  ;;  %v1240_v37 = vpack.c.bf16 %v2093_v33, %v2093_v33  ;;  %v795_v27 = vld [vmem:[#allocation2 + $0x160] sm:$0xff] }
 0x155   : > { %1289 = vst.msk [vmem:[%s2529_s8 + $0x64] sm:$0xf] %vm1263_vm2, %v1224_v19  ;;  %v1369_v38 = vsub.f32 1.0, %v2093_v33  ;;  %v1256_v39 = vpack.c.bf16 %v2109_v34, %v2109_v34  ;;  %v1385_v40 = vsub.f32 1.0, %v2109_v34  ;;  %v1209_v43 = vpack.c.bf16 %v2062_v35, %v2062_v35  ;;  %v811_v33 = vld [vmem:[#allocation2 + $0x1e0] sm:$0xff] }
 0x156   : > { %1482 = vst.msk [vmem:[#allocation2 + $0xc8] sm:$0xff] %vm1456_vm3, %v1417_v31  ;;  %v1338_v44 = vsub.f32 1.0, %v2062_v35  ;;  %v1225_v45 = vpack.c.bf16 %v2078_v36, %v2078_v36  ;;  %v1354_v46 = vsub.f32 1.0, %v2078_v36  ;;  %v921_v51 = vmul.f32 0.5, %v857_v28 }
 0x157   : > { %1305 = vst.msk [vmem:[%s2529_s8 + $0xa4] sm:$0xf] %vm1263_vm2, %v1240_v37  ;;  %v1433_v49 = vmul.f32 %v1369_v38, %v984_v23  ;;  %v1449_v50 = vmul.f32 %v1385_v40, %v1000_v24  ;;  %v937_v52 = vmul.f32 0.5, %v873_v32  ;;  %v826_v58 = vsub.f32 %v618_v29, %v762_v41  ;;  %v764_v40 = vld [vmem:[#allocation2 + $0x68] sm:$0xff] }
 0x158   : > { %1321 = vst.msk [vmem:[%s2529_s8 + $0xe4] sm:$0xf] %vm1263_vm2, %v1256_v39  ;;  %v1402_v55 = vmul.f32 %v1338_v44, %v953_v25  ;;  %v1418_v56 = vmul.f32 %v1354_v46, %v969_v26  ;;  %v842_v59 = vsub.f32 %v658_v30, %v778_v42  ;;  %v698_v60 = vpop.f32.mrf.mxu2  ;;  %v738_v61 = vpop.f32.mrf.mxu3  ;;  %v985_v62 = vadd.f32 %v921_v51, %v2877_v11 }
 0x159   : > { %1498 = vst.msk [vmem:[#allocation2 + $0x148] sm:$0xff] %vm1456_vm3, %v1433_v49  ;;  %v1001_v63 = vadd.f32 %v937_v52, %v2880_v13  ;;  %v858_v0 = vsub.f32 %v698_v60, %v794_v47  ;;  %v874_v1 = vsub.f32 %v738_v61, %v810_v48  ;;  %v621_v2 = vpop.f32.mrf.mxu0  ;;  %v661_v3 = vpop.f32.mrf.mxu1  ;;  %v890_v4 = vmul.f32 0.5, %v826_v58 }
 0x15a   : > { %1514 = vst.msk [vmem:[#allocation2 + $0x1c8] sm:$0xff] %vm1456_vm3, %v1449_v50  ;;  %v906_v5 = vmul.f32 0.5, %v842_v59  ;;  %v827_v6 = vsub.f32 %v621_v2, %v2904_v53  ;;  %v843_v7 = vsub.f32 %v661_v3, %v2906_v54  ;;  %vm1049_vm1 = vcmp.ge.f32.partialorder %v985_v62, 1.0  ;;  %v2944_v59 = vld [vmem:[#allocation2 + $0x1e8] sm:$0xff] }
 0x15b   : > { %1274 = vst.msk [vmem:[%s2529_s8 + $0x28] sm:$0xf] %vm1263_vm2, %v1209_v43  ;;  %vm1065_vm4 = vcmp.ge.f32.partialorder %v1001_v63, 1.0  ;;  %v922_v10 = vmul.f32 0.5, %v858_v0  ;;  %v938_v11 = vmul.f32 0.5, %v874_v1  ;;  %v2094_v12 = vsel %vm1049_vm1, 1.0, %v2444_v57 }
 0x15c   : > { %1467 = vst.msk [vmem:[#allocation2 + $0x50] sm:$0xff] %vm1456_vm3, %v1402_v55  ;;  %v2110_v8 = vsel %vm1065_vm4, 1.0, %v2444_v57  ;;  %v954_v13 = vadd.f32 %v890_v4, %v762_v41  ;;  %v970_v9 = vadd.f32 %v906_v5, %v778_v42  ;;  %v1241_v14 = vpack.c.bf16 %v2094_v12, %v2094_v12  ;;  %v780_v41 = vld [vmem:[#allocation2 + $0xe8] sm:$0xff] }
 0x15d   : > { %1290 = vst.msk [vmem:[%s2529_s8 + $0x68] sm:$0xf] %vm1263_vm2, %v1225_v45  ;;  %v1370_v15 = vsub.f32 1.0, %v2094_v12  ;;  %v1257_v16 = vpack.c.bf16 %v2110_v8, %v2110_v8  ;;  %v1386_v17 = vsub.f32 1.0, %v2110_v8  ;;  %v986_v18 = vadd.f32 %v922_v10, %v794_v47 }
 0x15e   : > { %1483 = vst.msk [vmem:[#allocation2 + $0xd0] sm:$0xff] %vm1456_vm3, %v1418_v56  ;;  %vm1018_vm5 = vcmp.ge.f32.partialorder %v954_v13, 1.0  ;;  %vm1034_vm6 = vcmp.ge.f32.partialorder %v970_v9, 1.0  ;;  %v1002_v19 = vadd.f32 %v938_v11, %v810_v48  ;;  %v891_v28 = vmul.f32 0.5, %v827_v6  ;;  %v2941_v56 = vld [vmem:[#allocation2 + $0x168] sm:$0xff] }
 0x15f   : > { %1306 = vst.msk [vmem:[%s2529_s8 + $0xa8] sm:$0xf] %vm1263_vm2, %v1241_v14  ;;  %v1434_v20 = vmul.f32 %v1370_v15, %v985_v62  ;;  %v1450_v21 = vmul.f32 %v1386_v17, %v1001_v63  ;;  %v2063_v22 = vsel %vm1018_vm5, 1.0, %v2444_v57  ;;  %v2079_v23 = vsel %vm1034_vm6, 1.0, %v2444_v57 }
 0x160   : > { %1322 = vst.msk [vmem:[%s2529_s8 + $0xe8] sm:$0xf] %vm1263_vm2, %v1257_v16  ;;  %v1210_v24 = vpack.c.bf16 %v2063_v22, %v2063_v22  ;;  %v1339_v25 = vsub.f32 1.0, %v2063_v22  ;;  %v1226_v26 = vpack.c.bf16 %v2079_v23, %v2079_v23  ;;  %v1355_v29 = vsub.f32 1.0, %v2079_v23  ;;  %v701_v30 = vpop.f32.mrf.mxu2  ;;  %v741_v31 = vpop.f32.mrf.mxu3  ;;  %v765_v23 = vld [vmem:[#allocation2 + $0x70] sm:$0xff] }
 0x161   : > { %1499 = vst.msk [vmem:[#allocation2 + $0x150] sm:$0xff] %vm1456_vm3, %v1434_v20  ;;  %vm1050_vm7 = vcmp.ge.f32.partialorder %v986_v18, 1.0  ;;  %vm1066_vm8 = vcmp.ge.f32.partialorder %v1002_v19, 1.0  ;;  %v907_v32 = vmul.f32 0.5, %v843_v7  ;;  %v623_v34 = vpop.f32.mrf.mxu0  ;;  %v663_v35 = vpop.f32.mrf.mxu1  ;;  %v955_v46 = vadd.f32 %v891_v28, %v2904_v53 }
 0x162   : > { %1515 = vst.msk [vmem:[#allocation2 + $0x1d0] sm:$0xff] %vm1456_vm3, %v1450_v21  ;;  %v1403_v36 = vmul.f32 %v1339_v25, %v954_v13  ;;  %v1419_v37 = vmul.f32 %v1355_v29, %v970_v9  ;;  %v2095_v38 = vsel %vm1050_vm7, 1.0, %v2444_v57  ;;  %v2111_v39 = vsel %vm1066_vm8, 1.0, %v2444_v57 }
 0x163   : > { %1275 = vst.msk [vmem:[%s2529_s8 + $0x2c] sm:$0xf] %vm1263_vm2, %v1210_v24  ;;  %v1242_v42 = vpack.c.bf16 %v2095_v38, %v2095_v38  ;;  %v1371_v43 = vsub.f32 1.0, %v2095_v38  ;;  %v1258_v44 = vpack.c.bf16 %v2111_v39, %v2111_v39  ;;  %v1387_v45 = vsub.f32 1.0, %v2111_v39  ;;  %v781_v24 = vld [vmem:[#allocation2 + $0xf0] sm:$0xff] }
 0x164   : > { %1468 = vst.msk [vmem:[#allocation2 + $0x58] sm:$0xff] %vm1456_vm3, %v1403_v36  ;;  %v971_v47 = vadd.f32 %v907_v32, %v2906_v54  ;;  %v859_v48 = vsub.f32 %v701_v30, %v795_v27  ;;  %v875_v49 = vsub.f32 %v741_v31, %v811_v33  ;;  %v828_v52 = vsub.f32 %v623_v34, %v764_v40  ;;  %v813_v31 = vld [vmem:[#allocation2 + $0x1f0] sm:$0xff]  ;;  %v2970_v36 = vld [vmem:[#allocation2 + $0xf8] sm:$0xff] }
 0x165   : > { %1291 = vst.msk [vmem:[%s2529_s8 + $0x6c] sm:$0xf] %vm1263_vm2, %v1226_v26  ;;  %v1435_v50 = vmul.f32 %v1371_v43, %v986_v18  ;;  %v1451_v51 = vmul.f32 %v1387_v45, %v1002_v19  ;;  %v844_v55 = vsub.f32 %v663_v35, %v780_v41  ;;  %vm1019_vm9 = vcmp.ge.f32.partialorder %v955_v46, 1.0  ;;  %v2968_v35 = vld [vmem:[#allocation2 + $0x78] sm:$0xff] }
 0x166   : > { %1484 = vst.msk [vmem:[#allocation2 + $0xd8] sm:$0xff] %vm1456_vm3, %v1419_v37  ;;  %vm1035_vm10 = vcmp.ge.f32.partialorder %v971_v47, 1.0  ;;  %v923_v58 = vmul.f32 0.5, %v859_v48  ;;  %v939_v53 = vmul.f32 0.5, %v875_v49  ;;  %v2064_v54 = vsel %vm1019_vm9, 1.0, %v2444_v57 }
 0x167   : > { %1307 = vst.msk [vmem:[%s2529_s8 + $0xac] sm:$0xf] %vm1263_vm2, %v1242_v42  ;;  %v2080_v60 = vsel %vm1035_vm10, 1.0, %v2444_v57  ;;  %v892_v61 = vmul.f32 0.5, %v828_v52  ;;  %v908_v62 = vmul.f32 0.5, %v844_v55  ;;  %v1211_v63 = vpack.c.bf16 %v2064_v54, %v2064_v54 }
 0x168   : > { %1500 = vst.msk [vmem:[#allocation2 + $0x158] sm:$0xff] %vm1456_vm3, %v1435_v50  ;;  %v1340_v0 = vsub.f32 1.0, %v2064_v54  ;;  %v1227_v1 = vpack.c.bf16 %v2080_v60, %v2080_v60  ;;  %v1356_v2 = vsub.f32 1.0, %v2080_v60  ;;  %v703_v3 = vpop.f32.mrf.mxu2  ;;  %v743_v4 = vpop.f32.mrf.mxu3  ;;  %v987_v5 = vadd.f32 %v923_v58, %v795_v27  ;;  %v797_v27 = vld [vmem:[#allocation2 + $0x170] sm:$0xff] }
 0x169   : > { %1323 = vst.msk [vmem:[%s2529_s8 + $0xec] sm:$0xf] %vm1263_vm2, %v1258_v44  ;;  %v1003_v6 = vadd.f32 %v939_v53, %v811_v33  ;;  %v956_v7 = vadd.f32 %v892_v61, %v764_v40  ;;  %v972_v10 = vadd.f32 %v908_v62, %v780_v41  ;;  %v626_v11 = vpop.f32.mrf.mxu0  ;;  %v666_v12 = vpop.f32.mrf.mxu1  ;;  %v860_v9 = vsub.f32 %v703_v3, %v2941_v56 }
 0x16a   : > { %1516 = vst.msk [vmem:[#allocation2 + $0x1d8] sm:$0xff] %vm1456_vm3, %v1451_v51  ;;  %v1404_v8 = vmul.f32 %v1340_v0, %v955_v46  ;;  %v1420_v13 = vmul.f32 %v1356_v2, %v971_v47  ;;  %v876_v14 = vsub.f32 %v743_v4, %v2944_v59  ;;  %vm1051_vm11 = vcmp.ge.f32.partialorder %v987_v5, 1.0 }
 0x16b   : > { %1276 = vst.msk [vmem:[%s2529_s8 + $0x30] sm:$0xf] %vm1263_vm2, %v1211_v63  ;;  %vm1067_vm12 = vcmp.ge.f32.partialorder %v1003_v6, 1.0  ;;  %vm1020_vm13 = vcmp.ge.f32.partialorder %v956_v7, 1.0  ;;  %vm1036_vm14 = vcmp.ge.f32.partialorder %v972_v10, 1.0  ;;  %v2096_v15 = vsel %vm1051_vm11, 1.0, %v2444_v57 }
 0x16c   : > { %1469 = vst.msk [vmem:[#allocation2 + $0x60] sm:$0xff] %vm1456_vm3, %v1404_v8  ;;  %v2112_v16 = vsel %vm1067_vm12, 1.0, %v2444_v57  ;;  %v2065_v17 = vsel %vm1020_vm13, 1.0, %v2444_v57  ;;  %v2081_v18 = vsel %vm1036_vm14, 1.0, %v2444_v57  ;;  %v1243_v19 = vpack.c.bf16 %v2096_v15, %v2096_v15 }
 0x16d   : > { %1292 = vst.msk [vmem:[%s2529_s8 + $0x70] sm:$0xf] %vm1263_vm2, %v1227_v1  ;;  %v1372_v20 = vsub.f32 1.0, %v2096_v15  ;;  %v1259_v21 = vpack.c.bf16 %v2112_v16, %v2112_v16  ;;  %v1388_v22 = vsub.f32 1.0, %v2112_v16  ;;  %v1212_v25 = vpack.c.bf16 %v2065_v17, %v2065_v17  ;;  %v814_v15 = vld [vmem:[#allocation2 + $0x1f8] sm:$0xff] }
 0x16e   : > { %1485 = vst.msk [vmem:[#allocation2 + $0xe0] sm:$0xff] %vm1456_vm3, %v1420_v13  ;;  %v1341_v26 = vsub.f32 1.0, %v2065_v17  ;;  %v1228_v29 = vpack.c.bf16 %v2081_v18, %v2081_v18  ;;  %v1357_v30 = vsub.f32 1.0, %v2081_v18  ;;  %v924_v33 = vmul.f32 0.5, %v860_v9 }
 0x16f   : > { %1308 = vst.msk [vmem:[%s2529_s8 + $0xb0] sm:$0xf] %vm1263_vm2, %v1243_v19  ;;  %v1436_v28 = vmul.f32 %v1372_v20, %v987_v5  ;;  %v1452_v32 = vmul.f32 %v1388_v22, %v1003_v6  ;;  %v940_v34 = vmul.f32 0.5, %v876_v14  ;;  %v829_v39 = vsub.f32 %v626_v11, %v765_v23 }
 0x170   : > { %1324 = vst.msk [vmem:[%s2529_s8 + $0xf0] sm:$0xf] %vm1263_vm2, %v1259_v21  ;;  %v1405_v37 = vmul.f32 %v1341_v26, %v956_v7  ;;  %v1421_v38 = vmul.f32 %v1357_v30, %v972_v10  ;;  %v845_v40 = vsub.f32 %v666_v12, %v781_v24  ;;  %v706_v41 = vpop.f32.mrf.mxu2  ;;  %v746_v42 = vpop.f32.mrf.mxu3  ;;  %v988_v43 = vadd.f32 %v924_v33, %v2941_v56  ;;  %v798_v12 = vld [vmem:[#allocation2 + $0x178] sm:$0xff] }
 0x171   : > { %1501 = vst.msk [vmem:[#allocation2 + $0x160] sm:$0xff] %vm1456_vm3, %v1436_v28  ;;  %v1004_v44 = vadd.f32 %v940_v34, %v2944_v59  ;;  %v861_v45 = vsub.f32 %v706_v41, %v797_v27  ;;  %v877_v46 = vsub.f32 %v746_v42, %v813_v31  ;;  %v628_v47 = vpop.f32.mrf.mxu0  ;;  %v668_v48 = vpop.f32.mrf.mxu1  ;;  %v893_v49 = vmul.f32 0.5, %v829_v39 }
 0x172   : > { %1517 = vst.msk [vmem:[#allocation2 + $0x1e0] sm:$0xff] %vm1456_vm3, %v1452_v32  ;;  %v909_v50 = vmul.f32 0.5, %v845_v40  ;;  %v830_v51 = vsub.f32 %v628_v47, %v2968_v35  ;;  %v846_v52 = vsub.f32 %v668_v48, %v2970_v36  ;;  %vm1052_vm15 = vcmp.ge.f32.partialorder %v988_v43, 1.0 }
 0x173   : > { %1277 = vst.msk [vmem:[%s2529_s8 + $0x34] sm:$0xf] %vm1263_vm2, %v1212_v25  ;;  %vm1068_vm0 = vcmp.ge.f32.partialorder %v1004_v44, 1.0  ;;  %v925_v55 = vmul.f32 0.5, %v861_v45  ;;  %v941_v56 = vmul.f32 0.5, %v877_v46  ;;  %v2097_v58 = vsel %vm1052_vm15, 1.0, %v2444_v57 }
 0x174   : > { %1470 = vst.msk [vmem:[#allocation2 + $0x68] sm:$0xff] %vm1456_vm3, %v1405_v37  ;;  %v2113_v53 = vsel %vm1068_vm0, 1.0, %v2444_v57  ;;  %v957_v59 = vadd.f32 %v893_v49, %v765_v23  ;;  %v973_v54 = vadd.f32 %v909_v50, %v781_v24  ;;  %v1244_v60 = vpack.c.bf16 %v2097_v58, %v2097_v58 }
 0x175   : > { %1293 = vst.msk [vmem:[%s2529_s8 + $0x74] sm:$0xf] %vm1263_vm2, %v1228_v29  ;;  %v1373_v61 = vsub.f32 1.0, %v2097_v58  ;;  %v1260_v62 = vpack.c.bf16 %v2113_v53, %v2113_v53  ;;  %v1389_v63 = vsub.f32 1.0, %v2113_v53  ;;  %v989_v0 = vadd.f32 %v925_v55, %v797_v27 }
 0x176   : > { %1486 = vst.msk [vmem:[#allocation2 + $0xe8] sm:$0xff] %vm1456_vm3, %v1421_v38  ;;  %vm1021_vm1 = vcmp.ge.f32.partialorder %v957_v59, 1.0  ;;  %vm1037_vm4 = vcmp.ge.f32.partialorder %v973_v54, 1.0  ;;  %v1005_v1 = vadd.f32 %v941_v56, %v813_v31  ;;  %v894_v8 = vmul.f32 0.5, %v830_v51 }
 0x177   : > { %1309 = vst.msk [vmem:[%s2529_s8 + $0xb4] sm:$0xf] %vm1263_vm2, %v1244_v60  ;;  %v1437_v2 = vmul.f32 %v1373_v61, %v988_v43  ;;  %v1453_v3 = vmul.f32 %v1389_v63, %v1004_v44  ;;  %v2066_v4 = vsel %vm1021_vm1, 1.0, %v2444_v57  ;;  %v2082_v5 = vsel %vm1037_vm4, 1.0, %v2444_v57 }
 0x178   : > { %1325 = vst.msk [vmem:[%s2529_s8 + $0xf4] sm:$0xf] %vm1263_vm2, %v1260_v62  ;;  %v1213_v6 = vpack.c.bf16 %v2066_v4, %v2066_v4  ;;  %v1342_v7 = vsub.f32 1.0, %v2066_v4  ;;  %v1229_v10 = vpack.c.bf16 %v2082_v5, %v2082_v5  ;;  %v1358_v11 = vsub.f32 1.0, %v2082_v5  ;;  %v708_v9 = vpop.f32.mrf.mxu2  ;;  %v748_v14 = vpop.f32.mrf.mxu3 }
 0x179   : > { %1502 = vst.msk [vmem:[#allocation2 + $0x168] sm:$0xff] %vm1456_vm3, %v1437_v2  ;;  %vm1053_vm5 = vcmp.ge.f32.partialorder %v989_v0, 1.0  ;;  %vm1069_vm6 = vcmp.ge.f32.partialorder %v1005_v1, 1.0  ;;  %v910_v13 = vmul.f32 0.5, %v846_v52  ;;  %v958_v23 = vadd.f32 %v894_v8, %v2968_v35 }
 0x17a   : > { %1518 = vst.msk [vmem:[#allocation2 + $0x1e8] sm:$0xff] %vm1456_vm3, %v1453_v3  ;;  %v1406_v16 = vmul.f32 %v1342_v7, %v957_v59  ;;  %v1422_v17 = vmul.f32 %v1358_v11, %v973_v54  ;;  %v2098_v18 = vsel %vm1053_vm5, 1.0, %v2444_v57  ;;  %v2114_v19 = vsel %vm1069_vm6, 1.0, %v2444_v57 }
 0x17b   : > { %1278 = vst.msk [vmem:[%s2529_s8 + $0x38] sm:$0xf] %vm1263_vm2, %v1213_v6  ;;  %v1245_v20 = vpack.c.bf16 %v2098_v18, %v2098_v18  ;;  %v1374_v21 = vsub.f32 1.0, %v2098_v18  ;;  %v1390_v22 = vsub.f32 1.0, %v2114_v19  ;;  %v974_v24 = vadd.f32 %v910_v13, %v2970_v36 }
 0x17c   : > { %1471 = vst.msk [vmem:[#allocation2 + $0x70] sm:$0xff] %vm1456_vm3, %v1406_v16  ;;  %v862_v25 = vsub.f32 %v708_v9, %v798_v12  ;;  %v878_v26 = vsub.f32 %v748_v14, %v814_v15  ;;  %v1261_v30 = vpack.c.bf16 %v2114_v19, %v2114_v19  ;;  %vm1022_vm7 = vcmp.ge.f32.partialorder %v958_v23, 1.0 }
 0x17d   : > { %1294 = vst.msk [vmem:[%s2529_s8 + $0x78] sm:$0xf] %vm1263_vm2, %v1229_v10  ;;  %v1438_v29 = vmul.f32 %v1374_v21, %v989_v0  ;;  %v1454_v27 = vmul.f32 %v1390_v22, %v1005_v1  ;;  %vm1038_vm8 = vcmp.ge.f32.partialorder %v974_v24, 1.0  ;;  %v2067_v32 = vsel %vm1022_vm7, 1.0, %v2444_v57 }
 0x17e   : > { %1487 = vst.msk [vmem:[#allocation2 + $0xf0] sm:$0xff] %vm1456_vm3, %v1422_v17  ;;  %v926_v31 = vmul.f32 0.5, %v862_v25  ;;  %v942_v28 = vmul.f32 0.5, %v878_v26  ;;  %v2083_v33 = vsel %vm1038_vm8, 1.0, %v2444_v57  ;;  %v1214_v34 = vpack.c.bf16 %v2067_v32, %v2067_v32 }
 0x17f   : > { %1310 = vst.msk [vmem:[%s2529_s8 + $0xb8] sm:$0xf] %vm1263_vm2, %v1245_v20  ;;  %v1343_v35 = vsub.f32 1.0, %v2067_v32  ;;  %v1359_v36 = vsub.f32 1.0, %v2083_v33  ;;  %v1230_v37 = vpack.c.bf16 %v2083_v33, %v2083_v33 }
 0x180   : > { %1503 = vst.msk [vmem:[#allocation2 + $0x170] sm:$0xff] %vm1456_vm3, %v1438_v29  ;;  %v990_v38 = vadd.f32 %v926_v31, %v798_v12  ;;  %v1006_v39 = vadd.f32 %v942_v28, %v814_v15 }
 0x181   : > { %1326 = vst.msk [vmem:[%s2529_s8 + $0xf8] sm:$0xf] %vm1263_vm2, %v1261_v30  ;;  %v1407_v40 = vmul.f32 %v1343_v35, %v958_v23  ;;  %v1423_v41 = vmul.f32 %v1359_v36, %v974_v24 }
 0x182   : > { %1519 = vst.msk [vmem:[#allocation2 + $0x1f0] sm:$0xff] %vm1456_vm3, %v1454_v27  ;;  %vm1054_vm9 = vcmp.ge.f32.partialorder %v990_v38, 1.0  ;;  %vm1070_vm10 = vcmp.ge.f32.partialorder %v1006_v39, 1.0 }
 0x183   : > { %1279 = vst.msk [vmem:[%s2529_s8 + $0x3c] sm:$0xf] %vm1263_vm2, %v1214_v34  ;;  %v2099_v42 = vsel %vm1054_vm9, 1.0, %v2444_v57  ;;  %v2115_v43 = vsel %vm1070_vm10, 1.0, %v2444_v57 }
 0x184   : > { %1472 = vst.msk [vmem:[#allocation2 + $0x78] sm:$0xff] %vm1456_vm3, %v1407_v40  ;;  %v1246_v44 = vpack.c.bf16 %v2099_v42, %v2099_v42  ;;  %v1375_v45 = vsub.f32 1.0, %v2099_v42  ;;  %v1262_v46 = vpack.c.bf16 %v2115_v43, %v2115_v43  ;;  %v1391_v47 = vsub.f32 1.0, %v2115_v43 }
 0x185   : > { %1295 = vst.msk [vmem:[%s2529_s8 + $0x7c] sm:$0xf] %vm1263_vm2, %v1230_v37 }
 0x186   : > { %1488 = vst.msk [vmem:[#allocation2 + $0xf8] sm:$0xff] %vm1456_vm3, %v1423_v41  ;;  %v1439_v48 = vmul.f32 %v1375_v45, %v990_v38  ;;  %v1455_v49 = vmul.f32 %v1391_v47, %v1006_v39  ;;  %1527 = sbr.rel (!%p2504_p5) target bundleno = 459 (0x1cb), region = 36 }
 0x187   : > { %1311 = vst.msk [vmem:[%s2529_s8 + $0xbc] sm:$0xf] %vm1263_vm2, %v1246_v44 }
 0x188   : > { %1327 = vst.msk [vmem:[%s2529_s8 + $0xfc] sm:$0xf] %vm1263_vm2, %v1262_v46 }
 0x189   : > { %1504 = vst.msk [vmem:[#allocation2 + $0x178] sm:$0xff] %vm1456_vm3, %v1439_v48 }
 0x18a   : > { %1520 = vst.msk [vmem:[#allocation2 + $0x1f8] sm:$0xff] %vm1456_vm3, %v1455_v49 }
 0x18b   : > { %s3204_s7 = smov (!%p1530_p12, %s1529_s7), 64 }
 0x18c   : > { %s2118_s19 = sshll.u32 %s3204_s7, 2 }
 0x18d   : > { %p2121_p13 = scmp.eq.s32.totalorder %s2118_s19, 0 }
 0x18e   : > { %s3042_s20 = sshrl.u32 (!%p2121_p13), %s3204_s7, 5 }
 0x18f   : > { %1540 = sbr.rel (%p2121_p13) target bundleno = 459 (0x1cb), region = 40  ;;  %p2122_p0 = scmp.le.s32.totalorder (!%p2121_p13), %s3042_s20, 0 }
 0x194   : > { %1828 = sbr.rel (%p2122_p0) target bundleno = 442 (0x1ba), region = 112  ;;  %s3186_s11 = smov (!%p2122_p0), %s3039_s23 }
 0x195   : > { %s3187_s26 = smov (!%p2122_p0), %s2529_s8  ;;  %s3051_s25 = smov (!%p2122_p0), 0  }
 0x196   : > { %s3053_s27 = smov (!%p2122_p0), 0  }
 0x199 LB: >> { %v1557_v57 = vld [vmem:[%s2417_s26] sm:$0xf]  ;;  %v1559_v50 = vld [vmem:[%s2417_s26 + $0x4] sm:$0xf]  ;;  %v1561_v51 = vld [vmem:[%s2417_s26 + $0x8] sm:$0xf]  ;;  %s2425_s27 = sphi %s3053_s27, %s1551_s27   ;;  %s2421_s25 = sphi %s3051_s25, %s3190_s25   ;;  %s2417_s26 = sphi %s3187_s26, %s3189_s26   ;;  %s2413_s11 = sphi %s3186_s11, %s3188_s11  }
 0x19a   : >> { %1558 = vst [vmem:[%s2413_s11] sm:$0xf] %v1557_v57  ;;  %v1563_v52 = vld [vmem:[%s2417_s26 + $0xc] sm:$0xf]  ;;  %v1565_v55 = vld [vmem:[%s2417_s26 + $0x10] sm:$0xf]  ;;  %s1621_s28 = sadd.s32 1, %s2421_s25 }
 0x19b   : >> { %1560 = vst [vmem:[%s2413_s11 + $0x4] sm:$0xf] %v1559_v50  ;;  %v1567_v56 = vld [vmem:[%s2417_s26 + $0x14] sm:$0xf]  ;;  %v1569_v58 = vld [vmem:[%s2417_s26 + $0x18] sm:$0xf]  ;;  %p1622_p1 = scmp.ge.s32.totalorder %s1621_s28, %s3042_s20 }
 0x19c   : >> { %1562 = vst [vmem:[%s2413_s11 + $0x8] sm:$0xf] %v1561_v51  ;;  %v1571_v53 = vld [vmem:[%s2417_s26 + $0x1c] sm:$0xf]  ;;  %v1573_v59 = vld [vmem:[%s2417_s26 + $0x20] sm:$0xf] }
 0x19d   : >> { %1564 = vst [vmem:[%s2413_s11 + $0xc] sm:$0xf] %v1563_v52  ;;  %v1575_v54 = vld [vmem:[%s2417_s26 + $0x24] sm:$0xf]  ;;  %v1577_v60 = vld [vmem:[%s2417_s26 + $0x28] sm:$0xf] }
 0x19e   : >> { %1566 = vst [vmem:[%s2413_s11 + $0x10] sm:$0xf] %v1565_v55  ;;  %v1579_v61 = vld [vmem:[%s2417_s26 + $0x2c] sm:$0xf]  ;;  %v1581_v62 = vld [vmem:[%s2417_s26 + $0x30] sm:$0xf] }
 0x19f   : >> { %1568 = vst [vmem:[%s2413_s11 + $0x14] sm:$0xf] %v1567_v56  ;;  %v1583_v63 = vld [vmem:[%s2417_s26 + $0x34] sm:$0xf]  ;;  %v1585_v0 = vld [vmem:[%s2417_s26 + $0x38] sm:$0xf] }
 0x1a0   : >> { %1570 = vst [vmem:[%s2413_s11 + $0x18] sm:$0xf] %v1569_v58  ;;  %v1587_v1 = vld [vmem:[%s2417_s26 + $0x3c] sm:$0xf]  ;;  %v1589_v2 = vld [vmem:[%s2417_s26 + $0x40] sm:$0xf] }
 0x1a1   : >> { %1572 = vst [vmem:[%s2413_s11 + $0x1c] sm:$0xf] %v1571_v53  ;;  %v1591_v3 = vld [vmem:[%s2417_s26 + $0x44] sm:$0xf]  ;;  %s3206_s28 = smov (%p1622_p1, %s1621_s28), 0  ;;  %s1551_s27 = sadd.s32 1, %s2425_s27  }
 0x1a2   : >> { %1574 = vst [vmem:[%s2413_s11 + $0x20] sm:$0xf] %v1573_v59  ;;  %v1593_v4 = vld [vmem:[%s2417_s26 + $0x48] sm:$0xf]  ;;  %v1595_v5 = vld [vmem:[%s2417_s26 + $0x4c] sm:$0xf]  ;;  %p1550_p2 = scmp.ge.s32.totalorder %s1551_s27, %s3042_s20  ;;  %s3190_s25 = smov %s3206_s28 }
 0x1a3   : >> { %1576 = vst [vmem:[%s2413_s11 + $0x24] sm:$0xf] %v1575_v54  ;;  %s2123_s29 = sshll.u32 %s3206_s28, 7  ;;  %v1597_v6 = vld [vmem:[%s2417_s26 + $0x50] sm:$0xf] }
 0x1a4   : >> { %1578 = vst [vmem:[%s2413_s11 + $0x28] sm:$0xf] %v1577_v60  ;;  %s3112_s30 = scalar_lea.vmem %s2529_s8, %s2123_s29 [#allocation3]   ;;  %s1627_s3 = scalar_lea.vmem %s3039_s23, %s2123_s29   ;;  %v1599_v7 = vld [vmem:[%s2417_s26 + $0x54] sm:$0xf]  ;;  %v1601_v10 = vld [vmem:[%s2417_s26 + $0x58] sm:$0xf] }
 0x1a5   : >> { %1580 = vst [vmem:[%s2413_s11 + $0x2c] sm:$0xf] %v1579_v61  ;;  %v1603_v11 = vld [vmem:[%s2417_s26 + $0x5c] sm:$0xf]  ;;  %v1605_v12 = vld [vmem:[%s2417_s26 + $0x60] sm:$0xf] }
 0x1a6   : >> { %1582 = vst [vmem:[%s2413_s11 + $0x30] sm:$0xf] %v1581_v62  ;;  %v1607_v8 = vld [vmem:[%s2417_s26 + $0x64] sm:$0xf]  ;;  %v1609_v13 = vld [vmem:[%s2417_s26 + $0x68] sm:$0xf] }
 0x1a7   : >> { %1584 = vst [vmem:[%s2413_s11 + $0x34] sm:$0xf] %v1583_v63  ;;  %v1611_v9 = vld [vmem:[%s2417_s26 + $0x6c] sm:$0xf]  ;;  %v1613_v14 = vld [vmem:[%s2417_s26 + $0x70] sm:$0xf] }
 0x1a8   : >> { %1586 = vst [vmem:[%s2413_s11 + $0x38] sm:$0xf] %v1585_v0  ;;  %v1615_v15 = vld [vmem:[%s2417_s26 + $0x74] sm:$0xf]  ;;  %v1617_v16 = vld [vmem:[%s2417_s26 + $0x78] sm:$0xf] }
 0x1a9   : >> { %1588 = vst [vmem:[%s2413_s11 + $0x3c] sm:$0xf] %v1587_v1  ;;  %v1619_v17 = vld [vmem:[%s2417_s26 + $0x7c] sm:$0xf]  ;;  %s3189_s26 = smov %s3112_s30 }
 0x1aa   : >> { %1590 = vst [vmem:[%s2413_s11 + $0x40] sm:$0xf] %v1589_v2 }
 0x1ab   : >> { %1592 = vst [vmem:[%s2413_s11 + $0x44] sm:$0xf] %v1591_v3 }
 0x1ac   : >> { %1594 = vst [vmem:[%s2413_s11 + $0x48] sm:$0xf] %v1593_v4 }
 0x1ad   : >> { %1596 = vst [vmem:[%s2413_s11 + $0x4c] sm:$0xf] %v1595_v5 }
 0x1ae   : >> { %1598 = vst [vmem:[%s2413_s11 + $0x50] sm:$0xf] %v1597_v6 }
 0x1af   : >> { %1600 = vst [vmem:[%s2413_s11 + $0x54] sm:$0xf] %v1599_v7 }
 0x1b0   : >> { %1602 = vst [vmem:[%s2413_s11 + $0x58] sm:$0xf] %v1601_v10 }
 0x1b1   : >> { %1604 = vst [vmem:[%s2413_s11 + $0x5c] sm:$0xf] %v1603_v11 }
 0x1b2   : >> { %1606 = vst [vmem:[%s2413_s11 + $0x60] sm:$0xf] %v1605_v12 }
 0x1b3   : >> { %1608 = vst [vmem:[%s2413_s11 + $0x64] sm:$0xf] %v1607_v8 }
 0x1b4   : >> { %1610 = vst [vmem:[%s2413_s11 + $0x68] sm:$0xf] %v1609_v13 }
 0x1b5   : >> { %1612 = vst [vmem:[%s2413_s11 + $0x6c] sm:$0xf] %v1611_v9  ;;  %1553 = sbr.rel (!%p1550_p2) target bundleno = 409 (0x199), region = 118 }
 0x1b6   : >> { %1614 = vst [vmem:[%s2413_s11 + $0x70] sm:$0xf] %v1613_v14 }
 0x1b7   : >> { %1616 = vst [vmem:[%s2413_s11 + $0x74] sm:$0xf] %v1615_v15 }
 0x1b8   : >> { %1618 = vst [vmem:[%s2413_s11 + $0x78] sm:$0xf] %v1617_v16 }
 0x1b9   : >> { %1620 = vst [vmem:[%s2413_s11 + $0x7c] sm:$0xf] %v1619_v17  ;;  %s3188_s11 = smov %s1627_s3 }
 0x1ba PF: > { %s3153_s4 = sand.u32 31, %s3204_s7   ;;  %s2173_s5 = sshll.u32 %s3042_s20, 7 }
 0x1bb   : > { %s1632_s6 = scalar_lea.vmem %s2529_s8, %s2173_s5 [#allocation3]   ;;  %s1634_s9 = scalar_lea.vmem %s3039_s23, %s2173_s5  }
 0x1bc   : > { %p2128_p3 = scmp.le.s32.totalorder %s3153_s4, 0 }
 0x1bd   : > { %s2427_s12 = smov (!%p2128_p3), %s1634_s9   ;;  %s2431_s18 = smov (!%p2128_p3), %s1632_s6  }
 0x1be   : > { %1842 = sbr.rel (%p2128_p3) target bundleno = 459 (0x1cb), region = 123  ;;  %s2435_s19 = smov (!%p2128_p3), 0  }
 0x1bf   : > { %s2439_s21 = smov (!%p2128_p3), 0  }
 0x1c3 LB: >> { %v1644_v18 = vld [vmem:[%s2433_s18] sm:$0xf]  ;;  %s1646_s7 = sadd.s32 1, %s2437_s19  ;;  %s1638_s21 = sadd.s32 1, %s2441_s21   ;;  %s2441_s21 = sphi %s2439_s21, %s1638_s21   ;;  %s2437_s19 = sphi %s2435_s19, %s2436_s19   ;;  %s2433_s18 = sphi %s2431_s18, %s1651_s18   ;;  %s2429_s12 = sphi %s2427_s12, %s1652_s12  }
 0x1c4   : >> { %1645 = vst [vmem:[%s2429_s12] sm:$0xf] %v1644_v18  ;;  %p1647_p4 = scmp.ge.s32.totalorder %s1646_s7, %s3153_s4  ;;  %p1637_p5 = scmp.ge.s32.totalorder %s1638_s21, %s3153_s4 }
 0x1c6   : >> { %s3208_s7 = smov (%p1647_p4, %s1646_s7), 0  ;;  %1640 = sbr.rel (!%p1637_p5) target bundleno = 451 (0x1c3), region = 129 }
 0x1c7   : >> { %s2129_s8 = sshll.u32 %s3208_s7, 2  ;;  %s2436_s19 = smov %s3208_s7  }
 0x1c8   : >> { %s1651_s18 = scalar_lea.vmem %s1632_s6, %s2129_s8 [#allocation3]   ;;  %s1652_s12 = scalar_lea.vmem %s1634_s9, %s2129_s8  }
 0x1cb PF: > { %s12_s15 = sadd.s32 1, %s2409_s15   ;;  %s3191_s9 = smov %s2389_s10 }
 0x1cc   : > { %p9_p6 = scmp.ge.s32.totalorder %s12_s15, 14   ;;  %s3192_s10 = smov %s2515_s24 }
 0x1cd   : > { %s3193_s11 = smov %s2401_s13  ;;  %s3194_s12 = smov %s2405_s14 }
 0x1ce   : > { %s3195_s13 = smov %s3198_s16  ;;  %s3196_s14 = smov %s3202_s17 }
 0x1cf   :  { %11 = sbr.rel (!%p9_p6) target bundleno = 4 (0x4), region = 140 }

// kernel: all_conv_plif_snn_forward.9
= control target key start
LH: loop header
LB: loop body
LE: loop exit
PB: predicated region body
PF: predicated region fallthrough
CT: control target
= control target key end

     0   :  { %s1455_s9 = smov 0   ;;  %s1457_s10 = smov 0   ;;  %s1795_s0 = inlined_call_operand.vmem [shape: bf16[4,338,128], index: 0, kind: input, shape index: {}]   ;;  %s1796_s1 = inlined_call_operand.vmem [shape: bf16[128,128], index: 1, kind: input, shape index: {}]   ;;  %s1797_s2 = inlined_call_operand.vmem [shape: bf16[4,338,16], index: 2, kind: output, shape index: {}]  }
   0x1   :  { %s1459_s11 = smov 0   ;;  %s1461_s12 = smov 0  }
   0x2   :  { %s1463_s13 = smov 0   ;;  %s1465_s14 = smov 0  }
   0x3   :  { %s1467_s15 = smov 0  }
   0x4 LB: > { %s21_s16 = sadd.s32 1, %s1396_s13  ;;  %s24_s17 = sadd.s32 1, %s1400_s14  ;;  %s1404_s15 = sphi %s1467_s15, %s12_s15   ;;  %s1400_s14 = sphi %s1465_s14, %s1809_s14   ;;  %s1396_s13 = sphi %s1463_s13, %s1808_s13   ;;  %s1392_s12 = sphi %s1461_s12, %s1807_s12   ;;  %s1388_s11 = sphi %s1459_s11, %s1806_s11   ;;  %s1384_s10 = sphi %s1457_s10, %s1805_s10   ;;  %s1380_s9 = sphi %s1455_s9, %s1804_s9  }
   0x5   : > { %p22_p0 = scmp.ge.s32.totalorder %s21_s16, 4  ;;  %s1026_s18 = sadd.s32 4294967295, %s1404_s15  }
   0x6   : > { %p92_p1 = scmp.ne.s32.totalorder %s1384_s10, %s1380_s9  ;;  %p93_p2 = scmp.eq.s32.totalorder %s1026_s18, 7 }
   0x7   : > { %s1811_s16 = smov (%p22_p0, %s21_s16), 0  ;;  %s1813_s17 = smov (!%p22_p0, %s24_s17), %s1400_s14 }
   0x8   : > { %s77_s19 = ssub.s32 %s1396_s13, %s1811_s16  ;;  %p26_p3 = scmp.ge.s32.totalorder %s1813_s17, 2 }
   0x9   : > { %p1030_p4 = scmp.ge.s32.totalorder %s1404_s15, 1  ;;  %p1499_p5 = por %p93_p2, %p92_p1 }
   0xa   : > { %p141_p6 = scmp.lt.s32.totalorder %s1404_s15, 9  ;;  %s1815_s17 = smov (%p26_p3, %s1813_s17), 0 }
   0xb   : > { %s78_s21 = ssub.s32 %s1400_s14, %s1815_s17  ;;  %s82_s23 = sadd.s32 1, %s1384_s10 }
   0xc   : > { %p142_p7 = pnand %p1030_p4, %p141_p6  ;;  %s79_s22 = sor.u32 %s78_s21, %s77_s19 }
   0xd   : > { %p80_p8 = scmp.eq.s32.totalorder %s79_s22, 0  ;;  %s167_s25 = sand.u32 (!%p142_p7), 1, %s1380_s9  }
   0xe   : > { %145 = sbr.rel (%p142_p7) target bundleno = 338 (0x152), region = 28  ;;  %p175_p9 = scmp.lt.s32.totalorder (!%p142_p7), %s1388_s11, 3 }
   0xf   : > { %s1510_s24 = scalar_select %p80_p8, %s1384_s10, %s82_s23  }
  0x10   : > { %s1513_s26 = smul.u32 (!%p142_p7), 22, %s1392_s12  ;;  %p1032_p11 = scmp.ne.s32.totalorder (!%p142_p7), %s1388_s11, 0 }
  0x11   : > { %s1186_s27 = smul.u32 (!%p142_p7), 88, %s167_s25 }
  0x12   : > { %p177_p10 = scmp.lt.s32.totalorder (!%p142_p7), %s1513_s26, 42 }
  0x13   : > { %s176_s28 = scalar_select %p175_p9, %s1388_s11, 3 }
  0x14   : > { %s178_s29 = scalar_select %p177_p10, %s1513_s26, 42 }
  0x15   : > { %s1187_s30 = smul.u32 43, %s176_s28  ;;  %s1524_s8 = scalar_lea.vmem [#allocation3], %s1186_s27  }
  0x16   : > { %196 = sbr.rel (%p1032_p11) target bundleno = 50 (0x32), region = 32 }
  0x17   : > { %s180_s3 = sadd.s32 %s1187_s30, %s178_s29 }
  0x18   : > { %s1031_s4 = sshll.u32 %s180_s3, 2 }
  0x19   : > { %s1522_s7 = scalar_lea.vmem %s1795_s0, %s1031_s4 }
  0x1b   : > { %vm197_vm0 = vcmask 130048   ;;  %v1438_v0 = vmov 0.0  }
  0x1c   : > { %198 = vst.msk [vmem:[#allocation2] sm:$0xff] %vm197_vm0, %v1438_v0 }
  0x1d   : > { %199 = vst.msk [vmem:[#allocation2 + $0x8] sm:$0xff] %vm197_vm0, %v1438_v0 }
  0x1e   : > { %200 = vst.msk [vmem:[#allocation2 + $0x10] sm:$0xff] %vm197_vm0, %v1438_v0 }
  0x1f   : > { %201 = vst.msk [vmem:[#allocation2 + $0x18] sm:$0xff] %vm197_vm0, %v1438_v0 }
  0x20   : > { %202 = vst.msk [vmem:[#allocation2 + $0x20] sm:$0xff] %vm197_vm0, %v1438_v0 }
  0x21   : > { %203 = vst.msk [vmem:[#allocation2 + $0x28] sm:$0xff] %vm197_vm0, %v1438_v0 }
  0x22   : > { %204 = vst.msk [vmem:[#allocation2 + $0x30] sm:$0xff] %vm197_vm0, %v1438_v0 }
  0x23   : > { %205 = vst.msk [vmem:[#allocation2 + $0x38] sm:$0xff] %vm197_vm0, %v1438_v0 }
  0x24   : > { %206 = vst.msk [vmem:[#allocation2 + $0x40] sm:$0xff] %vm197_vm0, %v1438_v0 }
  0x25   : > { %207 = vst.msk [vmem:[#allocation2 + $0x48] sm:$0xff] %vm197_vm0, %v1438_v0 }
  0x26   : > { %208 = vst.msk [vmem:[#allocation2 + $0x50] sm:$0xff] %vm197_vm0, %v1438_v0 }
  0x27   : > { %209 = vst.msk [vmem:[#allocation2 + $0x58] sm:$0xff] %vm197_vm0, %v1438_v0 }
  0x28   : > { %210 = vst.msk [vmem:[#allocation2 + $0x60] sm:$0xff] %vm197_vm0, %v1438_v0 }
  0x29   : > { %211 = vst.msk [vmem:[#allocation2 + $0x68] sm:$0xff] %vm197_vm0, %v1438_v0 }
  0x2a   : > { %212 = vst.msk [vmem:[#allocation2 + $0x70] sm:$0xff] %vm197_vm0, %v1438_v0 }
  0x2b   : > { %213 = vst.msk [vmem:[#allocation2 + $0x78] sm:$0xff] %vm197_vm0, %v1438_v0 }
  0x2c   : > { %214 = vst.msk [vmem:[#allocation2 + $0x80] sm:$0xff] %vm197_vm0, %v1438_v0 }
  0x2d   : > { %215 = vst.msk [vmem:[#allocation2 + $0x88] sm:$0xff] %vm197_vm0, %v1438_v0 }
  0x2e   : > { %216 = vst.msk [vmem:[#allocation2 + $0x90] sm:$0xff] %vm197_vm0, %v1438_v0 }
  0x2f   : > { %217 = vst.msk [vmem:[#allocation2 + $0x98] sm:$0xff] %vm197_vm0, %v1438_v0 }
  0x30   : > { %218 = vst.msk [vmem:[#allocation2 + $0xa0] sm:$0xff] %vm197_vm0, %v1438_v0 }
  0x31   : > { %219 = vst.msk [vmem:[#allocation2 + $0xa8] sm:$0xff] %vm197_vm0, %v1438_v0 }
  0x32 PF: > { %v1161_v1 = vld [vmem:[%s1796_s1 + $0x38] sm:$0xff]  ;;  %v1160_v2 = vld [vmem:[%s1796_s1 + $0x30] sm:$0xff]  ;;  %v1159_v3 = vld [vmem:[%s1796_s1 + $0x28] sm:$0xff]  ;;  %v1439_v37 = vmov 0.0   ;;  %vm612_vm2 = vcmask 125952   ;;  %vm679_vm4 = vcmask 130048  }
  0x33   : > { %1162 = vmatpush.bf16.msra.mxu1 %v1161_v1  ;;  %1163 = vmatpush.bf16.msra.mxu2 %v1161_v1  ;;  %v1158_v4 = vld [vmem:[%s1796_s1 + $0x20] sm:$0xff]  ;;  %v1157_v5 = vld [vmem:[%s1796_s1 + $0x18] sm:$0xff]  ;;  %v1156_v6 = vld [vmem:[%s1796_s1 + $0x10] sm:$0xff]  ;;  %s1188_s9 = smul.u32 (%p1499_p5), 43, %s1388_s11 }
  0x34   : > { %1164 = vmatpush.bf16.msra.mxu3 %v1161_v1  ;;  %372 = vmatpush.bf16.msra.mxu0 %v1161_v1  ;;  %v1155_v7 = vld [vmem:[%s1796_s1 + $0x8] sm:$0xff]  ;;  %v1154_v8 = vld [vmem:[%s1796_s1] sm:$0xff]  ;;  %v1145_v9 = vld [vmem:[%s1522_s7 + $0x10] sm:$0xff] }
  0x35   : > { %v1148_v10 = vld [vmem:[%s1522_s7 + $0x28] sm:$0xff]  ;;  %v1151_v11 = vld [vmem:[%s1522_s7 + $0x40] sm:$0xff]  ;;  %v1146_v13 = vld [vmem:[%s1522_s7 + $0x18] sm:$0xff]  ;;  %s716_s12 = sadd.s32 (%p1499_p5), %s1188_s9, %s1513_s26 }
  0x36   : > { %v1143_v12 = vld [vmem:[%s1522_s7] sm:$0xff]  ;;  %v1149_v14 = vld [vmem:[%s1522_s7 + $0x30] sm:$0xff]  ;;  %v1152_v15 = vld [vmem:[%s1522_s7 + $0x48] sm:$0xff]  ;;  %s1133_s18 = sshll.u32 (%p1499_p5), %s716_s12, 2 }
  0x37   : > { %1165 = vmatpush.bf16.msra.mxu1 %v1160_v2  ;;  %1166 = vmatpush.bf16.msra.mxu2 %v1160_v2  ;;  %v1144_v16 = vld [vmem:[%s1522_s7 + $0x8] sm:$0xff]  ;;  %v1147_v17 = vld [vmem:[%s1522_s7 + $0x20] sm:$0xff]  ;;  %v1150_v18 = vld [vmem:[%s1522_s7 + $0x38] sm:$0xff]  ;;  %s1683_s23 = scalar_lea.vmem (%p1499_p5), %s1797_s2, %s1133_s18  }
  0x38   : > { %1167 = vmatpush.bf16.msra.mxu3 %v1160_v2  ;;  %373 = vmatpush.bf16.msra.mxu0 %v1160_v2  ;;  %v1153_v19 = vld [vmem:[%s1522_s7 + $0x50] sm:$0xff]  ;;  %v440_v20 = vld [vmem:[#allocation2 + $0x20] sm:$0xff]  ;;  %v441_v32 = vld [vmem:[#allocation2 + $0x28] sm:$0xff]  ;;  %s710_s7 = ssub.s32 (%p1499_p5), 43, %s1513_s26 }
  0x39   : > { %v436_v21 = vld [vmem:[#allocation2] sm:$0xff]  ;;  %v446_v27 = vld [vmem:[#allocation2 + $0x50] sm:$0xff]  ;;  %v437_v36 = vld [vmem:[#allocation2 + $0x8] sm:$0xff]  ;;  %p711_p12 = scmp.lt.s32.totalorder (%p1499_p5), %s710_s7, 22 }
  0x3a   : > { %v452_v30 = vld [vmem:[#allocation2 + $0x80] sm:$0xff]  ;;  %v447_v57 = vld [vmem:[#allocation2 + $0x58] sm:$0xff]  ;;  %v453_v61 = vld [vmem:[#allocation2 + $0x88] sm:$0xff] }
  0x3b   : > { %1168 = vmatpush.bf16.msra.mxu1 %v1159_v3  ;;  %1169 = vmatpush.bf16.msra.mxu2 %v1159_v3 }
  0x3c   : > { %1170 = vmatpush.bf16.msra.mxu3 %v1159_v3  ;;  %374 = vmatpush.bf16.msra.mxu0 %v1159_v3  ;;  %v442_v3 = vld [vmem:[#allocation2 + $0x30] sm:$0xff] }
  0x3f   : > { %1171 = vmatpush.bf16.msra.mxu1 %v1158_v4  ;;  %1172 = vmatpush.bf16.msra.mxu2 %v1158_v4 }
  0x40   : > { %1173 = vmatpush.bf16.msra.mxu3 %v1158_v4  ;;  %375 = vmatpush.bf16.msra.mxu0 %v1158_v4 }
  0x43   : > { %1174 = vmatpush.bf16.msra.mxu1 %v1157_v5  ;;  %1175 = vmatpush.bf16.msra.mxu2 %v1157_v5 }
  0x44   : > { %1176 = vmatpush.bf16.msra.mxu3 %v1157_v5  ;;  %376 = vmatpush.bf16.msra.mxu0 %v1157_v5 }
  0x47   : > { %1177 = vmatpush.bf16.msra.mxu1 %v1156_v6  ;;  %1178 = vmatpush.bf16.msra.mxu2 %v1156_v6 }
  0x48   : > { %1179 = vmatpush.bf16.msra.mxu3 %v1156_v6  ;;  %377 = vmatpush.bf16.msra.mxu0 %v1156_v6 }
  0x4b   : > { %1180 = vmatpush.bf16.msra.mxu1 %v1155_v7  ;;  %1181 = vmatpush.bf16.msra.mxu2 %v1155_v7 }
  0x4c   : > { %1182 = vmatpush.bf16.msra.mxu3 %v1155_v7  ;;  %378 = vmatpush.bf16.msra.mxu0 %v1155_v7 }
  0x4f   : > { %1183 = vmatpush.bf16.msra.mxu1 %v1154_v8  ;;  %1184 = vmatpush.bf16.msra.mxu2 %v1154_v8 }
  0x50   : > { %1185 = vmatpush.bf16.msra.mxu3 %v1154_v8  ;;  %379 = vmatpush.bf16.msra.mxu0 %v1154_v8 }
  0x52   : > { %390 = vmatmul.bf16.vlgmr.msra.gmra.mxu1 %v1145_v9  ;;  %405 = vmatmul.bf16.vlgmr.msra.gmra.mxu2 %v1148_v10  ;;  %v438_v9 = vld [vmem:[#allocation2 + $0x10] sm:$0xff] }
  0x53   : > { %420 = vmatmul.bf16.vlgmr.msra.gmra.mxu3 %v1151_v11  ;;  %380 = vmatmul.bf16.vlgmr.msra.gmra.mxu0 %v1143_v12 }
  0x62   : > { %395 = vmatmul.bf16.gmra.mxu1 %v1146_v13  ;;  %410 = vmatmul.bf16.gmra.mxu2 %v1149_v14 }
  0x63   : > { %425 = vmatmul.bf16.gmra.mxu3 %v1152_v15  ;;  %385 = vmatmul.bf16.gmra.mxu0 %v1144_v16 }
  0x72   : > { %400 = vmatmul.bf16.gmra.mxu1 %v1147_v17  ;;  %415 = vmatmul.bf16.gmra.mxu2 %v1150_v18 }
  0x73   : > { %430 = vmatmul.bf16.gmra.mxu3 %v1153_v19 }
  0xcf   : > { %v391_v22 = vpop.f32.mrf.mxu1 }
  0xd0   : > { %v462_v23 = vsub.f32 %v391_v22, %v440_v20  ;;  %v381_v24 = vpop.f32.mrf.mxu0 }
  0xd1   : > { %v458_v25 = vsub.f32 %v381_v24, %v436_v21 }
  0xd2   : > { %v484_v26 = vmul.f32 0.5, %v462_v23 }
  0xd3   : > { %v480_v28 = vmul.f32 0.5, %v458_v25 }
  0xd4   : > { %v506_v29 = vadd.f32 %v484_v26, %v440_v20  ;;  %v448_v26 = vld [vmem:[#allocation2 + $0x60] sm:$0xff] }
  0xd5   : > { %v406_v31 = vpop.f32.mrf.mxu2  ;;  %v502_v33 = vadd.f32 %v480_v28, %v436_v21 }
  0xd6   : > { %vm528_vm1 = vcmp.ge.f32.partialorder %v506_v29, 1.0  ;;  %v468_v34 = vsub.f32 %v406_v31, %v446_v27  ;;  %v421_v35 = vpop.f32.mrf.mxu3 }
  0xd7   : > { %v1113_v38 = vsel %vm528_vm1, 1.0, %v1439_v37  ;;  %v474_v39 = vsub.f32 %v421_v35, %v452_v30  ;;  %v393_v40 = vpop.f32.mrf.mxu1  ;;  %vm524_vm3 = vcmp.ge.f32.partialorder %v502_v33, 1.0  ;;  %v454_v35 = vld [vmem:[#allocation2 + $0x90] sm:$0xff] }
  0xd8   : > { %v594_v41 = vpack.c.bf16 %v1113_v38, %v1113_v38  ;;  %v639_v42 = vsub.f32 1.0, %v1113_v38  ;;  %v490_v43 = vmul.f32 0.5, %v468_v34  ;;  %v463_v44 = vsub.f32 %v393_v40, %v441_v32  ;;  %v383_v45 = vpop.f32.mrf.mxu0 }
  0xd9   : > { %v496_v46 = vmul.f32 0.5, %v474_v39  ;;  %v1109_v47 = vsel %vm524_vm3, 1.0, %v1439_v37  ;;  %v459_v48 = vsub.f32 %v383_v45, %v437_v36 }
  0xda   : > { %617 = vst.msk [vmem:[%s1524_s8 + $0x10] sm:$0xf] %vm612_vm2, %v594_v41  ;;  %v661_v49 = vmul.f32 %v639_v42, %v506_v29  ;;  %v512_v50 = vadd.f32 %v490_v43, %v446_v27  ;;  %v485_v51 = vmul.f32 0.5, %v463_v44  ;;  %v590_v52 = vpack.c.bf16 %v1109_v47, %v1109_v47  ;;  %v443_v42 = vld [vmem:[#allocation2 + $0x38] sm:$0xff] }
  0xdb   : > { %v518_v53 = vadd.f32 %v496_v46, %v452_v30  ;;  %v635_v54 = vsub.f32 1.0, %v1109_v47  ;;  %v481_v55 = vmul.f32 0.5, %v459_v48  ;;  %v439_v48 = vld [vmem:[#allocation2 + $0x18] sm:$0xff] }
  0xdc   : > { %684 = vst.msk [vmem:[#allocation2 + $0x20] sm:$0xff] %vm679_vm4, %v661_v49  ;;  %vm534_vm5 = vcmp.ge.f32.partialorder %v512_v50, 1.0  ;;  %v507_v56 = vadd.f32 %v485_v51, %v441_v32 }
  0xdd   : > { %v1119_v58 = vsel %vm534_vm5, 1.0, %v1439_v37  ;;  %vm540_vm6 = vcmp.ge.f32.partialorder %v518_v53, 1.0  ;;  %613 = vst.msk [vmem:[%s1524_s8] sm:$0xf] %vm612_vm2, %v590_v52  ;;  %v657_v59 = vmul.f32 %v635_v54, %v502_v33  ;;  %v408_v60 = vpop.f32.mrf.mxu2  ;;  %v503_v62 = vadd.f32 %v481_v55, %v437_v36 }
  0xde   : > { %v600_v63 = vpack.c.bf16 %v1119_v58, %v1119_v58  ;;  %v645_v0 = vsub.f32 1.0, %v1119_v58  ;;  %v1125_v1 = vsel %vm540_vm6, 1.0, %v1439_v37  ;;  %vm529_vm7 = vcmp.ge.f32.partialorder %v507_v56, 1.0  ;;  %v423_v2 = vpop.f32.mrf.mxu3 }
  0xdf   : > { %v606_v4 = vpack.c.bf16 %v1125_v1, %v1125_v1  ;;  %v651_v5 = vsub.f32 1.0, %v1125_v1  ;;  %v1114_v6 = vsel %vm529_vm7, 1.0, %v1439_v37  ;;  %680 = vst.msk [vmem:[#allocation2] sm:$0xff] %vm679_vm4, %v657_v59  ;;  %v469_v7 = vsub.f32 %v408_v60, %v447_v57  ;;  %v396_v8 = vpop.f32.mrf.mxu1 }
  0xe0   : > { %623 = vst.msk [vmem:[%s1524_s8 + $0x28] sm:$0xf] %vm612_vm2, %v600_v63  ;;  %v667_v10 = vmul.f32 %v645_v0, %v512_v50  ;;  %v595_v11 = vpack.c.bf16 %v1114_v6, %v1114_v6  ;;  %v640_v12 = vsub.f32 1.0, %v1114_v6  ;;  %v475_v13 = vsub.f32 %v423_v2, %v453_v61  ;;  %v386_v14 = vpop.f32.mrf.mxu0  ;;  %v449_v63 = vld [vmem:[#allocation2 + $0x68] sm:$0xff]  ;;  %v455_v0 = vld [vmem:[#allocation2 + $0x98] sm:$0xff] }
  0xe1   : > { %629 = vst.msk [vmem:[%s1524_s8 + $0x40] sm:$0xf] %vm612_vm2, %v606_v4  ;;  %v673_v15 = vmul.f32 %v651_v5, %v518_v53  ;;  %v491_v16 = vmul.f32 0.5, %v469_v7  ;;  %v464_v17 = vsub.f32 %v396_v8, %v442_v3  ;;  %vm525_vm8 = vcmp.ge.f32.partialorder %v503_v62, 1.0  ;;  %v444_v4 = vld [vmem:[#allocation2 + $0x40] sm:$0xff] }
  0xe2   : > { %690 = vst.msk [vmem:[#allocation2 + $0x50] sm:$0xff] %vm679_vm4, %v667_v10  ;;  %v662_v18 = vmul.f32 %v640_v12, %v507_v56  ;;  %v497_v19 = vmul.f32 0.5, %v475_v13  ;;  %v1110_v20 = vsel %vm525_vm8, 1.0, %v1439_v37  ;;  %v460_v21 = vsub.f32 %v386_v14, %v438_v9 }
  0xe3   : > { %696 = vst.msk [vmem:[#allocation2 + $0x80] sm:$0xff] %vm679_vm4, %v673_v15  ;;  %v513_v22 = vadd.f32 %v491_v16, %v447_v57  ;;  %v486_v23 = vmul.f32 0.5, %v464_v17  ;;  %v591_v24 = vpack.c.bf16 %v1110_v20, %v1110_v20  ;;  %v636_v25 = vsub.f32 1.0, %v1110_v20 }
  0xe4   : > { %618 = vst.msk [vmem:[%s1524_s8 + $0x14] sm:$0xf] %vm612_vm2, %v595_v11  ;;  %v519_v27 = vadd.f32 %v497_v19, %v453_v61  ;;  %v482_v28 = vmul.f32 0.5, %v460_v21 }
  0xe5   : > { %685 = vst.msk [vmem:[#allocation2 + $0x28] sm:$0xff] %vm679_vm4, %v662_v18  ;;  %vm535_vm9 = vcmp.ge.f32.partialorder %v513_v22, 1.0  ;;  %v508_v29 = vadd.f32 %v486_v23, %v442_v3  ;;  %v658_v30 = vmul.f32 %v636_v25, %v503_v62  ;;  %v411_v31 = vpop.f32.mrf.mxu2 }
  0xe6   : > { %v1120_v32 = vsel %vm535_vm9, 1.0, %v1439_v37  ;;  %vm541_vm10 = vcmp.ge.f32.partialorder %v519_v27, 1.0  ;;  %614 = vst.msk [vmem:[%s1524_s8 + $0x4] sm:$0xf] %vm612_vm2, %v591_v24  ;;  %v470_v33 = vsub.f32 %v411_v31, %v448_v26  ;;  %v426_v34 = vpop.f32.mrf.mxu3  ;;  %v504_v36 = vadd.f32 %v482_v28, %v438_v9  ;;  %v450_v28 = vld [vmem:[#allocation2 + $0x70] sm:$0xff] }
  0xe7   : > { %v601_v38 = vpack.c.bf16 %v1120_v32, %v1120_v32  ;;  %v646_v39 = vsub.f32 1.0, %v1120_v32  ;;  %v1126_v40 = vsel %vm541_vm10, 1.0, %v1439_v37  ;;  %vm530_vm11 = vcmp.ge.f32.partialorder %v508_v29, 1.0  ;;  %681 = vst.msk [vmem:[#allocation2 + $0x8] sm:$0xff] %vm679_vm4, %v658_v30  ;;  %v398_v41 = vpop.f32.mrf.mxu1 }
  0xe8   : > { %v607_v43 = vpack.c.bf16 %v1126_v40, %v1126_v40  ;;  %v652_v44 = vsub.f32 1.0, %v1126_v40  ;;  %v1115_v45 = vsel %vm530_vm11, 1.0, %v1439_v37  ;;  %v492_v46 = vmul.f32 0.5, %v470_v33  ;;  %v388_v47 = vpop.f32.mrf.mxu0  ;;  %v456_v40 = vld [vmem:[#allocation2 + $0xa0] sm:$0xff] }
  0xe9   : > { %624 = vst.msk [vmem:[%s1524_s8 + $0x2c] sm:$0xf] %vm612_vm2, %v601_v38  ;;  %v668_v49 = vmul.f32 %v646_v39, %v513_v22  ;;  %v596_v50 = vpack.c.bf16 %v1115_v45, %v1115_v45  ;;  %v641_v51 = vsub.f32 1.0, %v1115_v45  ;;  %v476_v52 = vsub.f32 %v426_v34, %v454_v35 }
  0xea   : > { %630 = vst.msk [vmem:[%s1524_s8 + $0x44] sm:$0xf] %vm612_vm2, %v607_v43  ;;  %v674_v53 = vmul.f32 %v652_v44, %v519_v27  ;;  %v514_v54 = vadd.f32 %v492_v46, %v448_v26  ;;  %v465_v55 = vsub.f32 %v398_v41, %v443_v42  ;;  %vm526_vm12 = vcmp.ge.f32.partialorder %v504_v36, 1.0  ;;  %v445_v46 = vld [vmem:[#allocation2 + $0x48] sm:$0xff] }
  0xeb   : > { %691 = vst.msk [vmem:[#allocation2 + $0x58] sm:$0xff] %vm679_vm4, %v668_v49  ;;  %v663_v56 = vmul.f32 %v641_v51, %v508_v29  ;;  %v498_v57 = vmul.f32 0.5, %v476_v52  ;;  %v1111_v58 = vsel %vm526_vm12, 1.0, %v1439_v37  ;;  %v461_v59 = vsub.f32 %v388_v47, %v439_v48 }
  0xec   : > { %697 = vst.msk [vmem:[#allocation2 + $0x88] sm:$0xff] %vm679_vm4, %v674_v53  ;;  %vm536_vm13 = vcmp.ge.f32.partialorder %v514_v54, 1.0  ;;  %v487_v60 = vmul.f32 0.5, %v465_v55  ;;  %v592_v61 = vpack.c.bf16 %v1111_v58, %v1111_v58  ;;  %v637_v62 = vsub.f32 1.0, %v1111_v58 }
  0xed   : > { %619 = vst.msk [vmem:[%s1524_s8 + $0x18] sm:$0xf] %vm612_vm2, %v596_v50  ;;  %v1121_v1 = vsel %vm536_vm13, 1.0, %v1439_v37  ;;  %v520_v2 = vadd.f32 %v498_v57, %v454_v35  ;;  %v413_v3 = vpop.f32.mrf.mxu2  ;;  %v483_v5 = vmul.f32 0.5, %v461_v59 }
  0xee   : > { %686 = vst.msk [vmem:[#allocation2 + $0x30] sm:$0xff] %vm679_vm4, %v663_v56  ;;  %v602_v6 = vpack.c.bf16 %v1121_v1, %v1121_v1  ;;  %v647_v7 = vsub.f32 1.0, %v1121_v1  ;;  %v509_v8 = vadd.f32 %v487_v60, %v443_v42  ;;  %v659_v9 = vmul.f32 %v637_v62, %v504_v36  ;;  %v428_v10 = vpop.f32.mrf.mxu3  ;;  %v451_v60 = vld [vmem:[#allocation2 + $0x78] sm:$0xff]  ;;  %v457_v62 = vld [vmem:[#allocation2 + $0xa8] sm:$0xff] }
  0xef   : > { %vm542_vm14 = vcmp.ge.f32.partialorder %v520_v2, 1.0  ;;  %615 = vst.msk [vmem:[%s1524_s8 + $0x8] sm:$0xf] %vm612_vm2, %v592_v61  ;;  %v471_v11 = vsub.f32 %v413_v3, %v449_v63  ;;  %v477_v12 = vsub.f32 %v428_v10, %v455_v0  ;;  %v401_v13 = vpop.f32.mrf.mxu1  ;;  %v505_v14 = vadd.f32 %v483_v5, %v439_v48 }
  0xf0   : > { %625 = vst.msk [vmem:[%s1524_s8 + $0x30] sm:$0xf] %vm612_vm2, %v602_v6  ;;  %v669_v15 = vmul.f32 %v647_v7, %v514_v54  ;;  %v1127_v16 = vsel %vm542_vm14, 1.0, %v1439_v37  ;;  %vm531_vm15 = vcmp.ge.f32.partialorder %v509_v8, 1.0  ;;  %v466_v17 = vsub.f32 %v401_v13, %v444_v4 }
  0xf1   : > { %v608_v18 = vpack.c.bf16 %v1127_v16, %v1127_v16  ;;  %v653_v19 = vsub.f32 1.0, %v1127_v16  ;;  %v1116_v20 = vsel %vm531_vm15, 1.0, %v1439_v37  ;;  %682 = vst.msk [vmem:[#allocation2 + $0x10] sm:$0xff] %vm679_vm4, %v659_v9  ;;  %v493_v21 = vmul.f32 0.5, %v471_v11 }
  0xf2   : > { %692 = vst.msk [vmem:[#allocation2 + $0x60] sm:$0xff] %vm679_vm4, %v669_v15  ;;  %v597_v22 = vpack.c.bf16 %v1116_v20, %v1116_v20  ;;  %v642_v23 = vsub.f32 1.0, %v1116_v20  ;;  %v499_v24 = vmul.f32 0.5, %v477_v12  ;;  %v488_v25 = vmul.f32 0.5, %v466_v17 }
  0xf3   : > { %631 = vst.msk [vmem:[%s1524_s8 + $0x48] sm:$0xf] %vm612_vm2, %v608_v18  ;;  %v675_v26 = vmul.f32 %v653_v19, %v520_v2  ;;  %v515_v27 = vadd.f32 %v493_v21, %v449_v63  ;;  %vm527_vm0 = vcmp.ge.f32.partialorder %v505_v14, 1.0 }
  0xf4   : > { %620 = vst.msk [vmem:[%s1524_s8 + $0x1c] sm:$0xf] %vm612_vm2, %v597_v22  ;;  %v664_v29 = vmul.f32 %v642_v23, %v509_v8  ;;  %v521_v30 = vadd.f32 %v499_v24, %v455_v0  ;;  %v510_v31 = vadd.f32 %v488_v25, %v444_v4  ;;  %v1112_v32 = vsel %vm527_vm0, 1.0, %v1439_v37 }
  0xf5   : > { %698 = vst.msk [vmem:[#allocation2 + $0x90] sm:$0xff] %vm679_vm4, %v675_v26  ;;  %vm537_vm1 = vcmp.ge.f32.partialorder %v515_v27, 1.0  ;;  %v593_v33 = vpack.c.bf16 %v1112_v32, %v1112_v32  ;;  %v638_v34 = vsub.f32 1.0, %v1112_v32  ;;  %v416_v35 = vpop.f32.mrf.mxu2 }
  0xf6   : > { %687 = vst.msk [vmem:[#allocation2 + $0x38] sm:$0xff] %vm679_vm4, %v664_v29  ;;  %v1122_v36 = vsel %vm537_vm1, 1.0, %v1439_v37  ;;  %vm543_vm3 = vcmp.ge.f32.partialorder %v521_v30, 1.0  ;;  %vm532_vm5 = vcmp.ge.f32.partialorder %v510_v31, 1.0  ;;  %v472_v38 = vsub.f32 %v416_v35, %v450_v28  ;;  %v431_v39 = vpop.f32.mrf.mxu3 }
  0xf7   : > { %v603_v41 = vpack.c.bf16 %v1122_v36, %v1122_v36  ;;  %v648_v42 = vsub.f32 1.0, %v1122_v36  ;;  %v1128_v43 = vsel %vm543_vm3, 1.0, %v1439_v37  ;;  %v1117_v44 = vsel %vm532_vm5, 1.0, %v1439_v37  ;;  %616 = vst.msk [vmem:[%s1524_s8 + $0xc] sm:$0xf] %vm612_vm2, %v593_v33  ;;  %v403_v45 = vpop.f32.mrf.mxu1 }
  0xf8   : > { %v609_v47 = vpack.c.bf16 %v1128_v43, %v1128_v43  ;;  %v654_v48 = vsub.f32 1.0, %v1128_v43  ;;  %v643_v49 = vsub.f32 1.0, %v1117_v44  ;;  %v598_v51 = vpack.c.bf16 %v1117_v44, %v1117_v44 }
  0xf9   : > { %626 = vst.msk [vmem:[%s1524_s8 + $0x34] sm:$0xf] %vm612_vm2, %v603_v41  ;;  %v670_v50 = vmul.f32 %v648_v42, %v515_v27  ;;  %v494_v52 = vmul.f32 0.5, %v472_v38  ;;  %v478_v53 = vsub.f32 %v431_v39, %v456_v40  ;;  %v467_v56 = vsub.f32 %v403_v45, %v445_v46 }
  0xfa   : > { %632 = vst.msk [vmem:[%s1524_s8 + $0x4c] sm:$0xf] %vm612_vm2, %v609_v47  ;;  %v676_v54 = vmul.f32 %v654_v48, %v521_v30  ;;  %v665_v55 = vmul.f32 %v643_v49, %v510_v31  ;;  %v660_v57 = vmul.f32 %v638_v34, %v505_v14 }
  0xfb   : > { %693 = vst.msk [vmem:[#allocation2 + $0x68] sm:$0xff] %vm679_vm4, %v670_v50  ;;  %v516_v58 = vadd.f32 %v494_v52, %v450_v28  ;;  %v500_v59 = vmul.f32 0.5, %v478_v53  ;;  %v489_v61 = vmul.f32 0.5, %v467_v56 }
  0xfc   : > { %699 = vst.msk [vmem:[#allocation2 + $0x98] sm:$0xff] %vm679_vm4, %v676_v54 }
  0xfd   : > { %621 = vst.msk [vmem:[%s1524_s8 + $0x20] sm:$0xf] %vm612_vm2, %v598_v51  ;;  %vm538_vm6 = vcmp.ge.f32.partialorder %v516_v58, 1.0  ;;  %v522_v63 = vadd.f32 %v500_v59, %v456_v40  ;;  %v418_v0 = vpop.f32.mrf.mxu2  ;;  %v511_v2 = vadd.f32 %v489_v61, %v445_v46 }
  0xfe   : > { %688 = vst.msk [vmem:[#allocation2 + $0x40] sm:$0xff] %vm679_vm4, %v665_v55  ;;  %v1123_v1 = vsel %vm538_vm6, 1.0, %v1439_v37  ;;  %v473_v3 = vsub.f32 %v418_v0, %v451_v60  ;;  %v433_v4 = vpop.f32.mrf.mxu3 }
  0xff   : > { %683 = vst.msk [vmem:[#allocation2 + $0x18] sm:$0xff] %vm679_vm4, %v660_v57  ;;  %v604_v5 = vpack.c.bf16 %v1123_v1, %v1123_v1  ;;  %v649_v6 = vsub.f32 1.0, %v1123_v1  ;;  %vm544_vm7 = vcmp.ge.f32.partialorder %v522_v63, 1.0  ;;  %v479_v7 = vsub.f32 %v433_v4, %v457_v62 }
 0x100   : > { %v1129_v8 = vsel %vm544_vm7, 1.0, %v1439_v37  ;;  %vm533_vm8 = vcmp.ge.f32.partialorder %v511_v2, 1.0  ;;  %v495_v9 = vmul.f32 0.5, %v473_v3 }
 0x101   : > { %627 = vst.msk [vmem:[%s1524_s8 + $0x38] sm:$0xf] %vm612_vm2, %v604_v5  ;;  %v671_v10 = vmul.f32 %v649_v6, %v516_v58  ;;  %v610_v11 = vpack.c.bf16 %v1129_v8, %v1129_v8  ;;  %v655_v12 = vsub.f32 1.0, %v1129_v8  ;;  %v1118_v13 = vsel %vm533_vm8, 1.0, %v1439_v37 }
 0x102   : > { %v599_v14 = vpack.c.bf16 %v1118_v13, %v1118_v13  ;;  %v644_v15 = vsub.f32 1.0, %v1118_v13  ;;  %v517_v16 = vadd.f32 %v495_v9, %v451_v60  ;;  %v501_v17 = vmul.f32 0.5, %v479_v7 }
 0x103   : > { %694 = vst.msk [vmem:[#allocation2 + $0x70] sm:$0xff] %vm679_vm4, %v671_v10  ;;  %v677_v18 = vmul.f32 %v655_v12, %v522_v63 }
 0x104   : > { %633 = vst.msk [vmem:[%s1524_s8 + $0x50] sm:$0xf] %vm612_vm2, %v610_v11  ;;  %v666_v19 = vmul.f32 %v644_v15, %v511_v2  ;;  %vm539_vm9 = vcmp.ge.f32.partialorder %v517_v16, 1.0  ;;  %v523_v20 = vadd.f32 %v501_v17, %v457_v62 }
 0x105   : > { %700 = vst.msk [vmem:[#allocation2 + $0xa0] sm:$0xff] %vm679_vm4, %v677_v18  ;;  %v1124_v21 = vsel %vm539_vm9, 1.0, %v1439_v37 }
 0x106   : > { %622 = vst.msk [vmem:[%s1524_s8 + $0x24] sm:$0xf] %vm612_vm2, %v599_v14  ;;  %v605_v22 = vpack.c.bf16 %v1124_v21, %v1124_v21  ;;  %v650_v23 = vsub.f32 1.0, %v1124_v21  ;;  %vm545_vm10 = vcmp.ge.f32.partialorder %v523_v20, 1.0 }
 0x107   : > { %689 = vst.msk [vmem:[#allocation2 + $0x48] sm:$0xff] %vm679_vm4, %v666_v19  ;;  %v1130_v24 = vsel %vm545_vm10, 1.0, %v1439_v37 }
 0x108   : > { %628 = vst.msk [vmem:[%s1524_s8 + $0x3c] sm:$0xf] %vm612_vm2, %v605_v22  ;;  %v672_v25 = vmul.f32 %v650_v23, %v517_v16  ;;  %v611_v26 = vpack.c.bf16 %v1130_v24, %v1130_v24  ;;  %v656_v27 = vsub.f32 1.0, %v1130_v24  ;;  %708 = sbr.rel (!%p1499_p5) target bundleno = 338 (0x152), region = 36 }
 0x10a   : > { %695 = vst.msk [vmem:[#allocation2 + $0x78] sm:$0xff] %vm679_vm4, %v672_v25  ;;  %v678_v28 = vmul.f32 %v656_v27, %v523_v20 }
 0x10b   : > { %634 = vst.msk [vmem:[%s1524_s8 + $0x54] sm:$0xf] %vm612_vm2, %v611_v26 }
 0x10c   : > { %701 = vst.msk [vmem:[#allocation2 + $0xa8] sm:$0xff] %vm679_vm4, %v678_v28 }
 0x10d   : > { %s1817_s7 = smov (!%p711_p12, %s710_s7), 22 }
 0x10e   : > { %s1131_s19 = sshll.u32 %s1817_s7, 2 }
 0x10f   : > { %p1134_p13 = scmp.eq.s32.totalorder %s1131_s19, 0 }
 0x110   : > { %1312 = sdivrem.u32 (!%p1134_p13), %s1817_s7, 22 }
 0x111   : > { %721 = sbr.rel (%p1134_p13) target bundleno = 338 (0x152), region = 40 }
 0x119   : > { %s1686_s20 = spop.drf %1312 }
 0x11a   : > { %s1314_s25 = spop.drf %1312  ;;  %p1135_p0 = scmp.le.s32.totalorder %s1686_s20, 0 }
 0x11b   : > { %s1799_s11 = smov (!%p1135_p0), %s1683_s23  ;;  %s1800_s26 = smov (!%p1135_p0), %s1524_s8 }
 0x11c   : > { %971 = sbr.rel (%p1135_p0) target bundleno = 312 (0x138), region = 112  ;;  %s1695_s27 = smov (!%p1135_p0), 0  }
 0x11d   : > { %s1697_s28 = smov (!%p1135_p0), 0  }
 0x121 LB: >> { %v739_v37 = vld [vmem:[%s1412_s26] sm:$0xf]  ;;  %v741_v29 = vld [vmem:[%s1412_s26 + $0x4] sm:$0xf]  ;;  %v743_v30 = vld [vmem:[%s1412_s26 + $0x8] sm:$0xf]  ;;  %s1420_s28 = sphi %s1697_s28, %s733_s28   ;;  %s1416_s27 = sphi %s1695_s27, %s1803_s27   ;;  %s1412_s26 = sphi %s1800_s26, %s1802_s26   ;;  %s1408_s11 = sphi %s1799_s11, %s1801_s11  }
 0x122   : >> { %740 = vst [vmem:[%s1408_s11] sm:$0xf] %v739_v37  ;;  %v745_v31 = vld [vmem:[%s1412_s26 + $0xc] sm:$0xf]  ;;  %v747_v32 = vld [vmem:[%s1412_s26 + $0x10] sm:$0xf]  ;;  %s783_s29 = sadd.s32 1, %s1416_s27 }
 0x123   : >> { %742 = vst [vmem:[%s1408_s11 + $0x4] sm:$0xf] %v741_v29  ;;  %v749_v33 = vld [vmem:[%s1412_s26 + $0x14] sm:$0xf]  ;;  %v751_v34 = vld [vmem:[%s1412_s26 + $0x18] sm:$0xf]  ;;  %p784_p1 = scmp.ge.s32.totalorder %s783_s29, %s1686_s20 }
 0x124   : >> { %744 = vst [vmem:[%s1408_s11 + $0x8] sm:$0xf] %v743_v30  ;;  %v753_v35 = vld [vmem:[%s1412_s26 + $0x1c] sm:$0xf]  ;;  %v755_v36 = vld [vmem:[%s1412_s26 + $0x20] sm:$0xf] }
 0x125   : >> { %746 = vst [vmem:[%s1408_s11 + $0xc] sm:$0xf] %v745_v31  ;;  %v757_v38 = vld [vmem:[%s1412_s26 + $0x24] sm:$0xf]  ;;  %v759_v39 = vld [vmem:[%s1412_s26 + $0x28] sm:$0xf] }
 0x126   : >> { %748 = vst [vmem:[%s1408_s11 + $0x10] sm:$0xf] %v747_v32  ;;  %v761_v40 = vld [vmem:[%s1412_s26 + $0x2c] sm:$0xf]  ;;  %v763_v41 = vld [vmem:[%s1412_s26 + $0x30] sm:$0xf] }
 0x127   : >> { %750 = vst [vmem:[%s1408_s11 + $0x14] sm:$0xf] %v749_v33  ;;  %s1819_s29 = smov (%p784_p1, %s783_s29), 0  ;;  %v765_v42 = vld [vmem:[%s1412_s26 + $0x34] sm:$0xf]  ;;  %s733_s28 = sadd.s32 1, %s1420_s28  }
 0x128   : >> { %752 = vst [vmem:[%s1408_s11 + $0x18] sm:$0xf] %v751_v34  ;;  %v767_v43 = vld [vmem:[%s1412_s26 + $0x38] sm:$0xf]  ;;  %s786_s30 = smul.u32 88, %s1819_s29  ;;  %p732_p2 = scmp.ge.s32.totalorder %s733_s28, %s1686_s20 }
 0x129   : >> { %754 = vst [vmem:[%s1408_s11 + $0x1c] sm:$0xf] %v753_v35  ;;  %v769_v44 = vld [vmem:[%s1412_s26 + $0x3c] sm:$0xf]  ;;  %v771_v45 = vld [vmem:[%s1412_s26 + $0x40] sm:$0xf]  ;;  %s1803_s27 = smov %s1819_s29 }
 0x12a   : >> { %756 = vst [vmem:[%s1408_s11 + $0x20] sm:$0xf] %v755_v36  ;;  %s788_s3 = scalar_lea.vmem %s1524_s8, %s786_s30 [#allocation3]   ;;  %s789_s4 = scalar_lea.vmem %s1683_s23, %s786_s30   ;;  %v773_v46 = vld [vmem:[%s1412_s26 + $0x44] sm:$0xf]  ;;  %v775_v47 = vld [vmem:[%s1412_s26 + $0x48] sm:$0xf] }
 0x12b   : >> { %758 = vst [vmem:[%s1408_s11 + $0x24] sm:$0xf] %v757_v38  ;;  %v777_v48 = vld [vmem:[%s1412_s26 + $0x4c] sm:$0xf]  ;;  %v779_v49 = vld [vmem:[%s1412_s26 + $0x50] sm:$0xf] }
 0x12c   : >> { %760 = vst [vmem:[%s1408_s11 + $0x28] sm:$0xf] %v759_v39  ;;  %v781_v50 = vld [vmem:[%s1412_s26 + $0x54] sm:$0xf]  ;;  %s1802_s26 = smov %s788_s3 }
 0x12d   : >> { %762 = vst [vmem:[%s1408_s11 + $0x2c] sm:$0xf] %v761_v40 }
 0x12e   : >> { %764 = vst [vmem:[%s1408_s11 + $0x30] sm:$0xf] %v763_v41 }
 0x12f   : >> { %766 = vst [vmem:[%s1408_s11 + $0x34] sm:$0xf] %v765_v42 }
 0x130   : >> { %768 = vst [vmem:[%s1408_s11 + $0x38] sm:$0xf] %v767_v43 }
 0x131   : >> { %770 = vst [vmem:[%s1408_s11 + $0x3c] sm:$0xf] %v769_v44 }
 0x132   : >> { %772 = vst [vmem:[%s1408_s11 + $0x40] sm:$0xf] %v771_v45 }
 0x133   : >> { %774 = vst [vmem:[%s1408_s11 + $0x44] sm:$0xf] %v773_v46  ;;  %735 = sbr.rel (!%p732_p2) target bundleno = 289 (0x121), region = 118 }
 0x134   : >> { %776 = vst [vmem:[%s1408_s11 + $0x48] sm:$0xf] %v775_v47 }
 0x135   : >> { %778 = vst [vmem:[%s1408_s11 + $0x4c] sm:$0xf] %v777_v48 }
 0x136   : >> { %780 = vst [vmem:[%s1408_s11 + $0x50] sm:$0xf] %v779_v49 }
 0x137   : >> { %782 = vst [vmem:[%s1408_s11 + $0x54] sm:$0xf] %v781_v50  ;;  %s1801_s11 = smov %s789_s4 }
 0x138 PF: > { %1315 = sdivrem.u32 %s1817_s7, 22 }
 0x139   : > { %s1136_s5 = smul.u32 88, %s1686_s20 }
 0x13b   : > { %s1769_s6 = scalar_lea.vmem %s1524_s8, %s1136_s5 [#allocation3]   ;;  %s796_s9 = scalar_lea.vmem %s1683_s23, %s1136_s5  }
 0x141   : > { %s1316_s12 = spop.drf %1315 }
 0x142   : > { %s1317_s18 = spop.drf %1315 }
 0x143   : > { %p1138_p3 = scmp.le.s32.totalorder %s1317_s18, 0 }
 0x144   : > { %s1422_s19 = smov (!%p1138_p3), %s796_s9   ;;  %s1426_s21 = smov (!%p1138_p3), %s1769_s6  }
 0x145   : > { %985 = sbr.rel (%p1138_p3) target bundleno = 338 (0x152), region = 123  ;;  %s1430_s22 = smov (!%p1138_p3), 0  }
 0x146   : > { %s1434_s25 = smov (!%p1138_p3), 0  }
 0x14a LB: >> { %v806_v51 = vld [vmem:[%s1428_s21] sm:$0xf]  ;;  %s808_s8 = sadd.s32 1, %s1432_s22  ;;  %s800_s25 = sadd.s32 1, %s1436_s25   ;;  %s1436_s25 = sphi %s1434_s25, %s800_s25   ;;  %s1432_s22 = sphi %s1430_s22, %s1431_s22   ;;  %s1428_s21 = sphi %s1426_s21, %s813_s21   ;;  %s1424_s19 = sphi %s1422_s19, %s814_s19  }
 0x14b   : >> { %807 = vst [vmem:[%s1424_s19] sm:$0xf] %v806_v51  ;;  %p809_p4 = scmp.ge.s32.totalorder %s808_s8, %s1317_s18  ;;  %p799_p5 = scmp.ge.s32.totalorder %s800_s25, %s1317_s18 }
 0x14d   : >> { %s1821_s8 = smov (%p809_p4, %s808_s8), 0  ;;  %802 = sbr.rel (!%p799_p5) target bundleno = 330 (0x14a), region = 129 }
 0x14e   : >> { %s1139_s7 = sshll.u32 %s1821_s8, 2  ;;  %s1431_s22 = smov %s1821_s8  }
 0x14f   : >> { %s813_s21 = scalar_lea.vmem %s1769_s6, %s1139_s7 [#allocation3]   ;;  %s814_s19 = scalar_lea.vmem %s796_s9, %s1139_s7  }
 0x152 PF: > { %s12_s15 = sadd.s32 1, %s1404_s15   ;;  %s1804_s9 = smov %s1384_s10 }
 0x153   : > { %p9_p6 = scmp.ge.s32.totalorder %s12_s15, 10   ;;  %s1805_s10 = smov %s1510_s24 }
 0x154   : > { %s1806_s11 = smov %s1396_s13  ;;  %s1807_s12 = smov %s1400_s14 }
 0x155   : > { %s1808_s13 = smov %s1811_s16  ;;  %s1809_s14 = smov %s1815_s17 }
 0x156   :  { %11 = sbr.rel (!%p9_p6) target bundleno = 4 (0x4), region = 140 }

// kernel: all_conv_plif_snn_forward.10
= control target key start
LH: loop header
LB: loop body
LE: loop exit
PB: predicated region body
PF: predicated region fallthrough
CT: control target
= control target key end

     0   :  { %s874_s9 = smov 0   ;;  %s876_s10 = smov 0   ;;  %s1018_s0 = inlined_call_operand.vmem [shape: bf16[4,72,256], index: 0, kind: input, shape index: {}]   ;;  %s1019_s1 = inlined_call_operand.vmem [shape: bf16[256,128], index: 1, kind: input, shape index: {}]   ;;  %s1020_s2 = inlined_call_operand.vmem [shape: bf16[4,72,32], index: 2, kind: output, shape index: {}]  }
   0x1   :  { %s878_s11 = smov 0  }
   0x2 LB: > { %s21_s12 = sadd.s32 1, %s851_s10  ;;  %p654_p0 = scmp.ge.s32.totalorder %s855_s11, 1  ;;  %s855_s11 = sphi %s878_s11, %s12_s11   ;;  %s851_s10 = sphi %s876_s10, %s1022_s10   ;;  %s847_s9 = sphi %s874_s9, %s1021_s9  }
   0x3   : > { %p22_p1 = scmp.ge.s32.totalorder %s21_s12, 4  ;;  %p134_p2 = scmp.lt.s32.totalorder %s855_s11, 5 }
   0x5   : > { %s1024_s12 = smov (%p22_p1, %s21_s12), 0  ;;  %p135_p3 = pnand %p654_p0, %p134_p2 }
   0x6   : > { %p166_p4 = scmp.lt.s32.totalorder (!%p135_p3), %s847_s9, 3  ;;  %p657_p5 = scmp.ne.s32.totalorder (!%p135_p3), %s847_s9, 0 }
   0x7   : > { %138 = sbr.rel (%p135_p3) target bundleno = 242 (0xf2), region = 28 }
   0xc   : > { %s167_s13 = scalar_select %p166_p4, %s847_s9, 3 }
   0xd   : > { %189 = sbr.rel (%p657_p5) target bundleno = 28 (0x1c), region = 32 }
   0xe   : > { %s805_s14 = smul.u32 72, %s167_s13 }
   0xf   : > { %s806_s15 = smul.u32 36, %s167_s13 }
  0x10   : > { %s895_s18 = scalar_lea.vmem %s1018_s0, %s805_s14 }
  0x11   : > { %s900_s21 = scalar_lea.vmem %s1020_s2, %s806_s15 }
  0x12   : > { %vm190_vm0 = vcmask 261120   ;;  %v857_v0 = vmov 0.0  }
  0x13   : > { %191 = vst.msk [vmem:[#allocation2] sm:$0xff] %vm190_vm0, %v857_v0 }
  0x14   : > { %192 = vst.msk [vmem:[#allocation2 + $0x8] sm:$0xff] %vm190_vm0, %v857_v0 }
  0x15   : > { %193 = vst.msk [vmem:[#allocation2 + $0x10] sm:$0xff] %vm190_vm0, %v857_v0 }
  0x16   : > { %194 = vst.msk [vmem:[#allocation2 + $0x18] sm:$0xff] %vm190_vm0, %v857_v0 }
  0x17   : > { %195 = vst.msk [vmem:[#allocation2 + $0x20] sm:$0xff] %vm190_vm0, %v857_v0 }
  0x18   : > { %196 = vst.msk [vmem:[#allocation2 + $0x28] sm:$0xff] %vm190_vm0, %v857_v0 }
  0x19   : > { %197 = vst.msk [vmem:[#allocation2 + $0x30] sm:$0xff] %vm190_vm0, %v857_v0 }
  0x1a   : > { %198 = vst.msk [vmem:[#allocation2 + $0x38] sm:$0xff] %vm190_vm0, %v857_v0 }
  0x1b   : > { %199 = vst.msk [vmem:[#allocation2 + $0x40] sm:$0xff] %vm190_vm0, %v857_v0 }
  0x1c PF: > { %v780_v1 = vld [vmem:[%s1019_s1 + $0x38] sm:$0xff]  ;;  %v779_v3 = vld [vmem:[%s1019_s1 + $0x30] sm:$0xff]  ;;  %v778_v5 = vld [vmem:[%s1019_s1 + $0x28] sm:$0xff]  ;;  %v858_v59 = vmov 0.0   ;;  %vm522_vm2 = vcmask 257024   ;;  %vm550_vm3 = vcmask 261120  }
  0x1d   : > { %v788_v2 = vld [vmem:[%s1019_s1 + $0x78] sm:$0xff]  ;;  %384 = vmatpush.bf16.msra.mxu0 %v780_v1  ;;  %789 = vmatpush.bf16.msra.mxu2 %v780_v1  ;;  %v787_v4 = vld [vmem:[%s1019_s1 + $0x70] sm:$0xff]  ;;  %v786_v6 = vld [vmem:[%s1019_s1 + $0x68] sm:$0xff] }
  0x1e   : > { %417 = vmatpush.bf16.msra.mxu1 %v788_v2  ;;  %797 = vmatpush.bf16.msra.mxu3 %v788_v2  ;;  %v777_v7 = vld [vmem:[%s1019_s1 + $0x20] sm:$0xff]  ;;  %v776_v9 = vld [vmem:[%s1019_s1 + $0x18] sm:$0xff]  ;;  %v775_v11 = vld [vmem:[%s1019_s1 + $0x10] sm:$0xff] }
  0x1f   : > { %v785_v8 = vld [vmem:[%s1019_s1 + $0x60] sm:$0xff]  ;;  %v784_v10 = vld [vmem:[%s1019_s1 + $0x58] sm:$0xff]  ;;  %v783_v12 = vld [vmem:[%s1019_s1 + $0x50] sm:$0xff] }
  0x20   : > { %v774_v13 = vld [vmem:[%s1019_s1 + $0x8] sm:$0xff]  ;;  %v773_v15 = vld [vmem:[%s1019_s1] sm:$0xff]  ;;  %v771_v23 = vld [vmem:[%s895_s18 + $0x34] sm:$0xf] }
  0x21   : > { %385 = vmatpush.bf16.msra.mxu0 %v779_v3  ;;  %790 = vmatpush.bf16.msra.mxu2 %v779_v3  ;;  %v782_v14 = vld [vmem:[%s1019_s1 + $0x48] sm:$0xff]  ;;  %v781_v16 = vld [vmem:[%s1019_s1 + $0x40] sm:$0xff]  ;;  %v686_v24 = vld [vmem:[%s895_s18 + $0x38] sm:$0xf0] }
  0x22   : > { %418 = vmatpush.bf16.msra.mxu1 %v787_v4  ;;  %798 = vmatpush.bf16.msra.mxu3 %v787_v4  ;;  %v660_v17 = vld [vmem:[%s895_s18] sm:$0xf]  ;;  %v766_v18 = vld [vmem:[%s895_s18 + $0x4] sm:$0xf0]  ;;  %v765_v21 = vld [vmem:[%s895_s18 + $0x4] sm:$0xf]  ;;  %v689_v28 = vor.u32 %v771_v23, %v686_v24 }
  0x23   : > { %v676_v19 = vld [vmem:[%s895_s18 + $0x20] sm:$0xf]  ;;  %v770_v20 = vld [vmem:[%s895_s18 + $0x24] sm:$0xf0]  ;;  %v662_v22 = vld [vmem:[%s895_s18 + $0x8] sm:$0xf0]  ;;  %v661_v25 = vor.u32 %v766_v18, %v660_v17 }
  0x24   : > { %v677_v26 = vor.u32 %v770_v20, %v676_v19  ;;  %v665_v27 = vor.u32 %v765_v21, %v662_v22  ;;  %v208_v29 = vld [vmem:[%s895_s18 + $0x40] sm:$0xff]  ;;  %v668_v30 = vld [vmem:[%s895_s18 + $0x10] sm:$0xf]  ;;  %v768_v31 = vld [vmem:[%s895_s18 + $0x14] sm:$0xf0] }
  0x25   : > { %386 = vmatpush.bf16.msra.mxu0 %v778_v5  ;;  %791 = vmatpush.bf16.msra.mxu2 %v778_v5  ;;  %v684_v32 = vld [vmem:[%s895_s18 + $0x30] sm:$0xf]  ;;  %v772_v33 = vld [vmem:[%s895_s18 + $0x34] sm:$0xf0]  ;;  %v267_v34 = vunpack.c.h.b16 %v208_v29  ;;  %v767_v35 = vld [vmem:[%s895_s18 + $0x14] sm:$0xf]  ;;  %v669_v37 = vor.u32 %v768_v31, %v668_v30  ;;  %v266_v41 = vunpack.c.l.b16 %v208_v29 }
  0x26   : > { %419 = vmatpush.bf16.msra.mxu1 %v786_v6  ;;  %799 = vmatpush.bf16.msra.mxu3 %v786_v6  ;;  %v670_v36 = vld [vmem:[%s895_s18 + $0x18] sm:$0xf0]  ;;  %v685_v38 = vor.u32 %v772_v33, %v684_v32  ;;  %v769_v42 = vld [vmem:[%s895_s18 + $0x24] sm:$0xf]  ;;  %v678_v43 = vld [vmem:[%s895_s18 + $0x28] sm:$0xf0] }
  0x27   : > { %v673_v39 = vor.u32 %v767_v35, %v670_v36  ;;  %v277_v40 = vpack.c.b16 %v267_v34, %v267_v34  ;;  %v276_v44 = vpack.c.b16 %v266_v41, %v266_v41  ;;  %v681_v45 = vor.u32 %v769_v42, %v678_v43  ;;  %v450_v48 = vld [vmem:[#allocation2] sm:$0xff]  ;;  %v451_v57 = vld [vmem:[#allocation2 + $0x8] sm:$0xff]  ;;  %v453_v23 = vld [vmem:[#allocation2 + $0x18] sm:$0xff] }
  0x28   : > { %v457_v34 = vld [vmem:[#allocation2 + $0x38] sm:$0xff]  ;;  %v454_v43 = vld [vmem:[#allocation2 + $0x20] sm:$0xff] }
  0x29   : > { %387 = vmatpush.bf16.msra.mxu0 %v777_v7  ;;  %792 = vmatpush.bf16.msra.mxu2 %v777_v7  ;;  %v452_v7 = vld [vmem:[#allocation2 + $0x10] sm:$0xff] }
  0x2a   : > { %420 = vmatpush.bf16.msra.mxu1 %v785_v8  ;;  %800 = vmatpush.bf16.msra.mxu3 %v785_v8 }
  0x2d   : > { %388 = vmatpush.bf16.msra.mxu0 %v776_v9  ;;  %793 = vmatpush.bf16.msra.mxu2 %v776_v9 }
  0x2e   : > { %421 = vmatpush.bf16.msra.mxu1 %v784_v10  ;;  %801 = vmatpush.bf16.msra.mxu3 %v784_v10 }
  0x31   : > { %389 = vmatpush.bf16.msra.mxu0 %v775_v11  ;;  %794 = vmatpush.bf16.msra.mxu2 %v775_v11 }
  0x32   : > { %422 = vmatpush.bf16.msra.mxu1 %v783_v12  ;;  %802 = vmatpush.bf16.msra.mxu3 %v783_v12 }
  0x35   : > { %390 = vmatpush.bf16.msra.mxu0 %v774_v13  ;;  %795 = vmatpush.bf16.msra.mxu2 %v774_v13 }
  0x36   : > { %423 = vmatpush.bf16.msra.mxu1 %v782_v14  ;;  %803 = vmatpush.bf16.msra.mxu3 %v782_v14 }
  0x39   : > { %391 = vmatpush.bf16.msra.mxu0 %v773_v15  ;;  %796 = vmatpush.bf16.msra.mxu2 %v773_v15 }
  0x3a   : > { %424 = vmatpush.bf16.msra.mxu1 %v781_v16  ;;  %804 = vmatpush.bf16.msra.mxu3 %v781_v16  ;;  %v456_v16 = vld [vmem:[#allocation2 + $0x30] sm:$0xff] }
  0x3c   : > { %392 = vmatmul.bf16.vlgmr.msra.gmra.mxu0 %v661_v25  ;;  %402 = vmatmul.bf16.vlgmr.msra.gmra.mxu2 %v677_v26 }
  0x3d   : > { %425 = vmatmul.bf16.vlgmr.msra.gmra.mxu1 %v665_v27  ;;  %440 = vmatmul.bf16.vlgmr.msra.gmra.mxu3 %v689_v28 }
  0x4c   : > { %397 = vmatmul.bf16.gmra.mxu0 %v669_v37  ;;  %407 = vmatmul.bf16.gmra.mxu2 %v685_v38 }
  0x4d   : > { %430 = vmatmul.bf16.gmra.mxu1 %v673_v39  ;;  %445 = vmatmul.bf16.gmra.mxu3 %v277_v40 }
  0x5c   : > { %412 = vmatmul.bf16.gmra.mxu2 %v276_v44 }
  0x5d   : > { %435 = vmatmul.bf16.gmra.mxu1 %v681_v45 }
  0xb9   : > { %v393_v46 = vpop.f32.mrf.mxu0 }
  0xba   : > { %v426_v47 = vpop.f32.mrf.mxu1 }
  0xbb   : > { %v427_v49 = vadd.f32 %v426_v47, %v393_v46 }
  0xbd   : > { %v459_v50 = vsub.f32 %v427_v49, %v450_v48 }
  0xbf   : > { %v468_v51 = vmul.f32 0.5, %v459_v50  ;;  %v967_v52 = vpop.f32.mrf.mxu2 }
  0xc0   : > { %v441_v53 = vpop.f32.mrf.mxu3 }
  0xc1   : > { %v477_v54 = vadd.f32 %v468_v51, %v450_v48  ;;  %v395_v55 = vpop.f32.mrf.mxu0 }
  0xc2   : > { %v428_v56 = vpop.f32.mrf.mxu1 }
  0xc3   : > { %vm486_vm1 = vcmp.ge.f32.partialorder %v477_v54, 1.0  ;;  %v429_v58 = vadd.f32 %v428_v56, %v395_v55  ;;  %v458_v56 = vld [vmem:[#allocation2 + $0x40] sm:$0xff] }
  0xc4   : > { %v754_v60 = vsel %vm486_vm1, 1.0, %v858_v59 }
  0xc5   : > { %v513_v61 = vpack.c.bf16 %v754_v60, %v754_v60  ;;  %v532_v62 = vsub.f32 1.0, %v754_v60  ;;  %v460_v63 = vsub.f32 %v429_v58, %v451_v57 }
  0xc7   : > { %523 = vst.msk [vmem:[%s900_s21] sm:$0xf] %vm522_vm2, %v513_v61  ;;  %v541_v0 = vmul.f32 %v532_v62, %v477_v54  ;;  %v469_v1 = vmul.f32 0.5, %v460_v63  ;;  %v972_v2 = vpop.f32.mrf.mxu2 }
  0xc8   : > { %v443_v3 = vpop.f32.mrf.mxu3 }
  0xc9   : > { %551 = vst.msk [vmem:[#allocation2] sm:$0xff] %vm550_vm3, %v541_v0  ;;  %v478_v4 = vadd.f32 %v469_v1, %v451_v57  ;;  %v398_v5 = vpop.f32.mrf.mxu0  ;;  %v455_v0 = vld [vmem:[#allocation2 + $0x28] sm:$0xff] }
  0xca   : > { %v431_v6 = vpop.f32.mrf.mxu1 }
  0xcb   : > { %vm487_vm4 = vcmp.ge.f32.partialorder %v478_v4, 1.0  ;;  %v432_v8 = vadd.f32 %v431_v6, %v398_v5 }
  0xcc   : > { %v755_v9 = vsel %vm487_vm4, 1.0, %v858_v59 }
  0xcd   : > { %v514_v10 = vpack.c.bf16 %v755_v9, %v755_v9  ;;  %v533_v11 = vsub.f32 1.0, %v755_v9  ;;  %v461_v12 = vsub.f32 %v432_v8, %v452_v7 }
  0xcf   : > { %524 = vst.msk [vmem:[%s900_s21 + $0x4] sm:$0xf] %vm522_vm2, %v514_v10  ;;  %v542_v13 = vmul.f32 %v533_v11, %v478_v4  ;;  %v470_v14 = vmul.f32 0.5, %v461_v12  ;;  %v408_v15 = vpop.f32.mrf.mxu2 }
  0xd0   : > { %v442_v17 = vadd.f32 %v441_v53, %v408_v15  ;;  %v446_v18 = vpop.f32.mrf.mxu3 }
  0xd1   : > { %552 = vst.msk [vmem:[#allocation2 + $0x8] sm:$0xff] %vm550_vm3, %v542_v13  ;;  %v479_v19 = vadd.f32 %v470_v14, %v452_v7  ;;  %v400_v20 = vpop.f32.mrf.mxu0 }
  0xd2   : > { %v465_v21 = vsub.f32 %v442_v17, %v456_v16  ;;  %v433_v22 = vpop.f32.mrf.mxu1 }
  0xd3   : > { %vm488_vm5 = vcmp.ge.f32.partialorder %v479_v19, 1.0  ;;  %v434_v24 = vadd.f32 %v433_v22, %v400_v20 }
  0xd4   : > { %v756_v25 = vsel %vm488_vm5, 1.0, %v858_v59  ;;  %v474_v26 = vmul.f32 0.5, %v465_v21 }
  0xd5   : > { %v515_v27 = vpack.c.bf16 %v756_v25, %v756_v25  ;;  %v534_v28 = vsub.f32 1.0, %v756_v25  ;;  %v462_v29 = vsub.f32 %v434_v24, %v453_v23 }
  0xd6   : > { %v483_v30 = vadd.f32 %v474_v26, %v456_v16 }
  0xd7   : > { %525 = vst.msk [vmem:[%s900_s21 + $0x8] sm:$0xf] %vm522_vm2, %v515_v27  ;;  %v543_v31 = vmul.f32 %v534_v28, %v479_v19  ;;  %v471_v32 = vmul.f32 0.5, %v462_v29  ;;  %v410_v33 = vpop.f32.mrf.mxu2 }
  0xd8   : > { %vm492_vm6 = vcmp.ge.f32.partialorder %v483_v30, 1.0  ;;  %v444_v35 = vadd.f32 %v443_v3, %v410_v33  ;;  %v448_v36 = vpop.f32.mrf.mxu3 }
  0xd9   : > { %553 = vst.msk [vmem:[#allocation2 + $0x10] sm:$0xff] %vm550_vm3, %v543_v31  ;;  %v760_v37 = vsel %vm492_vm6, 1.0, %v858_v59  ;;  %v480_v38 = vadd.f32 %v471_v32, %v453_v23 }
  0xda   : > { %v519_v39 = vpack.c.bf16 %v760_v37, %v760_v37  ;;  %v538_v40 = vsub.f32 1.0, %v760_v37  ;;  %v466_v41 = vsub.f32 %v444_v35, %v457_v34  ;;  %v436_v42 = vpop.f32.mrf.mxu1 }
  0xdb   : > { %vm489_vm7 = vcmp.ge.f32.partialorder %v480_v38, 1.0  ;;  %v437_v44 = vadd.f32 %v436_v42, %v967_v52 }
  0xdc   : > { %529 = vst.msk [vmem:[%s900_s21 + $0x18] sm:$0xf] %vm522_vm2, %v519_v39  ;;  %v547_v45 = vmul.f32 %v538_v40, %v483_v30  ;;  %v757_v46 = vsel %vm489_vm7, 1.0, %v858_v59  ;;  %v475_v47 = vmul.f32 0.5, %v466_v41 }
  0xdd   : > { %v516_v48 = vpack.c.bf16 %v757_v46, %v757_v46  ;;  %v535_v49 = vsub.f32 1.0, %v757_v46  ;;  %v463_v50 = vsub.f32 %v437_v44, %v454_v43 }
  0xde   : > { %557 = vst.msk [vmem:[#allocation2 + $0x30] sm:$0xff] %vm550_vm3, %v547_v45  ;;  %v484_v51 = vadd.f32 %v475_v47, %v457_v34 }
  0xdf   : > { %526 = vst.msk [vmem:[%s900_s21 + $0xc] sm:$0xf] %vm522_vm2, %v516_v48  ;;  %v544_v53 = vmul.f32 %v535_v49, %v480_v38  ;;  %v472_v54 = vmul.f32 0.5, %v463_v50  ;;  %v413_v55 = vpop.f32.mrf.mxu2 }
  0xe0   : > { %vm493_vm8 = vcmp.ge.f32.partialorder %v484_v51, 1.0  ;;  %v447_v52 = vadd.f32 %v446_v18, %v413_v55 }
  0xe1   : > { %554 = vst.msk [vmem:[#allocation2 + $0x18] sm:$0xff] %vm550_vm3, %v544_v53  ;;  %v761_v57 = vsel %vm493_vm8, 1.0, %v858_v59  ;;  %v481_v58 = vadd.f32 %v472_v54, %v454_v43 }
  0xe2   : > { %v520_v60 = vpack.c.bf16 %v761_v57, %v761_v57  ;;  %v539_v61 = vsub.f32 1.0, %v761_v57  ;;  %v467_v62 = vsub.f32 %v447_v52, %v458_v56  ;;  %v438_v63 = vpop.f32.mrf.mxu1 }
  0xe3   : > { %vm490_vm9 = vcmp.ge.f32.partialorder %v481_v58, 1.0  ;;  %v439_v1 = vadd.f32 %v438_v63, %v972_v2 }
  0xe4   : > { %530 = vst.msk [vmem:[%s900_s21 + $0x1c] sm:$0xf] %vm522_vm2, %v520_v60  ;;  %v548_v3 = vmul.f32 %v539_v61, %v484_v51  ;;  %v758_v4 = vsel %vm490_vm9, 1.0, %v858_v59  ;;  %v476_v5 = vmul.f32 0.5, %v467_v62 }
  0xe5   : > { %v517_v6 = vpack.c.bf16 %v758_v4, %v758_v4  ;;  %v536_v7 = vsub.f32 1.0, %v758_v4  ;;  %v464_v8 = vsub.f32 %v439_v1, %v455_v0 }
  0xe6   : > { %558 = vst.msk [vmem:[#allocation2 + $0x38] sm:$0xff] %vm550_vm3, %v548_v3  ;;  %v485_v9 = vadd.f32 %v476_v5, %v458_v56 }
  0xe7   : > { %527 = vst.msk [vmem:[%s900_s21 + $0x10] sm:$0xf] %vm522_vm2, %v517_v6  ;;  %v545_v10 = vmul.f32 %v536_v7, %v481_v58  ;;  %v473_v11 = vmul.f32 0.5, %v464_v8  ;;  %v415_v12 = vpop.f32.mrf.mxu2 }
  0xe8   : > { %vm494_vm10 = vcmp.ge.f32.partialorder %v485_v9, 1.0 }
  0xe9   : > { %555 = vst.msk [vmem:[#allocation2 + $0x20] sm:$0xff] %vm550_vm3, %v545_v10  ;;  %v762_v2 = vsel %vm494_vm10, 1.0, %v858_v59  ;;  %v482_v13 = vadd.f32 %v473_v11, %v455_v0 }
  0xea   : > { %v521_v14 = vpack.c.bf16 %v762_v2, %v762_v2  ;;  %v540_v15 = vsub.f32 1.0, %v762_v2 }
  0xeb   : > { %vm491_vm11 = vcmp.ge.f32.partialorder %v482_v13, 1.0 }
  0xec   : > { %531 = vst.msk [vmem:[%s900_s21 + $0x20] sm:$0xf] %vm522_vm2, %v521_v14  ;;  %v549_v16 = vmul.f32 %v540_v15, %v485_v9  ;;  %v759_v17 = vsel %vm491_vm11, 1.0, %v858_v59 }
  0xed   : > { %v518_v18 = vpack.c.bf16 %v759_v17, %v759_v17  ;;  %v537_v19 = vsub.f32 1.0, %v759_v17 }
  0xee   : > { %559 = vst.msk [vmem:[#allocation2 + $0x40] sm:$0xff] %vm550_vm3, %v549_v16 }
  0xef   : > { %528 = vst.msk [vmem:[%s900_s21 + $0x14] sm:$0xf] %vm522_vm2, %v518_v18  ;;  %v546_v20 = vmul.f32 %v537_v19, %v482_v13 }
  0xf1   : > { %556 = vst.msk [vmem:[#allocation2 + $0x28] sm:$0xff] %vm550_vm3, %v546_v20 }
  0xf2 PF: > { %s12_s11 = sadd.s32 1, %s855_s11   ;;  %s1021_s9 = smov %s851_s10 }
  0xf3   : > { %p9_p6 = scmp.ge.s32.totalorder %s12_s11, 6   ;;  %s1022_s10 = smov %s1024_s12 }
  0xf5   :  { %11 = sbr.rel (!%p9_p6) target bundleno = 2 (0x2), region = 62 }

// kernel: all_conv_plif_snn_forward.11
= control target key start
LH: loop header
LB: loop body
LE: loop exit
PB: predicated region body
PF: predicated region fallthrough
CT: control target
= control target key end

     0   :  { %s1068_s9 = smov 0   ;;  %s1070_s10 = smov 0   ;;  %s1239_s0 = inlined_call_operand.vmem [shape: bf16[4,72,384], index: 0, kind: input, shape index: {}]   ;;  %s1240_s1 = inlined_call_operand.vmem [shape: bf16[384,128], index: 1, kind: input, shape index: {}]   ;;  %s1241_s2 = inlined_call_operand.vmem [shape: bf16[4,72,32], index: 2, kind: output, shape index: {}]  }
   0x1   :  { %s1072_s11 = smov 0  }
   0x2 LB: > { %s21_s12 = sadd.s32 1, %s1045_s10  ;;  %p788_p0 = scmp.ge.s32.totalorder %s1049_s11, 1  ;;  %s1049_s11 = sphi %s1072_s11, %s12_s11   ;;  %s1045_s10 = sphi %s1070_s10, %s1243_s10   ;;  %s1041_s9 = sphi %s1068_s9, %s1242_s9  }
   0x3   : > { %p22_p1 = scmp.ge.s32.totalorder %s21_s12, 4  ;;  %p134_p2 = scmp.lt.s32.totalorder %s1049_s11, 5 }
   0x5   : > { %s1245_s12 = smov (%p22_p1, %s21_s12), 0  ;;  %p135_p3 = pnand %p788_p0, %p134_p2 }
   0x6   : > { %p166_p4 = scmp.lt.s32.totalorder (!%p135_p3), %s1041_s9, 3  ;;  %p791_p5 = scmp.ne.s32.totalorder (!%p135_p3), %s1041_s9, 0 }
   0x7   : > { %138 = sbr.rel (%p135_p3) target bundleno = 272 (0x110), region = 28 }
   0xc   : > { %s167_s13 = scalar_select %p166_p4, %s1041_s9, 3 }
   0xd   : > { %189 = sbr.rel (%p791_p5) target bundleno = 28 (0x1c), region = 32 }
   0xe   : > { %s999_s14 = smul.u32 108, %s167_s13 }
   0xf   : > { %s1000_s15 = smul.u32 36, %s167_s13 }
  0x10   : > { %s1089_s18 = scalar_lea.vmem %s1239_s0, %s999_s14 }
  0x11   : > { %s1094_s21 = scalar_lea.vmem %s1241_s2, %s1000_s15 }
  0x12   : > { %vm190_vm0 = vcmask 261120   ;;  %v1051_v0 = vmov 0.0  }
  0x13   : > { %191 = vst.msk [vmem:[#allocation2] sm:$0xff] %vm190_vm0, %v1051_v0 }
  0x14   : > { %192 = vst.msk [vmem:[#allocation2 + $0x8] sm:$0xff] %vm190_vm0, %v1051_v0 }
  0x15   : > { %193 = vst.msk [vmem:[#allocation2 + $0x10] sm:$0xff] %vm190_vm0, %v1051_v0 }
  0x16   : > { %194 = vst.msk [vmem:[#allocation2 + $0x18] sm:$0xff] %vm190_vm0, %v1051_v0 }
  0x17   : > { %195 = vst.msk [vmem:[#allocation2 + $0x20] sm:$0xff] %vm190_vm0, %v1051_v0 }
  0x18   : > { %196 = vst.msk [vmem:[#allocation2 + $0x28] sm:$0xff] %vm190_vm0, %v1051_v0 }
  0x19   : > { %197 = vst.msk [vmem:[#allocation2 + $0x30] sm:$0xff] %vm190_vm0, %v1051_v0 }
  0x1a   : > { %198 = vst.msk [vmem:[#allocation2 + $0x38] sm:$0xff] %vm190_vm0, %v1051_v0 }
  0x1b   : > { %199 = vst.msk [vmem:[#allocation2 + $0x40] sm:$0xff] %vm190_vm0, %v1051_v0 }
  0x1c PF: > { %v966_v1 = vld [vmem:[%s1240_s1 + $0x38] sm:$0xff]  ;;  %v965_v3 = vld [vmem:[%s1240_s1 + $0x30] sm:$0xff]  ;;  %v964_v7 = vld [vmem:[%s1240_s1 + $0x28] sm:$0xff]  ;;  %vm656_vm2 = vcmask 257024   ;;  %vm684_vm3 = vcmask 261120  }
  0x1d   : > { %v982_v2 = vld [vmem:[%s1240_s1 + $0xb8] sm:$0xff]  ;;  %485 = vmatpush.bf16.msra.mxu0 %v966_v1  ;;  %v981_v4 = vld [vmem:[%s1240_s1 + $0xb0] sm:$0xff]  ;;  %983 = vmatpush.bf16.msra.mxu3 %v966_v1  ;;  %v980_v8 = vld [vmem:[%s1240_s1 + $0xa8] sm:$0xff] }
  0x1e   : > { %551 = vmatpush.bf16.msra.mxu2 %v982_v2  ;;  %v974_v5 = vld [vmem:[%s1240_s1 + $0x78] sm:$0xff]  ;;  %v973_v6 = vld [vmem:[%s1240_s1 + $0x70] sm:$0xff]  ;;  %v972_v9 = vld [vmem:[%s1240_s1 + $0x68] sm:$0xff] }
  0x1f   : > { %991 = vmatpush.bf16.msra.mxu1 %v974_v5  ;;  %v963_v10 = vld [vmem:[%s1240_s1 + $0x20] sm:$0xff]  ;;  %v962_v13 = vld [vmem:[%s1240_s1 + $0x18] sm:$0xff]  ;;  %v961_v16 = vld [vmem:[%s1240_s1 + $0x10] sm:$0xff] }
  0x20   : > { %v979_v11 = vld [vmem:[%s1240_s1 + $0xa0] sm:$0xff]  ;;  %v978_v14 = vld [vmem:[%s1240_s1 + $0x98] sm:$0xff]  ;;  %v977_v17 = vld [vmem:[%s1240_s1 + $0x90] sm:$0xff] }
  0x21   : > { %486 = vmatpush.bf16.msra.mxu0 %v965_v3  ;;  %984 = vmatpush.bf16.msra.mxu3 %v965_v3  ;;  %v971_v12 = vld [vmem:[%s1240_s1 + $0x60] sm:$0xff]  ;;  %v970_v15 = vld [vmem:[%s1240_s1 + $0x58] sm:$0xff]  ;;  %v969_v18 = vld [vmem:[%s1240_s1 + $0x50] sm:$0xff] }
  0x22   : > { %552 = vmatpush.bf16.msra.mxu2 %v981_v4  ;;  %v960_v19 = vld [vmem:[%s1240_s1 + $0x8] sm:$0xff]  ;;  %v959_v22 = vld [vmem:[%s1240_s1] sm:$0xff]  ;;  %v949_v25 = vld [vmem:[%s1089_s18 + $0x10] sm:$0xf0] }
  0x23   : > { %992 = vmatpush.bf16.msra.mxu1 %v973_v6  ;;  %v976_v20 = vld [vmem:[%s1240_s1 + $0x88] sm:$0xff]  ;;  %v975_v23 = vld [vmem:[%s1240_s1 + $0x80] sm:$0xff]  ;;  %v806_v28 = vld [vmem:[%s1089_s18 + $0x18] sm:$0xf] }
  0x24   : > { %v968_v21 = vld [vmem:[%s1240_s1 + $0x48] sm:$0xff]  ;;  %v794_v26 = vld [vmem:[%s1089_s18] sm:$0xf]  ;;  %v951_v29 = vld [vmem:[%s1089_s18 + $0x20] sm:$0xf0] }
  0x25   : > { %487 = vmatpush.bf16.msra.mxu0 %v964_v7  ;;  %985 = vmatpush.bf16.msra.mxu3 %v964_v7  ;;  %v802_v24 = vld [vmem:[%s1089_s18 + $0x8] sm:$0xf]  ;;  %v948_v27 = vld [vmem:[%s1089_s18 + $0x8] sm:$0xf0]  ;;  %v967_v30 = vld [vmem:[%s1240_s1 + $0x40] sm:$0xff]  ;;  %v807_v35 = vor.u32 %v951_v29, %v806_v28 }
  0x26   : > { %553 = vmatpush.bf16.msra.mxu2 %v980_v8  ;;  %v950_v31 = vld [vmem:[%s1089_s18 + $0x1c] sm:$0xf]  ;;  %v808_v32 = vld [vmem:[%s1089_s18 + $0x24] sm:$0xf0]  ;;  %v803_v33 = vor.u32 %v949_v25, %v802_v24  ;;  %v795_v34 = vor.u32 %v948_v27, %v794_v26  ;;  %v814_v37 = vld [vmem:[%s1089_s18 + $0x20] sm:$0xf] }
  0x27   : > { %993 = vmatpush.bf16.msra.mxu1 %v972_v9  ;;  %v811_v36 = vor.u32 %v950_v31, %v808_v32  ;;  %v952_v38 = vld [vmem:[%s1089_s18 + $0x28] sm:$0xf0]  ;;  %v818_v39 = vld [vmem:[%s1089_s18 + $0x30] sm:$0xf]  ;;  %v954_v40 = vld [vmem:[%s1089_s18 + $0x38] sm:$0xf0] }
  0x28   : > { %v953_v41 = vld [vmem:[%s1089_s18 + $0x34] sm:$0xf]  ;;  %v820_v42 = vld [vmem:[%s1089_s18 + $0x3c] sm:$0xf0]  ;;  %v815_v43 = vor.u32 %v952_v38, %v814_v37  ;;  %v819_v44 = vor.u32 %v954_v40, %v818_v39  ;;  %v947_v46 = vld [vmem:[%s1089_s18 + $0x4] sm:$0xf] }
  0x29   : > { %488 = vmatpush.bf16.msra.mxu0 %v963_v10  ;;  %986 = vmatpush.bf16.msra.mxu3 %v963_v10  ;;  %v823_v45 = vor.u32 %v953_v41, %v820_v42  ;;  %v796_v47 = vld [vmem:[%s1089_s18 + $0xc] sm:$0xf0]  ;;  %v826_v49 = vld [vmem:[%s1089_s18 + $0x38] sm:$0xf]  ;;  %v955_v50 = vld [vmem:[%s1089_s18 + $0x40] sm:$0xf0] }
  0x2a   : > { %554 = vmatpush.bf16.msra.mxu2 %v979_v11  ;;  %v799_v48 = vor.u32 %v947_v46, %v796_v47  ;;  %v830_v51 = vld [vmem:[%s1089_s18 + $0x48] sm:$0xf]  ;;  %v957_v52 = vld [vmem:[%s1089_s18 + $0x50] sm:$0xf0]  ;;  %v956_v53 = vld [vmem:[%s1089_s18 + $0x4c] sm:$0xf]  ;;  %v827_v55 = vor.u32 %v955_v50, %v826_v49 }
  0x2b   : > { %994 = vmatpush.bf16.msra.mxu1 %v971_v12  ;;  %v832_v54 = vld [vmem:[%s1089_s18 + $0x54] sm:$0xf0]  ;;  %v831_v56 = vor.u32 %v957_v52, %v830_v51  ;;  %v216_v58 = vld [vmem:[%s1089_s18 + $0x60] sm:$0xff]  ;;  %v838_v59 = vld [vmem:[%s1089_s18 + $0x50] sm:$0xf]  ;;  %v1052_v31 = vmov 0.0  }
  0x2c   : > { %v835_v57 = vor.u32 %v956_v53, %v832_v54  ;;  %v958_v60 = vld [vmem:[%s1089_s18 + $0x58] sm:$0xf0]  ;;  %v308_v61 = vunpack.c.l.b16 %v216_v58  ;;  %v309_v62 = vunpack.c.h.b16 %v216_v58  ;;  %v217_v2 = vld [vmem:[%s1089_s18 + $0x68] sm:$0xf]  ;;  %v584_v28 = vld [vmem:[#allocation2] sm:$0xff] }
  0x2d   : > { %489 = vmatpush.bf16.msra.mxu0 %v962_v13  ;;  %987 = vmatpush.bf16.msra.mxu3 %v962_v13  ;;  %v839_v63 = vor.u32 %v958_v60, %v838_v59  ;;  %v310_v3 = vunpack.c.l.b16 %v217_v2  ;;  %v587_v27 = vld [vmem:[#allocation2 + $0x18] sm:$0xff]  ;;  %v585_v49 = vld [vmem:[#allocation2 + $0x8] sm:$0xff] }
  0x2e   : > { %555 = vmatpush.bf16.msra.mxu2 %v978_v14  ;;  %v323_v0 = vpack.c.b16 %v308_v61, %v308_v61  ;;  %v324_v1 = vpack.c.b16 %v309_v62, %v309_v62 }
  0x2f   : > { %995 = vmatpush.bf16.msra.mxu1 %v970_v15  ;;  %v325_v4 = vpack.c.b16 %v310_v3, %v310_v3 }
  0x31   : > { %490 = vmatpush.bf16.msra.mxu0 %v961_v16  ;;  %988 = vmatpush.bf16.msra.mxu3 %v961_v16  ;;  %v586_v16 = vld [vmem:[#allocation2 + $0x10] sm:$0xff] }
  0x32   : > { %556 = vmatpush.bf16.msra.mxu2 %v977_v17 }
  0x33   : > { %996 = vmatpush.bf16.msra.mxu1 %v969_v18 }
  0x35   : > { %491 = vmatpush.bf16.msra.mxu0 %v960_v19  ;;  %989 = vmatpush.bf16.msra.mxu3 %v960_v19 }
  0x36   : > { %557 = vmatpush.bf16.msra.mxu2 %v976_v20 }
  0x37   : > { %997 = vmatpush.bf16.msra.mxu1 %v968_v21 }
  0x39   : > { %492 = vmatpush.bf16.msra.mxu0 %v959_v22  ;;  %990 = vmatpush.bf16.msra.mxu3 %v959_v22 }
  0x3a   : > { %558 = vmatpush.bf16.msra.mxu2 %v975_v23 }
  0x3b   : > { %998 = vmatpush.bf16.msra.mxu1 %v967_v30 }
  0x3c   : > { %493 = vmatmul.bf16.vlgmr.msra.gmra.mxu0 %v795_v34  ;;  %498 = vmatmul.bf16.vlgmr.msra.gmra.mxu3 %v807_v35 }
  0x3d   : > { %518 = vmatpush.bf16.msrb.mxu0 %v974_v5  ;;  %559 = vmatmul.bf16.vlgmr.msra.gmra.mxu2 %v803_v33 }
  0x3e   : > { %531 = vmatmul.bf16.vlgmr.msra.gmra.mxu1 %v811_v36 }
  0x41   : > { %519 = vmatpush.bf16.msrb.mxu0 %v973_v6 }
  0x45   : > { %520 = vmatpush.bf16.msrb.mxu0 %v972_v9 }
  0x49   : > { %521 = vmatpush.bf16.msrb.mxu0 %v971_v12 }
  0x4c   : > { %503 = vmatmul.bf16.gmra.mxu3 %v819_v44 }
  0x4d   : > { %522 = vmatpush.bf16.msrb.mxu0 %v970_v15  ;;  %564 = vmatmul.bf16.gmra.mxu2 %v815_v43 }
  0x4e   : > { %536 = vmatmul.bf16.gmra.mxu1 %v823_v45 }
  0x51   : > { %523 = vmatpush.bf16.msrb.mxu0 %v969_v18 }
  0x55   : > { %524 = vmatpush.bf16.msrb.mxu0 %v968_v21 }
  0x59   : > { %525 = vmatpush.bf16.msrb.mxu0 %v967_v30 }
  0x5c   : > { %526 = vmatmul.bf16.vlgmr.msrb.gmra.mxu0 %v799_v48  ;;  %508 = vmatmul.bf16.gmra.mxu3 %v831_v56  ;;  %v588_v48 = vld [vmem:[#allocation2 + $0x20] sm:$0xff] }
  0x5d   : > { %569 = vmatmul.bf16.gmra.mxu2 %v827_v55 }
  0x5e   : > { %541 = vmatmul.bf16.gmra.mxu1 %v835_v57 }
  0x6c   : > { %513 = vmatmul.bf16.gmra.mxu3 %v323_v0 }
  0x6d   : > { %574 = vmatmul.bf16.gmra.mxu2 %v839_v63 }
  0x6e   : > { %546 = vmatmul.bf16.gmra.mxu1 %v324_v1 }
  0x7d   : > { %579 = vmatmul.bf16.gmra.mxu2 %v325_v4 }
  0xb9   : > { %v494_v8 = vpop.f32.mrf.mxu0 }
  0xbb   : > { %v532_v5 = vpop.f32.mrf.mxu1 }
  0xbf   : > { %v499_v7 = vpop.f32.mrf.mxu3 }
  0xc0   : > { %v560_v6 = vpop.f32.mrf.mxu2  ;;  %v533_v13 = vadd.f32 %v532_v5, %v499_v7 }
  0xc1   : > { %v496_v14 = vpop.f32.mrf.mxu0 }
  0xc3   : > { %v534_v9 = vpop.f32.mrf.mxu1 }
  0xc7   : > { %v501_v11 = vpop.f32.mrf.mxu3 }
  0xc8   : > { %v562_v10 = vpop.f32.mrf.mxu2  ;;  %v535_v22 = vadd.f32 %v534_v9, %v501_v11 }
  0xcb   : > { %v537_v12 = vpop.f32.mrf.mxu1 }
  0xcf   : > { %v504_v18 = vpop.f32.mrf.mxu3 }
  0xd0   : > { %v565_v15 = vpop.f32.mrf.mxu2  ;;  %v538_v40 = vadd.f32 %v537_v12, %v504_v18 }
  0xd1   : > { %v566_v17 = vadd.f32 %v565_v15, %v533_v13 }
  0xd3   : > { %v595_v19 = vsub.f32 %v566_v17, %v586_v16  ;;  %v539_v20 = vpop.f32.mrf.mxu1 }
  0xd5   : > { %v604_v21 = vmul.f32 0.5, %v595_v19 }
  0xd7   : > { %v613_v23 = vadd.f32 %v604_v21, %v586_v16  ;;  %v506_v30 = vpop.f32.mrf.mxu3 }
  0xd8   : > { %v567_v26 = vpop.f32.mrf.mxu2  ;;  %v540_v2 = vadd.f32 %v539_v20, %v506_v30 }
  0xd9   : > { %v527_v24 = vpop.f32.mrf.mxu0  ;;  %vm622_vm1 = vcmp.ge.f32.partialorder %v613_v23, 1.0  ;;  %v568_v29 = vadd.f32 %v567_v26, %v535_v22 }
  0xda   : > { %v528_v25 = vadd.f32 %v527_v24, %v494_v8  ;;  %v938_v32 = vsel %vm622_vm1, 1.0, %v1052_v31 }
  0xdb   : > { %v649_v34 = vpack.c.bf16 %v938_v32, %v938_v32  ;;  %v668_v35 = vsub.f32 1.0, %v938_v32  ;;  %v596_v36 = vsub.f32 %v568_v29, %v587_v27  ;;  %v542_v38 = vpop.f32.mrf.mxu1 }
  0xdc   : > { %v561_v33 = vadd.f32 %v560_v6, %v528_v25  ;;  %v589_v6 = vld [vmem:[#allocation2 + $0x28] sm:$0xff] }
  0xdd   : > { %659 = vst.msk [vmem:[%s1094_s21 + $0x8] sm:$0xf] %vm656_vm2, %v649_v34  ;;  %v677_v39 = vmul.f32 %v668_v35, %v613_v23  ;;  %v605_v41 = vmul.f32 0.5, %v596_v36  ;;  %v590_v23 = vld [vmem:[#allocation2 + $0x30] sm:$0xff] }
  0xde   : > { %v593_v37 = vsub.f32 %v561_v33, %v584_v28 }
  0xdf   : > { %687 = vst.msk [vmem:[#allocation2 + $0x10] sm:$0xff] %vm684_vm3, %v677_v39  ;;  %v614_v43 = vadd.f32 %v605_v41, %v587_v27  ;;  %v509_v51 = vpop.f32.mrf.mxu3 }
  0xe0   : > { %v602_v42 = vmul.f32 0.5, %v593_v37  ;;  %v570_v47 = vpop.f32.mrf.mxu2  ;;  %v543_v18 = vadd.f32 %v542_v38, %v509_v51  ;;  %v591_v37 = vld [vmem:[#allocation2 + $0x38] sm:$0xff] }
  0xe1   : > { %v529_v44 = vpop.f32.mrf.mxu0  ;;  %vm623_vm4 = vcmp.ge.f32.partialorder %v614_v43, 1.0  ;;  %v571_v50 = vadd.f32 %v570_v47, %v538_v40 }
  0xe2   : > { %v611_v45 = vadd.f32 %v602_v42, %v584_v28  ;;  %v530_v46 = vadd.f32 %v529_v44, %v496_v14  ;;  %v939_v52 = vsel %vm623_vm4, 1.0, %v1052_v31 }
  0xe3   : > { %v650_v55 = vpack.c.bf16 %v939_v52, %v939_v52  ;;  %v669_v56 = vsub.f32 1.0, %v939_v52  ;;  %v597_v57 = vsub.f32 %v571_v50, %v588_v48  ;;  %v544_v61 = vpop.f32.mrf.mxu1 }
  0xe4   : > { %vm620_vm5 = vcmp.ge.f32.partialorder %v611_v45, 1.0  ;;  %v563_v53 = vadd.f32 %v562_v10, %v530_v46 }
  0xe5   : > { %v936_v54 = vsel %vm620_vm5, 1.0, %v1052_v31  ;;  %660 = vst.msk [vmem:[%s1094_s21 + $0xc] sm:$0xf] %vm656_vm2, %v650_v55  ;;  %v678_v62 = vmul.f32 %v669_v56, %v614_v43  ;;  %v606_v63 = vmul.f32 0.5, %v597_v57 }
  0xe6   : > { %v647_v58 = vpack.c.bf16 %v936_v54, %v936_v54  ;;  %v666_v59 = vsub.f32 1.0, %v936_v54  ;;  %v594_v60 = vsub.f32 %v563_v53, %v585_v49 }
  0xe7   : > { %688 = vst.msk [vmem:[#allocation2 + $0x18] sm:$0xff] %vm684_vm3, %v678_v62  ;;  %v615_v3 = vadd.f32 %v606_v63, %v588_v48  ;;  %v511_v8 = vpop.f32.mrf.mxu3 }
  0xe8   : > { %657 = vst.msk [vmem:[%s1094_s21] sm:$0xf] %vm656_vm2, %v647_v58  ;;  %v675_v0 = vmul.f32 %v666_v59, %v611_v45  ;;  %v603_v1 = vmul.f32 0.5, %v594_v60  ;;  %v572_v5 = vpop.f32.mrf.mxu2  ;;  %v545_v34 = vadd.f32 %v544_v61, %v511_v8 }
  0xe9   : > { %vm624_vm6 = vcmp.ge.f32.partialorder %v615_v3, 1.0  ;;  %v573_v7 = vadd.f32 %v572_v5, %v540_v2 }
  0xea   : > { %685 = vst.msk [vmem:[#allocation2] sm:$0xff] %vm684_vm3, %v675_v0  ;;  %v612_v4 = vadd.f32 %v603_v1, %v585_v49  ;;  %v940_v9 = vsel %vm624_vm6, 1.0, %v1052_v31  ;;  %v592_v49 = vld [vmem:[#allocation2 + $0x40] sm:$0xff] }
  0xeb   : > { %v651_v11 = vpack.c.bf16 %v940_v9, %v940_v9  ;;  %v670_v12 = vsub.f32 1.0, %v940_v9  ;;  %v598_v13 = vsub.f32 %v573_v7, %v589_v6  ;;  %v547_v16 = vpop.f32.mrf.mxu1 }
  0xec   : > { %vm621_vm7 = vcmp.ge.f32.partialorder %v612_v4, 1.0 }
  0xed   : > { %v937_v10 = vsel %vm621_vm7, 1.0, %v1052_v31  ;;  %661 = vst.msk [vmem:[%s1094_s21 + $0x10] sm:$0xf] %vm656_vm2, %v651_v11  ;;  %v679_v17 = vmul.f32 %v670_v12, %v615_v3  ;;  %v607_v19 = vmul.f32 0.5, %v598_v13 }
  0xee   : > { %v648_v14 = vpack.c.bf16 %v937_v10, %v937_v10  ;;  %v667_v15 = vsub.f32 1.0, %v937_v10 }
  0xef   : > { %689 = vst.msk [vmem:[#allocation2 + $0x20] sm:$0xff] %vm684_vm3, %v679_v17  ;;  %v616_v21 = vadd.f32 %v607_v19, %v589_v6  ;;  %v514_v25 = vpop.f32.mrf.mxu3 }
  0xf0   : > { %658 = vst.msk [vmem:[%s1094_s21 + $0x4] sm:$0xf] %vm656_vm2, %v648_v14  ;;  %v676_v20 = vmul.f32 %v667_v15, %v612_v4  ;;  %v575_v22 = vpop.f32.mrf.mxu2  ;;  %v548_v45 = vadd.f32 %v547_v16, %v514_v25 }
  0xf1   : > { %vm625_vm8 = vcmp.ge.f32.partialorder %v616_v21, 1.0  ;;  %v576_v24 = vadd.f32 %v575_v22, %v543_v18 }
  0xf2   : > { %686 = vst.msk [vmem:[#allocation2 + $0x8] sm:$0xff] %vm684_vm3, %v676_v20  ;;  %v941_v26 = vsel %vm625_vm8, 1.0, %v1052_v31 }
  0xf3   : > { %v652_v27 = vpack.c.bf16 %v941_v26, %v941_v26  ;;  %v671_v28 = vsub.f32 1.0, %v941_v26  ;;  %v599_v29 = vsub.f32 %v576_v24, %v590_v23  ;;  %v549_v30 = vpop.f32.mrf.mxu1 }
  0xf5   : > { %662 = vst.msk [vmem:[%s1094_s21 + $0x14] sm:$0xf] %vm656_vm2, %v652_v27  ;;  %v680_v32 = vmul.f32 %v671_v28, %v616_v21  ;;  %v608_v33 = vmul.f32 0.5, %v599_v29 }
  0xf7   : > { %690 = vst.msk [vmem:[#allocation2 + $0x28] sm:$0xff] %vm684_vm3, %v680_v32  ;;  %v617_v35 = vadd.f32 %v608_v33, %v590_v23  ;;  %v516_v39 = vpop.f32.mrf.mxu3 }
  0xf8   : > { %v577_v36 = vpop.f32.mrf.mxu2 }
  0xf9   : > { %vm626_vm9 = vcmp.ge.f32.partialorder %v617_v35, 1.0  ;;  %v578_v38 = vadd.f32 %v577_v36, %v545_v34 }
  0xfa   : > { %v942_v40 = vsel %vm626_vm9, 1.0, %v1052_v31 }
  0xfb   : > { %v653_v41 = vpack.c.bf16 %v942_v40, %v942_v40  ;;  %v672_v42 = vsub.f32 1.0, %v942_v40  ;;  %v600_v43 = vsub.f32 %v578_v38, %v591_v37 }
  0xfd   : > { %663 = vst.msk [vmem:[%s1094_s21 + $0x18] sm:$0xf] %vm656_vm2, %v653_v41  ;;  %v681_v44 = vmul.f32 %v672_v42, %v617_v35  ;;  %v609_v46 = vmul.f32 0.5, %v600_v43 }
  0xff   : > { %691 = vst.msk [vmem:[#allocation2 + $0x30] sm:$0xff] %vm684_vm3, %v681_v44  ;;  %v618_v47 = vadd.f32 %v609_v46, %v591_v37 }
 0x100   : > { %v580_v48 = vpop.f32.mrf.mxu2 }
 0x101   : > { %vm627_vm10 = vcmp.ge.f32.partialorder %v618_v47, 1.0  ;;  %v581_v50 = vadd.f32 %v580_v48, %v548_v45 }
 0x102   : > { %v943_v51 = vsel %vm627_vm10, 1.0, %v1052_v31 }
 0x103   : > { %v654_v52 = vpack.c.bf16 %v943_v51, %v943_v51  ;;  %v673_v53 = vsub.f32 1.0, %v943_v51  ;;  %v601_v54 = vsub.f32 %v581_v50, %v592_v49 }
 0x105   : > { %664 = vst.msk [vmem:[%s1094_s21 + $0x1c] sm:$0xf] %vm656_vm2, %v654_v52  ;;  %v682_v55 = vmul.f32 %v673_v53, %v618_v47  ;;  %v610_v56 = vmul.f32 0.5, %v601_v54 }
 0x107   : > { %692 = vst.msk [vmem:[#allocation2 + $0x38] sm:$0xff] %vm684_vm3, %v682_v55  ;;  %v619_v57 = vadd.f32 %v610_v56, %v592_v49 }
 0x108   : > { %v582_v58 = vpop.f32.mrf.mxu2 }
 0x109   : > { %vm628_vm11 = vcmp.ge.f32.partialorder %v619_v57, 1.0 }
 0x10a   : > { %v944_v59 = vsel %vm628_vm11, 1.0, %v1052_v31 }
 0x10b   : > { %v655_v60 = vpack.c.bf16 %v944_v59, %v944_v59  ;;  %v674_v61 = vsub.f32 1.0, %v944_v59 }
 0x10d   : > { %665 = vst.msk [vmem:[%s1094_s21 + $0x20] sm:$0xf] %vm656_vm2, %v655_v60  ;;  %v683_v62 = vmul.f32 %v674_v61, %v619_v57 }
 0x10f   : > { %693 = vst.msk [vmem:[#allocation2 + $0x40] sm:$0xff] %vm684_vm3, %v683_v62 }
 0x110 PF: > { %s12_s11 = sadd.s32 1, %s1049_s11   ;;  %s1242_s9 = smov %s1045_s10 }
 0x111   : > { %p9_p6 = scmp.ge.s32.totalorder %s12_s11, 6   ;;  %s1243_s10 = smov %s1245_s12 }
 0x113   :  { %11 = sbr.rel (!%p9_p6) target bundleno = 2 (0x2), region = 62 }

// kernel: all_conv_plif_snn_forward.12
= control target key start
LH: loop header
LB: loop body
LE: loop exit
PB: predicated region body
PF: predicated region fallthrough
CT: control target
= control target key end

     0   :  { %s1423_s9 = smov 0   ;;  %s1425_s10 = smov 0   ;;  %s1691_s0 = inlined_call_operand.vmem [shape: bf16[4,2,1152], index: 0, kind: input, shape index: {}]   ;;  %s1692_s1 = inlined_call_operand.vmem [shape: bf16[1152,128], index: 1, kind: input, shape index: {}]   ;;  %s1693_s2 = inlined_call_operand.vmem [shape: f32[4,2,64], index: 2, kind: output, shape index: {}]  }
   0x1   :  { %s1427_s11 = smov 0  }
   0x2 LB: > { %s21_s12 = sadd.s32 1, %s1400_s10  ;;  %p989_p0 = scmp.ge.s32.totalorder %s1404_s11, 1  ;;  %s1404_s11 = sphi %s1427_s11, %s12_s11   ;;  %s1400_s10 = sphi %s1425_s10, %s1695_s10   ;;  %s1396_s9 = sphi %s1423_s9, %s1694_s9  }
   0x3   : > { %p22_p1 = scmp.ge.s32.totalorder %s21_s12, 4  ;;  %p131_p2 = scmp.lt.s32.totalorder %s1404_s11, 5 }
   0x5   : > { %s1697_s12 = smov (%p22_p1, %s21_s12), 0  ;;  %p132_p3 = pnand %p989_p0, %p131_p2 }
   0x6   : > { %p158_p4 = scmp.lt.s32.totalorder (!%p132_p3), %s1396_s9, 3  ;;  %p991_p5 = scmp.ne.s32.totalorder (!%p132_p3), %s1396_s9, 0 }
   0x7   : > { %135 = sbr.rel (%p132_p3) target bundleno = 257 (0x101), region = 28 }
   0xc   : > { %s159_s13 = scalar_select %p158_p4, %s1396_s9, 3 }
   0xd   : > { %176 = sbr.rel (%p991_p5) target bundleno = 20 (0x14), region = 32 }
   0xe   : > { %s1355_s14 = smul.u32 9, %s159_s13  ;;  %s990_s15 = sshll.u32 %s159_s13, 1 }
   0xf   : > { %s1444_s18 = scalar_lea.vmem %s1693_s2, %s990_s15 }
  0x10   : > { %s1449_s21 = scalar_lea.vmem %s1691_s0, %s1355_s14 }
  0x12   : > { %vm177_vm0 = vcmask 517120   ;;  %v1406_v0 = vmov 0.0  }
  0x13   : > { %178 = vst.msk [vmem:[#allocation2] sm:$0x3] %vm177_vm0, %v1406_v0 }
  0x14 PF: > { %v1290_v1 = vld [vmem:[%s1692_s1 + $0x38] sm:$0xff]  ;;  %v1289_v5 = vld [vmem:[%s1692_s1 + $0x30] sm:$0xff]  ;;  %v1288_v9 = vld [vmem:[%s1692_s1 + $0x28] sm:$0xff]  ;;  %vm903_vm1 = vcmask 517120  }
  0x15   : > { %v1306_v2 = vld [vmem:[%s1692_s1 + $0xb8] sm:$0xff]  ;;  %779 = vmatpush.bf16.msra.mxu0 %v1290_v1  ;;  %v1305_v6 = vld [vmem:[%s1692_s1 + $0xb0] sm:$0xff]  ;;  %v1304_v10 = vld [vmem:[%s1692_s1 + $0xa8] sm:$0xff] }
  0x16   : > { %v1314_v3 = vld [vmem:[%s1692_s1 + $0xf8] sm:$0xff]  ;;  %805 = vmatpush.bf16.msra.mxu2 %v1306_v2  ;;  %v1313_v7 = vld [vmem:[%s1692_s1 + $0xf0] sm:$0xff]  ;;  %v1312_v11 = vld [vmem:[%s1692_s1 + $0xe8] sm:$0xff] }
  0x17   : > { %v1298_v4 = vld [vmem:[%s1692_s1 + $0x78] sm:$0xff]  ;;  %818 = vmatpush.bf16.msra.mxu3 %v1314_v3  ;;  %v1297_v8 = vld [vmem:[%s1692_s1 + $0x70] sm:$0xff]  ;;  %v1296_v12 = vld [vmem:[%s1692_s1 + $0x68] sm:$0xff] }
  0x18   : > { %792 = vmatpush.bf16.msra.mxu1 %v1298_v4  ;;  %v1287_v13 = vld [vmem:[%s1692_s1 + $0x20] sm:$0xff]  ;;  %v1286_v17 = vld [vmem:[%s1692_s1 + $0x18] sm:$0xff]  ;;  %v1285_v22 = vld [vmem:[%s1692_s1 + $0x10] sm:$0xff] }
  0x19   : > { %780 = vmatpush.bf16.msra.mxu0 %v1289_v5  ;;  %v1303_v14 = vld [vmem:[%s1692_s1 + $0xa0] sm:$0xff]  ;;  %v1302_v18 = vld [vmem:[%s1692_s1 + $0x98] sm:$0xff]  ;;  %v1301_v23 = vld [vmem:[%s1692_s1 + $0x90] sm:$0xff] }
  0x1a   : > { %806 = vmatpush.bf16.msra.mxu2 %v1305_v6  ;;  %v1311_v15 = vld [vmem:[%s1692_s1 + $0xe0] sm:$0xff]  ;;  %v1310_v19 = vld [vmem:[%s1692_s1 + $0xd8] sm:$0xff]  ;;  %v1309_v24 = vld [vmem:[%s1692_s1 + $0xd0] sm:$0xff] }
  0x1b   : > { %819 = vmatpush.bf16.msra.mxu3 %v1313_v7  ;;  %v1295_v16 = vld [vmem:[%s1692_s1 + $0x60] sm:$0xff]  ;;  %v1294_v20 = vld [vmem:[%s1692_s1 + $0x58] sm:$0xff]  ;;  %v1293_v25 = vld [vmem:[%s1692_s1 + $0x50] sm:$0xff] }
  0x1c   : > { %793 = vmatpush.bf16.msra.mxu1 %v1297_v8  ;;  %v179_v21 = vld [vmem:[%s1449_s21] sm:$0xff]  ;;  %v1284_v26 = vld [vmem:[%s1692_s1 + $0x8] sm:$0xff]  ;;  %v1322_v32 = vld [vmem:[%s1692_s1 + $0x138] sm:$0xff] }
  0x1d   : > { %781 = vmatpush.bf16.msra.mxu0 %v1288_v9  ;;  %326 = vst [vmem:[#allocation1] ss:$9 sm:$0xff] %v179_v21  ;;  %v1300_v27 = vld [vmem:[%s1692_s1 + $0x88] sm:$0xff]  ;;  %v1283_v30 = vld [vmem:[%s1692_s1] sm:$0xff]  ;;  %v1338_v33 = vld [vmem:[%s1692_s1 + $0x1b8] sm:$0xff] }
  0x1e   : > { %807 = vmatpush.bf16.msra.mxu2 %v1304_v10  ;;  %v1308_v28 = vld [vmem:[%s1692_s1 + $0xc8] sm:$0xff]  ;;  %v1299_v31 = vld [vmem:[%s1692_s1 + $0x80] sm:$0xff]  ;;  %v1346_v36 = vld [vmem:[%s1692_s1 + $0x1f8] sm:$0xff] }
  0x1f   : > { %820 = vmatpush.bf16.msra.mxu3 %v1312_v11  ;;  %v1292_v29 = vld [vmem:[%s1692_s1 + $0x48] sm:$0xff]  ;;  %v1307_v34 = vld [vmem:[%s1692_s1 + $0xc0] sm:$0xff]  ;;  %v1330_v37 = vld [vmem:[%s1692_s1 + $0x178] sm:$0xff] }
  0x20   : > { %794 = vmatpush.bf16.msra.mxu1 %v1296_v12  ;;  %v1291_v35 = vld [vmem:[%s1692_s1 + $0x40] sm:$0xff]  ;;  %v1321_v38 = vld [vmem:[%s1692_s1 + $0x130] sm:$0xff]  ;;  %v180_v47 = vld [vmem:[%s1449_s21 + $0x8] sm:$0x1] }
  0x21   : > { %782 = vmatpush.bf16.msra.mxu0 %v1287_v13  ;;  %v1337_v39 = vld [vmem:[%s1692_s1 + $0x1b0] sm:$0xff]  ;;  %v1320_v51 = vld [vmem:[%s1692_s1 + $0x128] sm:$0xff]  ;;  %v1319_v55 = vld [vmem:[%s1692_s1 + $0x120] sm:$0xff] }
  0x22   : > { %808 = vmatpush.bf16.msra.mxu2 %v1303_v14  ;;  %v1345_v40 = vld [vmem:[%s1692_s1 + $0x1f0] sm:$0xff]  ;;  %v1336_v52 = vld [vmem:[%s1692_s1 + $0x1a8] sm:$0xff]  ;;  %v1335_v56 = vld [vmem:[%s1692_s1 + $0x1a0] sm:$0xff] }
  0x23   : > { %821 = vmatpush.bf16.msra.mxu3 %v1311_v15  ;;  %v1329_v41 = vld [vmem:[%s1692_s1 + $0x170] sm:$0xff]  ;;  %v1344_v53 = vld [vmem:[%s1692_s1 + $0x1e8] sm:$0xff]  ;;  %v1343_v57 = vld [vmem:[%s1692_s1 + $0x1e0] sm:$0xff] }
  0x24   : > { %795 = vmatpush.bf16.msra.mxu1 %v1295_v16  ;;  %v329_v42 = vld [vmem:[#allocation1 + $0x12] sm:$0xff]  ;;  %v327_v43 = vld [vmem:[#allocation1] sm:$0xff]  ;;  %v328_v45 = vld [vmem:[#allocation1 + $0x9] sm:$0xff] }
  0x25   : > { %783 = vmatpush.bf16.msra.mxu0 %v1286_v17  ;;  %v330_v44 = vld [vmem:[#allocation1 + $0x1b] sm:$0xff]  ;;  %v1575_v48 = vld [vmem:[#allocation1 + $0x24] sm:$0xff]  ;;  %v1579_v50 = vld [vmem:[#allocation1 + $0x2d] sm:$0xff] }
  0x26   : > { %809 = vmatpush.bf16.msra.mxu2 %v1302_v18  ;;  %v1572_v46 = vld [vmem:[#allocation1 + $0x36] sm:$0xff]  ;;  %v1577_v49 = vld [vmem:[#allocation1 + $0x3f] sm:$0xff]  ;;  %v1328_v54 = vld [vmem:[%s1692_s1 + $0x168] sm:$0xff] }
  0x27   : > { %822 = vmatpush.bf16.msra.mxu3 %v1310_v19  ;;  %336 = vst [vmem:[#allocation1] ss:$9 sm:$0xff] %v180_v47  ;;  %v1327_v58 = vld [vmem:[%s1692_s1 + $0x160] sm:$0xff]  ;;  %v1318_v59 = vld [vmem:[%s1692_s1 + $0x118] sm:$0xff]  ;;  %v1317_v63 = vld [vmem:[%s1692_s1 + $0x110] sm:$0xff] }
  0x28   : > { %796 = vmatpush.bf16.msra.mxu1 %v1294_v20  ;;  %v1334_v60 = vld [vmem:[%s1692_s1 + $0x198] sm:$0xff]  ;;  %v1333_v0 = vld [vmem:[%s1692_s1 + $0x190] sm:$0xff]  ;;  %v1316_v3 = vld [vmem:[%s1692_s1 + $0x108] sm:$0xff] }
  0x29   : > { %784 = vmatpush.bf16.msra.mxu0 %v1285_v22  ;;  %v1342_v61 = vld [vmem:[%s1692_s1 + $0x1d8] sm:$0xff]  ;;  %v1341_v1 = vld [vmem:[%s1692_s1 + $0x1d0] sm:$0xff]  ;;  %v1332_v4 = vld [vmem:[%s1692_s1 + $0x188] sm:$0xff] }
  0x2a   : > { %810 = vmatpush.bf16.msra.mxu2 %v1301_v23  ;;  %v1326_v62 = vld [vmem:[%s1692_s1 + $0x158] sm:$0xff]  ;;  %v1325_v2 = vld [vmem:[%s1692_s1 + $0x150] sm:$0xff]  ;;  %v1340_v5 = vld [vmem:[%s1692_s1 + $0x1c8] sm:$0xff] }
  0x2b   : > { %823 = vmatpush.bf16.msra.mxu3 %v1309_v24  ;;  %v1324_v6 = vld [vmem:[%s1692_s1 + $0x148] sm:$0xff]  ;;  %v1315_v7 = vld [vmem:[%s1692_s1 + $0x100] sm:$0xff]  ;;  %v1354_v9 = vld [vmem:[%s1692_s1 + $0x238] sm:$0xff] }
  0x2c   : > { %797 = vmatpush.bf16.msra.mxu1 %v1293_v25  ;;  %v1331_v8 = vld [vmem:[%s1692_s1 + $0x180] sm:$0xff]  ;;  %v1353_v12 = vld [vmem:[%s1692_s1 + $0x230] sm:$0xff]  ;;  %v1352_v13 = vld [vmem:[%s1692_s1 + $0x228] sm:$0xff] }
  0x2d   : > { %785 = vmatpush.bf16.msra.mxu0 %v1284_v26  ;;  %v1339_v10 = vld [vmem:[%s1692_s1 + $0x1c0] sm:$0xff]  ;;  %v1350_v15 = vld [vmem:[%s1692_s1 + $0x218] sm:$0xff]  ;;  %v1349_v16 = vld [vmem:[%s1692_s1 + $0x210] sm:$0xff] }
  0x2e   : > { %811 = vmatpush.bf16.msra.mxu2 %v1300_v27  ;;  %v1323_v11 = vld [vmem:[%s1692_s1 + $0x140] sm:$0xff]  ;;  %v1348_v17 = vld [vmem:[%s1692_s1 + $0x208] sm:$0xff] }
  0x2f   : > { %824 = vmatpush.bf16.msra.mxu3 %v1308_v28  ;;  %v1351_v14 = vld [vmem:[%s1692_s1 + $0x220] sm:$0xff] }
  0x30   : > { %798 = vmatpush.bf16.msra.mxu1 %v1292_v29  ;;  %v1347_v18 = vld [vmem:[%s1692_s1 + $0x200] sm:$0xff] }
  0x31   : > { %786 = vmatpush.bf16.msra.mxu0 %v1283_v30  ;;  %v337_v19 = vld [vmem:[#allocation1] sm:$0xff] }
  0x32   : > { %812 = vmatpush.bf16.msra.mxu2 %v1299_v31 }
  0x33   : > { %825 = vmatpush.bf16.msra.mxu3 %v1307_v34 }
  0x34   : > { %799 = vmatpush.bf16.msra.mxu1 %v1291_v35  ;;  %787 = vmatmul.bf16.vlgmr.msra.gmra.mxu0 %v327_v43 }
  0x35   : > { %831 = vmatpush.bf16.msrb.mxu0 %v1322_v32  ;;  %813 = vmatmul.bf16.vlgmr.msra.gmra.mxu2 %v329_v42 }
  0x36   : > { %857 = vmatpush.bf16.msrb.mxu2 %v1338_v33  ;;  %826 = vmatmul.bf16.vlgmr.msra.gmra.mxu3 %v330_v44  ;;  %v896_v44 = vld [vmem:[#allocation2] sm:$0x3] }
  0x37   : > { %870 = vmatpush.bf16.msrb.mxu3 %v1346_v36  ;;  %800 = vmatmul.bf16.vlgmr.msra.gmra.mxu1 %v328_v45 }
  0x38   : > { %844 = vmatpush.bf16.msrb.mxu1 %v1330_v37 }
  0x39   : > { %832 = vmatpush.bf16.msrb.mxu0 %v1321_v38 }
  0x3a   : > { %858 = vmatpush.bf16.msrb.mxu2 %v1337_v39 }
  0x3b   : > { %871 = vmatpush.bf16.msrb.mxu3 %v1345_v40 }
  0x3c   : > { %845 = vmatpush.bf16.msrb.mxu1 %v1329_v41 }
  0x3d   : > { %833 = vmatpush.bf16.msrb.mxu0 %v1320_v51 }
  0x3e   : > { %859 = vmatpush.bf16.msrb.mxu2 %v1336_v52 }
  0x3f   : > { %872 = vmatpush.bf16.msrb.mxu3 %v1344_v53 }
  0x40   : > { %846 = vmatpush.bf16.msrb.mxu1 %v1328_v54 }
  0x41   : > { %834 = vmatpush.bf16.msrb.mxu0 %v1319_v55 }
  0x42   : > { %860 = vmatpush.bf16.msrb.mxu2 %v1335_v56 }
  0x43   : > { %873 = vmatpush.bf16.msrb.mxu3 %v1343_v57 }
  0x44   : > { %847 = vmatpush.bf16.msrb.mxu1 %v1327_v58 }
  0x45   : > { %835 = vmatpush.bf16.msrb.mxu0 %v1318_v59 }
  0x46   : > { %861 = vmatpush.bf16.msrb.mxu2 %v1334_v60 }
  0x47   : > { %874 = vmatpush.bf16.msrb.mxu3 %v1342_v61 }
  0x48   : > { %848 = vmatpush.bf16.msrb.mxu1 %v1326_v62 }
  0x49   : > { %836 = vmatpush.bf16.msrb.mxu0 %v1317_v63 }
  0x4a   : > { %862 = vmatpush.bf16.msrb.mxu2 %v1333_v0 }
  0x4b   : > { %875 = vmatpush.bf16.msrb.mxu3 %v1341_v1 }
  0x4c   : > { %849 = vmatpush.bf16.msrb.mxu1 %v1325_v2 }
  0x4d   : > { %837 = vmatpush.bf16.msrb.mxu0 %v1316_v3 }
  0x4e   : > { %863 = vmatpush.bf16.msrb.mxu2 %v1332_v4 }
  0x4f   : > { %876 = vmatpush.bf16.msrb.mxu3 %v1340_v5 }
  0x50   : > { %850 = vmatpush.bf16.msrb.mxu1 %v1324_v6 }
  0x51   : > { %838 = vmatpush.bf16.msrb.mxu0 %v1315_v7 }
  0x52   : > { %864 = vmatpush.bf16.msrb.mxu2 %v1331_v8 }
  0x53   : > { %877 = vmatpush.bf16.msrb.mxu3 %v1339_v10 }
  0x54   : > { %851 = vmatpush.bf16.msrb.mxu1 %v1323_v11  ;;  %839 = vmatmul.bf16.vlgmr.msrb.gmra.mxu0 %v1575_v48 }
  0x55   : > { %883 = vmatpush.bf16.msra.mxu0 %v1354_v9  ;;  %865 = vmatmul.bf16.vlgmr.msrb.gmra.mxu2 %v1572_v46 }
  0x56   : > { %878 = vmatmul.bf16.vlgmr.msrb.gmra.mxu3 %v1577_v49 }
  0x57   : > { %852 = vmatmul.bf16.vlgmr.msrb.gmra.mxu1 %v1579_v50  ;;  %v1407_v50 = vmov 0.0  }
  0x59   : > { %884 = vmatpush.bf16.msra.mxu0 %v1353_v12 }
  0x5d   : > { %885 = vmatpush.bf16.msra.mxu0 %v1352_v13 }
  0x61   : > { %886 = vmatpush.bf16.msra.mxu0 %v1351_v14 }
  0x65   : > { %887 = vmatpush.bf16.msra.mxu0 %v1350_v15 }
  0x69   : > { %888 = vmatpush.bf16.msra.mxu0 %v1349_v16 }
  0x6d   : > { %889 = vmatpush.bf16.msra.mxu0 %v1348_v17 }
  0x71   : > { %890 = vmatpush.bf16.msra.mxu0 %v1347_v18 }
  0x74   : > { %891 = vmatmul.bf16.vlgmr.msra.gmra.mxu0 %v337_v19 }
  0xb1   : > { %v788_v20 = vpop.f32.mrf.mxu0 }
  0xb4   : > { %v801_v21 = vpop.f32.mrf.mxu1 }
  0xb5   : > { %v802_v30 = vadd.f32 %v801_v21, %v788_v20 }
  0xb8   : > { %v814_v22 = vpop.f32.mrf.mxu2 }
  0xb9   : > { %v827_v23 = vpop.f32.mrf.mxu3  ;;  %v790_v24 = vpop.f32.mrf.mxu0  ;;  %v815_v32 = vadd.f32 %v814_v22, %v802_v30 }
  0xbb   : > { %v828_v36 = vadd.f32 %v827_v23, %v815_v32 }
  0xbc   : > { %v803_v25 = vpop.f32.mrf.mxu1 }
  0xc0   : > { %v816_v26 = vpop.f32.mrf.mxu2 }
  0xc1   : > { %v829_v27 = vpop.f32.mrf.mxu3 }
  0xd1   : > { %v840_v28 = vpop.f32.mrf.mxu0 }
  0xd2   : > { %v841_v38 = vadd.f32 %v840_v28, %v828_v36 }
  0xd4   : > { %v853_v29 = vpop.f32.mrf.mxu1 }
  0xd5   : > { %v854_v40 = vadd.f32 %v853_v29, %v841_v38 }
  0xd8   : > { %v866_v31 = vpop.f32.mrf.mxu2 }
  0xd9   : > { %v879_v33 = vpop.f32.mrf.mxu3  ;;  %v842_v34 = vpop.f32.mrf.mxu0  ;;  %v867_v41 = vadd.f32 %v866_v31, %v854_v40 }
  0xdb   : > { %v880_v42 = vadd.f32 %v879_v33, %v867_v41 }
  0xdc   : > { %v855_v35 = vpop.f32.mrf.mxu1 }
  0xe0   : > { %v868_v37 = vpop.f32.mrf.mxu2 }
  0xe1   : > { %v881_v39 = vpop.f32.mrf.mxu3 }
  0xf1   : > { %v892_v43 = vpop.f32.mrf.mxu0 }
  0xf2   : > { %v893_v45 = vadd.f32 %v892_v43, %v880_v42 }
  0xf4   : > { %v897_v46 = vsub.f32 %v893_v45, %v896_v44 }
  0xf6   : > { %v898_v47 = vmul.f32 0.5, %v897_v46 }
  0xf8   : > { %v899_v48 = vadd.f32 %v898_v47, %v896_v44 }
  0xf9   : > { %v894_v49 = vpop.f32.mrf.mxu0 }
  0xfa   : > { %vm900_vm2 = vcmp.ge.f32.partialorder %v899_v48, 1.0 }
  0xfb   : > { %v1280_v51 = vsel %vm900_vm2, 1.0, %v1407_v50 }
  0xfc   : > { %904 = vst.msk [vmem:[%s1444_s18] sm:$0x3] %vm903_vm1, %v1280_v51  ;;  %v905_v52 = vsub.f32 1.0, %v1280_v51 }
  0xfe   : > { %v906_v53 = vmul.f32 %v905_v52, %v899_v48 }
 0x100   : > { %907 = vst.msk [vmem:[#allocation2] sm:$0x3] %vm903_vm1, %v906_v53 }
 0x101 PF: > { %s12_s11 = sadd.s32 1, %s1404_s11   ;;  %s1694_s9 = smov %s1400_s10 }
 0x102   : > { %p9_p6 = scmp.ge.s32.totalorder %s12_s11, 6   ;;  %s1695_s10 = smov %s1697_s12 }
 0x104   :  { %11 = sbr.rel (!%p9_p6) target bundleno = 2 (0x2), region = 62 }

// kernel: all_conv_plif_snn_forward.13
= control target key start
LH: loop header
LB: loop body
LE: loop exit
PB: predicated region body
PF: predicated region fallthrough
CT: control target
= control target key end

     0   :  { %7 = vsyncpa [#allocation4], 0  ;;  %s683_s0 = inlined_call_operand.vmem [shape: bf16[4,2,128], index: 0, kind: input, shape index: {}]   ;;  %s684_s1 = inlined_call_operand.vmem [shape: bf16[128,128], index: 1, kind: input, shape index: {}]   ;;  %s685_s2 = inlined_call_operand.hbm [shape: f32[4,2,12], index: 2, kind: output, shape index: {}]  }
   0x1   :  { %9 = vsyncpa [#allocation4 + $0x1], 0  ;;  %s548_s9 = smov 0   ;;  %s550_s10 = smov 0  }
   0x2   :  { %s552_s11 = smov 0   ;;  %s554_s12 = smov 0  }
   0x3   :  { %s556_s13 = smov 0   ;;  %s558_s14 = smov 0  }
   0x4 LB: > { %s342_s15 = sadd.s32 4294967295, %s529_s14   ;;  %s343_s16 = sadd.s32 4294967294, %s529_s14   ;;  %s529_s14 = sphi %s558_s14, %s15_s14   ;;  %s525_s13 = sphi %s556_s13, %s692_s13   ;;  %s521_s12 = sphi %s554_s12, %s691_s12   ;;  %s517_s11 = sphi %s552_s11, %s690_s11   ;;  %s513_s10 = sphi %s550_s10, %s689_s10   ;;  %s509_s9 = sphi %s548_s9, %s688_s9  }
   0x5   : > { %s24_s17 = sadd.s32 1, %s525_s13  ;;  %s85_s18 = sadd.s32 1, %s517_s11 }
   0x6   : > { %p25_p0 = scmp.ge.s32.totalorder %s24_s17, 4  ;;  %p95_p1 = scmp.ne.s32.totalorder %s517_s11, %s513_s10 }
   0x7   : > { %p96_p2 = scmp.eq.s32.totalorder %s342_s15, 3  ;;  %p101_p3 = scmp.ne.s32.totalorder %s513_s10, %s509_s9 }
   0x8   : > { %s694_s17 = smov (%p25_p0, %s24_s17), 0  ;;  %p102_p5 = scmp.eq.s32.totalorder %s343_s16, 3 }
   0x9   : > { %p588_p4 = por %p96_p2, %p95_p1  ;;  %s80_s20 = ssub.s32 %s525_s13, %s694_s17 }
   0xa   : > { %p346_p6 = scmp.ge.s32.totalorder %s529_s14, 1  ;;  %p83_p7 = scmp.eq.s32.totalorder %s80_s20, 0 }
   0xb   : > { %p595_p8 = por %p102_p5, %p101_p3  ;;  %p132_p9 = scmp.lt.s32.totalorder %s529_s14, 5 }
   0xc   : > { %s601_s22 = scalar_select %p83_p7, %s517_s11, %s85_s18  }
   0xd   : > { %p133_p10 = pnand %p346_p6, %p132_p9 }
   0xe   : > { %s152_s23 = sand.u32 (!%p133_p10), 1, %s513_s10   ;;  %p155_p11 = scmp.lt.s32.totalorder (!%p133_p10), %s521_s12, 3 }
   0xf   : > { %136 = sbr.rel (%p133_p10) target bundleno = 199 (0xc7), region = 28  ;;  %s607_s24 = sshll.u32 (!%p133_p10), %s152_s23, 1 }
  0x10   : > { %s154_s29 = scalar_lea.vmem (!%p133_p10), [#allocation3], %s607_s24  ;;  %p348_p12 = scmp.ne.s32.totalorder (!%p133_p10), %s521_s12, 0 }
  0x14   : > { %s156_s25 = scalar_select %p155_p11, %s521_s12, 3 }
  0x15   : > { %164 = sbr.rel (%p348_p12) target bundleno = 28 (0x1c), region = 32 }
  0x16   : > { %s160_s28 = scalar_lea.vmem %s683_s0, %s156_s25 }
  0x1a   : > { %vm165_vm0 = vcmask 91136   ;;  %v531_v0 = vmov 0.0  }
  0x1b   : > { %166 = vst.msk [vmem:[#allocation2] sm:$0x3] %vm165_vm0, %v531_v0 }
  0x1c PF: > { %v393_v1 = vld [vmem:[%s684_s1 + $0x38] sm:$0xff]  ;;  %v392_v2 = vld [vmem:[%s684_s1 + $0x30] sm:$0xff]  ;;  %v391_v3 = vld [vmem:[%s684_s1 + $0x28] sm:$0xff]  ;;  %s383_s4 = sshll.u32 %s521_s12, 1  ;;  %s271_s8 = sshll.u32 %s154_s29, 4  ;;  %vm252_vm1 = vcmask 91136   ;;  %s272_s8 = int_to_ptr.vmem [resolvable:$true] %s271_s8 }
  0x1d   : > { %232 = vmatpush.bf16.msra.mxu0 %v393_v1  ;;  %v390_v4 = vld [vmem:[%s684_s1 + $0x20] sm:$0xff]  ;;  %v389_v5 = vld [vmem:[%s684_s1 + $0x18] sm:$0xff]  ;;  %v388_v6 = vld [vmem:[%s684_s1 + $0x10] sm:$0xff]  ;;  %s269_s7 = scalar_lea.hbm %s685_s2, %s383_s4  ;;  %v532_v16 = vmov 0.0   ;;  %s258_s12 = scalar_lea.sflag [#allocation4], %s152_s23 }
  0x1e   : > { %v387_v7 = vld [vmem:[%s684_s1 + $0x8] sm:$0xff]  ;;  %v386_v8 = vld [vmem:[%s684_s1] sm:$0xff]  ;;  %s273_s15 = sshll.u32 %s269_s7, 4  ;;  %s471_s25 = scalar_lea.hbm %s685_s2, 8  ;;  %s274_s15 = int_to_ptr.hbm [resolvable:$true] %s273_s15 }
  0x1f   : > { %v167_v9 = vld [vmem:[%s160_s28] sm:$0x1]  ;;  %s465_s28 = sshra.s32 %s274_s15, 4  ;;  %s466_s28 = int_to_ptr.hbm [resolvable:$true] %s465_s28 }
  0x20   : > { %s467_s16 = scalar_lea.hbm %s466_s28, 2  ;;  %p472_p2 = scmp.lt.s32.totalorder %s466_s28, %s685_s2 }
  0x21   : > { %233 = vmatpush.bf16.msra.mxu0 %v392_v2  ;;  %p468_p13 = scmp.ne.s32.totalorder %s466_s28, %s467_s16  ;;  %p473_p3 = scmp.lt.s32.totalorder %s471_s25, %s467_s16 }
  0x22   : > { %v245_v10 = vld [vmem:[#allocation2] sm:$0x3] }
  0x23   : > { %p469_p0 = pnand %p468_p13, %p588_p4  ;;  %p474_p5 = por %p473_p3, %p472_p2 }
  0x25   : > { %234 = vmatpush.bf16.msra.mxu0 %v391_v3  ;;  %p470_p1 = pneg %p469_p0 }
  0x27   : > { %p475_p6 = pnand %p474_p5, %p470_p1 }
  0x29   : > { %235 = vmatpush.bf16.msra.mxu0 %v390_v4 }
  0x2d   : > { %236 = vmatpush.bf16.msra.mxu0 %v389_v5 }
  0x31   : > { %237 = vmatpush.bf16.msra.mxu0 %v388_v6 }
  0x35   : > { %238 = vmatpush.bf16.msra.mxu0 %v387_v7 }
  0x39   : > { %239 = vmatpush.bf16.msra.mxu0 %v386_v8 }
  0x3c   : > { %240 = vmatmul.bf16.vlgmr.msra.gmra.mxu0 %v167_v9 }
  0xb9   : > { %v241_v11 = vpop.f32.mrf.mxu0 }
  0xba   : > { %v246_v12 = vsub.f32 %v241_v11, %v245_v10 }
  0xbc   : > { %v247_v13 = vmul.f32 0.5, %v246_v12 }
  0xbe   : > { %v248_v14 = vadd.f32 %v247_v13, %v245_v10 }
  0xc0   : > { %vm249_vm2 = vcmp.ge.f32.partialorder %v248_v14, 1.0 }
  0xc1   : > { %v243_v15 = vpop.f32.mrf.mxu0  ;;  %v381_v17 = vsel %vm249_vm2, 1.0, %v532_v16 }
  0xc2   : > { %253 = vst.msk [vmem:[%s154_s29] sm:$0x3] %vm252_vm1, %v381_v17  ;;  %v254_v18 = vsub.f32 1.0, %v381_v17 }
  0xc3   : > { %478 = shalt.err (!%p475_p6)
}
  0xc4   : > { %394 = dma.vmem_to_hbm [thread:$0]  (%p588_p4), %s272_s8, 32, %s274_s15, %s258_s12   ;;  %v255_v19 = vmul.f32 %v254_v18, %v248_v14 }
  0xc6   : > { %256 = vst.msk [vmem:[#allocation2] sm:$0x3] %vm252_vm1, %v255_v19 }
  0xc7 PF: > { %p400_p7 = scmp.ge.s32.totalorder %s529_s14, 2  ;;  %s285_s23 = sand.u32 1, %s509_s9  }
  0xc8   : > { %s286_s24 = scalar_lea.sflag [#allocation4], %s285_s23 }
  0xc9   : > { %p397_p9 = pnand %p400_p7, %p595_p8 }
  0xcb   : > { %p398_p10 = pneg %p397_p9 }
  0xcd   : > { %504 = dma.done.wait (%p398_p10), %s286_s24, 32  }
  0xce   : > { %506 = vsyncadd (%p398_p10), %s286_s24, 4294967264  ;;  %s15_s14 = sadd.s32 1, %s529_s14   ;;  %s688_s9 = smov %s513_s10 }
  0xcf   : > { %p12_p11 = scmp.ge.s32.totalorder %s15_s14, 6   ;;  %s689_s10 = smov %s517_s11 }
  0xd0   : > { %s690_s11 = smov %s601_s22  ;;  %s691_s12 = smov %s525_s13 }
  0xd1   : > { %s692_s13 = smov %s694_s17  ;;  %14 = sbr.rel (!%p12_p11) target bundleno = 4 (0x4), region = 67 }
  0xd6   :  { %292 = vsyncpa [#allocation4], 1 }
  0xd7   :  { %294 = vsyncpa [#allocation4 + $0x1], 1 }

</bundles_post_ra>
